<compile_context>
chip_gen: v6e
topology: v6e:2x2x1
jax: 0.10.0
libtpu: 0.0.40
codegen_flags: <defaults>
</compile_context>

<pallas_src>
import functools

import jax
import jax.numpy as jnp
from jax import lax
from jax.experimental import pallas as pl
from jax.experimental.pallas import tpu as pltpu

LANE = 128


def _rup(n, m=LANE):
  return ((n + m - 1) // m) * m


def _pad2(a, rows, cols, dtype):
  out = jnp.zeros((rows, cols), dtype)
  return out.at[:a.shape[0], :a.shape[1]].set(a.astype(dtype))


def _pick_batch_tile(batch, seq_len, target_rows=256):
  """Largest divisor of `batch` whose tile keeps <= target_rows matmul rows."""
  bt = 1
  for c in range(1, batch + 1):
    if batch % c == 0 and c * seq_len <= target_rows:
      bt = c
  return bt


# ---------------------------------------------------------------------------
# Fused Pallas kernel: full TCN stack + attention head for one batch tile.
#
# refs = [x_ref, <per-block weights...>, uwT_ref, fw_ref, fb_ref, y_ref, (shift_scratch)]
# Per block (static order): [w1_0?] w1_1 b1 [w2_0?] w2_1 b2 [wd? bd?]
#   (w*_0 present only when dilation < seq_len; wd/bd only when in_c != out_c)
# Conv weights / U^T are bf16; biases, final.weight, final.bias are f32.
# ---------------------------------------------------------------------------
def _tcn_fused_kernel(*refs, meta, bt, seq_len, pad_rows, has_scratch):
  T = seq_len
  if has_scratch:
    shift_ref = refs[-1]
    y_ref = refs[-2]
    in_refs = refs[:-2]
  else:
    shift_ref = None
    y_ref = refs[-1]
    in_refs = refs[:-1]

  x_ref = in_refs[0]
  wpos = [1]

  def nxt():
    r = in_refs[wpos[0]]
    wpos[0] += 1
    return r

  if has_scratch:
    # Rows [0, pad_rows) of the scratch are never written again -> permanent
    # causal zero pad for every dilation < T.
    shift_ref[...] = jnp.zeros_like(shift_ref)

  def shifted(v2d, d):
    """Return v shifted down by d timesteps within each batch segment (zero fill)."""
    c = v2d.shape[1]
    shift_ref[:, pad_rows:pad_rows + T, :c] = v2d.reshape(bt, T, c)
    return shift_ref[:, pad_rows - d:pad_rows - d + T, :c].reshape(bt * T, c)

  def conv(v2d, d, use_w0, w0, w1, b):
    # out[t] = W0 @ x[t-d] + W1 @ x[t] + b   (W0 term dropped when d >= T)
    acc = jnp.dot(v2d.astype(jnp.bfloat16), w1[...],
                  preferred_element_type=jnp.float32)
    if use_w0:
      acc = acc + jnp.dot(shifted(v2d, d).astype(jnp.bfloat16), w0[...],
                          preferred_element_type=jnp.float32)
    return acc + b[...]

  # Running activation, channels-last, batch*time flattened: [bt*T, C_pad] f32.
  x = x_ref[...]

  for (d, use_w0, has_ds) in meta:
    w1_0 = nxt() if use_w0 else None
    w1_1 = nxt()
    b1 = nxt()
    w2_0 = nxt() if use_w0 else None
    w2_1 = nxt()
    b2 = nxt()
    wd = nxt() if has_ds else None
    bd = nxt() if has_ds else None

    h = jnp.maximum(conv(x, d, use_w0, w1_0, w1_1, b1), 0.0)     # conv1+relu
    h = jnp.maximum(conv(h, d, use_w0, w2_0, w2_1, b2), 0.0)     # conv2+relu
    if has_ds:                                                   # 1x1 downsample
      res = jnp.dot(x.astype(jnp.bfloat16), wd[...],
                    preferred_element_type=jnp.float32) + bd[...]
    else:
      res = x
    x = jnp.maximum(h + res, 0.0)                                # relu(out + res)

  # OutputLayer: alpha = softmax_T(U.weight @ x^T); m = alpha @ x;
  # y = sum_d(final.weight * m) + final.bias
  uwT = nxt()
  fw = nxt()
  fb = nxt()
  for b in range(bt):
    xb = x[b * T:(b + 1) * T, :]                                  # [T, D]
    s = jnp.dot(xb.astype(jnp.bfloat16), uwT[...],
                preferred_element_type=jnp.float32)               # [T, Yp]
    s = s - jnp.max(s, axis=0, keepdims=True)
    p = jnp.exp(s)
    p = p * pl.reciprocal(jnp.sum(p, axis=0, keepdims=True), approx=True)
    m = lax.dot_general(p.astype(jnp.bfloat16), xb.astype(jnp.bfloat16),
                        (((0,), (0,)), ((), ())),
                        preferred_element_type=jnp.float32)       # [Yp, D]
    yb = jnp.sum(fw[...] * m, axis=1) + fb[0, :]                  # [Yp]
    y_ref[b:b + 1, :] = yb[None, :]


# ---------------------------------------------------------------------------
# Parameter packing (once): channel padding to 128-multiples, bf16 matmul
# weights, hoisted U^T transpose, static per-block metadata.
# ---------------------------------------------------------------------------
def pack_params(params, seq_len, y_labels):
  T = seq_len
  embed = params["embed"]
  c0p = _rup(embed.shape[1])
  embed_pad = jnp.zeros((embed.shape[0], c0p), jnp.float32
                        ).at[:, :embed.shape[1]].set(embed)

  flat, meta = [], []
  cmax = c0p
  in_c = embed.shape[1]
  for i, blk in enumerate(params["blocks"]):
    d = 2 ** i
    out_c = blk["w1_1"].shape[1]
    cin_p, cout_p = _rup(in_c), _rup(out_c)
    use_w0 = d < T                      # x[t-d] tap is identically zero otherwise
    has_ds = blk["wd"] is not None
    if use_w0:
      cmax = max(cmax, cin_p, cout_p)
      flat.append(_pad2(blk["w1_0"], cin_p, cout_p, jnp.bfloat16))
    flat.append(_pad2(blk["w1_1"], cin_p, cout_p, jnp.bfloat16))
    flat.append(_pad2(blk["b1"][None, :], 1, cout_p, jnp.float32))
    if use_w0:
      flat.append(_pad2(blk["w2_0"], cout_p, cout_p, jnp.bfloat16))
    flat.append(_pad2(blk["w2_1"], cout_p, cout_p, jnp.bfloat16))
    flat.append(_pad2(blk["b2"][None, :], 1, cout_p, jnp.float32))
    if has_ds:
      flat.append(_pad2(blk["wd"], cin_p, cout_p, jnp.bfloat16))
      flat.append(_pad2(blk["bd"][None, :], 1, cout_p, jnp.float32))
    meta.append((d, use_w0, has_ds))
    in_c = out_c

  dp, yp = _rup(in_c), _rup(y_labels)
  flat.append(_pad2(params["U_w"].T, dp, yp, jnp.bfloat16))   # U^T hoisted here
  flat.append(_pad2(params["final_w"], yp, dp, jnp.float32))
  flat.append(_pad2(params["final_b"][None, :], 1, yp, jnp.float32))

  shift_ds = [d for (d, u, _) in meta if u]
  pad_rows = max(shift_ds) if shift_ds else 0

  cfg = dict(meta=tuple(meta), seq_len=T, pad_rows=pad_rows, cmax=cmax,
             yp=yp, y_labels=y_labels, c0p=c0p)
  return flat, embed_pad, cfg


# ---------------------------------------------------------------------------
# Forward builder: one fused pallas_call per forward, glue (embedding gather,
# logit slice, BCE loss) in plain JAX under a single jit.
# ---------------------------------------------------------------------------
def make_tcn_forward(cfg, batch_size):
  meta = cfg["meta"]
  T = cfg["seq_len"]
  pad_rows = cfg["pad_rows"]
  cmax = cfg["cmax"]
  yp = cfg["yp"]
  y_labels = cfg["y_labels"]
  c0p = cfg["c0p"]

  assert T % 8 == 0, "seq_len must be a multiple of 8 for the in-kernel reshape"
  bt = _pick_batch_tile(batch_size, T)
  assert batch_size % bt == 0
  grid_b = batch_size // bt
  has_scratch = pad_rows > 0

  kernel = functools.partial(_tcn_fused_kernel, meta=meta, bt=bt, seq_len=T,
                             pad_rows=pad_rows, has_scratch=has_scratch)

  @jax.jit
  def forward(flat_w, embed_pad, tokens, target):
    B = tokens.shape[0]
    # WordRep: embedding row gather (eval-mode dropout = identity).
    x = embed_pad[tokens]                         # [B, T, c0p] f32
    x2 = x.reshape(B * T, c0p)                    # rows = batch*time for big-M matmuls

    in_specs = [pl.BlockSpec((bt * T, c0p), lambda i: (i, 0))]
    in_specs += [pl.BlockSpec(w.shape, lambda i: (0, 0)) for w in flat_w]
    scratch = ([pltpu.VMEM((bt, T + pad_rows, cmax), jnp.float32)]
               if has_scratch else [])

    y_pad = pl.pallas_call(
        kernel,
        out_shape=jax.ShapeDtypeStruct((B, yp), jnp.float32),
        grid=(grid_b,),
        in_specs=in_specs,
        out_specs=pl.BlockSpec((bt, yp), lambda i: (i, 0)),
        scratch_shapes=scratch,
        compiler_params=pltpu.CompilerParams(
            dimension_semantics=("parallel",),
            vmem_limit_bytes=48 * 1024 * 1024),   # explicit: safe on v7x's 64 MiB
    )(x2, *flat_w)

    y = y_pad[:, :y_labels]
    # BCEWithLogitsLoss (mean), numerically stable form.
    loss = jnp.mean(jnp.maximum(y, 0.0) - y * target
                    + jnp.log1p(jnp.exp(-jnp.abs(y))))
    return y, loss

  return forward


# ---------------------------------------------------------------------------
# Deterministic synthetic parameters (shapes from the module __init__).
# ---------------------------------------------------------------------------
def init_params(key, vocab, embed_dim, num_labels, channels):
  def xavier(k, shape):
    fan_in, fan_out = shape
    lim = float(jnp.sqrt(6.0 / (fan_in + fan_out)))
    return jax.random.uniform(k, shape, jnp.float32, -lim, lim)

  keys = iter(jax.random.split(key, 128))
  params = {}
  emb = 0.3 * jax.random.normal(next(keys), (vocab, embed_dim), jnp.float32)
  params["embed"] = emb.at[0].set(0.0)            # padding_idx = 0

  blocks = []
  in_c = embed_dim                                # TemporalCnn(100, ...)
  for out_c in channels:
    blk = {
        "w1_0": xavier(next(keys), (in_c, out_c)),   # conv1 tap on x[t-d]
        "w1_1": xavier(next(keys), (in_c, out_c)),   # conv1 tap on x[t]
        "b1": 0.01 * jax.random.normal(next(keys), (out_c,), jnp.float32),
        "w2_0": xavier(next(keys), (out_c, out_c)),
        "w2_1": xavier(next(keys), (out_c, out_c)),
        "b2": 0.01 * jax.random.normal(next(keys), (out_c,), jnp.float32),
    }
    if in_c != out_c:                               # residual 1x1 downsample
      blk["wd"] = xavier(next(keys), (in_c, out_c))
      blk["bd"] = 0.01 * jax.random.normal(next(keys), (out_c,), jnp.float32)
    else:
      blk["wd"] = None
      blk["bd"] = None
    blocks.append(blk)
    in_c = out_c
  params["blocks"] = blocks

  d_out = channels[-1]                              # 300
  params["U_w"] = xavier(next(keys), (num_labels, d_out))
  params["final_w"] = xavier(next(keys), (num_labels, d_out))
  params["final_b"] = 0.01 * jax.random.normal(next(keys), (num_labels,), jnp.float32)
  return params


# ---------------------------------------------------------------------------
# Pure-JAX f32 reference (exact module math, incl. the taps the kernel skips).
# ---------------------------------------------------------------------------
def reference_forward(params, tokens, target):
  T = tokens.shape[1]
  with jax.default_matmul_precision("highest"):
    x = params["embed"][tokens]
    for i, blk in enumerate(params["blocks"]):
      d = 2 ** i

      def conv(h, w0, w1, b, d=d):
        hp = jnp.pad(h, ((0, 0), (d, 0), (0, 0)))
        return (jnp.einsum("btc,cf->btf", hp[:, :T], w0)
                + jnp.einsum("btc,cf->btf", hp[:, d:d + T], w1) + b)

      h = jax.nn.relu(conv(x, blk["w1_0"], blk["w1_1"], blk["b1"]))
      h2 = jax.nn.relu(conv(h, blk["w2_0"], blk["w2_1"], blk["b2"]))
      res = x if blk["wd"] is None else (
          jnp.einsum("btc,cf->btf", x, blk["wd"]) + blk["bd"])
      x = jax.nn.relu(h2 + res)
    s = jnp.einsum("yd,btd->byt", params["U_w"], x)
    alpha = jax.nn.softmax(s, axis=2)
    m = jnp.einsum("byt,btd->byd", alpha, x)
    y = jnp.sum(params["final_w"] * m, axis=2) + params["final_b"]
    loss = jnp.mean(jnp.maximum(y, 0.0) - y * target + jnp.log1p(jnp.exp(-jnp.abs(y))))
  return y, loss


if __name__ == "__main__":
  B, T, VOCAB, EMBED, Y = 2, 16, 50, 100, 8
  CHANNELS = [100, 150, 150, 200, 200, 250, 250, 300, 300]

  root = jax.random.PRNGKey(0)
  kp, kt, ky = jax.random.split(root, 3)
  params = init_params(kp, VOCAB, EMBED, Y, CHANNELS)
  tokens = jax.random.randint(kt, (B, T), 0, VOCAB, dtype=jnp.int32)
  target = jax.random.bernoulli(ky, 0.5, (B, Y)).astype(jnp.float32)

  flat_w, embed_pad, cfg = pack_params(params, T, Y)
  fwd = make_tcn_forward(cfg, B)

  y, loss = fwd(flat_w, embed_pad, tokens, target)
  jax.block_until_ready((y, loss))

  y_ref, loss_ref = reference_forward(params, tokens, target)
  err = float(jnp.max(jnp.abs(y - y_ref)))
  assert jnp.allclose(y, y_ref, rtol=5e-2, atol=5e-2), f"max |dy| = {err}"
  assert jnp.allclose(loss, loss_ref, rtol=5e-2, atol=5e-2), (loss, loss_ref)
  print("KERNEL_OK")
</pallas_src>

<mosaic_0001>
module attributes {stable_mosaic.version = 11 : i64} {
  func.func @_tcn_fused_kernel(%arg0: i32, %arg1: memref<32x128xf32, #tpu.memory_space<vmem>>, %arg2: memref<128x128xbf16, #tpu.memory_space<vmem>>, %arg3: memref<128x128xbf16, #tpu.memory_space<vmem>>, %arg4: memref<1x128xf32, #tpu.memory_space<vmem>>, %arg5: memref<128x128xbf16, #tpu.memory_space<vmem>>, %arg6: memref<128x128xbf16, #tpu.memory_space<vmem>>, %arg7: memref<1x128xf32, #tpu.memory_space<vmem>>, %arg8: memref<128x256xbf16, #tpu.memory_space<vmem>>, %arg9: memref<128x256xbf16, #tpu.memory_space<vmem>>, %arg10: memref<1x256xf32, #tpu.memory_space<vmem>>, %arg11: memref<256x256xbf16, #tpu.memory_space<vmem>>, %arg12: memref<256x256xbf16, #tpu.memory_space<vmem>>, %arg13: memref<1x256xf32, #tpu.memory_space<vmem>>, %arg14: memref<128x256xbf16, #tpu.memory_space<vmem>>, %arg15: memref<1x256xf32, #tpu.memory_space<vmem>>, %arg16: memref<256x256xbf16, #tpu.memory_space<vmem>>, %arg17: memref<256x256xbf16, #tpu.memory_space<vmem>>, %arg18: memref<1x256xf32, #tpu.memory_space<vmem>>, %arg19: memref<256x256xbf16, #tpu.memory_space<vmem>>, %arg20: memref<256x256xbf16, #tpu.memory_space<vmem>>, %arg21: memref<1x256xf32, #tpu.memory_space<vmem>>, %arg22: memref<256x256xbf16, #tpu.memory_space<vmem>>, %arg23: memref<256x256xbf16, #tpu.memory_space<vmem>>, %arg24: memref<1x256xf32, #tpu.memory_space<vmem>>, %arg25: memref<256x256xbf16, #tpu.memory_space<vmem>>, %arg26: memref<256x256xbf16, #tpu.memory_space<vmem>>, %arg27: memref<1x256xf32, #tpu.memory_space<vmem>>, %arg28: memref<256x256xbf16, #tpu.memory_space<vmem>>, %arg29: memref<1x256xf32, #tpu.memory_space<vmem>>, %arg30: memref<256x256xbf16, #tpu.memory_space<vmem>>, %arg31: memref<1x256xf32, #tpu.memory_space<vmem>>, %arg32: memref<256x256xbf16, #tpu.memory_space<vmem>>, %arg33: memref<1x256xf32, #tpu.memory_space<vmem>>, %arg34: memref<256x256xbf16, #tpu.memory_space<vmem>>, %arg35: memref<1x256xf32, #tpu.memory_space<vmem>>, %arg36: memref<256x256xbf16, #tpu.memory_space<vmem>>, %arg37: memref<1x256xf32, #tpu.memory_space<vmem>>, %arg38: memref<256x256xbf16, #tpu.memory_space<vmem>>, %arg39: memref<1x256xf32, #tpu.memory_space<vmem>>, %arg40: memref<256x256xbf16, #tpu.memory_space<vmem>>, %arg41: memref<1x256xf32, #tpu.memory_space<vmem>>, %arg42: memref<256x256xbf16, #tpu.memory_space<vmem>>, %arg43: memref<1x256xf32, #tpu.memory_space<vmem>>, %arg44: memref<256x384xbf16, #tpu.memory_space<vmem>>, %arg45: memref<1x384xf32, #tpu.memory_space<vmem>>, %arg46: memref<384x384xbf16, #tpu.memory_space<vmem>>, %arg47: memref<1x384xf32, #tpu.memory_space<vmem>>, %arg48: memref<256x384xbf16, #tpu.memory_space<vmem>>, %arg49: memref<1x384xf32, #tpu.memory_space<vmem>>, %arg50: memref<384x384xbf16, #tpu.memory_space<vmem>>, %arg51: memref<1x384xf32, #tpu.memory_space<vmem>>, %arg52: memref<384x384xbf16, #tpu.memory_space<vmem>>, %arg53: memref<1x384xf32, #tpu.memory_space<vmem>>, %arg54: memref<384x128xbf16, #tpu.memory_space<vmem>>, %arg55: memref<128x384xf32, #tpu.memory_space<vmem>>, %arg56: memref<1x128xf32, #tpu.memory_space<vmem>>, %arg57: memref<2x128xf32, #tpu.memory_space<vmem>>, %arg58: memref<2x24x256xf32, #tpu.memory_space<vmem>>) attributes {dimension_semantics = [#tpu.dimension_semantics<parallel>], iteration_bounds = array<i64: 1>, scalar_prefetch = 0 : i64, scratch_operands = 1 : i64, tpu.core_type = #tpu.core_type<tc>, window_params = [{transform_indices = @transform_0, window_bounds = array<i64: 32, 128>}, {pipeline_mode = #tpu.pipeline_mode<synchronous>, transform_indices = @transform_1, window_bounds = array<i64: 128, 128>}, {pipeline_mode = #tpu.pipeline_mode<synchronous>, transform_indices = @transform_2, window_bounds = array<i64: 128, 128>}, {pipeline_mode = #tpu.pipeline_mode<synchronous>, transform_indices = @transform_3, window_bounds = array<i64: 1, 128>}, {pipeline_mode = #tpu.pipeline_mode<synchronous>, transform_indices = @transform_4, window_bounds = array<i64: 128, 128>}, {pipeline_mode = #tpu.pipeline_mode<synchronous>, transform_indices = @transform_5, window_bounds = array<i64: 128, 128>}, {pipeline_mode = #tpu.pipeline_mode<synchronous>, transform_indices = @transform_6, window_bounds = array<i64: 1, 128>}, {pipeline_mode = #tpu.pipeline_mode<synchronous>, transform_indices = @transform_7, window_bounds = array<i64: 128, 256>}, {pipeline_mode = #tpu.pipeline_mode<synchronous>, transform_indices = @transform_8, window_bounds = array<i64: 128, 256>}, {pipeline_mode = #tpu.pipeline_mode<synchronous>, transform_indices = @transform_9, window_bounds = array<i64: 1, 256>}, {pipeline_mode = #tpu.pipeline_mode<synchronous>, transform_indices = @transform_10, window_bounds = array<i64: 256, 256>}, {pipeline_mode = #tpu.pipeline_mode<synchronous>, transform_indices = @transform_11, window_bounds = array<i64: 256, 256>}, {pipeline_mode = #tpu.pipeline_mode<synchronous>, transform_indices = @transform_12, window_bounds = array<i64: 1, 256>}, {pipeline_mode = #tpu.pipeline_mode<synchronous>, transform_indices = @transform_13, window_bounds = array<i64: 128, 256>}, {pipeline_mode = #tpu.pipeline_mode<synchronous>, transform_indices = @transform_14, window_bounds = array<i64: 1, 256>}, {pipeline_mode = #tpu.pipeline_mode<synchronous>, transform_indices = @transform_15, window_bounds = array<i64: 256, 256>}, {pipeline_mode = #tpu.pipeline_mode<synchronous>, transform_indices = @transform_16, window_bounds = array<i64: 256, 256>}, {pipeline_mode = #tpu.pipeline_mode<synchronous>, transform_indices = @transform_17, window_bounds = array<i64: 1, 256>}, {pipeline_mode = #tpu.pipeline_mode<synchronous>, transform_indices = @transform_18, window_bounds = array<i64: 256, 256>}, {pipeline_mode = #tpu.pipeline_mode<synchronous>, transform_indices = @transform_19, window_bounds = array<i64: 256, 256>}, {pipeline_mode = #tpu.pipeline_mode<synchronous>, transform_indices = @transform_20, window_bounds = array<i64: 1, 256>}, {pipeline_mode = #tpu.pipeline_mode<synchronous>, transform_indices = @transform_21, window_bounds = array<i64: 256, 256>}, {pipeline_mode = #tpu.pipeline_mode<synchronous>, transform_indices = @transform_22, window_bounds = array<i64: 256, 256>}, {pipeline_mode = #tpu.pipeline_mode<synchronous>, transform_indices = @transform_23, window_bounds = array<i64: 1, 256>}, {pipeline_mode = #tpu.pipeline_mode<synchronous>, transform_indices = @transform_24, window_bounds = array<i64: 256, 256>}, {pipeline_mode = #tpu.pipeline_mode<synchronous>, transform_indices = @transform_25, window_bounds = array<i64: 256, 256>}, {pipeline_mode = #tpu.pipeline_mode<synchronous>, transform_indices = @transform_26, window_bounds = array<i64: 1, 256>}, {pipeline_mode = #tpu.pipeline_mode<synchronous>, transform_indices = @transform_27, window_bounds = array<i64: 256, 256>}, {pipeline_mode = #tpu.pipeline_mode<synchronous>, transform_indices = @transform_28, window_bounds = array<i64: 1, 256>}, {pipeline_mode = #tpu.pipeline_mode<synchronous>, transform_indices = @transform_29, window_bounds = array<i64: 256, 256>}, {pipeline_mode = #tpu.pipeline_mode<synchronous>, transform_indices = @transform_30, window_bounds = array<i64: 1, 256>}, {pipeline_mode = #tpu.pipeline_mode<synchronous>, transform_indices = @transform_31, window_bounds = array<i64: 256, 256>}, {pipeline_mode = #tpu.pipeline_mode<synchronous>, transform_indices = @transform_32, window_bounds = array<i64: 1, 256>}, {pipeline_mode = #tpu.pipeline_mode<synchronous>, transform_indices = @transform_33, window_bounds = array<i64: 256, 256>}, {pipeline_mode = #tpu.pipeline_mode<synchronous>, transform_indices = @transform_34, window_bounds = array<i64: 1, 256>}, {pipeline_mode = #tpu.pipeline_mode<synchronous>, transform_indices = @transform_35, window_bounds = array<i64: 256, 256>}, {pipeline_mode = #tpu.pipeline_mode<synchronous>, transform_indices = @transform_36, window_bounds = array<i64: 1, 256>}, {pipeline_mode = #tpu.pipeline_mode<synchronous>, transform_indices = @transform_37, window_bounds = array<i64: 256, 256>}, {pipeline_mode = #tpu.pipeline_mode<synchronous>, transform_indices = @transform_38, window_bounds = array<i64: 1, 256>}, {pipeline_mode = #tpu.pipeline_mode<synchronous>, transform_indices = @transform_39, window_bounds = array<i64: 256, 256>}, {pipeline_mode = #tpu.pipeline_mode<synchronous>, transform_indices = @transform_40, window_bounds = array<i64: 1, 256>}, {pipeline_mode = #tpu.pipeline_mode<synchronous>, transform_indices = @transform_41, window_bounds = array<i64: 256, 256>}, {pipeline_mode = #tpu.pipeline_mode<synchronous>, transform_indices = @transform_42, window_bounds = array<i64: 1, 256>}, {pipeline_mode = #tpu.pipeline_mode<synchronous>, transform_indices = @transform_43, window_bounds = array<i64: 256, 384>}, {pipeline_mode = #tpu.pipeline_mode<synchronous>, transform_indices = @transform_44, window_bounds = array<i64: 1, 384>}, {pipeline_mode = #tpu.pipeline_mode<synchronous>, transform_indices = @transform_45, window_bounds = array<i64: 384, 384>}, {pipeline_mode = #tpu.pipeline_mode<synchronous>, transform_indices = @transform_46, window_bounds = array<i64: 1, 384>}, {pipeline_mode = #tpu.pipeline_mode<synchronous>, transform_indices = @transform_47, window_bounds = array<i64: 256, 384>}, {pipeline_mode = #tpu.pipeline_mode<synchronous>, transform_indices = @transform_48, window_bounds = array<i64: 1, 384>}, {pipeline_mode = #tpu.pipeline_mode<synchronous>, transform_indices = @transform_49, window_bounds = array<i64: 384, 384>}, {pipeline_mode = #tpu.pipeline_mode<synchronous>, transform_indices = @transform_50, window_bounds = array<i64: 1, 384>}, {pipeline_mode = #tpu.pipeline_mode<synchronous>, transform_indices = @transform_51, window_bounds = array<i64: 384, 384>}, {pipeline_mode = #tpu.pipeline_mode<synchronous>, transform_indices = @transform_52, window_bounds = array<i64: 1, 384>}, {pipeline_mode = #tpu.pipeline_mode<synchronous>, transform_indices = @transform_53, window_bounds = array<i64: 384, 128>}, {pipeline_mode = #tpu.pipeline_mode<synchronous>, transform_indices = @transform_54, window_bounds = array<i64: 128, 384>}, {pipeline_mode = #tpu.pipeline_mode<synchronous>, transform_indices = @transform_55, window_bounds = array<i64: 1, 128>}, {transform_indices = @transform_56, window_bounds = array<i64: 2, 128>}]} {
    %cst = arith.constant 0.000000e+00 : f32
    %0 = vector.broadcast %cst : f32 to vector<2x24x256xf32>
    %c0 = arith.constant 0 : index
    %c0_0 = arith.constant 0 : index
    %c0_1 = arith.constant 0 : index
    %1 = vector.load %arg58[%c0, %c0_0, %c0_1] : memref<2x24x256xf32, #tpu.memory_space<vmem>>, vector<2x24x256xf32>
    tpu.vector_store %arg58[%c0, %c0_0, %c0_1], %0 {strides = array<i32>} : memref<2x24x256xf32, #tpu.memory_space<vmem>>, vector<2x24x256xf32>,
    %c0_2 = arith.constant 0 : index
    %c0_3 = arith.constant 0 : index
    %2 = vector.load %arg1[%c0_2, %c0_3] : memref<32x128xf32, #tpu.memory_space<vmem>>, vector<32x128xf32>
    %3 = arith.truncf %2 : vector<32x128xf32> to vector<32x128xbf16>
    %c0_4 = arith.constant 0 : index
    %c0_5 = arith.constant 0 : index
    %4 = vector.load %arg3[%c0_4, %c0_5] : memref<128x128xbf16, #tpu.memory_space<vmem>>, vector<128x128xbf16>
    %cst_6 = arith.constant dense<0.000000e+00> : vector<32x128xf32>
    %5 = tpu.matmul %3, %4, %cst_6 {dimension_numbers = #tpu.dot_dimension_numbers<[1], [0], [0], [1], [0, 0, 1, 1], [], []>} : vector<32x128xbf16>, vector<128x128xbf16>, vector<32x128xf32> -> vector<32x128xf32>
    %6 = vector.shape_cast %2 : vector<32x128xf32> to vector<2x16x128xf32>
    %c0_7 = arith.constant 0 : index
    %c8 = arith.constant 8 : index
    %c0_8 = arith.constant 0 : index
    %7 = vector.load %arg58[%c0_7, %c8, %c0_8] : memref<2x24x256xf32, #tpu.memory_space<vmem>>, vector<2x16x128xf32>
    tpu.vector_store %arg58[%c0_7, %c8, %c0_8], %6 {strides = array<i32>} : memref<2x24x256xf32, #tpu.memory_space<vmem>>, vector<2x16x128xf32>,
    %c0_9 = arith.constant 0 : index
    %c7 = arith.constant 7 : index
    %c0_10 = arith.constant 0 : index
    %8 = vector.load %arg58[%c0_9, %c7, %c0_10] : memref<2x24x256xf32, #tpu.memory_space<vmem>>, vector<2x16x128xf32>
    %9 = vector.shape_cast %8 : vector<2x16x128xf32> to vector<32x128xf32>
    %10 = arith.truncf %9 : vector<32x128xf32> to vector<32x128xbf16>
    %c0_11 = arith.constant 0 : index
    %c0_12 = arith.constant 0 : index
    %11 = vector.load %arg2[%c0_11, %c0_12] : memref<128x128xbf16, #tpu.memory_space<vmem>>, vector<128x128xbf16>
    %cst_13 = arith.constant dense<0.000000e+00> : vector<32x128xf32>
    %12 = tpu.matmul %10, %11, %cst_13 {dimension_numbers = #tpu.dot_dimension_numbers<[1], [0], [0], [1], [0, 0, 1, 1], [], []>} : vector<32x128xbf16>, vector<128x128xbf16>, vector<32x128xf32> -> vector<32x128xf32>
    %13 = arith.addf %5, %12 : vector<32x128xf32>
    %c0_14 = arith.constant 0 : index
    %c0_15 = arith.constant 0 : index
    %14 = vector.load %arg4[%c0_14, %c0_15] : memref<1x128xf32, #tpu.memory_space<vmem>>, vector<1x128xf32>
    %15 = vector.broadcast %14 : vector<1x128xf32> to vector<32x128xf32>
    %16 = arith.addf %13, %15 : vector<32x128xf32>
    %cst_16 = arith.constant 0.000000e+00 : f32
    %17 = vector.broadcast %cst_16 : f32 to vector<32x128xf32>
    %18 = arith.maximumf %16, %17 : vector<32x128xf32>
    %19 = arith.truncf %18 : vector<32x128xf32> to vector<32x128xbf16>
    %c0_17 = arith.constant 0 : index
    %c0_18 = arith.constant 0 : index
    %20 = vector.load %arg6[%c0_17, %c0_18] : memref<128x128xbf16, #tpu.memory_space<vmem>>, vector<128x128xbf16>
    %cst_19 = arith.constant dense<0.000000e+00> : vector<32x128xf32>
    %21 = tpu.matmul %19, %20, %cst_19 {dimension_numbers = #tpu.dot_dimension_numbers<[1], [0], [0], [1], [0, 0, 1, 1], [], []>} : vector<32x128xbf16>, vector<128x128xbf16>, vector<32x128xf32> -> vector<32x128xf32>
    %22 = vector.shape_cast %18 : vector<32x128xf32> to vector<2x16x128xf32>
    %c0_20 = arith.constant 0 : index
    %c8_21 = arith.constant 8 : index
    %c0_22 = arith.constant 0 : index
    %23 = vector.load %arg58[%c0_20, %c8_21, %c0_22] : memref<2x24x256xf32, #tpu.memory_space<vmem>>, vector<2x16x128xf32>
    tpu.vector_store %arg58[%c0_20, %c8_21, %c0_22], %22 {strides = array<i32>} : memref<2x24x256xf32, #tpu.memory_space<vmem>>, vector<2x16x128xf32>,
    %c0_23 = arith.constant 0 : index
    %c7_24 = arith.constant 7 : index
    %c0_25 = arith.constant 0 : index
    %24 = vector.load %arg58[%c0_23, %c7_24, %c0_25] : memref<2x24x256xf32, #tpu.memory_space<vmem>>, vector<2x16x128xf32>
    %25 = vector.shape_cast %24 : vector<2x16x128xf32> to vector<32x128xf32>
    %26 = arith.truncf %25 : vector<32x128xf32> to vector<32x128xbf16>
    %c0_26 = arith.constant 0 : index
    %c0_27 = arith.constant 0 : index
    %27 = vector.load %arg5[%c0_26, %c0_27] : memref<128x128xbf16, #tpu.memory_space<vmem>>, vector<128x128xbf16>
    %cst_28 = arith.constant dense<0.000000e+00> : vector<32x128xf32>
    %28 = tpu.matmul %26, %27, %cst_28 {dimension_numbers = #tpu.dot_dimension_numbers<[1], [0], [0], [1], [0, 0, 1, 1], [], []>} : vector<32x128xbf16>, vector<128x128xbf16>, vector<32x128xf32> -> vector<32x128xf32>
    %29 = arith.addf %21, %28 : vector<32x128xf32>
    %c0_29 = arith.constant 0 : index
    %c0_30 = arith.constant 0 : index
    %30 = vector.load %arg7[%c0_29, %c0_30] : memref<1x128xf32, #tpu.memory_space<vmem>>, vector<1x128xf32>
    %31 = vector.broadcast %30 : vector<1x128xf32> to vector<32x128xf32>
    %32 = arith.addf %29, %31 : vector<32x128xf32>
    %cst_31 = arith.constant 0.000000e+00 : f32
    %33 = vector.broadcast %cst_31 : f32 to vector<32x128xf32>
    %34 = arith.maximumf %32, %33 : vector<32x128xf32>
    %35 = arith.addf %34, %2 : vector<32x128xf32>
    %cst_32 = arith.constant 0.000000e+00 : f32
    %36 = vector.broadcast %cst_32 : f32 to vector<32x128xf32>
    %37 = arith.maximumf %35, %36 : vector<32x128xf32>
    %38 = arith.truncf %37 : vector<32x128xf32> to vector<32x128xbf16>
    %c0_33 = arith.constant 0 : index
    %c0_34 = arith.constant 0 : index
    %39 = vector.load %arg9[%c0_33, %c0_34] : memref<128x256xbf16, #tpu.memory_space<vmem>>, vector<128x256xbf16>
    %cst_35 = arith.constant dense<0.000000e+00> : vector<32x256xf32>
    %40 = tpu.matmul %38, %39, %cst_35 {dimension_numbers = #tpu.dot_dimension_numbers<[1], [0], [0], [1], [0, 0, 1, 1], [], []>} : vector<32x128xbf16>, vector<128x256xbf16>, vector<32x256xf32> -> vector<32x256xf32>
    %41 = vector.shape_cast %37 : vector<32x128xf32> to vector<2x16x128xf32>
    %c0_36 = arith.constant 0 : index
    %c8_37 = arith.constant 8 : index
    %c0_38 = arith.constant 0 : index
    %42 = vector.load %arg58[%c0_36, %c8_37, %c0_38] : memref<2x24x256xf32, #tpu.memory_space<vmem>>, vector<2x16x128xf32>
    tpu.vector_store %arg58[%c0_36, %c8_37, %c0_38], %41 {strides = array<i32>} : memref<2x24x256xf32, #tpu.memory_space<vmem>>, vector<2x16x128xf32>,
    %c0_39 = arith.constant 0 : index
    %c6 = arith.constant 6 : index
    %c0_40 = arith.constant 0 : index
    %43 = vector.load %arg58[%c0_39, %c6, %c0_40] : memref<2x24x256xf32, #tpu.memory_space<vmem>>, vector<2x16x128xf32>
    %44 = vector.shape_cast %43 : vector<2x16x128xf32> to vector<32x128xf32>
    %45 = arith.truncf %44 : vector<32x128xf32> to vector<32x128xbf16>
    %c0_41 = arith.constant 0 : index
    %c0_42 = arith.constant 0 : index
    %46 = vector.load %arg8[%c0_41, %c0_42] : memref<128x256xbf16, #tpu.memory_space<vmem>>, vector<128x256xbf16>
    %cst_43 = arith.constant dense<0.000000e+00> : vector<32x256xf32>
    %47 = tpu.matmul %45, %46, %cst_43 {dimension_numbers = #tpu.dot_dimension_numbers<[1], [0], [0], [1], [0, 0, 1, 1], [], []>} : vector<32x128xbf16>, vector<128x256xbf16>, vector<32x256xf32> -> vector<32x256xf32>
    %48 = arith.addf %40, %47 : vector<32x256xf32>
    %c0_44 = arith.constant 0 : index
    %c0_45 = arith.constant 0 : index
    %49 = vector.load %arg10[%c0_44, %c0_45] : memref<1x256xf32, #tpu.memory_space<vmem>>, vector<1x256xf32>
    %50 = vector.broadcast %49 : vector<1x256xf32> to vector<32x256xf32>
    %51 = arith.addf %48, %50 : vector<32x256xf32>
    %cst_46 = arith.constant 0.000000e+00 : f32
    %52 = vector.broadcast %cst_46 : f32 to vector<32x256xf32>
    %53 = arith.maximumf %51, %52 : vector<32x256xf32>
    %54 = arith.truncf %53 : vector<32x256xf32> to vector<32x256xbf16>
    %c0_47 = arith.constant 0 : index
    %c0_48 = arith.constant 0 : index
    %55 = vector.load %arg12[%c0_47, %c0_48] : memref<256x256xbf16, #tpu.memory_space<vmem>>, vector<256x256xbf16>
    %cst_49 = arith.constant dense<0.000000e+00> : vector<32x256xf32>
    %56 = tpu.matmul %54, %55, %cst_49 {dimension_numbers = #tpu.dot_dimension_numbers<[1], [0], [0], [1], [0, 0, 1, 1], [], []>} : vector<32x256xbf16>, vector<256x256xbf16>, vector<32x256xf32> -> vector<32x256xf32>
    %57 = vector.shape_cast %53 : vector<32x256xf32> to vector<2x16x256xf32>
    %c0_50 = arith.constant 0 : index
    %c8_51 = arith.constant 8 : index
    %c0_52 = arith.constant 0 : index
    %58 = vector.load %arg58[%c0_50, %c8_51, %c0_52] : memref<2x24x256xf32, #tpu.memory_space<vmem>>, vector<2x16x256xf32>
    tpu.vector_store %arg58[%c0_50, %c8_51, %c0_52], %57 {strides = array<i32>} : memref<2x24x256xf32, #tpu.memory_space<vmem>>, vector<2x16x256xf32>,
    %c0_53 = arith.constant 0 : index
    %c6_54 = arith.constant 6 : index
    %c0_55 = arith.constant 0 : index
    %59 = vector.load %arg58[%c0_53, %c6_54, %c0_55] : memref<2x24x256xf32, #tpu.memory_space<vmem>>, vector<2x16x256xf32>
    %60 = vector.shape_cast %59 : vector<2x16x256xf32> to vector<32x256xf32>
    %61 = arith.truncf %60 : vector<32x256xf32> to vector<32x256xbf16>
    %c0_56 = arith.constant 0 : index
    %c0_57 = arith.constant 0 : index
    %62 = vector.load %arg11[%c0_56, %c0_57] : memref<256x256xbf16, #tpu.memory_space<vmem>>, vector<256x256xbf16>
    %cst_58 = arith.constant dense<0.000000e+00> : vector<32x256xf32>
    %63 = tpu.matmul %61, %62, %cst_58 {dimension_numbers = #tpu.dot_dimension_numbers<[1], [0], [0], [1], [0, 0, 1, 1], [], []>} : vector<32x256xbf16>, vector<256x256xbf16>, vector<32x256xf32> -> vector<32x256xf32>
    %64 = arith.addf %56, %63 : vector<32x256xf32>
    %c0_59 = arith.constant 0 : index
    %c0_60 = arith.constant 0 : index
    %65 = vector.load %arg13[%c0_59, %c0_60] : memref<1x256xf32, #tpu.memory_space<vmem>>, vector<1x256xf32>
    %66 = vector.broadcast %65 : vector<1x256xf32> to vector<32x256xf32>
    %67 = arith.addf %64, %66 : vector<32x256xf32>
    %cst_61 = arith.constant 0.000000e+00 : f32
    %68 = vector.broadcast %cst_61 : f32 to vector<32x256xf32>
    %69 = arith.maximumf %67, %68 : vector<32x256xf32>
    %70 = arith.truncf %37 : vector<32x128xf32> to vector<32x128xbf16>
    %c0_62 = arith.constant 0 : index
    %c0_63 = arith.constant 0 : index
    %71 = vector.load %arg14[%c0_62, %c0_63] : memref<128x256xbf16, #tpu.memory_space<vmem>>, vector<128x256xbf16>
    %cst_64 = arith.constant dense<0.000000e+00> : vector<32x256xf32>
    %72 = tpu.matmul %70, %71, %cst_64 {dimension_numbers = #tpu.dot_dimension_numbers<[1], [0], [0], [1], [0, 0, 1, 1], [], []>} : vector<32x128xbf16>, vector<128x256xbf16>, vector<32x256xf32> -> vector<32x256xf32>
    %c0_65 = arith.constant 0 : index
    %c0_66 = arith.constant 0 : index
    %73 = vector.load %arg15[%c0_65, %c0_66] : memref<1x256xf32, #tpu.memory_space<vmem>>, vector<1x256xf32>
    %74 = vector.broadcast %73 : vector<1x256xf32> to vector<32x256xf32>
    %75 = arith.addf %72, %74 : vector<32x256xf32>
    %76 = arith.addf %69, %75 : vector<32x256xf32>
    %cst_67 = arith.constant 0.000000e+00 : f32
    %77 = vector.broadcast %cst_67 : f32 to vector<32x256xf32>
    %78 = arith.maximumf %76, %77 : vector<32x256xf32>
    %79 = arith.truncf %78 : vector<32x256xf32> to vector<32x256xbf16>
    %c0_68 = arith.constant 0 : index
    %c0_69 = arith.constant 0 : index
    %80 = vector.load %arg17[%c0_68, %c0_69] : memref<256x256xbf16, #tpu.memory_space<vmem>>, vector<256x256xbf16>
    %cst_70 = arith.constant dense<0.000000e+00> : vector<32x256xf32>
    %81 = tpu.matmul %79, %80, %cst_70 {dimension_numbers = #tpu.dot_dimension_numbers<[1], [0], [0], [1], [0, 0, 1, 1], [], []>} : vector<32x256xbf16>, vector<256x256xbf16>, vector<32x256xf32> -> vector<32x256xf32>
    %82 = vector.shape_cast %78 : vector<32x256xf32> to vector<2x16x256xf32>
    %c0_71 = arith.constant 0 : index
    %c8_72 = arith.constant 8 : index
    %c0_73 = arith.constant 0 : index
    %83 = vector.load %arg58[%c0_71, %c8_72, %c0_73] : memref<2x24x256xf32, #tpu.memory_space<vmem>>, vector<2x16x256xf32>
    tpu.vector_store %arg58[%c0_71, %c8_72, %c0_73], %82 {strides = array<i32>} : memref<2x24x256xf32, #tpu.memory_space<vmem>>, vector<2x16x256xf32>,
    %c0_74 = arith.constant 0 : index
    %c4 = arith.constant 4 : index
    %c0_75 = arith.constant 0 : index
    %84 = vector.load %arg58[%c0_74, %c4, %c0_75] : memref<2x24x256xf32, #tpu.memory_space<vmem>>, vector<2x16x256xf32>
    %85 = vector.shape_cast %84 : vector<2x16x256xf32> to vector<32x256xf32>
    %86 = arith.truncf %85 : vector<32x256xf32> to vector<32x256xbf16>
    %c0_76 = arith.constant 0 : index
    %c0_77 = arith.constant 0 : index
    %87 = vector.load %arg16[%c0_76, %c0_77] : memref<256x256xbf16, #tpu.memory_space<vmem>>, vector<256x256xbf16>
    %cst_78 = arith.constant dense<0.000000e+00> : vector<32x256xf32>
    %88 = tpu.matmul %86, %87, %cst_78 {dimension_numbers = #tpu.dot_dimension_numbers<[1], [0], [0], [1], [0, 0, 1, 1], [], []>} : vector<32x256xbf16>, vector<256x256xbf16>, vector<32x256xf32> -> vector<32x256xf32>
    %89 = arith.addf %81, %88 : vector<32x256xf32>
    %c0_79 = arith.constant 0 : index
    %c0_80 = arith.constant 0 : index
    %90 = vector.load %arg18[%c0_79, %c0_80] : memref<1x256xf32, #tpu.memory_space<vmem>>, vector<1x256xf32>
    %91 = vector.broadcast %90 : vector<1x256xf32> to vector<32x256xf32>
    %92 = arith.addf %89, %91 : vector<32x256xf32>
    %cst_81 = arith.constant 0.000000e+00 : f32
    %93 = vector.broadcast %cst_81 : f32 to vector<32x256xf32>
    %94 = arith.maximumf %92, %93 : vector<32x256xf32>
    %95 = arith.truncf %94 : vector<32x256xf32> to vector<32x256xbf16>
    %c0_82 = arith.constant 0 : index
    %c0_83 = arith.constant 0 : index
    %96 = vector.load %arg20[%c0_82, %c0_83] : memref<256x256xbf16, #tpu.memory_space<vmem>>, vector<256x256xbf16>
    %cst_84 = arith.constant dense<0.000000e+00> : vector<32x256xf32>
    %97 = tpu.matmul %95, %96, %cst_84 {dimension_numbers = #tpu.dot_dimension_numbers<[1], [0], [0], [1], [0, 0, 1, 1], [], []>} : vector<32x256xbf16>, vector<256x256xbf16>, vector<32x256xf32> -> vector<32x256xf32>
    %98 = vector.shape_cast %94 : vector<32x256xf32> to vector<2x16x256xf32>
    %c0_85 = arith.constant 0 : index
    %c8_86 = arith.constant 8 : index
    %c0_87 = arith.constant 0 : index
    %99 = vector.load %arg58[%c0_85, %c8_86, %c0_87] : memref<2x24x256xf32, #tpu.memory_space<vmem>>, vector<2x16x256xf32>
    tpu.vector_store %arg58[%c0_85, %c8_86, %c0_87], %98 {strides = array<i32>} : memref<2x24x256xf32, #tpu.memory_space<vmem>>, vector<2x16x256xf32>,
    %c0_88 = arith.constant 0 : index
    %c4_89 = arith.constant 4 : index
    %c0_90 = arith.constant 0 : index
    %100 = vector.load %arg58[%c0_88, %c4_89, %c0_90] : memref<2x24x256xf32, #tpu.memory_space<vmem>>, vector<2x16x256xf32>
    %101 = vector.shape_cast %100 : vector<2x16x256xf32> to vector<32x256xf32>
    %102 = arith.truncf %101 : vector<32x256xf32> to vector<32x256xbf16>
    %c0_91 = arith.constant 0 : index
    %c0_92 = arith.constant 0 : index
    %103 = vector.load %arg19[%c0_91, %c0_92] : memref<256x256xbf16, #tpu.memory_space<vmem>>, vector<256x256xbf16>
    %cst_93 = arith.constant dense<0.000000e+00> : vector<32x256xf32>
    %104 = tpu.matmul %102, %103, %cst_93 {dimension_numbers = #tpu.dot_dimension_numbers<[1], [0], [0], [1], [0, 0, 1, 1], [], []>} : vector<32x256xbf16>, vector<256x256xbf16>, vector<32x256xf32> -> vector<32x256xf32>
    %105 = arith.addf %97, %104 : vector<32x256xf32>
    %c0_94 = arith.constant 0 : index
    %c0_95 = arith.constant 0 : index
    %106 = vector.load %arg21[%c0_94, %c0_95] : memref<1x256xf32, #tpu.memory_space<vmem>>, vector<1x256xf32>
    %107 = vector.broadcast %106 : vector<1x256xf32> to vector<32x256xf32>
    %108 = arith.addf %105, %107 : vector<32x256xf32>
    %cst_96 = arith.constant 0.000000e+00 : f32
    %109 = vector.broadcast %cst_96 : f32 to vector<32x256xf32>
    %110 = arith.maximumf %108, %109 : vector<32x256xf32>
    %111 = arith.addf %110, %78 : vector<32x256xf32>
    %cst_97 = arith.constant 0.000000e+00 : f32
    %112 = vector.broadcast %cst_97 : f32 to vector<32x256xf32>
    %113 = arith.maximumf %111, %112 : vector<32x256xf32>
    %114 = arith.truncf %113 : vector<32x256xf32> to vector<32x256xbf16>
    %c0_98 = arith.constant 0 : index
    %c0_99 = arith.constant 0 : index
    %115 = vector.load %arg23[%c0_98, %c0_99] : memref<256x256xbf16, #tpu.memory_space<vmem>>, vector<256x256xbf16>
    %cst_100 = arith.constant dense<0.000000e+00> : vector<32x256xf32>
    %116 = tpu.matmul %114, %115, %cst_100 {dimension_numbers = #tpu.dot_dimension_numbers<[1], [0], [0], [1], [0, 0, 1, 1], [], []>} : vector<32x256xbf16>, vector<256x256xbf16>, vector<32x256xf32> -> vector<32x256xf32>
    %117 = vector.shape_cast %113 : vector<32x256xf32> to vector<2x16x256xf32>
    %c0_101 = arith.constant 0 : index
    %c8_102 = arith.constant 8 : index
    %c0_103 = arith.constant 0 : index
    %118 = vector.load %arg58[%c0_101, %c8_102, %c0_103] : memref<2x24x256xf32, #tpu.memory_space<vmem>>, vector<2x16x256xf32>
    tpu.vector_store %arg58[%c0_101, %c8_102, %c0_103], %117 {strides = array<i32>} : memref<2x24x256xf32, #tpu.memory_space<vmem>>, vector<2x16x256xf32>,
    %c0_104 = arith.constant 0 : index
    %c0_105 = arith.constant 0 : index
    %c0_106 = arith.constant 0 : index
    %119 = vector.load %arg58[%c0_104, %c0_105, %c0_106] : memref<2x24x256xf32, #tpu.memory_space<vmem>>, vector<2x16x256xf32>
    %120 = vector.shape_cast %119 : vector<2x16x256xf32> to vector<32x256xf32>
    %121 = arith.truncf %120 : vector<32x256xf32> to vector<32x256xbf16>
    %c0_107 = arith.constant 0 : index
    %c0_108 = arith.constant 0 : index
    %122 = vector.load %arg22[%c0_107, %c0_108] : memref<256x256xbf16, #tpu.memory_space<vmem>>, vector<256x256xbf16>
    %cst_109 = arith.constant dense<0.000000e+00> : vector<32x256xf32>
    %123 = tpu.matmul %121, %122, %cst_109 {dimension_numbers = #tpu.dot_dimension_numbers<[1], [0], [0], [1], [0, 0, 1, 1], [], []>} : vector<32x256xbf16>, vector<256x256xbf16>, vector<32x256xf32> -> vector<32x256xf32>
    %124 = arith.addf %116, %123 : vector<32x256xf32>
    %c0_110 = arith.constant 0 : index
    %c0_111 = arith.constant 0 : index
    %125 = vector.load %arg24[%c0_110, %c0_111] : memref<1x256xf32, #tpu.memory_space<vmem>>, vector<1x256xf32>
    %126 = vector.broadcast %125 : vector<1x256xf32> to vector<32x256xf32>
    %127 = arith.addf %124, %126 : vector<32x256xf32>
    %cst_112 = arith.constant 0.000000e+00 : f32
    %128 = vector.broadcast %cst_112 : f32 to vector<32x256xf32>
    %129 = arith.maximumf %127, %128 : vector<32x256xf32>
    %130 = arith.truncf %129 : vector<32x256xf32> to vector<32x256xbf16>
    %c0_113 = arith.constant 0 : index
    %c0_114 = arith.constant 0 : index
    %131 = vector.load %arg26[%c0_113, %c0_114] : memref<256x256xbf16, #tpu.memory_space<vmem>>, vector<256x256xbf16>
    %cst_115 = arith.constant dense<0.000000e+00> : vector<32x256xf32>
    %132 = tpu.matmul %130, %131, %cst_115 {dimension_numbers = #tpu.dot_dimension_numbers<[1], [0], [0], [1], [0, 0, 1, 1], [], []>} : vector<32x256xbf16>, vector<256x256xbf16>, vector<32x256xf32> -> vector<32x256xf32>
    %133 = vector.shape_cast %129 : vector<32x256xf32> to vector<2x16x256xf32>
    %c0_116 = arith.constant 0 : index
    %c8_117 = arith.constant 8 : index
    %c0_118 = arith.constant 0 : index
    %134 = vector.load %arg58[%c0_116, %c8_117, %c0_118] : memref<2x24x256xf32, #tpu.memory_space<vmem>>, vector<2x16x256xf32>
    tpu.vector_store %arg58[%c0_116, %c8_117, %c0_118], %133 {strides = array<i32>} : memref<2x24x256xf32, #tpu.memory_space<vmem>>, vector<2x16x256xf32>,
    %c0_119 = arith.constant 0 : index
    %c0_120 = arith.constant 0 : index
    %c0_121 = arith.constant 0 : index
    %135 = vector.load %arg58[%c0_119, %c0_120, %c0_121] : memref<2x24x256xf32, #tpu.memory_space<vmem>>, vector<2x16x256xf32>
    %136 = vector.shape_cast %135 : vector<2x16x256xf32> to vector<32x256xf32>
    %137 = arith.truncf %136 : vector<32x256xf32> to vector<32x256xbf16>
    %c0_122 = arith.constant 0 : index
    %c0_123 = arith.constant 0 : index
    %138 = vector.load %arg25[%c0_122, %c0_123] : memref<256x256xbf16, #tpu.memory_space<vmem>>, vector<256x256xbf16>
    %cst_124 = arith.constant dense<0.000000e+00> : vector<32x256xf32>
    %139 = tpu.matmul %137, %138, %cst_124 {dimension_numbers = #tpu.dot_dimension_numbers<[1], [0], [0], [1], [0, 0, 1, 1], [], []>} : vector<32x256xbf16>, vector<256x256xbf16>, vector<32x256xf32> -> vector<32x256xf32>
    %140 = arith.addf %132, %139 : vector<32x256xf32>
    %c0_125 = arith.constant 0 : index
    %c0_126 = arith.constant 0 : index
    %141 = vector.load %arg27[%c0_125, %c0_126] : memref<1x256xf32, #tpu.memory_space<vmem>>, vector<1x256xf32>
    %142 = vector.broadcast %141 : vector<1x256xf32> to vector<32x256xf32>
    %143 = arith.addf %140, %142 : vector<32x256xf32>
    %cst_127 = arith.constant 0.000000e+00 : f32
    %144 = vector.broadcast %cst_127 : f32 to vector<32x256xf32>
    %145 = arith.maximumf %143, %144 : vector<32x256xf32>
    %146 = arith.truncf %113 : vector<32x256xf32> to vector<32x256xbf16>
    %c0_128 = arith.constant 0 : index
    %c0_129 = arith.constant 0 : index
    %147 = vector.load %arg28[%c0_128, %c0_129] : memref<256x256xbf16, #tpu.memory_space<vmem>>, vector<256x256xbf16>
    %cst_130 = arith.constant dense<0.000000e+00> : vector<32x256xf32>
    %148 = tpu.matmul %146, %147, %cst_130 {dimension_numbers = #tpu.dot_dimension_numbers<[1], [0], [0], [1], [0, 0, 1, 1], [], []>} : vector<32x256xbf16>, vector<256x256xbf16>, vector<32x256xf32> -> vector<32x256xf32>
    %c0_131 = arith.constant 0 : index
    %c0_132 = arith.constant 0 : index
    %149 = vector.load %arg29[%c0_131, %c0_132] : memref<1x256xf32, #tpu.memory_space<vmem>>, vector<1x256xf32>
    %150 = vector.broadcast %149 : vector<1x256xf32> to vector<32x256xf32>
    %151 = arith.addf %148, %150 : vector<32x256xf32>
    %152 = arith.addf %145, %151 : vector<32x256xf32>
    %cst_133 = arith.constant 0.000000e+00 : f32
    %153 = vector.broadcast %cst_133 : f32 to vector<32x256xf32>
    %154 = arith.maximumf %152, %153 : vector<32x256xf32>
    %155 = arith.truncf %154 : vector<32x256xf32> to vector<32x256xbf16>
    %c0_134 = arith.constant 0 : index
    %c0_135 = arith.constant 0 : index
    %156 = vector.load %arg30[%c0_134, %c0_135] : memref<256x256xbf16, #tpu.memory_space<vmem>>, vector<256x256xbf16>
    %cst_136 = arith.constant dense<0.000000e+00> : vector<32x256xf32>
    %157 = tpu.matmul %155, %156, %cst_136 {dimension_numbers = #tpu.dot_dimension_numbers<[1], [0], [0], [1], [0, 0, 1, 1], [], []>} : vector<32x256xbf16>, vector<256x256xbf16>, vector<32x256xf32> -> vector<32x256xf32>
    %c0_137 = arith.constant 0 : index
    %c0_138 = arith.constant 0 : index
    %158 = vector.load %arg31[%c0_137, %c0_138] : memref<1x256xf32, #tpu.memory_space<vmem>>, vector<1x256xf32>
    %159 = vector.broadcast %158 : vector<1x256xf32> to vector<32x256xf32>
    %160 = arith.addf %157, %159 : vector<32x256xf32>
    %cst_139 = arith.constant 0.000000e+00 : f32
    %161 = vector.broadcast %cst_139 : f32 to vector<32x256xf32>
    %162 = arith.maximumf %160, %161 : vector<32x256xf32>
    %163 = arith.truncf %162 : vector<32x256xf32> to vector<32x256xbf16>
    %c0_140 = arith.constant 0 : index
    %c0_141 = arith.constant 0 : index
    %164 = vector.load %arg32[%c0_140, %c0_141] : memref<256x256xbf16, #tpu.memory_space<vmem>>, vector<256x256xbf16>
    %cst_142 = arith.constant dense<0.000000e+00> : vector<32x256xf32>
    %165 = tpu.matmul %163, %164, %cst_142 {dimension_numbers = #tpu.dot_dimension_numbers<[1], [0], [0], [1], [0, 0, 1, 1], [], []>} : vector<32x256xbf16>, vector<256x256xbf16>, vector<32x256xf32> -> vector<32x256xf32>
    %c0_143 = arith.constant 0 : index
    %c0_144 = arith.constant 0 : index
    %166 = vector.load %arg33[%c0_143, %c0_144] : memref<1x256xf32, #tpu.memory_space<vmem>>, vector<1x256xf32>
    %167 = vector.broadcast %166 : vector<1x256xf32> to vector<32x256xf32>
    %168 = arith.addf %165, %167 : vector<32x256xf32>
    %cst_145 = arith.constant 0.000000e+00 : f32
    %169 = vector.broadcast %cst_145 : f32 to vector<32x256xf32>
    %170 = arith.maximumf %168, %169 : vector<32x256xf32>
    %171 = arith.addf %170, %154 : vector<32x256xf32>
    %cst_146 = arith.constant 0.000000e+00 : f32
    %172 = vector.broadcast %cst_146 : f32 to vector<32x256xf32>
    %173 = arith.maximumf %171, %172 : vector<32x256xf32>
    %174 = arith.truncf %173 : vector<32x256xf32> to vector<32x256xbf16>
    %c0_147 = arith.constant 0 : index
    %c0_148 = arith.constant 0 : index
    %175 = vector.load %arg34[%c0_147, %c0_148] : memref<256x256xbf16, #tpu.memory_space<vmem>>, vector<256x256xbf16>
    %cst_149 = arith.constant dense<0.000000e+00> : vector<32x256xf32>
    %176 = tpu.matmul %174, %175, %cst_149 {dimension_numbers = #tpu.dot_dimension_numbers<[1], [0], [0], [1], [0, 0, 1, 1], [], []>} : vector<32x256xbf16>, vector<256x256xbf16>, vector<32x256xf32> -> vector<32x256xf32>
    %c0_150 = arith.constant 0 : index
    %c0_151 = arith.constant 0 : index
    %177 = vector.load %arg35[%c0_150, %c0_151] : memref<1x256xf32, #tpu.memory_space<vmem>>, vector<1x256xf32>
    %178 = vector.broadcast %177 : vector<1x256xf32> to vector<32x256xf32>
    %179 = arith.addf %176, %178 : vector<32x256xf32>
    %cst_152 = arith.constant 0.000000e+00 : f32
    %180 = vector.broadcast %cst_152 : f32 to vector<32x256xf32>
    %181 = arith.maximumf %179, %180 : vector<32x256xf32>
    %182 = arith.truncf %181 : vector<32x256xf32> to vector<32x256xbf16>
    %c0_153 = arith.constant 0 : index
    %c0_154 = arith.constant 0 : index
    %183 = vector.load %arg36[%c0_153, %c0_154] : memref<256x256xbf16, #tpu.memory_space<vmem>>, vector<256x256xbf16>
    %cst_155 = arith.constant dense<0.000000e+00> : vector<32x256xf32>
    %184 = tpu.matmul %182, %183, %cst_155 {dimension_numbers = #tpu.dot_dimension_numbers<[1], [0], [0], [1], [0, 0, 1, 1], [], []>} : vector<32x256xbf16>, vector<256x256xbf16>, vector<32x256xf32> -> vector<32x256xf32>
    %c0_156 = arith.constant 0 : index
    %c0_157 = arith.constant 0 : index
    %185 = vector.load %arg37[%c0_156, %c0_157] : memref<1x256xf32, #tpu.memory_space<vmem>>, vector<1x256xf32>
    %186 = vector.broadcast %185 : vector<1x256xf32> to vector<32x256xf32>
    %187 = arith.addf %184, %186 : vector<32x256xf32>
    %cst_158 = arith.constant 0.000000e+00 : f32
    %188 = vector.broadcast %cst_158 : f32 to vector<32x256xf32>
    %189 = arith.maximumf %187, %188 : vector<32x256xf32>
    %190 = arith.truncf %173 : vector<32x256xf32> to vector<32x256xbf16>
    %c0_159 = arith.constant 0 : index
    %c0_160 = arith.constant 0 : index
    %191 = vector.load %arg38[%c0_159, %c0_160] : memref<256x256xbf16, #tpu.memory_space<vmem>>, vector<256x256xbf16>
    %cst_161 = arith.constant dense<0.000000e+00> : vector<32x256xf32>
    %192 = tpu.matmul %190, %191, %cst_161 {dimension_numbers = #tpu.dot_dimension_numbers<[1], [0], [0], [1], [0, 0, 1, 1], [], []>} : vector<32x256xbf16>, vector<256x256xbf16>, vector<32x256xf32> -> vector<32x256xf32>
    %c0_162 = arith.constant 0 : index
    %c0_163 = arith.constant 0 : index
    %193 = vector.load %arg39[%c0_162, %c0_163] : memref<1x256xf32, #tpu.memory_space<vmem>>, vector<1x256xf32>
    %194 = vector.broadcast %193 : vector<1x256xf32> to vector<32x256xf32>
    %195 = arith.addf %192, %194 : vector<32x256xf32>
    %196 = arith.addf %189, %195 : vector<32x256xf32>
    %cst_164 = arith.constant 0.000000e+00 : f32
    %197 = vector.broadcast %cst_164 : f32 to vector<32x256xf32>
    %198 = arith.maximumf %196, %197 : vector<32x256xf32>
    %199 = arith.truncf %198 : vector<32x256xf32> to vector<32x256xbf16>
    %c0_165 = arith.constant 0 : index
    %c0_166 = arith.constant 0 : index
    %200 = vector.load %arg40[%c0_165, %c0_166] : memref<256x256xbf16, #tpu.memory_space<vmem>>, vector<256x256xbf16>
    %cst_167 = arith.constant dense<0.000000e+00> : vector<32x256xf32>
    %201 = tpu.matmul %199, %200, %cst_167 {dimension_numbers = #tpu.dot_dimension_numbers<[1], [0], [0], [1], [0, 0, 1, 1], [], []>} : vector<32x256xbf16>, vector<256x256xbf16>, vector<32x256xf32> -> vector<32x256xf32>
    %c0_168 = arith.constant 0 : index
    %c0_169 = arith.constant 0 : index
    %202 = vector.load %arg41[%c0_168, %c0_169] : memref<1x256xf32, #tpu.memory_space<vmem>>, vector<1x256xf32>
    %203 = vector.broadcast %202 : vector<1x256xf32> to vector<32x256xf32>
    %204 = arith.addf %201, %203 : vector<32x256xf32>
    %cst_170 = arith.constant 0.000000e+00 : f32
    %205 = vector.broadcast %cst_170 : f32 to vector<32x256xf32>
    %206 = arith.maximumf %204, %205 : vector<32x256xf32>
    %207 = arith.truncf %206 : vector<32x256xf32> to vector<32x256xbf16>
    %c0_171 = arith.constant 0 : index
    %c0_172 = arith.constant 0 : index
    %208 = vector.load %arg42[%c0_171, %c0_172] : memref<256x256xbf16, #tpu.memory_space<vmem>>, vector<256x256xbf16>
    %cst_173 = arith.constant dense<0.000000e+00> : vector<32x256xf32>
    %209 = tpu.matmul %207, %208, %cst_173 {dimension_numbers = #tpu.dot_dimension_numbers<[1], [0], [0], [1], [0, 0, 1, 1], [], []>} : vector<32x256xbf16>, vector<256x256xbf16>, vector<32x256xf32> -> vector<32x256xf32>
    %c0_174 = arith.constant 0 : index
    %c0_175 = arith.constant 0 : index
    %210 = vector.load %arg43[%c0_174, %c0_175] : memref<1x256xf32, #tpu.memory_space<vmem>>, vector<1x256xf32>
    %211 = vector.broadcast %210 : vector<1x256xf32> to vector<32x256xf32>
    %212 = arith.addf %209, %211 : vector<32x256xf32>
    %cst_176 = arith.constant 0.000000e+00 : f32
    %213 = vector.broadcast %cst_176 : f32 to vector<32x256xf32>
    %214 = arith.maximumf %212, %213 : vector<32x256xf32>
    %215 = arith.addf %214, %198 : vector<32x256xf32>
    %cst_177 = arith.constant 0.000000e+00 : f32
    %216 = vector.broadcast %cst_177 : f32 to vector<32x256xf32>
    %217 = arith.maximumf %215, %216 : vector<32x256xf32>
    %218 = arith.truncf %217 : vector<32x256xf32> to vector<32x256xbf16>
    %c0_178 = arith.constant 0 : index
    %c0_179 = arith.constant 0 : index
    %219 = vector.load %arg44[%c0_178, %c0_179] : memref<256x384xbf16, #tpu.memory_space<vmem>>, vector<256x384xbf16>
    %cst_180 = arith.constant dense<0.000000e+00> : vector<32x384xf32>
    %220 = tpu.matmul %218, %219, %cst_180 {dimension_numbers = #tpu.dot_dimension_numbers<[1], [0], [0], [1], [0, 0, 1, 1], [], []>} : vector<32x256xbf16>, vector<256x384xbf16>, vector<32x384xf32> -> vector<32x384xf32>
    %c0_181 = arith.constant 0 : index
    %c0_182 = arith.constant 0 : index
    %221 = vector.load %arg45[%c0_181, %c0_182] : memref<1x384xf32, #tpu.memory_space<vmem>>, vector<1x384xf32>
    %222 = vector.broadcast %221 : vector<1x384xf32> to vector<32x384xf32>
    %223 = arith.addf %220, %222 : vector<32x384xf32>
    %cst_183 = arith.constant 0.000000e+00 : f32
    %224 = vector.broadcast %cst_183 : f32 to vector<32x384xf32>
    %225 = arith.maximumf %223, %224 : vector<32x384xf32>
    %226 = arith.truncf %225 : vector<32x384xf32> to vector<32x384xbf16>
    %c0_184 = arith.constant 0 : index
    %c0_185 = arith.constant 0 : index
    %227 = vector.load %arg46[%c0_184, %c0_185] : memref<384x384xbf16, #tpu.memory_space<vmem>>, vector<384x384xbf16>
    %cst_186 = arith.constant dense<0.000000e+00> : vector<32x384xf32>
    %228 = tpu.matmul %226, %227, %cst_186 {dimension_numbers = #tpu.dot_dimension_numbers<[1], [0], [0], [1], [0, 0, 1, 1], [], []>} : vector<32x384xbf16>, vector<384x384xbf16>, vector<32x384xf32> -> vector<32x384xf32>
    %c0_187 = arith.constant 0 : index
    %c0_188 = arith.constant 0 : index
    %229 = vector.load %arg47[%c0_187, %c0_188] : memref<1x384xf32, #tpu.memory_space<vmem>>, vector<1x384xf32>
    %230 = vector.broadcast %229 : vector<1x384xf32> to vector<32x384xf32>
    %231 = arith.addf %228, %230 : vector<32x384xf32>
    %cst_189 = arith.constant 0.000000e+00 : f32
    %232 = vector.broadcast %cst_189 : f32 to vector<32x384xf32>
    %233 = arith.maximumf %231, %232 : vector<32x384xf32>
    %234 = arith.truncf %217 : vector<32x256xf32> to vector<32x256xbf16>
    %c0_190 = arith.constant 0 : index
    %c0_191 = arith.constant 0 : index
    %235 = vector.load %arg48[%c0_190, %c0_191] : memref<256x384xbf16, #tpu.memory_space<vmem>>, vector<256x384xbf16>
    %cst_192 = arith.constant dense<0.000000e+00> : vector<32x384xf32>
    %236 = tpu.matmul %234, %235, %cst_192 {dimension_numbers = #tpu.dot_dimension_numbers<[1], [0], [0], [1], [0, 0, 1, 1], [], []>} : vector<32x256xbf16>, vector<256x384xbf16>, vector<32x384xf32> -> vector<32x384xf32>
    %c0_193 = arith.constant 0 : index
    %c0_194 = arith.constant 0 : index
    %237 = vector.load %arg49[%c0_193, %c0_194] : memref<1x384xf32, #tpu.memory_space<vmem>>, vector<1x384xf32>
    %238 = vector.broadcast %237 : vector<1x384xf32> to vector<32x384xf32>
    %239 = arith.addf %236, %238 : vector<32x384xf32>
    %240 = arith.addf %233, %239 : vector<32x384xf32>
    %cst_195 = arith.constant 0.000000e+00 : f32
    %241 = vector.broadcast %cst_195 : f32 to vector<32x384xf32>
    %242 = arith.maximumf %240, %241 : vector<32x384xf32>
    %243 = arith.truncf %242 : vector<32x384xf32> to vector<32x384xbf16>
    %c0_196 = arith.constant 0 : index
    %c0_197 = arith.constant 0 : index
    %244 = vector.load %arg50[%c0_196, %c0_197] : memref<384x384xbf16, #tpu.memory_space<vmem>>, vector<384x384xbf16>
    %cst_198 = arith.constant dense<0.000000e+00> : vector<32x384xf32>
    %245 = tpu.matmul %243, %244, %cst_198 {dimension_numbers = #tpu.dot_dimension_numbers<[1], [0], [0], [1], [0, 0, 1, 1], [], []>} : vector<32x384xbf16>, vector<384x384xbf16>, vector<32x384xf32> -> vector<32x384xf32>
    %c0_199 = arith.constant 0 : index
    %c0_200 = arith.constant 0 : index
    %246 = vector.load %arg51[%c0_199, %c0_200] : memref<1x384xf32, #tpu.memory_space<vmem>>, vector<1x384xf32>
    %247 = vector.broadcast %246 : vector<1x384xf32> to vector<32x384xf32>
    %248 = arith.addf %245, %247 : vector<32x384xf32>
    %cst_201 = arith.constant 0.000000e+00 : f32
    %249 = vector.broadcast %cst_201 : f32 to vector<32x384xf32>
    %250 = arith.maximumf %248, %249 : vector<32x384xf32>
    %251 = arith.truncf %250 : vector<32x384xf32> to vector<32x384xbf16>
    %c0_202 = arith.constant 0 : index
    %c0_203 = arith.constant 0 : index
    %252 = vector.load %arg52[%c0_202, %c0_203] : memref<384x384xbf16, #tpu.memory_space<vmem>>, vector<384x384xbf16>
    %cst_204 = arith.constant dense<0.000000e+00> : vector<32x384xf32>
    %253 = tpu.matmul %251, %252, %cst_204 {dimension_numbers = #tpu.dot_dimension_numbers<[1], [0], [0], [1], [0, 0, 1, 1], [], []>} : vector<32x384xbf16>, vector<384x384xbf16>, vector<32x384xf32> -> vector<32x384xf32>
    %c0_205 = arith.constant 0 : index
    %c0_206 = arith.constant 0 : index
    %254 = vector.load %arg53[%c0_205, %c0_206] : memref<1x384xf32, #tpu.memory_space<vmem>>, vector<1x384xf32>
    %255 = vector.broadcast %254 : vector<1x384xf32> to vector<32x384xf32>
    %256 = arith.addf %253, %255 : vector<32x384xf32>
    %cst_207 = arith.constant 0.000000e+00 : f32
    %257 = vector.broadcast %cst_207 : f32 to vector<32x384xf32>
    %258 = arith.maximumf %256, %257 : vector<32x384xf32>
    %259 = arith.addf %258, %242 : vector<32x384xf32>
    %cst_208 = arith.constant 0.000000e+00 : f32
    %260 = vector.broadcast %cst_208 : f32 to vector<32x384xf32>
    %261 = arith.maximumf %259, %260 : vector<32x384xf32>
    %262 = vector.extract_strided_slice %261 {offsets = [0, 0], sizes = [16, 384], strides = [1, 1]} : vector<32x384xf32> to vector<16x384xf32>
    %263 = arith.truncf %262 : vector<16x384xf32> to vector<16x384xbf16>
    %c0_209 = arith.constant 0 : index
    %c0_210 = arith.constant 0 : index
    %264 = vector.load %arg54[%c0_209, %c0_210] : memref<384x128xbf16, #tpu.memory_space<vmem>>, vector<384x128xbf16>
    %cst_211 = arith.constant dense<0.000000e+00> : vector<16x128xf32>
    %265 = tpu.matmul %263, %264, %cst_211 {dimension_numbers = #tpu.dot_dimension_numbers<[1], [0], [0], [1], [0, 0, 1, 1], [], []>} : vector<16x384xbf16>, vector<384x128xbf16>, vector<16x128xf32> -> vector<16x128xf32>
    %cst_212 = arith.constant dense<0xFF800000> : vector<128xf32>
    %266 = vector.multi_reduction <maximumf>, %265, %cst_212 [0] : vector<16x128xf32> to vector<128xf32>
    %267 = vector.shape_cast %266 : vector<128xf32> to vector<1x128xf32>
    %268 = vector.broadcast %267 : vector<1x128xf32> to vector<16x128xf32>
    %269 = arith.subf %265, %268 : vector<16x128xf32>
    %270 = math.exp %269 : vector<16x128xf32>
    %cst_213 = arith.constant dense<0.000000e+00> : vector<128xf32>
    %271 = vector.multi_reduction <add>, %270, %cst_213 [0] : vector<16x128xf32> to vector<128xf32>
    %272 = vector.shape_cast %271 : vector<128xf32> to vector<1x128xf32>
    %273 = tpu.reciprocal %272 {approx = true} : vector<1x128xf32> -> vector<1x128xf32>
    %274 = vector.broadcast %273 : vector<1x128xf32> to vector<16x128xf32>
    %275 = arith.mulf %270, %274 : vector<16x128xf32>
    %276 = arith.truncf %275 : vector<16x128xf32> to vector<16x128xbf16>
    %277 = arith.truncf %262 : vector<16x384xf32> to vector<16x384xbf16>
    %cst_214 = arith.constant dense<0.000000e+00> : vector<128x384xf32>
    %278 = tpu.matmul %276, %277, %cst_214 {dimension_numbers = #tpu.dot_dimension_numbers<[0], [0], [1], [1], [0, 1, 1, 1], [], []>} : vector<16x128xbf16>, vector<16x384xbf16>, vector<128x384xf32> -> vector<128x384xf32>
    %c0_215 = arith.constant 0 : index
    %c0_216 = arith.constant 0 : index
    %279 = vector.load %arg55[%c0_215, %c0_216] : memref<128x384xf32, #tpu.memory_space<vmem>>, vector<128x384xf32>
    %280 = arith.mulf %279, %278 : vector<128x384xf32>
    %cst_217 = arith.constant dense<0.000000e+00> : vector<128xf32>
    %281 = vector.multi_reduction <add>, %280, %cst_217 [1] : vector<128x384xf32> to vector<128xf32>
    %c0_218 = arith.constant 0 : index
    %c0_219 = arith.constant 0 : index
    %282 = vector.load %arg56[%c0_218, %c0_219] : memref<1x128xf32, #tpu.memory_space<vmem>>, vector<1x128xf32>
    %283 = vector.shape_cast %282 : vector<1x128xf32> to vector<128xf32>
    %284 = arith.addf %281, %283 : vector<128xf32>
    %285 = vector.shape_cast %284 : vector<128xf32> to vector<1x128xf32>
    %c0_220 = arith.constant 0 : index
    %c0_221 = arith.constant 0 : index
    %286 = vector.load %arg57[%c0_220, %c0_221] : memref<2x128xf32, #tpu.memory_space<vmem>>, vector<1x128xf32>
    tpu.vector_store %arg57[%c0_220, %c0_221], %285 {strides = array<i32>} : memref<2x128xf32, #tpu.memory_space<vmem>>, vector<1x128xf32>,
    %287 = vector.extract_strided_slice %261 {offsets = [16, 0], sizes = [16, 384], strides = [1, 1]} : vector<32x384xf32> to vector<16x384xf32>
    %288 = arith.truncf %287 : vector<16x384xf32> to vector<16x384xbf16>
    %c0_222 = arith.constant 0 : index
    %c0_223 = arith.constant 0 : index
    %289 = vector.load %arg54[%c0_222, %c0_223] : memref<384x128xbf16, #tpu.memory_space<vmem>>, vector<384x128xbf16>
    %cst_224 = arith.constant dense<0.000000e+00> : vector<16x128xf32>
    %290 = tpu.matmul %288, %289, %cst_224 {dimension_numbers = #tpu.dot_dimension_numbers<[1], [0], [0], [1], [0, 0, 1, 1], [], []>} : vector<16x384xbf16>, vector<384x128xbf16>, vector<16x128xf32> -> vector<16x128xf32>
    %cst_225 = arith.constant dense<0xFF800000> : vector<128xf32>
    %291 = vector.multi_reduction <maximumf>, %290, %cst_225 [0] : vector<16x128xf32> to vector<128xf32>
    %292 = vector.shape_cast %291 : vector<128xf32> to vector<1x128xf32>
    %293 = vector.broadcast %292 : vector<1x128xf32> to vector<16x128xf32>
    %294 = arith.subf %290, %293 : vector<16x128xf32>
    %295 = math.exp %294 : vector<16x128xf32>
    %cst_226 = arith.constant dense<0.000000e+00> : vector<128xf32>
    %296 = vector.multi_reduction <add>, %295, %cst_226 [0] : vector<16x128xf32> to vector<128xf32>
    %297 = vector.shape_cast %296 : vector<128xf32> to vector<1x128xf32>
    %298 = tpu.reciprocal %297 {approx = true} : vector<1x128xf32> -> vector<1x128xf32>
    %299 = vector.broadcast %298 : vector<1x128xf32> to vector<16x128xf32>
    %300 = arith.mulf %295, %299 : vector<16x128xf32>
    %301 = arith.truncf %300 : vector<16x128xf32> to vector<16x128xbf16>
    %302 = arith.truncf %287 : vector<16x384xf32> to vector<16x384xbf16>
    %cst_227 = arith.constant dense<0.000000e+00> : vector<128x384xf32>
    %303 = tpu.matmul %301, %302, %cst_227 {dimension_numbers = #tpu.dot_dimension_numbers<[0], [0], [1], [1], [0, 1, 1, 1], [], []>} : vector<16x128xbf16>, vector<16x384xbf16>, vector<128x384xf32> -> vector<128x384xf32>
    %c0_228 = arith.constant 0 : index
    %c0_229 = arith.constant 0 : index
    %304 = vector.load %arg55[%c0_228, %c0_229] : memref<128x384xf32, #tpu.memory_space<vmem>>, vector<128x384xf32>
    %305 = arith.mulf %304, %303 : vector<128x384xf32>
    %cst_230 = arith.constant dense<0.000000e+00> : vector<128xf32>
    %306 = vector.multi_reduction <add>, %305, %cst_230 [1] : vector<128x384xf32> to vector<128xf32>
    %c0_231 = arith.constant 0 : index
    %c0_232 = arith.constant 0 : index
    %307 = vector.load %arg56[%c0_231, %c0_232] : memref<1x128xf32, #tpu.memory_space<vmem>>, vector<1x128xf32>
    %308 = vector.shape_cast %307 : vector<1x128xf32> to vector<128xf32>
    %309 = arith.addf %306, %308 : vector<128xf32>
    %310 = vector.shape_cast %309 : vector<128xf32> to vector<1x128xf32>
    %c1 = arith.constant 1 : index
    %c0_233 = arith.constant 0 : index
    %311 = vector.load %arg57[%c1, %c0_233] : memref<2x128xf32, #tpu.memory_space<vmem>>, vector<1x128xf32>
    tpu.vector_store %arg57[%c1, %c0_233], %310 {strides = array<i32>} : memref<2x128xf32, #tpu.memory_space<vmem>>, vector<1x128xf32>,
    return
  }
  func.func @transform_0(%arg0: i32) -> (i32, i32) {
    %c0_i32 = arith.constant 0 : i32
    %c0_i32_0 = arith.constant 0 : i32
    return %arg0, %c0_i32 : i32, i32
  }
  func.func @transform_1(%arg0: i32) -> (i32, i32) {
    %c0_i32 = arith.constant 0 : i32
    %c0_i32_0 = arith.constant 0 : i32
    %c0_i32_1 = arith.constant 0 : i32
    return %c0_i32, %c0_i32_0 : i32, i32
  }
  func.func @transform_2(%arg0: i32) -> (i32, i32) {
    %c0_i32 = arith.constant 0 : i32
    %c0_i32_0 = arith.constant 0 : i32
    %c0_i32_1 = arith.constant 0 : i32
    return %c0_i32, %c0_i32_0 : i32, i32
  }
  func.func @transform_3(%arg0: i32) -> (i32, i32) {
    %c0_i32 = arith.constant 0 : i32
    %c0_i32_0 = arith.constant 0 : i32
    %c0_i32_1 = arith.constant 0 : i32
    return %c0_i32, %c0_i32_0 : i32, i32
  }
  func.func @transform_4(%arg0: i32) -> (i32, i32) {
    %c0_i32 = arith.constant 0 : i32
    %c0_i32_0 = arith.constant 0 : i32
    %c0_i32_1 = arith.constant 0 : i32
    return %c0_i32, %c0_i32_0 : i32, i32
  }
  func.func @transform_5(%arg0: i32) -> (i32, i32) {
    %c0_i32 = arith.constant 0 : i32
    %c0_i32_0 = arith.constant 0 : i32
    %c0_i32_1 = arith.constant 0 : i32
    return %c0_i32, %c0_i32_0 : i32, i32
  }
  func.func @transform_6(%arg0: i32) -> (i32, i32) {
    %c0_i32 = arith.constant 0 : i32
    %c0_i32_0 = arith.constant 0 : i32
    %c0_i32_1 = arith.constant 0 : i32
    return %c0_i32, %c0_i32_0 : i32, i32
  }
  func.func @transform_7(%arg0: i32) -> (i32, i32) {
    %c0_i32 = arith.constant 0 : i32
    %c0_i32_0 = arith.constant 0 : i32
    %c0_i32_1 = arith.constant 0 : i32
    return %c0_i32, %c0_i32_0 : i32, i32
  }
  func.func @transform_8(%arg0: i32) -> (i32, i32) {
    %c0_i32 = arith.constant 0 : i32
    %c0_i32_0 = arith.constant 0 : i32
    %c0_i32_1 = arith.constant 0 : i32
    return %c0_i32, %c0_i32_0 : i32, i32
  }
  func.func @transform_9(%arg0: i32) -> (i32, i32) {
    %c0_i32 = arith.constant 0 : i32
    %c0_i32_0 = arith.constant 0 : i32
    %c0_i32_1 = arith.constant 0 : i32
    return %c0_i32, %c0_i32_0 : i32, i32
  }
  func.func @transform_10(%arg0: i32) -> (i32, i32) {
    %c0_i32 = arith.constant 0 : i32
    %c0_i32_0 = arith.constant 0 : i32
    %c0_i32_1 = arith.constant 0 : i32
    return %c0_i32, %c0_i32_0 : i32, i32
  }
  func.func @transform_11(%arg0: i32) -> (i32, i32) {
    %c0_i32 = arith.constant 0 : i32
    %c0_i32_0 = arith.constant 0 : i32
    %c0_i32_1 = arith.constant 0 : i32
    return %c0_i32, %c0_i32_0 : i32, i32
  }
  func.func @transform_12(%arg0: i32) -> (i32, i32) {
    %c0_i32 = arith.constant 0 : i32
    %c0_i32_0 = arith.constant 0 : i32
    %c0_i32_1 = arith.constant 0 : i32
    return %c0_i32, %c0_i32_0 : i32, i32
  }
  func.func @transform_13(%arg0: i32) -> (i32, i32) {
    %c0_i32 = arith.constant 0 : i32
    %c0_i32_0 = arith.constant 0 : i32
    %c0_i32_1 = arith.constant 0 : i32
    return %c0_i32, %c0_i32_0 : i32, i32
  }
  func.func @transform_14(%arg0: i32) -> (i32, i32) {
    %c0_i32 = arith.constant 0 : i32
    %c0_i32_0 = arith.constant 0 : i32
    %c0_i32_1 = arith.constant 0 : i32
    return %c0_i32, %c0_i32_0 : i32, i32
  }
  func.func @transform_15(%arg0: i32) -> (i32, i32) {
    %c0_i32 = arith.constant 0 : i32
    %c0_i32_0 = arith.constant 0 : i32
    %c0_i32_1 = arith.constant 0 : i32
    return %c0_i32, %c0_i32_0 : i32, i32
  }
  func.func @transform_16(%arg0: i32) -> (i32, i32) {
    %c0_i32 = arith.constant 0 : i32
    %c0_i32_0 = arith.constant 0 : i32
    %c0_i32_1 = arith.constant 0 : i32
    return %c0_i32, %c0_i32_0 : i32, i32
  }
  func.func @transform_17(%arg0: i32) -> (i32, i32) {
    %c0_i32 = arith.constant 0 : i32
    %c0_i32_0 = arith.constant 0 : i32
    %c0_i32_1 = arith.constant 0 : i32
    return %c0_i32, %c0_i32_0 : i32, i32
  }
  func.func @transform_18(%arg0: i32) -> (i32, i32) {
    %c0_i32 = arith.constant 0 : i32
    %c0_i32_0 = arith.constant 0 : i32
    %c0_i32_1 = arith.constant 0 : i32
    return %c0_i32, %c0_i32_0 : i32, i32
  }
  func.func @transform_19(%arg0: i32) -> (i32, i32) {
    %c0_i32 = arith.constant 0 : i32
    %c0_i32_0 = arith.constant 0 : i32
    %c0_i32_1 = arith.constant 0 : i32
    return %c0_i32, %c0_i32_0 : i32, i32
  }
  func.func @transform_20(%arg0: i32) -> (i32, i32) {
    %c0_i32 = arith.constant 0 : i32
    %c0_i32_0 = arith.constant 0 : i32
    %c0_i32_1 = arith.constant 0 : i32
    return %c0_i32, %c0_i32_0 : i32, i32
  }
  func.func @transform_21(%arg0: i32) -> (i32, i32) {
    %c0_i32 = arith.constant 0 : i32
    %c0_i32_0 = arith.constant 0 : i32
    %c0_i32_1 = arith.constant 0 : i32
    return %c0_i32, %c0_i32_0 : i32, i32
  }
  func.func @transform_22(%arg0: i32) -> (i32, i32) {
    %c0_i32 = arith.constant 0 : i32
    %c0_i32_0 = arith.constant 0 : i32
    %c0_i32_1 = arith.constant 0 : i32
    return %c0_i32, %c0_i32_0 : i32, i32
  }
  func.func @transform_23(%arg0: i32) -> (i32, i32) {
    %c0_i32 = arith.constant 0 : i32
    %c0_i32_0 = arith.constant 0 : i32
    %c0_i32_1 = arith.constant 0 : i32
    return %c0_i32, %c0_i32_0 : i32, i32
  }
  func.func @transform_24(%arg0: i32) -> (i32, i32) {
    %c0_i32 = arith.constant 0 : i32
    %c0_i32_0 = arith.constant 0 : i32
    %c0_i32_1 = arith.constant 0 : i32
    return %c0_i32, %c0_i32_0 : i32, i32
  }
  func.func @transform_25(%arg0: i32) -> (i32, i32) {
    %c0_i32 = arith.constant 0 : i32
    %c0_i32_0 = arith.constant 0 : i32
    %c0_i32_1 = arith.constant 0 : i32
    return %c0_i32, %c0_i32_0 : i32, i32
  }
  func.func @transform_26(%arg0: i32) -> (i32, i32) {
    %c0_i32 = arith.constant 0 : i32
    %c0_i32_0 = arith.constant 0 : i32
    %c0_i32_1 = arith.constant 0 : i32
    return %c0_i32, %c0_i32_0 : i32, i32
  }
  func.func @transform_27(%arg0: i32) -> (i32, i32) {
    %c0_i32 = arith.constant 0 : i32
    %c0_i32_0 = arith.constant 0 : i32
    %c0_i32_1 = arith.constant 0 : i32
    return %c0_i32, %c0_i32_0 : i32, i32
  }
  func.func @transform_28(%arg0: i32) -> (i32, i32) {
    %c0_i32 = arith.constant 0 : i32
    %c0_i32_0 = arith.constant 0 : i32
    %c0_i32_1 = arith.constant 0 : i32
    return %c0_i32, %c0_i32_0 : i32, i32
  }
  func.func @transform_29(%arg0: i32) -> (i32, i32) {
    %c0_i32 = arith.constant 0 : i32
    %c0_i32_0 = arith.constant 0 : i32
    %c0_i32_1 = arith.constant 0 : i32
    return %c0_i32, %c0_i32_0 : i32, i32
  }
  func.func @transform_30(%arg0: i32) -> (i32, i32) {
    %c0_i32 = arith.constant 0 : i32
    %c0_i32_0 = arith.constant 0 : i32
    %c0_i32_1 = arith.constant 0 : i32
    return %c0_i32, %c0_i32_0 : i32, i32
  }
  func.func @transform_31(%arg0: i32) -> (i32, i32) {
    %c0_i32 = arith.constant 0 : i32
    %c0_i32_0 = arith.constant 0 : i32
    %c0_i32_1 = arith.constant 0 : i32
    return %c0_i32, %c0_i32_0 : i32, i32
  }
  func.func @transform_32(%arg0: i32) -> (i32, i32) {
    %c0_i32 = arith.constant 0 : i32
    %c0_i32_0 = arith.constant 0 : i32
    %c0_i32_1 = arith.constant 0 : i32
    return %c0_i32, %c0_i32_0 : i32, i32
  }
  func.func @transform_33(%arg0: i32) -> (i32, i32) {
    %c0_i32 = arith.constant 0 : i32
    %c0_i32_0 = arith.constant 0 : i32
    %c0_i32_1 = arith.constant 0 : i32
    return %c0_i32, %c0_i32_0 : i32, i32
  }
  func.func @transform_34(%arg0: i32) -> (i32, i32) {
    %c0_i32 = arith.constant 0 : i32
    %c0_i32_0 = arith.constant 0 : i32
    %c0_i32_1 = arith.constant 0 : i32
    return %c0_i32, %c0_i32_0 : i32, i32
  }
  func.func @transform_35(%arg0: i32) -> (i32, i32) {
    %c0_i32 = arith.constant 0 : i32
    %c0_i32_0 = arith.constant 0 : i32
    %c0_i32_1 = arith.constant 0 : i32
    return %c0_i32, %c0_i32_0 : i32, i32
  }
  func.func @transform_36(%arg0: i32) -> (i32, i32) {
    %c0_i32 = arith.constant 0 : i32
    %c0_i32_0 = arith.constant 0 : i32
    %c0_i32_1 = arith.constant 0 : i32
    return %c0_i32, %c0_i32_0 : i32, i32
  }
  func.func @transform_37(%arg0: i32) -> (i32, i32) {
    %c0_i32 = arith.constant 0 : i32
    %c0_i32_0 = arith.constant 0 : i32
    %c0_i32_1 = arith.constant 0 : i32
    return %c0_i32, %c0_i32_0 : i32, i32
  }
  func.func @transform_38(%arg0: i32) -> (i32, i32) {
    %c0_i32 = arith.constant 0 : i32
    %c0_i32_0 = arith.constant 0 : i32
    %c0_i32_1 = arith.constant 0 : i32
    return %c0_i32, %c0_i32_0 : i32, i32
  }
  func.func @transform_39(%arg0: i32) -> (i32, i32) {
    %c0_i32 = arith.constant 0 : i32
    %c0_i32_0 = arith.constant 0 : i32
    %c0_i32_1 = arith.constant 0 : i32
    return %c0_i32, %c0_i32_0 : i32, i32
  }
  func.func @transform_40(%arg0: i32) -> (i32, i32) {
    %c0_i32 = arith.constant 0 : i32
    %c0_i32_0 = arith.constant 0 : i32
    %c0_i32_1 = arith.constant 0 : i32
    return %c0_i32, %c0_i32_0 : i32, i32
  }
  func.func @transform_41(%arg0: i32) -> (i32, i32) {
    %c0_i32 = arith.constant 0 : i32
    %c0_i32_0 = arith.constant 0 : i32
    %c0_i32_1 = arith.constant 0 : i32
    return %c0_i32, %c0_i32_0 : i32, i32
  }
  func.func @transform_42(%arg0: i32) -> (i32, i32) {
    %c0_i32 = arith.constant 0 : i32
    %c0_i32_0 = arith.constant 0 : i32
    %c0_i32_1 = arith.constant 0 : i32
    return %c0_i32, %c0_i32_0 : i32, i32
  }
  func.func @transform_43(%arg0: i32) -> (i32, i32) {
    %c0_i32 = arith.constant 0 : i32
    %c0_i32_0 = arith.constant 0 : i32
    %c0_i32_1 = arith.constant 0 : i32
    return %c0_i32, %c0_i32_0 : i32, i32
  }
  func.func @transform_44(%arg0: i32) -> (i32, i32) {
    %c0_i32 = arith.constant 0 : i32
    %c0_i32_0 = arith.constant 0 : i32
    %c0_i32_1 = arith.constant 0 : i32
    return %c0_i32, %c0_i32_0 : i32, i32
  }
  func.func @transform_45(%arg0: i32) -> (i32, i32) {
    %c0_i32 = arith.constant 0 : i32
    %c0_i32_0 = arith.constant 0 : i32
    %c0_i32_1 = arith.constant 0 : i32
    return %c0_i32, %c0_i32_0 : i32, i32
  }
  func.func @transform_46(%arg0: i32) -> (i32, i32) {
    %c0_i32 = arith.constant 0 : i32
    %c0_i32_0 = arith.constant 0 : i32
    %c0_i32_1 = arith.constant 0 : i32
    return %c0_i32, %c0_i32_0 : i32, i32
  }
  func.func @transform_47(%arg0: i32) -> (i32, i32) {
    %c0_i32 = arith.constant 0 : i32
    %c0_i32_0 = arith.constant 0 : i32
    %c0_i32_1 = arith.constant 0 : i32
    return %c0_i32, %c0_i32_0 : i32, i32
  }
  func.func @transform_48(%arg0: i32) -> (i32, i32) {
    %c0_i32 = arith.constant 0 : i32
    %c0_i32_0 = arith.constant 0 : i32
    %c0_i32_1 = arith.constant 0 : i32
    return %c0_i32, %c0_i32_0 : i32, i32
  }
  func.func @transform_49(%arg0: i32) -> (i32, i32) {
    %c0_i32 = arith.constant 0 : i32
    %c0_i32_0 = arith.constant 0 : i32
    %c0_i32_1 = arith.constant 0 : i32
    return %c0_i32, %c0_i32_0 : i32, i32
  }
  func.func @transform_50(%arg0: i32) -> (i32, i32) {
    %c0_i32 = arith.constant 0 : i32
    %c0_i32_0 = arith.constant 0 : i32
    %c0_i32_1 = arith.constant 0 : i32
    return %c0_i32, %c0_i32_0 : i32, i32
  }
  func.func @transform_51(%arg0: i32) -> (i32, i32) {
    %c0_i32 = arith.constant 0 : i32
    %c0_i32_0 = arith.constant 0 : i32
    %c0_i32_1 = arith.constant 0 : i32
    return %c0_i32, %c0_i32_0 : i32, i32
  }
  func.func @transform_52(%arg0: i32) -> (i32, i32) {
    %c0_i32 = arith.constant 0 : i32
    %c0_i32_0 = arith.constant 0 : i32
    %c0_i32_1 = arith.constant 0 : i32
    return %c0_i32, %c0_i32_0 : i32, i32
  }
  func.func @transform_53(%arg0: i32) -> (i32, i32) {
    %c0_i32 = arith.constant 0 : i32
    %c0_i32_0 = arith.constant 0 : i32
    %c0_i32_1 = arith.constant 0 : i32
    return %c0_i32, %c0_i32_0 : i32, i32
  }
  func.func @transform_54(%arg0: i32) -> (i32, i32) {
    %c0_i32 = arith.constant 0 : i32
    %c0_i32_0 = arith.constant 0 : i32
    %c0_i32_1 = arith.constant 0 : i32
    return %c0_i32, %c0_i32_0 : i32, i32
  }
  func.func @transform_55(%arg0: i32) -> (i32, i32) {
    %c0_i32 = arith.constant 0 : i32
    %c0_i32_0 = arith.constant 0 : i32
    %c0_i32_1 = arith.constant 0 : i32
    return %c0_i32, %c0_i32_0 : i32, i32
  }
  func.func @transform_56(%arg0: i32) -> (i32, i32) {
    %c0_i32 = arith.constant 0 : i32
    %c0_i32_0 = arith.constant 0 : i32
    return %arg0, %c0_i32 : i32, i32
  }
}

</mosaic_0001>

<bundles_post_ra>
// kernel: forward.1
= control target key start
LH: loop header
LB: loop body
LE: loop exit
PB: predicated region body
PF: predicated region fallthrough
CT: control target
= control target key end

     0   :  { %s16306_s6 = smov 1   ;;  %s16307_s10 = smov 2   ;;  %s17976_s0 = inlined_call_operand.smem [shape: u32[57], index: -1, kind: input, shape index: {}] }
   0x1   :  { %s16430_s5 = sld [smem:[%s17976_s0]]   ;;  %s16308_s14 = smov 3  }
   0x2   :  { %s16435_s9 = sld [smem:[%s17976_s0 + %s16306_s6]]   ;;  %s16309_s18 = smov 4  }
   0x3   :  { %s16440_s13 = sld [smem:[%s17976_s0 + %s16307_s10]]   ;;  %s16310_s22 = smov 5  }
   0x4   :  { %s16445_s17 = sld [smem:[%s17976_s0 + %s16308_s14]]   ;;  %s16311_s26 = smov 6  }
   0x5   :  { %s16450_s21 = sld [smem:[%s17976_s0 + %s16309_s18]]   ;;  %s16312_s30 = smov 7  }
   0x6   :  { %s16455_s25 = sld [smem:[%s17976_s0 + %s16310_s22]]   ;;  %s16313_s4 = smov 8  }
   0x7   :  { %17994 = sst [smem:[#allocation102_spill]] %s16430_s5  ;;  %s16314_s10 = smov 9  }
   0x8   :  { %17995 = sst [smem:[#allocation103_spill]] %s16435_s9  ;;  %s16315_s15 = smov 10  }
   0x9   :  { %s16460_s29 = sld [smem:[%s17976_s0 + %s16311_s26]]   ;;  %s16316_s20 = smov 11  }
   0xa   :  { %17996 = sst [smem:[#allocation104_spill]] %s16445_s17  ;;  %s16317_s26 = smov 12  }
   0xb   :  { %s16465_s3 = sld [smem:[%s17976_s0 + %s16312_s30]]   ;;  %s16318_s1 = smov 13  }
   0xc   :  { %17997 = sst [smem:[#allocation105_spill]] %s16455_s25  ;;  %s16319_s7 = smov 14  }
   0xd   :  { %s16470_s8 = sld [smem:[%s17976_s0 + %s16313_s4]]   ;;  %s16321_s22 = smov 16  }
   0xe   :  { %s16475_s14 = sld [smem:[%s17976_s0 + %s16314_s10]]   ;;  %s16322_s28 = smov 17  }
   0xf   :  { %s16480_s19 = sld [smem:[%s17976_s0 + %s16315_s15]]   ;;  %s16320_s15 = smov 15  }
  0x10   :  { %s16485_s24 = sld [smem:[%s17976_s0 + %s16316_s20]]  }
  0x11   :  { %17998 = sst [smem:[#allocation106_spill]] %s16465_s3 }
  0x12   :  { %s16490_s30 = sld [smem:[%s17976_s0 + %s16317_s26]]  }
  0x13   :  { %s16495_s6 = sld [smem:[%s17976_s0 + %s16318_s1]]  }
  0x14   :  { %17999 = sst [smem:[#allocation107_spill]] %s16475_s14 }
  0x15   :  { %s16500_s12 = sld [smem:[%s17976_s0 + %s16319_s7]]   ;;  %s16323_s7 = smov 18  }
  0x16   :  { %18000 = sst [smem:[#allocation108_spill]] %s16485_s24 }
  0x17   :  { %s16505_s20 = sld [smem:[%s17976_s0 + %s16320_s15]]   ;;  %s16324_s15 = smov 19  }
  0x18   :  { %s16510_s27 = sld [smem:[%s17976_s0 + %s16321_s22]]   ;;  %s16325_s22 = smov 20  }
  0x19   :  { %18001 = sst [smem:[#allocation109_spill]] %s16495_s6 }
  0x1a   :  { %s16515_s4 = sld [smem:[%s17976_s0 + %s16322_s28]]   ;;  %s16326_s28 = smov 21  }
  0x1b   :  { %s16520_s5 = sld [smem:[%s17976_s0 + %s16323_s7]]   ;;  %s16327_s7 = smov 22  }
  0x1c   :  { %s16530_s6 = sld [smem:[%s17976_s0 + %s16325_s22]]   ;;  %s16329_s22 = smov 24  }
  0x1d   :  { %18002 = sst [smem:[#allocation110_spill]] %s16505_s20 }
  0x1e   :  { %s16525_s20 = sld [smem:[%s17976_s0 + %s16324_s15]]   ;;  %s16328_s15 = smov 23  }
  0x1f   :  { %s16540_s24 = sld [smem:[%s17976_s0 + %s16327_s7]]   ;;  %s16331_s7 = smov 26  }
  0x20   :  { %18003 = sst [smem:[#allocation111_spill]] %s16515_s4 }
  0x21   :  { %s16535_s4 = sld [smem:[%s17976_s0 + %s16326_s28]]   ;;  %s16330_s28 = smov 25  }
  0x22   :  { %s16550_s14 = sld [smem:[%s17976_s0 + %s16329_s22]]   ;;  %s16333_s22 = smov 28  }
  0x23   :  { %s16560_s3 = sld [smem:[%s17976_s0 + %s16331_s7]]   ;;  %s16335_s7 = smov 30  }
  0x24   :  { %18004 = sst [smem:[#allocation112_spill]] %s16525_s20 }
  0x25   :  { %s16545_s20 = sld [smem:[%s17976_s0 + %s16328_s15]]   ;;  %s16332_s15 = smov 27  }
  0x26   :  { %s16570_s25 = sld [smem:[%s17976_s0 + %s16333_s22]]   ;;  %s16337_s22 = smov 32  }
  0x27   :  { %18005 = sst [smem:[#allocation113_spill]] %s16535_s4 }
  0x28   :  { %s16555_s4 = sld [smem:[%s17976_s0 + %s16330_s28]]   ;;  %s16334_s28 = smov 29  }
  0x29   :  { %s16580_s17 = sld [smem:[%s17976_s0 + %s16335_s7]]   ;;  %s16339_s7 = smov 34  }
  0x2a   :  { %s16590_s9 = sld [smem:[%s17976_s0 + %s16337_s22]]   ;;  %s16341_s22 = smov 36  }
  0x2b   :  { %18006 = sst [smem:[#allocation114_spill]] %s16545_s20 }
  0x2c   :  { %s16565_s20 = sld [smem:[%s17976_s0 + %s16332_s15]]   ;;  %s16336_s15 = smov 31  }
  0x2e   :  { %18007 = sst [smem:[#allocation115_spill]] %s16555_s4 }
  0x2f   :  { %s16575_s4 = sld [smem:[%s17976_s0 + %s16334_s28]]   ;;  %s16338_s28 = smov 33  }
  0x30   :  { %18010 = sst [smem:[#allocation118_spill]] %s16580_s17 }
  0x31   :  { %18012 = sst [smem:[#allocation120_spill]] %s16590_s9 }
  0x32   :  { %18008 = sst [smem:[#allocation116_spill]] %s16565_s20 }
  0x33   :  { %s16585_s20 = sld [smem:[%s17976_s0 + %s16336_s15]]   ;;  %s16340_s15 = smov 35  }
  0x34   :  { %s16600_s17 = sld [smem:[%s17976_s0 + %s16339_s7]]   ;;  %s16343_s7 = smov 38  }
  0x35   :  { %18009 = sst [smem:[#allocation117_spill]] %s16575_s4 }
  0x36   :  { %s16595_s4 = sld [smem:[%s17976_s0 + %s16338_s28]]   ;;  %s16342_s28 = smov 37  }
  0x37   :  { %s16610_s9 = sld [smem:[%s17976_s0 + %s16341_s22]]   ;;  %s16345_s22 = smov 40  }
  0x39   :  { %18011 = sst [smem:[#allocation119_spill]] %s16585_s20 }
  0x3a   :  { %18014 = sst [smem:[#allocation122_spill]] %s16600_s17 }
  0x3b   :  { %s16605_s20 = sld [smem:[%s17976_s0 + %s16340_s15]]   ;;  %s16344_s15 = smov 39  }
  0x3c   :  { %18013 = sst [smem:[#allocation121_spill]] %s16595_s4 }
  0x3d   :  { %18016 = sst [smem:[#allocation124_spill]] %s16610_s9 }
  0x3e   :  { %s16615_s4 = sld [smem:[%s17976_s0 + %s16342_s28]]   ;;  %s16346_s28 = smov 41  }
  0x3f   :  { %s16620_s17 = sld [smem:[%s17976_s0 + %s16343_s7]]   ;;  %s16347_s7 = smov 42  }
  0x40   :  { %s16630_s9 = sld [smem:[%s17976_s0 + %s16345_s22]]   ;;  %s16349_s22 = smov 44  }
  0x41   :  { %18015 = sst [smem:[#allocation123_spill]] %s16605_s20 }
  0x42   :  { %s16625_s20 = sld [smem:[%s17976_s0 + %s16344_s15]]   ;;  %s16348_s15 = smov 43  }
  0x44   :  { %18017 = sst [smem:[#allocation125_spill]] %s16615_s4 }
  0x45   :  { %18018 = sst [smem:[#allocation126_spill]] %s16620_s17 }
  0x46   :  { %18020 = sst [smem:[#allocation128_spill]] %s16630_s9 }
  0x47   :  { %s16635_s4 = sld [smem:[%s17976_s0 + %s16346_s28]]   ;;  %s16350_s28 = smov 45  }
  0x48   :  { %18019 = sst [smem:[#allocation127_spill]] %s16625_s20 }
  0x49   :  { %s16640_s17 = sld [smem:[%s17976_s0 + %s16347_s7]]   ;;  %s16351_s7 = smov 46  }
  0x4a   :  { %s16645_s20 = sld [smem:[%s17976_s0 + %s16348_s15]]   ;;  %s16352_s15 = smov 47  }
  0x4b   :  { %s16650_s9 = sld [smem:[%s17976_s0 + %s16349_s22]]   ;;  %s16353_s22 = smov 48  }
  0x4d   :  { %18021 = sst [smem:[#allocation129_spill]] %s16635_s4 }
  0x4e   :  { %s16655_s4 = sld [smem:[%s17976_s0 + %s16350_s28]]   ;;  %s16354_s28 = smov 49  }
  0x4f   :  { %18022 = sst [smem:[#allocation130_spill]] %s16640_s17 }
  0x50   :  { %18023 = sst [smem:[#allocation131_spill]] %s16645_s20 }
  0x51   :  { %18024 = sst [smem:[#allocation132_spill]] %s16650_s9 }
  0x52   :  { %s16660_s17 = sld [smem:[%s17976_s0 + %s16351_s7]]   ;;  %s16355_s7 = smov 50  }
  0x53   :  { %s16665_s20 = sld [smem:[%s17976_s0 + %s16352_s15]]   ;;  %s16356_s15 = smov 51  }
  0x54   :  { %18025 = sst [smem:[#allocation133_spill]] %s16655_s4 }
  0x55   :  { %s16670_s9 = sld [smem:[%s17976_s0 + %s16353_s22]]   ;;  %s16357_s22 = smov 52  }
  0x56   :  { %s16675_s4 = sld [smem:[%s17976_s0 + %s16354_s28]]   ;;  %s16358_s28 = smov 53  }
  0x58   :  { %18026 = sst [smem:[#allocation134_spill]] %s16660_s17 }
  0x59   :  { %18027 = sst [smem:[#allocation135_spill]] %s16665_s20 }
  0x5a   :  { %s16680_s17 = sld [smem:[%s17976_s0 + %s16355_s7]]   ;;  %s16359_s7 = smov 54  }
  0x5b   :  { %18028 = sst [smem:[#allocation136_spill]] %s16670_s9 }
  0x5c   :  { %18029 = sst [smem:[#allocation137_spill]] %s16675_s4 }
  0x5d   :  { %s16685_s20 = sld [smem:[%s17976_s0 + %s16356_s15]]   ;;  %s16360_s15 = smov 55  }
  0x5e   :  { %s16690_s9 = sld [smem:[%s17976_s0 + %s16357_s22]]   ;;  %s16361_s22 = smov 56  }
  0x5f   :  { %s16695_s4 = sld [smem:[%s17976_s0 + %s16358_s28]]  }
  0x60   :  { %18030 = sst [smem:[#allocation138_spill]] %s16680_s17 }
  0x61   :  { %s16700_s17 = sld [smem:[%s17976_s0 + %s16359_s7]]  }
  0x63   :  { %18031 = sst [smem:[#allocation139_spill]] %s16685_s20 }
  0x64   :  { %18032 = sst [smem:[#allocation140_spill]] %s16690_s9 }
  0x65   :  { %s16705_s20 = sld [smem:[%s17976_s0 + %s16360_s15]]  }
  0x66   :  { %s16710_s9 = sld [smem:[%s17976_s0 + %s16361_s22]]  }
  0x67   :  { %118 = vsyncpa [#allocation4], 0 }
  0x68   :  { %119 = vsyncpa [#allocation6], 0 }
  0x69   :  { %120 = vsyncpa [#allocation9], 0 }
  0x6a   :  { %121 = vsyncpa [#allocation12], 0 }
  0x6b   :  { %122 = vsyncpa [#allocation15], 0 }
  0x6c   :  { %123 = vsyncpa [#allocation18], 0 }
  0x6d   :  { %124 = vsyncpa [#allocation21], 0 }
  0x6e   :  { %125 = vsyncpa [#allocation24], 0 }
  0x6f   :  { %126 = vsyncpa [#allocation27], 0 }
  0x70   :  { %127 = vsyncpa [#allocation30], 0 }
  0x71   :  { %128 = vsyncpa [#allocation33], 0 }
  0x72   :  { %129 = vsyncpa [#allocation36], 0 }
  0x73   :  { %130 = vsyncpa [#allocation39], 0 }
  0x74   :  { %131 = vsyncpa [#allocation42], 0 }
  0x75   :  { %132 = vsyncpa [#allocation45], 0 }
  0x76   :  { %133 = vsyncpa [#allocation48], 0 }
  0x77   :  { %134 = vsyncpa [#allocation51], 0 }
  0x78   :  { %135 = vsyncpa [#allocation54], 0 }
  0x79   :  { %136 = vsyncpa [#allocation57], 0 }
  0x7a   :  { %137 = vsyncpa [#allocation60], 0 }
  0x7b   :  { %138 = vsyncpa [#allocation63], 0 }
  0x7c   :  { %139 = vsyncpa [#allocation66], 0 }
  0x7d   :  { %140 = vsyncpa [#allocation69], 0 }
  0x7e   :  { %141 = vsyncpa [#allocation72], 0 }
  0x7f   :  { %142 = vsyncpa [#allocation75], 0  ;;  %s16362_s0 = smov [#allocation5]   ;;  %s16363_s1 = smov [#allocation8]  }
  0x80   :  { %s162_s28 = sshll.u32 %s16362_s0, 4  ;;  %s184_s2 = sshll.u32 %s16363_s1, 4  ;;  %s163_s28 = int_to_ptr.vmem [resolvable:$true] %s162_s28  ;;  %s185_s2 = int_to_ptr.vmem [resolvable:$true] %s184_s2 }
  0x81   :  { %s15284_s7 = scalar_lea.vmem %s163_s28, 1024  ;;  %p15289_p1 = scmp.lt.s32.totalorder %s163_s28, %s163_s28 }
  0x82   :  { %p15285_p0 = scmp.ne.s32.totalorder %s163_s28, %s15284_s7  ;;  %p15290_p2 = scmp.lt.s32.totalorder %s15284_s7, %s15284_s7 }
  0x84   :  { %p15291_p3 = por %p15290_p2, %p15289_p1 }
  0x86   :  { %p15292_p4 = pnand %p15291_p3, %p15285_p0 }
  0x88   :  { %15295 = shalt.err (!%p15292_p4)
}
  0x89   :  { %s16364_s10 = smov 64   ;;  %s16365_s11 = smov 4  }
  0x8a   :  { %168 = dma.hbm_to_vmem [thread:$0]  %s16440_s13, 1024, %s163_s28, [#allocation6], %s16364_s10, %s16364_s10, %s16365_s11  }
  0x8b   :  { %s15304_s15 = scalar_lea.vmem %s185_s2, 1024  ;;  %p15309_p6 = scmp.lt.s32.totalorder %s185_s2, %s185_s2 }
  0x8c   :  { %p15305_p5 = scmp.ne.s32.totalorder %s185_s2, %s15304_s15  ;;  %p15310_p7 = scmp.lt.s32.totalorder %s15304_s15, %s15304_s15 }
  0x8e   :  { %p15311_p8 = por %p15310_p7, %p15309_p6 }
  0x90   :  { %p15312_p9 = pnand %p15311_p8, %p15305_p5 }
  0x92   :  { %15315 = shalt.err (!%p15312_p9)
}
  0x93   :  { %190 = dma.hbm_to_vmem [thread:$0]  %s16450_s21, 1024, %s185_s2, [#allocation9], %s16364_s10, %s16364_s10, %s16365_s11  }
  0x94   :  { %s16366_s16 = smov [#allocation11]  }
  0x95   :  { %s209_s18 = sshll.u32 %s16366_s16, 4  ;;  %s210_s18 = int_to_ptr.vmem [resolvable:$true] %s209_s18 }
  0x96   :  { %s15324_s22 = scalar_lea.vmem %s210_s18, 16  ;;  %s15328_s23 = scalar_lea.vmem %s210_s18, 32 }
  0x97   :  { %p15325_p10 = scmp.ne.s32.totalorder %s210_s18, %s15324_s22  ;;  %p15329_p11 = scmp.lt.s32.totalorder %s210_s18, %s210_s18 }
  0x98   :  { %p15330_p12 = scmp.lt.s32.totalorder %s15328_s23, %s15324_s22 }
  0x9a   :  { %p15331_p13 = por %p15330_p12, %p15329_p11 }
  0x9c   :  { %p15332_p0 = pnand %p15331_p13, %p15325_p10 }
  0x9e   :  { %15335 = shalt.err (!%p15332_p0)
}
  0x9f   :  { %212 = dma.hbm_to_vmem [thread:$0]  %s16460_s29, 16, %s210_s18, [#allocation12]  }
  0xa0   :  { %s16367_s13 = smov [#allocation14]   ;;  %s16368_s0 = smov [#allocation17]  }
  0xa1   :  { %s230_s26 = sshll.u32 %s16367_s13, 4  ;;  %s252_s28 = sshll.u32 %s16368_s0, 4  ;;  %s231_s26 = int_to_ptr.vmem [resolvable:$true] %s230_s26  ;;  %s253_s28 = int_to_ptr.vmem [resolvable:$true] %s252_s28 }
  0xa2   :  { %s15344_s1 = scalar_lea.vmem %s231_s26, 2048  ;;  %p15349_p2 = scmp.lt.s32.totalorder %s231_s26, %s231_s26 }
  0xa3   :  { %p15345_p1 = scmp.ne.s32.totalorder %s231_s26, %s15344_s1  ;;  %p15350_p3 = scmp.lt.s32.totalorder %s15344_s1, %s15344_s1 }
  0xa5   :  { %p15351_p4 = por %p15350_p3, %p15349_p2 }
  0xa7   :  { %p15352_p5 = pnand %p15351_p4, %p15345_p1 }
  0xa9   :  { %15355 = shalt.err (!%p15352_p5)
}
  0xaa   :  { %s16369_s21 = smov 128   ;;  %s16370_s2 = smov 8  }
  0xab   :  { %236 = dma.hbm_to_vmem [thread:$0]  %s16470_s8, 2048, %s231_s26, [#allocation15], %s16369_s21, %s16369_s21, %s16370_s2  }
  0xac   :  { %s15364_s29 = scalar_lea.vmem %s253_s28, 4096  ;;  %p15369_p7 = scmp.lt.s32.totalorder %s253_s28, %s253_s28 }
  0xad   :  { %p15365_p6 = scmp.ne.s32.totalorder %s253_s28, %s15364_s29  ;;  %p15370_p8 = scmp.lt.s32.totalorder %s15364_s29, %s15364_s29 }
  0xaf   :  { %p15371_p9 = por %p15370_p8, %p15369_p7 }
  0xb1   :  { %p15372_p10 = pnand %p15371_p9, %p15365_p6 }
  0xb3   :  { %15375 = shalt.err (!%p15372_p10)
}
  0xb4   :  { %258 = dma.hbm_to_vmem [thread:$0]  %s16480_s19, 4096, %s253_s28, [#allocation18], %s16369_s21, %s16369_s21, %s16370_s2  }
  0xb5   :  { %s16371_s7 = smov [#allocation20]   ;;  %s16372_s16 = smov [#allocation23]  }
  0xb6   :  { %s277_s15 = sshll.u32 %s16371_s7, 4  ;;  %s299_s18 = sshll.u32 %s16372_s16, 4  ;;  %s278_s15 = int_to_ptr.vmem [resolvable:$true] %s277_s15  ;;  %s300_s18 = int_to_ptr.vmem [resolvable:$true] %s299_s18 }
  0xb7   :  { %s15384_s22 = scalar_lea.vmem %s278_s15, 32  ;;  %p15389_p12 = scmp.lt.s32.totalorder %s278_s15, %s278_s15 }
  0xb8   :  { %p15385_p11 = scmp.ne.s32.totalorder %s278_s15, %s15384_s22  ;;  %p15390_p13 = scmp.lt.s32.totalorder %s15384_s22, %s15384_s22 }
  0xba   :  { %p15391_p0 = por %p15390_p13, %p15389_p12 }
  0xbc   :  { %p15392_p1 = pnand %p15391_p0, %p15385_p11 }
  0xbe   :  { %15395 = shalt.err (!%p15392_p1)
}
  0xbf   :  { %280 = dma.hbm_to_vmem [thread:$0]  %s16490_s30, 32, %s278_s15, [#allocation21]  }
  0xc0   :  { %s15404_s8 = scalar_lea.vmem %s300_s18, 32  ;;  %p15409_p3 = scmp.lt.s32.totalorder %s300_s18, %s300_s18 }
  0xc1   :  { %p15405_p2 = scmp.ne.s32.totalorder %s300_s18, %s15404_s8  ;;  %p15410_p4 = scmp.lt.s32.totalorder %s15404_s8, %s15404_s8 }
  0xc3   :  { %p15411_p5 = por %p15410_p4, %p15409_p3 }
  0xc5   :  { %p15412_p6 = pnand %p15411_p5, %p15405_p2 }
  0xc7   :  { %15415 = shalt.err (!%p15412_p6)
}
  0xc8   :  { %302 = dma.hbm_to_vmem [thread:$0]  %s16500_s12, 32, %s300_s18, [#allocation24]  }
  0xc9   :  { %s16373_s19 = smov [#allocation26]   ;;  %s16374_s13 = smov [#allocation29]  }
  0xca   :  { %s320_s23 = sshll.u32 %s16373_s19, 4  ;;  %s342_s26 = sshll.u32 %s16374_s13, 4  ;;  %s321_s23 = int_to_ptr.vmem [resolvable:$true] %s320_s23  ;;  %s343_s26 = int_to_ptr.vmem [resolvable:$true] %s342_s26 }
  0xcb   :  { %s15424_s0 = scalar_lea.vmem %s321_s23, 4096  ;;  %p15429_p8 = scmp.lt.s32.totalorder %s321_s23, %s321_s23 }
  0xcc   :  { %p15425_p7 = scmp.ne.s32.totalorder %s321_s23, %s15424_s0  ;;  %p15430_p9 = scmp.lt.s32.totalorder %s15424_s0, %s15424_s0 }
  0xce   :  { %p15431_p10 = por %p15430_p9, %p15429_p8 }
  0xd0   :  { %p15432_p11 = pnand %p15431_p10, %p15425_p7 }
  0xd2   :  { %15435 = shalt.err (!%p15432_p11)
}
  0xd3   :  { %326 = dma.hbm_to_vmem [thread:$0]  %s16510_s27, 4096, %s321_s23, [#allocation27], %s16369_s21, %s16369_s21, %s16370_s2  }
  0xd4   :  { %s15444_s30 = scalar_lea.vmem %s343_s26, 4096  ;;  %p15449_p13 = scmp.lt.s32.totalorder %s343_s26, %s343_s26 }
  0xd5   :  { %p15445_p12 = scmp.ne.s32.totalorder %s343_s26, %s15444_s30  ;;  %p15450_p0 = scmp.lt.s32.totalorder %s15444_s30, %s15444_s30 }
  0xd7   :  { %p15451_p1 = por %p15450_p0, %p15449_p13 }
  0xd9   :  { %p15452_p2 = pnand %p15451_p1, %p15445_p12 }
  0xdb   :  { %15455 = shalt.err (!%p15452_p2)
}
  0xdc   :  { %348 = dma.hbm_to_vmem [thread:$0]  %s16520_s5, 4096, %s343_s26, [#allocation30], %s16369_s21, %s16369_s21, %s16370_s2  }
  0xdd   :  { %s16375_s12 = smov [#allocation32]   ;;  %s16376_s1 = smov [#allocation35]  }
  0xde   :  { %s367_s28 = sshll.u32 %s16375_s12, 4  ;;  %s388_s29 = sshll.u32 %s16376_s1, 4  ;;  %s368_s28 = int_to_ptr.vmem [resolvable:$true] %s367_s28  ;;  %s389_s29 = int_to_ptr.vmem [resolvable:$true] %s388_s29 }
  0xdf   :  { %s15464_s7 = scalar_lea.vmem %s368_s28, 32  ;;  %p15469_p4 = scmp.lt.s32.totalorder %s368_s28, %s368_s28 }
  0xe0   :  { %p15465_p3 = scmp.ne.s32.totalorder %s368_s28, %s15464_s7  ;;  %p15470_p5 = scmp.lt.s32.totalorder %s15464_s7, %s15464_s7 }
  0xe2   :  { %p15471_p6 = por %p15470_p5, %p15469_p4 }
  0xe4   :  { %p15472_p7 = pnand %p15471_p6, %p15465_p3 }
  0xe6   :  { %15475 = shalt.err (!%p15472_p7)
}
  0xe7   :  { %370 = dma.hbm_to_vmem [thread:$0]  %s16530_s6, 32, %s368_s28, [#allocation33]  }
  0xe8   :  { %s15484_s27 = scalar_lea.vmem %s389_s29, 4096  ;;  %p15489_p9 = scmp.lt.s32.totalorder %s389_s29, %s389_s29 }
  0xe9   :  { %p15485_p8 = scmp.ne.s32.totalorder %s389_s29, %s15484_s27  ;;  %p15490_p10 = scmp.lt.s32.totalorder %s15484_s27, %s15484_s27 }
  0xeb   :  { %p15491_p11 = por %p15490_p10, %p15489_p9 }
  0xed   :  { %p15492_p12 = pnand %p15491_p11, %p15485_p8 }
  0xef   :  { %15495 = shalt.err (!%p15492_p12)
}
  0xf0   :  { %394 = dma.hbm_to_vmem [thread:$0]  %s16540_s24, 4096, %s389_s29, [#allocation36], %s16369_s21, %s16369_s21, %s16370_s2  }
  0xf1   :  { %s16377_s5 = smov [#allocation38]   ;;  %s16378_s16 = smov [#allocation41]  }
  0xf2   :  { %s410_s15 = sshll.u32 %s16377_s5, 4  ;;  %s435_s18 = sshll.u32 %s16378_s16, 4  ;;  %s411_s15 = int_to_ptr.vmem [resolvable:$true] %s410_s15  ;;  %s436_s18 = int_to_ptr.vmem [resolvable:$true] %s435_s18 }
  0xf3   :  { %s15504_s22 = scalar_lea.vmem %s411_s15, 4096  ;;  %p15509_p0 = scmp.lt.s32.totalorder %s411_s15, %s411_s15 }
  0xf4   :  { %p15505_p13 = scmp.ne.s32.totalorder %s411_s15, %s15504_s22  ;;  %p15510_p1 = scmp.lt.s32.totalorder %s15504_s22, %s15504_s22 }
  0xf6   :  { %p15511_p2 = por %p15510_p1, %p15509_p0 }
  0xf8   :  { %p15512_p3 = pnand %p15511_p2, %p15505_p13 }
  0xfa   :  { %15515 = shalt.err (!%p15512_p3)
}
  0xfb   :  { %416 = dma.hbm_to_vmem [thread:$0]  %s16550_s14, 4096, %s411_s15, [#allocation39], %s16369_s21, %s16369_s21, %s16370_s2  }
  0xfc   :  { %s15524_s6 = scalar_lea.vmem %s436_s18, 32  ;;  %p15529_p5 = scmp.lt.s32.totalorder %s436_s18, %s436_s18 }
  0xfd   :  { %p15525_p4 = scmp.ne.s32.totalorder %s436_s18, %s15524_s6  ;;  %p15530_p6 = scmp.lt.s32.totalorder %s15524_s6, %s15524_s6 }
  0xff   :  { %p15531_p7 = por %p15530_p6, %p15529_p5 }
 0x101   :  { %p15532_p8 = pnand %p15531_p7, %p15525_p4 }
 0x103   :  { %15535 = shalt.err (!%p15532_p8)
}
 0x104   :  { %438 = dma.hbm_to_vmem [thread:$0]  %s16560_s3, 32, %s436_s18, [#allocation42]  }
 0x105   :  { %s16379_s24 = smov [#allocation44]   ;;  %s16380_s19 = smov [#allocation47]  }
 0x106   :  { %s457_s8 = sshll.u32 %s16379_s24, 4  ;;  %s479_s23 = sshll.u32 %s16380_s19, 4  ;;  %s458_s8 = int_to_ptr.vmem [resolvable:$true] %s457_s8  ;;  %s480_s23 = int_to_ptr.vmem [resolvable:$true] %s479_s23 }
 0x107   :  { %s15544_s13 = scalar_lea.vmem %s458_s8, 32  ;;  %p15549_p10 = scmp.lt.s32.totalorder %s458_s8, %s458_s8 }
 0x108   :  { %p15545_p9 = scmp.ne.s32.totalorder %s458_s8, %s15544_s13  ;;  %p15550_p11 = scmp.lt.s32.totalorder %s15544_s13, %s15544_s13 }
 0x10a   :  { %p15551_p12 = por %p15550_p11, %p15549_p10 }
 0x10c   :  { %p15552_p13 = pnand %p15551_p12, %p15545_p9 }
 0x10e   :  { %15555 = shalt.err (!%p15552_p13)
}
 0x10f   :  { %460 = dma.hbm_to_vmem [thread:$0]  %s16570_s25, 32, %s458_s8, [#allocation45]  }
 0x110   :  { %s15564_s14 = scalar_lea.vmem %s480_s23, 32  ;;  %p15569_p1 = scmp.lt.s32.totalorder %s480_s23, %s480_s23 }
 0x111   :  { %p15565_p0 = scmp.ne.s32.totalorder %s480_s23, %s15564_s14  ;;  %p15570_p2 = scmp.lt.s32.totalorder %s15564_s14, %s15564_s14 }
 0x113   :  { %p15571_p3 = por %p15570_p2, %p15569_p1 }
 0x115   :  { %p15572_p4 = pnand %p15571_p3, %p15565_p0 }
 0x117   :  { %15575 = shalt.err (!%p15572_p4)
}
 0x118   :  { %s18033_s3 = sld [smem:[#allocation118_spill]]  ;;  %s16381_s26 = smov [#allocation50]  }
 0x119   :  { %s501_s0 = sshll.u32 %s16381_s26, 4  ;;  %s16382_s30 = smov [#allocation53]   ;;  %s502_s0 = int_to_ptr.vmem [resolvable:$true] %s501_s0 }
 0x11a   :  { %s523_s12 = sshll.u32 %s16382_s30, 4  ;;  %s15584_s28 = scalar_lea.vmem %s502_s0, 32  ;;  %s524_s12 = int_to_ptr.vmem [resolvable:$true] %s523_s12 }
 0x11b   :  { %p15585_p5 = scmp.ne.s32.totalorder %s502_s0, %s15584_s28  ;;  %p15589_p6 = scmp.lt.s32.totalorder %s502_s0, %s502_s0 }
 0x11c   :  { %p15590_p7 = scmp.lt.s32.totalorder %s15584_s28, %s15584_s28 }
 0x11e   :  { %482 = dma.hbm_to_vmem [thread:$0]  %s18033_s3, 32, %s480_s23, [#allocation48]  }
 0x11f   :  { %p15591_p8 = por %p15590_p7, %p15589_p6 }
 0x121   :  { %p15592_p9 = pnand %p15591_p8, %p15585_p5 }
 0x123   :  { %15595 = shalt.err (!%p15592_p9)
}
 0x124   :  { %s18034_s25 = sld [smem:[#allocation120_spill]]  ;;  %s15604_s1 = scalar_lea.vmem %s524_s12, 32 }
 0x125   :  { %p15605_p10 = scmp.ne.s32.totalorder %s524_s12, %s15604_s1  ;;  %p15609_p11 = scmp.lt.s32.totalorder %s524_s12, %s524_s12 }
 0x126   :  { %p15610_p12 = scmp.lt.s32.totalorder %s15604_s1, %s15604_s1 }
 0x128   :  { %p15611_p13 = por %p15610_p12, %p15609_p11 }
 0x12a   :  { %504 = dma.hbm_to_vmem [thread:$0]  %s18034_s25, 32, %s502_s0, [#allocation51]  }
 0x12b   :  { %p15612_p0 = pnand %p15611_p13, %p15605_p10 }
 0x12d   :  { %15615 = shalt.err (!%p15612_p0)
}
 0x12e   :  { %s18035_s29 = sld [smem:[#allocation122_spill]]  ;;  %s16383_s7 = smov [#allocation56]  }
 0x12f   :  { %s545_s27 = sshll.u32 %s16383_s7, 4  ;;  %s16384_s5 = smov [#allocation59]   ;;  %s546_s27 = int_to_ptr.vmem [resolvable:$true] %s545_s27 }
 0x130   :  { %s567_s15 = sshll.u32 %s16384_s5, 4  ;;  %s15624_s16 = scalar_lea.vmem %s546_s27, 32  ;;  %s568_s15 = int_to_ptr.vmem [resolvable:$true] %s567_s15 }
 0x131   :  { %p15625_p1 = scmp.ne.s32.totalorder %s546_s27, %s15624_s16  ;;  %p15629_p2 = scmp.lt.s32.totalorder %s546_s27, %s546_s27 }
 0x132   :  { %p15630_p3 = scmp.lt.s32.totalorder %s15624_s16, %s15624_s16 }
 0x134   :  { %526 = dma.hbm_to_vmem [thread:$0]  %s18035_s29, 32, %s524_s12, [#allocation54]  }
 0x135   :  { %p15631_p4 = por %p15630_p3, %p15629_p2 }
 0x137   :  { %p15632_p5 = pnand %p15631_p4, %p15625_p1 }
 0x139   :  { %15635 = shalt.err (!%p15632_p5)
}
 0x13a   :  { %s18036_s18 = sld [smem:[#allocation124_spill]]  ;;  %s15644_s22 = scalar_lea.vmem %s568_s15, 32 }
 0x13b   :  { %p15645_p6 = scmp.ne.s32.totalorder %s568_s15, %s15644_s22  ;;  %p15649_p7 = scmp.lt.s32.totalorder %s568_s15, %s568_s15 }
 0x13c   :  { %p15650_p8 = scmp.lt.s32.totalorder %s15644_s22, %s15644_s22 }
 0x13e   :  { %p15651_p9 = por %p15650_p8, %p15649_p7 }
 0x140   :  { %548 = dma.hbm_to_vmem [thread:$0]  %s18036_s18, 32, %s546_s27, [#allocation57]  }
 0x141   :  { %p15652_p10 = pnand %p15651_p9, %p15645_p6 }
 0x143   :  { %15655 = shalt.err (!%p15652_p10)
}
 0x144   :  { %s18037_s6 = sld [smem:[#allocation126_spill]]  ;;  %s16385_s24 = smov [#allocation62]  }
 0x145   :  { %s589_s8 = sshll.u32 %s16385_s24, 4  ;;  %s16386_s19 = smov [#allocation65]   ;;  %s590_s8 = int_to_ptr.vmem [resolvable:$true] %s589_s8 }
 0x146   :  { %s611_s23 = sshll.u32 %s16386_s19, 4  ;;  %s15664_s13 = scalar_lea.vmem %s590_s8, 32  ;;  %s612_s23 = int_to_ptr.vmem [resolvable:$true] %s611_s23 }
 0x147   :  { %p15665_p11 = scmp.ne.s32.totalorder %s590_s8, %s15664_s13  ;;  %p15669_p12 = scmp.lt.s32.totalorder %s590_s8, %s590_s8 }
 0x148   :  { %p15670_p13 = scmp.lt.s32.totalorder %s15664_s13, %s15664_s13 }
 0x14a   :  { %570 = dma.hbm_to_vmem [thread:$0]  %s18037_s6, 32, %s568_s15, [#allocation60]  }
 0x14b   :  { %p15671_p0 = por %p15670_p13, %p15669_p12 }
 0x14d   :  { %p15672_p1 = pnand %p15671_p0, %p15665_p11 }
 0x14f   :  { %15675 = shalt.err (!%p15672_p1)
}
 0x150   :  { %s18038_s14 = sld [smem:[#allocation128_spill]]  ;;  %s15684_s3 = scalar_lea.vmem %s612_s23, 32 }
 0x151   :  { %p15685_p2 = scmp.ne.s32.totalorder %s612_s23, %s15684_s3  ;;  %p15689_p3 = scmp.lt.s32.totalorder %s612_s23, %s612_s23 }
 0x152   :  { %p15690_p4 = scmp.lt.s32.totalorder %s15684_s3, %s15684_s3 }
 0x154   :  { %p15691_p5 = por %p15690_p4, %p15689_p3 }
 0x156   :  { %592 = dma.hbm_to_vmem [thread:$0]  %s18038_s14, 32, %s590_s8, [#allocation63]  }
 0x157   :  { %p15692_p6 = pnand %p15691_p5, %p15685_p2 }
 0x159   :  { %15695 = shalt.err (!%p15692_p6)
}
 0x15a   :  { %s18039_s26 = sld [smem:[#allocation130_spill]]  ;;  %s16387_s0 = smov [#allocation68]  }
 0x15b   :  { %s634_s30 = sshll.u32 %s16387_s0, 4  ;;  %s16388_s12 = smov [#allocation71]   ;;  %s635_s30 = int_to_ptr.vmem [resolvable:$true] %s634_s30 }
 0x15c   :  { %s660_s28 = sshll.u32 %s16388_s12, 4  ;;  %s15704_s25 = scalar_lea.vmem %s635_s30, 9216  ;;  %s661_s28 = int_to_ptr.vmem [resolvable:$true] %s660_s28 }
 0x15d   :  { %p15705_p7 = scmp.ne.s32.totalorder %s635_s30, %s15704_s25  ;;  %p15709_p8 = scmp.lt.s32.totalorder %s635_s30, %s635_s30 }
 0x15e   :  { %p15710_p9 = scmp.lt.s32.totalorder %s15704_s25, %s15704_s25 }
 0x160   :  { %614 = dma.hbm_to_vmem [thread:$0]  %s18039_s26, 32, %s612_s23, [#allocation66]  }
 0x161   :  { %p15711_p10 = por %p15710_p9, %p15709_p8 }
 0x163   :  { %p15712_p11 = pnand %p15711_p10, %p15705_p7 }
 0x165   :  { %15715 = shalt.err (!%p15712_p11)
}
 0x166   :  { %s16389_s1 = smov 192   ;;  %s18040_s29 = sld [smem:[#allocation133_spill]] }
 0x167   :  { %s16390_s7 = smov 12   ;;  %s15724_s27 = scalar_lea.vmem %s661_s28, 9216 }
 0x168   :  { %p15725_p12 = scmp.ne.s32.totalorder %s661_s28, %s15724_s27  ;;  %p15729_p13 = scmp.lt.s32.totalorder %s661_s28, %s661_s28 }
 0x169   :  { %p15730_p0 = scmp.lt.s32.totalorder %s15724_s27, %s15724_s27 }
 0x16b   :  { %p15731_p1 = por %p15730_p0, %p15729_p13 }
 0x16c   :  { %640 = dma.hbm_to_vmem [thread:$0]  %s18040_s29, 9216, %s635_s30, [#allocation69], %s16389_s1, %s16389_s1, %s16390_s7  }
 0x16d   :  { %p15732_p2 = pnand %p15731_p1, %p15725_p12 }
 0x16f   :  { %15735 = shalt.err (!%p15732_p2)
}
 0x170   :  { %s18041_s5 = sld [smem:[#allocation137_spill]]  ;;  %s16391_s15 = smov [#allocation74]  }
 0x171   :  { %s688_s16 = sshll.u32 %s16391_s15, 4  ;;  %s16392_s18 = smov [#allocation3]   ;;  %s689_s16 = int_to_ptr.vmem [resolvable:$true] %s688_s16 }
 0x172   :  { %s150_s22 = sshll.u32 %s16392_s18, 4  ;;  %s15744_s6 = scalar_lea.vmem %s689_s16, 3072  ;;  %s151_s22 = int_to_ptr.vmem [resolvable:$true] %s150_s22 }
 0x173   :  { %p15745_p3 = scmp.ne.s32.totalorder %s689_s16, %s15744_s6  ;;  %p15749_p4 = scmp.lt.s32.totalorder %s689_s16, %s689_s16 }
 0x174   :  { %p15750_p5 = scmp.lt.s32.totalorder %s15744_s6, %s15744_s6 }
 0x176   :  { %666 = dma.hbm_to_vmem [thread:$0]  %s18041_s5, 9216, %s661_s28, [#allocation72], %s16389_s1, %s16389_s1, %s16390_s7  }
 0x177   :  { %p15751_p6 = por %p15750_p5, %p15749_p4 }
 0x179   :  { %p15752_p7 = pnand %p15751_p6, %p15745_p3 }
 0x17b   :  { %15755 = shalt.err (!%p15752_p7)
}
 0x17c   :  { %694 = dma.hbm_to_vmem [thread:$0]  %s16695_s4, 3072, %s689_s16, [#allocation75], %s16364_s10, %s16364_s10, %s16365_s11  }
 0x17d   :  { %s15764_s24 = scalar_lea.vmem %s151_s22, 1024  ;;  %p15769_p9 = scmp.lt.s32.totalorder %s151_s22, %s151_s22 }
 0x17e   :  { %p15765_p8 = scmp.ne.s32.totalorder %s151_s22, %s15764_s24  ;;  %p15770_p10 = scmp.lt.s32.totalorder %s15764_s24, %s15764_s24 }
 0x180   :  { %p15771_p11 = por %p15770_p10, %p15769_p9 }
 0x182   :  { %p15772_p12 = pnand %p15771_p11, %p15765_p8 }
 0x184   :  { %15775 = shalt.err (!%p15772_p12)
}
 0x185   :  { %s18042_s8 = sld [smem:[#allocation103_spill]]  ;;  %s16393_s19 = smov [#allocation7]  }
 0x186   :  { %s175_s23 = sshll.u32 %s16393_s19, 4  ;;  %s16394_s13 = smov [#allocation10]   ;;  %s176_s23 = int_to_ptr.vmem [resolvable:$true] %s175_s23 }
 0x187   :  { %s196_s14 = sshll.u32 %s16394_s13, 4  ;;  %s15784_s3 = scalar_lea.vmem %s176_s23, 16  ;;  %s197_s14 = int_to_ptr.vmem [resolvable:$true] %s196_s14 }
 0x188   :  { %p15785_p13 = scmp.ne.s32.totalorder %s176_s23, %s15784_s3  ;;  %s15788_s4 = scalar_lea.vmem %s176_s23, 32 }
 0x189   :  { %p15789_p0 = scmp.lt.s32.totalorder %s176_s23, %s176_s23  ;;  %p15790_p1 = scmp.lt.s32.totalorder %s15788_s4, %s15784_s3 }
 0x18b   :  { %156 = dma.hbm_to_vmem [thread:$0]  %s18042_s8, 1024, %s151_s22, [#allocation4], %s16364_s10, %s16364_s10, %s16365_s11  }
 0x18c   :  { %p15791_p2 = por %p15790_p1, %p15789_p0 }
 0x18e   :  { %p15792_p3 = pnand %p15791_p2, %p15785_p13 }
 0x190   :  { %15795 = shalt.err (!%p15792_p3)
}
 0x191   :  { %s18043_s26 = sld [smem:[#allocation104_spill]]  ;;  %s15804_s0 = scalar_lea.vmem %s197_s14, 1024 }
 0x192   :  { %p15805_p4 = scmp.ne.s32.totalorder %s197_s14, %s15804_s0  ;;  %p15809_p5 = scmp.lt.s32.totalorder %s197_s14, %s197_s14 }
 0x193   :  { %p15810_p6 = scmp.lt.s32.totalorder %s15804_s0, %s15804_s0 }
 0x195   :  { %p15811_p7 = por %p15810_p6, %p15809_p5 }
 0x197   :  { %178 = dma.hbm_to_vmem [thread:$0]  %s18043_s26, 16, %s176_s23, [#allocation6]  }
 0x198   :  { %p15812_p8 = pnand %p15811_p7, %p15805_p4 }
 0x19a   :  { %15815 = shalt.err (!%p15812_p8)
}
 0x19b   :  { %s18044_s30 = sld [smem:[#allocation105_spill]]  ;;  %s16395_s12 = smov [#allocation13]  }
 0x19c   :  { %s218_s28 = sshll.u32 %s16395_s12, 4  ;;  %s16396_s25 = smov [#allocation16]   ;;  %s219_s28 = int_to_ptr.vmem [resolvable:$true] %s218_s28 }
 0x19d   :  { %s243_s29 = sshll.u32 %s16396_s25, 4  ;;  %s15824_s27 = scalar_lea.vmem %s219_s28, 2048  ;;  %s244_s29 = int_to_ptr.vmem [resolvable:$true] %s243_s29 }
 0x19e   :  { %p15825_p9 = scmp.ne.s32.totalorder %s219_s28, %s15824_s27  ;;  %p15829_p10 = scmp.lt.s32.totalorder %s219_s28, %s219_s28 }
 0x19f   :  { %p15830_p11 = scmp.lt.s32.totalorder %s15824_s27, %s15824_s27 }
 0x1a1   :  { %202 = dma.hbm_to_vmem [thread:$0]  %s18044_s30, 1024, %s197_s14, [#allocation9], %s16364_s10, %s16364_s10, %s16365_s11  }
 0x1a2   :  { %p15831_p12 = por %p15830_p11, %p15829_p10 }
 0x1a4   :  { %p15832_p13 = pnand %p15831_p12, %p15825_p9 }
 0x1a6   :  { %15835 = shalt.err (!%p15832_p13)
}
 0x1a7   :  { %s18045_s5 = sld [smem:[#allocation106_spill]]  ;;  %s15844_s15 = scalar_lea.vmem %s244_s29, 32 }
 0x1a8   :  { %p15845_p0 = scmp.ne.s32.totalorder %s244_s29, %s15844_s15  ;;  %p15849_p1 = scmp.lt.s32.totalorder %s244_s29, %s244_s29 }
 0x1a9   :  { %p15850_p2 = scmp.lt.s32.totalorder %s15844_s15, %s15844_s15 }
 0x1ab   :  { %p15851_p3 = por %p15850_p2, %p15849_p1 }
 0x1ad   :  { %224 = dma.hbm_to_vmem [thread:$0]  %s18045_s5, 2048, %s219_s28, [#allocation12], %s16369_s21, %s16369_s21, %s16370_s2  }
 0x1ae   :  { %p15852_p4 = pnand %p15851_p3, %p15845_p0 }
 0x1b0   :  { %15855 = shalt.err (!%p15852_p4)
}
 0x1b1   :  { %s18046_s10 = sld [smem:[#allocation107_spill]]  ;;  %s16397_s11 = smov [#allocation19]  }
 0x1b2   :  { %s264_s16 = sshll.u32 %s16397_s11, 4  ;;  %s16398_s18 = smov [#allocation22]   ;;  %s265_s16 = int_to_ptr.vmem [resolvable:$true] %s264_s16 }
 0x1b3   :  { %s286_s22 = sshll.u32 %s16398_s18, 4  ;;  %s15864_s6 = scalar_lea.vmem %s265_s16, 4096  ;;  %s287_s22 = int_to_ptr.vmem [resolvable:$true] %s286_s22 }
 0x1b4   :  { %p15865_p5 = scmp.ne.s32.totalorder %s265_s16, %s15864_s6  ;;  %p15869_p6 = scmp.lt.s32.totalorder %s265_s16, %s265_s16 }
 0x1b5   :  { %p15870_p7 = scmp.lt.s32.totalorder %s15864_s6, %s15864_s6 }
 0x1b7   :  { %246 = dma.hbm_to_vmem [thread:$0]  %s18046_s10, 32, %s244_s29, [#allocation15]  }
 0x1b8   :  { %p15871_p8 = por %p15870_p7, %p15869_p6 }
 0x1ba   :  { %p15872_p9 = pnand %p15871_p8, %p15865_p5 }
 0x1bc   :  { %15875 = shalt.err (!%p15872_p9)
}
 0x1bd   :  { %s18047_s24 = sld [smem:[#allocation108_spill]]  ;;  %s15884_s8 = scalar_lea.vmem %s287_s22, 2048 }
 0x1be   :  { %p15885_p10 = scmp.ne.s32.totalorder %s287_s22, %s15884_s8  ;;  %p15889_p11 = scmp.lt.s32.totalorder %s287_s22, %s287_s22 }
 0x1bf   :  { %p15890_p12 = scmp.lt.s32.totalorder %s15884_s8, %s15884_s8 }
 0x1c1   :  { %p15891_p13 = por %p15890_p12, %p15889_p11 }
 0x1c3   :  { %270 = dma.hbm_to_vmem [thread:$0]  %s18047_s24, 4096, %s265_s16, [#allocation18], %s16369_s21, %s16369_s21, %s16370_s2  }
 0x1c4   :  { %p15892_p0 = pnand %p15891_p13, %p15885_p10 }
 0x1c6   :  { %15895 = shalt.err (!%p15892_p0)
}
 0x1c7   :  { %s18048_s19 = sld [smem:[#allocation109_spill]]  ;;  %s16399_s23 = smov [#allocation25]  }
 0x1c8   :  { %s308_s13 = sshll.u32 %s16399_s23, 4  ;;  %s16400_s14 = smov [#allocation28]   ;;  %s309_s13 = int_to_ptr.vmem [resolvable:$true] %s308_s13 }
 0x1c9   :  { %s333_s3 = sshll.u32 %s16400_s14, 4  ;;  %s15904_s4 = scalar_lea.vmem %s309_s13, 4096  ;;  %s334_s3 = int_to_ptr.vmem [resolvable:$true] %s333_s3 }
 0x1ca   :  { %p15905_p1 = scmp.ne.s32.totalorder %s309_s13, %s15904_s4  ;;  %p15909_p2 = scmp.lt.s32.totalorder %s309_s13, %s309_s13 }
 0x1cb   :  { %p15910_p3 = scmp.lt.s32.totalorder %s15904_s4, %s15904_s4 }
 0x1cd   :  { %292 = dma.hbm_to_vmem [thread:$0]  %s18048_s19, 2048, %s287_s22, [#allocation21], %s16369_s21, %s16369_s21, %s16370_s2  }
 0x1ce   :  { %p15911_p4 = por %p15910_p3, %p15909_p2 }
 0x1d0   :  { %p15912_p5 = pnand %p15911_p4, %p15905_p1 }
 0x1d2   :  { %15915 = shalt.err (!%p15912_p5)
}
 0x1d3   :  { %s18049_s26 = sld [smem:[#allocation110_spill]]  ;;  %s15924_s0 = scalar_lea.vmem %s334_s3, 32 }
 0x1d4   :  { %p15925_p6 = scmp.ne.s32.totalorder %s334_s3, %s15924_s0  ;;  %p15929_p7 = scmp.lt.s32.totalorder %s334_s3, %s334_s3 }
 0x1d5   :  { %p15930_p8 = scmp.lt.s32.totalorder %s15924_s0, %s15924_s0 }
 0x1d7   :  { %p15931_p9 = por %p15930_p8, %p15929_p7 }
 0x1d9   :  { %314 = dma.hbm_to_vmem [thread:$0]  %s18049_s26, 4096, %s309_s13, [#allocation24], %s16369_s21, %s16369_s21, %s16370_s2  }
 0x1da   :  { %p15932_p10 = pnand %p15931_p9, %p15925_p6 }
 0x1dc   :  { %15935 = shalt.err (!%p15932_p10)
}
 0x1dd   :  { %s18050_s30 = sld [smem:[#allocation111_spill]]  ;;  %s16401_s12 = smov [#allocation31]  }
 0x1de   :  { %s354_s28 = sshll.u32 %s16401_s12, 4  ;;  %s16402_s25 = smov [#allocation34]   ;;  %s355_s28 = int_to_ptr.vmem [resolvable:$true] %s354_s28 }
 0x1df   :  { %s376_s29 = sshll.u32 %s16402_s25, 4  ;;  %s15944_s27 = scalar_lea.vmem %s355_s28, 4096  ;;  %s377_s29 = int_to_ptr.vmem [resolvable:$true] %s376_s29 }
 0x1e0   :  { %p15945_p11 = scmp.ne.s32.totalorder %s355_s28, %s15944_s27  ;;  %p15949_p12 = scmp.lt.s32.totalorder %s355_s28, %s355_s28 }
 0x1e1   :  { %p15950_p13 = scmp.lt.s32.totalorder %s15944_s27, %s15944_s27 }
 0x1e3   :  { %336 = dma.hbm_to_vmem [thread:$0]  %s18050_s30, 32, %s334_s3, [#allocation27]  }
 0x1e4   :  { %p15951_p0 = por %p15950_p13, %p15949_p12 }
 0x1e6   :  { %p15952_p1 = pnand %p15951_p0, %p15945_p11 }
 0x1e8   :  { %15955 = shalt.err (!%p15952_p1)
}
 0x1e9   :  { %s18051_s5 = sld [smem:[#allocation112_spill]]  ;;  %s15964_s15 = scalar_lea.vmem %s377_s29, 4096 }
 0x1ea   :  { %p15965_p2 = scmp.ne.s32.totalorder %s377_s29, %s15964_s15  ;;  %p15969_p3 = scmp.lt.s32.totalorder %s377_s29, %s377_s29 }
 0x1eb   :  { %p15970_p4 = scmp.lt.s32.totalorder %s15964_s15, %s15964_s15 }
 0x1ed   :  { %p15971_p5 = por %p15970_p4, %p15969_p3 }
 0x1ef   :  { %360 = dma.hbm_to_vmem [thread:$0]  %s18051_s5, 4096, %s355_s28, [#allocation30], %s16369_s21, %s16369_s21, %s16370_s2  }
 0x1f0   :  { %p15972_p6 = pnand %p15971_p5, %p15965_p2 }
 0x1f2   :  { %15975 = shalt.err (!%p15972_p6)
}
 0x1f3   :  { %s18052_s10 = sld [smem:[#allocation113_spill]]  ;;  %s16403_s11 = smov [#allocation37]  }
 0x1f4   :  { %s401_s16 = sshll.u32 %s16403_s11, 4  ;;  %s16404_s18 = smov [#allocation40]   ;;  %s402_s16 = int_to_ptr.vmem [resolvable:$true] %s401_s16 }
 0x1f5   :  { %s422_s22 = sshll.u32 %s16404_s18, 4  ;;  %s15984_s6 = scalar_lea.vmem %s402_s16, 32  ;;  %s423_s22 = int_to_ptr.vmem [resolvable:$true] %s422_s22 }
 0x1f6   :  { %p15985_p7 = scmp.ne.s32.totalorder %s402_s16, %s15984_s6  ;;  %p15989_p8 = scmp.lt.s32.totalorder %s402_s16, %s402_s16 }
 0x1f7   :  { %p15990_p9 = scmp.lt.s32.totalorder %s15984_s6, %s15984_s6 }
 0x1f9   :  { %382 = dma.hbm_to_vmem [thread:$0]  %s18052_s10, 4096, %s377_s29, [#allocation33], %s16369_s21, %s16369_s21, %s16370_s2  }
 0x1fa   :  { %p15991_p10 = por %p15990_p9, %p15989_p8 }
 0x1fc   :  { %p15992_p11 = pnand %p15991_p10, %p15985_p7 }
 0x1fe   :  { %15995 = shalt.err (!%p15992_p11)
}
 0x1ff   :  { %s18053_s24 = sld [smem:[#allocation114_spill]]  ;;  %s16004_s8 = scalar_lea.vmem %s423_s22, 4096 }
 0x200   :  { %p16005_p12 = scmp.ne.s32.totalorder %s423_s22, %s16004_s8  ;;  %p16009_p13 = scmp.lt.s32.totalorder %s423_s22, %s423_s22 }
 0x201   :  { %p16010_p0 = scmp.lt.s32.totalorder %s16004_s8, %s16004_s8 }
 0x203   :  { %p16011_p1 = por %p16010_p0, %p16009_p13 }
 0x205   :  { %404 = dma.hbm_to_vmem [thread:$0]  %s18053_s24, 32, %s402_s16, [#allocation36]  }
 0x206   :  { %p16012_p2 = pnand %p16011_p1, %p16005_p12 }
 0x208   :  { %16015 = shalt.err (!%p16012_p2)
}
 0x209   :  { %s18054_s19 = sld [smem:[#allocation115_spill]]  ;;  %s16405_s23 = smov [#allocation43]  }
 0x20a   :  { %s444_s13 = sshll.u32 %s16405_s23, 4  ;;  %s16406_s14 = smov [#allocation46]   ;;  %s445_s13 = int_to_ptr.vmem [resolvable:$true] %s444_s13 }
 0x20b   :  { %s466_s3 = sshll.u32 %s16406_s14, 4  ;;  %s16024_s4 = scalar_lea.vmem %s445_s13, 4096  ;;  %s467_s3 = int_to_ptr.vmem [resolvable:$true] %s466_s3 }
 0x20c   :  { %p16025_p3 = scmp.ne.s32.totalorder %s445_s13, %s16024_s4  ;;  %p16029_p4 = scmp.lt.s32.totalorder %s445_s13, %s445_s13 }
 0x20d   :  { %p16030_p5 = scmp.lt.s32.totalorder %s16024_s4, %s16024_s4 }
 0x20f   :  { %428 = dma.hbm_to_vmem [thread:$0]  %s18054_s19, 4096, %s423_s22, [#allocation39], %s16369_s21, %s16369_s21, %s16370_s2  }
 0x210   :  { %p16031_p6 = por %p16030_p5, %p16029_p4 }
 0x212   :  { %p16032_p7 = pnand %p16031_p6, %p16025_p3 }
 0x214   :  { %16035 = shalt.err (!%p16032_p7)
}
 0x215   :  { %s18055_s26 = sld [smem:[#allocation116_spill]]  ;;  %s16044_s0 = scalar_lea.vmem %s467_s3, 4096 }
 0x216   :  { %p16045_p8 = scmp.ne.s32.totalorder %s467_s3, %s16044_s0  ;;  %p16049_p9 = scmp.lt.s32.totalorder %s467_s3, %s467_s3 }
 0x217   :  { %p16050_p10 = scmp.lt.s32.totalorder %s16044_s0, %s16044_s0 }
 0x219   :  { %p16051_p11 = por %p16050_p10, %p16049_p9 }
 0x21b   :  { %450 = dma.hbm_to_vmem [thread:$0]  %s18055_s26, 4096, %s445_s13, [#allocation42], %s16369_s21, %s16369_s21, %s16370_s2  }
 0x21c   :  { %p16052_p12 = pnand %p16051_p11, %p16045_p8 }
 0x21e   :  { %16055 = shalt.err (!%p16052_p12)
}
 0x21f   :  { %s18056_s30 = sld [smem:[#allocation117_spill]]  ;;  %s16407_s12 = smov [#allocation49]  }
 0x220   :  { %s488_s28 = sshll.u32 %s16407_s12, 4  ;;  %s16408_s25 = smov [#allocation52]   ;;  %s489_s28 = int_to_ptr.vmem [resolvable:$true] %s488_s28 }
 0x221   :  { %s510_s29 = sshll.u32 %s16408_s25, 4  ;;  %s16064_s27 = scalar_lea.vmem %s489_s28, 4096  ;;  %s511_s29 = int_to_ptr.vmem [resolvable:$true] %s510_s29 }
 0x222   :  { %p16065_p13 = scmp.ne.s32.totalorder %s489_s28, %s16064_s27  ;;  %p16069_p0 = scmp.lt.s32.totalorder %s489_s28, %s489_s28 }
 0x223   :  { %p16070_p1 = scmp.lt.s32.totalorder %s16064_s27, %s16064_s27 }
 0x225   :  { %472 = dma.hbm_to_vmem [thread:$0]  %s18056_s30, 4096, %s467_s3, [#allocation45], %s16369_s21, %s16369_s21, %s16370_s2  }
 0x226   :  { %p16071_p2 = por %p16070_p1, %p16069_p0 }
 0x228   :  { %p16072_p3 = pnand %p16071_p2, %p16065_p13 }
 0x22a   :  { %16075 = shalt.err (!%p16072_p3)
}
 0x22b   :  { %s18057_s5 = sld [smem:[#allocation119_spill]]  ;;  %s16084_s15 = scalar_lea.vmem %s511_s29, 4096 }
 0x22c   :  { %p16085_p4 = scmp.ne.s32.totalorder %s511_s29, %s16084_s15  ;;  %p16089_p5 = scmp.lt.s32.totalorder %s511_s29, %s511_s29 }
 0x22d   :  { %p16090_p6 = scmp.lt.s32.totalorder %s16084_s15, %s16084_s15 }
 0x22f   :  { %p16091_p7 = por %p16090_p6, %p16089_p5 }
 0x231   :  { %494 = dma.hbm_to_vmem [thread:$0]  %s18057_s5, 4096, %s489_s28, [#allocation48], %s16369_s21, %s16369_s21, %s16370_s2  }
 0x232   :  { %p16092_p8 = pnand %p16091_p7, %p16085_p4 }
 0x234   :  { %16095 = shalt.err (!%p16092_p8)
}
 0x235   :  { %s18058_s10 = sld [smem:[#allocation121_spill]]  ;;  %s16409_s11 = smov [#allocation55]  }
 0x236   :  { %s532_s16 = sshll.u32 %s16409_s11, 4  ;;  %s16410_s18 = smov [#allocation58]   ;;  %s533_s16 = int_to_ptr.vmem [resolvable:$true] %s532_s16 }
 0x237   :  { %s554_s22 = sshll.u32 %s16410_s18, 4  ;;  %s16104_s6 = scalar_lea.vmem %s533_s16, 4096  ;;  %s555_s22 = int_to_ptr.vmem [resolvable:$true] %s554_s22 }
 0x238   :  { %p16105_p9 = scmp.ne.s32.totalorder %s533_s16, %s16104_s6  ;;  %p16109_p10 = scmp.lt.s32.totalorder %s533_s16, %s533_s16 }
 0x239   :  { %p16110_p11 = scmp.lt.s32.totalorder %s16104_s6, %s16104_s6 }
 0x23b   :  { %516 = dma.hbm_to_vmem [thread:$0]  %s18058_s10, 4096, %s511_s29, [#allocation51], %s16369_s21, %s16369_s21, %s16370_s2  }
 0x23c   :  { %p16111_p12 = por %p16110_p11, %p16109_p10 }
 0x23e   :  { %p16112_p13 = pnand %p16111_p12, %p16105_p9 }
 0x240   :  { %16115 = shalt.err (!%p16112_p13)
}
 0x241   :  { %s18059_s24 = sld [smem:[#allocation123_spill]]  ;;  %s16124_s8 = scalar_lea.vmem %s555_s22, 4096 }
 0x242   :  { %p16125_p0 = scmp.ne.s32.totalorder %s555_s22, %s16124_s8  ;;  %p16129_p1 = scmp.lt.s32.totalorder %s555_s22, %s555_s22 }
 0x243   :  { %p16130_p2 = scmp.lt.s32.totalorder %s16124_s8, %s16124_s8 }
 0x245   :  { %p16131_p3 = por %p16130_p2, %p16129_p1 }
 0x247   :  { %538 = dma.hbm_to_vmem [thread:$0]  %s18059_s24, 4096, %s533_s16, [#allocation54], %s16369_s21, %s16369_s21, %s16370_s2  }
 0x248   :  { %p16132_p4 = pnand %p16131_p3, %p16125_p0 }
 0x24a   :  { %16135 = shalt.err (!%p16132_p4)
}
 0x24b   :  { %s18060_s19 = sld [smem:[#allocation125_spill]]  ;;  %s16411_s23 = smov [#allocation61]  }
 0x24c   :  { %s576_s13 = sshll.u32 %s16411_s23, 4  ;;  %s16412_s14 = smov [#allocation64]   ;;  %s577_s13 = int_to_ptr.vmem [resolvable:$true] %s576_s13 }
 0x24d   :  { %s598_s3 = sshll.u32 %s16412_s14, 4  ;;  %s16144_s4 = scalar_lea.vmem %s577_s13, 4096  ;;  %s599_s3 = int_to_ptr.vmem [resolvable:$true] %s598_s3 }
 0x24e   :  { %p16145_p5 = scmp.ne.s32.totalorder %s577_s13, %s16144_s4  ;;  %p16149_p6 = scmp.lt.s32.totalorder %s577_s13, %s577_s13 }
 0x24f   :  { %p16150_p7 = scmp.lt.s32.totalorder %s16144_s4, %s16144_s4 }
 0x251   :  { %560 = dma.hbm_to_vmem [thread:$0]  %s18060_s19, 4096, %s555_s22, [#allocation57], %s16369_s21, %s16369_s21, %s16370_s2  }
 0x252   :  { %p16151_p8 = por %p16150_p7, %p16149_p6 }
 0x254   :  { %p16152_p9 = pnand %p16151_p8, %p16145_p5 }
 0x256   :  { %16155 = shalt.err (!%p16152_p9)
}
 0x257   :  { %s18061_s26 = sld [smem:[#allocation127_spill]]  ;;  %s16164_s0 = scalar_lea.vmem %s599_s3, 4096 }
 0x258   :  { %p16165_p10 = scmp.ne.s32.totalorder %s599_s3, %s16164_s0  ;;  %p16169_p11 = scmp.lt.s32.totalorder %s599_s3, %s599_s3 }
 0x259   :  { %p16170_p12 = scmp.lt.s32.totalorder %s16164_s0, %s16164_s0 }
 0x25b   :  { %p16171_p13 = por %p16170_p12, %p16169_p11 }
 0x25d   :  { %582 = dma.hbm_to_vmem [thread:$0]  %s18061_s26, 4096, %s577_s13, [#allocation60], %s16369_s21, %s16369_s21, %s16370_s2  }
 0x25e   :  { %p16172_p0 = pnand %p16171_p13, %p16165_p10 }
 0x260   :  { %16175 = shalt.err (!%p16172_p0)
}
 0x261   :  { %s18062_s30 = sld [smem:[#allocation129_spill]]  ;;  %s16413_s12 = smov [#allocation67]  }
 0x262   :  { %s620_s28 = sshll.u32 %s16413_s12, 4  ;;  %s16414_s25 = smov [#allocation70]   ;;  %s621_s28 = int_to_ptr.vmem [resolvable:$true] %s620_s28 }
 0x263   :  { %s651_s29 = sshll.u32 %s16414_s25, 4  ;;  %s16184_s27 = scalar_lea.vmem %s621_s28, 6144  ;;  %s652_s29 = int_to_ptr.vmem [resolvable:$true] %s651_s29 }
 0x264   :  { %p16185_p1 = scmp.ne.s32.totalorder %s621_s28, %s16184_s27  ;;  %p16189_p2 = scmp.lt.s32.totalorder %s621_s28, %s621_s28 }
 0x265   :  { %p16190_p3 = scmp.lt.s32.totalorder %s16184_s27, %s16184_s27 }
 0x267   :  { %604 = dma.hbm_to_vmem [thread:$0]  %s18062_s30, 4096, %s599_s3, [#allocation63], %s16369_s21, %s16369_s21, %s16370_s2  }
 0x268   :  { %p16191_p4 = por %p16190_p3, %p16189_p2 }
 0x26a   :  { %p16192_p5 = pnand %p16191_p4, %p16185_p1 }
 0x26c   :  { %16195 = shalt.err (!%p16192_p5)
}
 0x26d   :  { %s18063_s5 = sld [smem:[#allocation131_spill]]  ;;  %s16204_s15 = scalar_lea.vmem %s652_s29, 48 }
 0x26e   :  { %p16205_p6 = scmp.ne.s32.totalorder %s652_s29, %s16204_s15  ;;  %s16208_s21 = scalar_lea.vmem %s652_s29, 64 }
 0x26f   :  { %p16209_p7 = scmp.lt.s32.totalorder %s652_s29, %s652_s29  ;;  %p16210_p8 = scmp.lt.s32.totalorder %s16208_s21, %s16204_s15 }
 0x271   :  { %p16211_p9 = por %p16210_p8, %p16209_p7 }
 0x273   :  { %626 = dma.hbm_to_vmem [thread:$0]  %s18063_s5, 6144, %s621_s28, [#allocation66], %s16389_s1, %s16389_s1, %s16390_s7  }
 0x274   :  { %p16212_p10 = pnand %p16211_p9, %p16205_p6 }
 0x276   :  { %16215 = shalt.err (!%p16212_p10)
}
 0x277   :  { %s18064_s2 = sld [smem:[#allocation136_spill]]  ;;  %s16415_s10 = smov [#allocation73]  }
 0x278   :  { %s674_s11 = sshll.u32 %s16415_s10, 4  ;;  %s16416_s16 = smov [#allocation76]   ;;  %s675_s11 = int_to_ptr.vmem [resolvable:$true] %s674_s11 }
 0x279   :  { %s700_s18 = sshll.u32 %s16416_s16, 4  ;;  %s16224_s22 = scalar_lea.vmem %s675_s11, 9216  ;;  %s701_s18 = int_to_ptr.vmem [resolvable:$true] %s700_s18 }
 0x27a   :  { %p16225_p11 = scmp.ne.s32.totalorder %s675_s11, %s16224_s22  ;;  %p16229_p12 = scmp.lt.s32.totalorder %s675_s11, %s675_s11 }
 0x27b   :  { %p16230_p13 = scmp.lt.s32.totalorder %s16224_s22, %s16224_s22 }
 0x27d   :  { %654 = dma.hbm_to_vmem [thread:$0]  %s18064_s2, 48, %s652_s29, [#allocation69]  }
 0x27e   :  { %p16231_p0 = por %p16230_p13, %p16229_p12 }
 0x280   :  { %p16232_p1 = pnand %p16231_p0, %p16225_p11 }
 0x282   :  { %16235 = shalt.err (!%p16232_p1)
}
 0x283   :  { %s18065_s6 = sld [smem:[#allocation139_spill]]  ;;  %s16244_s24 = scalar_lea.vmem %s701_s18, 6144 }
 0x284   :  { %p16245_p2 = scmp.ne.s32.totalorder %s701_s18, %s16244_s24  ;;  %p16249_p3 = scmp.lt.s32.totalorder %s701_s18, %s701_s18 }
 0x285   :  { %p16250_p4 = scmp.lt.s32.totalorder %s16244_s24, %s16244_s24 }
 0x287   :  { %p16251_p5 = por %p16250_p4, %p16249_p3 }
 0x289   :  { %680 = dma.hbm_to_vmem [thread:$0]  %s18065_s6, 9216, %s675_s11, [#allocation72], %s16389_s1, %s16389_s1, %s16390_s7  }
 0x28a   :  { %p16252_p6 = pnand %p16251_p5, %p16245_p2 }
 0x28c   :  { %16255 = shalt.err (!%p16252_p6)
}
 0x28d   :  { %s16417_s8 = smov 384   ;;  %s16418_s19 = smov 24  }
 0x28e   :  { %706 = dma.hbm_to_vmem [thread:$0]  %s16700_s17, 6144, %s701_s18, [#allocation75], %s16417_s8, %s16417_s8, %s16418_s19  }
 0x28f   :  { %16256 = dma.done.wait [#allocation4], 1024  }
 0x290   :  { %16257 = vsyncadd [#allocation4], 4294966272 }
 0x291   :  { %16258 = dma.done.wait [#allocation6], 1040  }
 0x292   :  { %16259 = vsyncadd [#allocation6], 4294966256 }
 0x293   :  { %16260 = dma.done.wait [#allocation9], 2048  }
 0x294   :  { %16261 = vsyncadd [#allocation9], 4294965248 }
 0x295   :  { %16262 = dma.done.wait [#allocation12], 2064  }
 0x296   :  { %16263 = vsyncadd [#allocation12], 4294965232 }
 0x297   :  { %16264 = dma.done.wait [#allocation15], 2080  }
 0x298   :  { %16265 = vsyncadd [#allocation15], 4294965216 }
 0x299   :  { %16266 = dma.done.wait [#allocation18], 8192  }
 0x29a   :  { %16267 = vsyncadd [#allocation18], 4294959104 }
 0x29b   :  { %16268 = dma.done.wait [#allocation21], 2080  }
 0x29c   :  { %16269 = vsyncadd [#allocation21], 4294965216 }
 0x29d   :  { %16270 = dma.done.wait [#allocation24], 4128  }
 0x29e   :  { %16271 = vsyncadd [#allocation24], 4294963168 }
 0x29f   :  { %16272 = dma.done.wait [#allocation27], 4128  }
 0x2a0   :  { %16273 = vsyncadd [#allocation27], 4294963168 }
 0x2a1   :  { %16274 = dma.done.wait [#allocation30], 8192  }
 0x2a2   :  { %16275 = vsyncadd [#allocation30], 4294959104 }
 0x2a3   :  { %16276 = dma.done.wait [#allocation33], 4128  }
 0x2a4   :  { %16277 = vsyncadd [#allocation33], 4294963168 }
 0x2a5   :  { %16278 = dma.done.wait [#allocation36], 4128  }
 0x2a6   :  { %16279 = vsyncadd [#allocation36], 4294963168 }
 0x2a7   :  { %16280 = dma.done.wait [#allocation39], 8192  }
 0x2a8   :  { %16281 = vsyncadd [#allocation39], 4294959104 }
 0x2a9   :  { %16282 = dma.done.wait [#allocation42], 4128  }
 0x2aa   :  { %16283 = vsyncadd [#allocation42], 4294963168 }
 0x2ab   :  { %16284 = dma.done.wait [#allocation45], 4128  }
 0x2ac   :  { %16285 = vsyncadd [#allocation45], 4294963168 }
 0x2ad   :  { %16286 = dma.done.wait [#allocation48], 4128  }
 0x2ae   :  { %16287 = vsyncadd [#allocation48], 4294963168 }
 0x2af   :  { %16288 = dma.done.wait [#allocation51], 4128  }
 0x2b0   :  { %16289 = vsyncadd [#allocation51], 4294963168 }
 0x2b1   :  { %16290 = dma.done.wait [#allocation54], 4128  }
 0x2b2   :  { %16291 = vsyncadd [#allocation54], 4294963168 }
 0x2b3   :  { %16292 = dma.done.wait [#allocation57], 4128  }
 0x2b4   :  { %16293 = vsyncadd [#allocation57], 4294963168 }
 0x2b5   :  { %16294 = dma.done.wait [#allocation60], 4128  }
 0x2b6   :  { %16295 = vsyncadd [#allocation60], 4294963168 }
 0x2b7   :  { %16296 = dma.done.wait [#allocation63], 4128  }
 0x2b8   :  { %16297 = vsyncadd [#allocation63], 4294963168 }
 0x2b9   :  { %16298 = dma.done.wait [#allocation66], 6176  }
 0x2ba   :  { %16299 = vsyncadd [#allocation66], 4294961120 }
 0x2bb   :  { %16300 = dma.done.wait [#allocation69], 9264  }
 0x2bc   :  { %16301 = vsyncadd [#allocation69], 4294958032 }
 0x2bd   :  { %16302 = dma.done.wait [#allocation72], 18432  }
 0x2be   :  { %16303 = vsyncadd [#allocation72], 4294948864 }
 0x2bf   :  { %16304 = dma.done.wait [#allocation75], 9216  }
 0x2c0   :  { %16305 = vsyncadd [#allocation75], 4294958080  ;;  %v16419_v0 = vmov 0.0   ;;  %v13828_v1 = vld [vmem:[#allocation3 + $0x38] sm:$0xff]   ;;  %v13830_v3 = vld [vmem:[#allocation3 + $0x30] sm:$0xff]   ;;  %s18066_s17 = sld [smem:[#allocation102_spill]] }
 0x2c1   :  { %857 = vst [vmem:[#allocation2 + $0x30] sm:$0xff] %v16419_v0  ;;  %858 = vst [vmem:[#allocation2] sm:$0xff] %v16419_v0  ;;  %v13829_v2 = vld [vmem:[#allocation5 + $0x38] sm:$0xff]   ;;  %13494 = vmatprep.subr.bf16.mxu0 %v13828_v1  ;;  %v13831_v4 = vld [vmem:[#allocation5 + $0x30] sm:$0xff]   ;;  %vm907_vm0 = vcmask 1040384   ;;  %vm1466_vm1 = vcmask 1041408  }
 0x2c2   :  { %863 = vst [vmem:[#allocation2 + $0x8] sm:$0xff] %v16419_v0  ;;  %864 = vst [vmem:[#allocation2 + $0x38] sm:$0xff] %v16419_v0  ;;  %13514 = vmatprep.subr.bf16.mxu1 %v13829_v2  ;;  %13495 = vmatpush3.bf16.msra.mxu0 %v13828_v1  ;;  %v13832_v5 = vld [vmem:[#allocation3 + $0x28] sm:$0xff]   ;;  %v13834_v7 = vld [vmem:[#allocation3 + $0x20] sm:$0xff]   ;;  %vm2624_vm2 = vcmask 1043456   ;;  %s18067_s1 = sld [smem:[#allocation132_spill]] }
 0x2c3   :  { %13515 = vmatpush3.bf16.msra.mxu1 %v13829_v2  ;;  %13496 = vmatprep.subr.bf16.mxu0 %v13830_v3  ;;  %v13833_v6 = vld [vmem:[#allocation5 + $0x28] sm:$0xff]   ;;  %v13835_v8 = vld [vmem:[#allocation5 + $0x20] sm:$0xff]   ;;  %v13836_v9 = vld [vmem:[#allocation3 + $0x18] sm:$0xff]   ;;  %s18068_s7 = sld [smem:[#allocation135_spill]]  ;;  %vm16421_vm3 = vmmov 0   ;;  %vm10437_vm4 = vcmask 130048  }
 0x2c4   :  { %13516 = vmatprep.subr.bf16.mxu1 %v13831_v4  ;;  %v13837_v10 = vld [vmem:[#allocation5 + $0x18] sm:$0xff]   ;;  %v13838_v11 = vld [vmem:[#allocation3 + $0x10] sm:$0xff]   ;;  %v13840_v17 = vld [vmem:[#allocation3 + $0x8] sm:$0xff]   ;;  %s18069_s23 = sld [smem:[#allocation134_spill]]  ;;  %vm11008_vm5 = vcmask 130112   ;;  %vm11015_vm6 = vcmask 195712  }
 0x2c5   :  { %v13839_v14 = vld [vmem:[#allocation5 + $0x10] sm:$0xff]   ;;  %v13841_v19 = vld [vmem:[#allocation5 + $0x8] sm:$0xff]   ;;  %v13842_v24 = vld [vmem:[#allocation3] sm:$0xff]   ;;  %s18070_s13 = sld [smem:[#allocation138_spill]]  ;;  %vm11022_vm7 = vcmask 261312   ;;  %vm11029_vm8 = vcmask 326912  }
 0x2c6   :  { %13497 = vmatpush3.bf16.msra.mxu0 %v13830_v3  ;;  %v869_v12 = vld [vmem:[%s18066_s17] sm:$0xff]  ;;  %v16853_v13 = vld [vmem:[%s18066_s17 + $0x8] sm:$0xff]  ;;  %v16858_v16 = vld [vmem:[%s18066_s17 + $0x18] sm:$0xff]  ;;  %s18071_s14 = sld [smem:[#allocation140_spill]]  ;;  %vm11036_vm9 = vcmask 392512   ;;  %vm11043_vm10 = vcmask 458112  }
 0x2c7   :  { %13517 = vmatpush3.bf16.msra.mxu1 %v13831_v4  ;;  %13498 = vmatprep.subr.bf16.mxu0 %v13832_v5  ;;  %892 = vst [vmem:[#allocation2 + $0x50] sm:$0xff] %v16853_v13  ;;  %v873_v15 = vpack.c.bf16 %v16853_v13, %v869_v12  ;;  %894 = vst [vmem:[#allocation2 + $0x10] sm:$0xff] %v16858_v16  ;;  %v871_v20 = vld [vmem:[%s18066_s17 + $0x10] sm:$0xff]  ;;  %v909_v23 = vrot.slane %v869_v12, 7  ;;  %v13843_v27 = vld [vmem:[#allocation5] sm:$0xff]   ;;  %vm11050_vm11 = vcmask 523712  }
 0x2c8   :  { %13518 = vmatprep.subr.bf16.mxu1 %v13833_v6  ;;  %v895_v18 = vld [vmem:[#allocation2 + $0x30] sm:$0x80]  ;;  %v914_v26 = vrot.slane %v871_v20, 7  ;;  %v13847_v33 = vld [vmem:[#allocation8 + $0x38] sm:$0xff]   ;;  %v874_v41 = vpack.c.bf16 %v16858_v16, %v871_v20  ;;  %v13846_v43 = vld [vmem:[#allocation10 + $0x28] sm:$0xff]   ;;  %vm11057_vm12 = vcmask 589312  }
 0x2c9   :  { %13530 = vmatprep.mubr.bf16.mxu1 %v873_v15  ;;  %v898_v21 = vld [vmem:[#allocation2 + $0x8] sm:$0x80]  ;;  %v908_v22 = vrot.slane %v895_v18, 7  ;;  %v13844_v36 = vld [vmem:[#allocation10 + $0x38] sm:$0xff]   ;;  %v13849_v40 = vld [vmem:[#allocation8 + $0x30] sm:$0xff]   ;;  %vm11064_vm13 = vcmask 654912  }
 0x2ca   :  { %13499 = vmatpush3.bf16.msra.mxu0 %v13832_v5  ;;  %v913_v25 = vrot.slane %v898_v21, 7  ;;  %v13845_v42 = vld [vmem:[#allocation10 + $0x30] sm:$0xff]   ;;  %v13848_v44 = vld [vmem:[#allocation10 + $0x20] sm:$0xff]   ;;  %v13850_v45 = vld [vmem:[#allocation10 + $0x18] sm:$0xff]   ;;  %vm11071_vm14 = vcmask 720512   ;;  %vm11078_vm15 = vcmask 786112  }
 0x2cb   :  { %13519 = vmatpush3.bf16.msra.mxu1 %v13833_v6  ;;  %13500 = vmatprep.subr.bf16.mxu0 %v13834_v7  ;;  %v910_v29 = vsel %vm907_vm0, %v908_v22, %v909_v23  ;;  %v13851_v46 = vld [vmem:[#allocation8 + $0x28] sm:$0xff]   ;;  %v13852_v47 = vld [vmem:[#allocation10 + $0x10] sm:$0xff]   ;;  %v13853_v48 = vld [vmem:[#allocation8 + $0x20] sm:$0xff]  }
 0x2cc   :  { %13520 = vmatprep.subr.bf16.mxu1 %v13835_v8  ;;  %v915_v35 = vsel %vm907_vm0, %v913_v25, %v914_v26  ;;  %v13854_v49 = vld [vmem:[#allocation10 + $0x8] sm:$0xff]   ;;  %v13855_v50 = vld [vmem:[#allocation8 + $0x18] sm:$0xff]   ;;  %v13856_v51 = vld [vmem:[#allocation10] sm:$0xff]  }
 0x2cd   :  { %v13857_v52 = vld [vmem:[#allocation8 + $0x10] sm:$0xff]   ;;  %v13858_v53 = vld [vmem:[#allocation8 + $0x8] sm:$0xff]   ;;  %v13859_v54 = vld [vmem:[#allocation8] sm:$0xff]  }
 0x2ce   :  { %13501 = vmatpush3.bf16.msra.mxu0 %v13834_v7  ;;  %v897_v28 = vld [vmem:[#allocation2 + $0x50] sm:$0x7f]  ;;  %v13862_v55 = vld [vmem:[#allocation14 + $0x74] ss:$8 sps:$4 sm:$0xff]   ;;  %v1171_v18 = vld [vmem:[#allocation2 + $0x30] sm:$0x80] }
 0x2cf   :  { %13521 = vmatpush3.bf16.msra.mxu1 %v13835_v8  ;;  %13502 = vmatprep.subr.bf16.mxu0 %v13836_v9  ;;  %v911_v30 = vrot.slane %v897_v28, 7  ;;  %v900_v31 = vld [vmem:[#allocation2 + $0x10] sm:$0x7f]  ;;  %v12168_v60 = vld [vmem:[#allocation7] ss:$0 sm:$0xff]  ;;  %v1183_v21 = vrot.slane %v1171_v18, 7 }
 0x2d0   :  { %13522 = vmatprep.subr.bf16.mxu1 %v13837_v10  ;;  %v916_v32 = vrot.slane %v900_v31, 7  ;;  %v13860_v12 = vld [vmem:[#allocation14 + $0x70] ss:$8 sps:$4 sm:$0xff]  }
 0x2d1   :  { %v912_v34 = vsel %vm907_vm0, %v909_v23, %v911_v30 }
 0x2d2   :  { %13503 = vmatpush3.bf16.msra.mxu0 %v13836_v9  ;;  %v922_v37 = vpack.c.bf16 %v912_v34, %v910_v29  ;;  %v917_v38 = vsel %vm907_vm0, %v914_v26, %v916_v32  ;;  %v13865_v34 = vld [vmem:[#allocation14 + $0x64] ss:$8 sps:$4 sm:$0xff]  }
 0x2d3   :  { %13523 = vmatpush3.bf16.msra.mxu1 %v13837_v10  ;;  %13504 = vmatprep.subr.bf16.mxu0 %v13838_v11  ;;  %v923_v39 = vpack.c.bf16 %v917_v38, %v915_v35  ;;  %v13863_v35 = vld [vmem:[#allocation14 + $0x60] ss:$8 sps:$4 sm:$0xff]   ;;  %v13869_v38 = vld [vmem:[#allocation13 + $0x70] ss:$8 sps:$4 sm:$0xff]  }
 0x2d4   :  { %13524 = vmatprep.subr.bf16.mxu1 %v13839_v14  ;;  %13510 = vmatprep.mubr.bf16.mxu0 %v922_v37  ;;  %v13866_v37 = vld [vmem:[#allocation14 + $0x50] ss:$8 sps:$4 sm:$0xff]  }
 0x2d6   :  { %13505 = vmatpush3.bf16.msra.mxu0 %v13838_v11 }
 0x2d7   :  { %13525 = vmatpush3.bf16.msra.mxu1 %v13839_v14  ;;  %13506 = vmatprep.subr.bf16.mxu0 %v13840_v17 }
 0x2d8   :  { %13526 = vmatprep.subr.bf16.mxu1 %v13841_v19 }
 0x2da   :  { %13507 = vmatpush3.bf16.msra.mxu0 %v13840_v17 }
 0x2db   :  { %13527 = vmatpush3.bf16.msra.mxu1 %v13841_v19  ;;  %13508 = vmatprep.subr.bf16.mxu0 %v13842_v24  ;;  %v1174_v19 = vld [vmem:[#allocation2 + $0x8] sm:$0x80] }
 0x2dc   :  { %13528 = vmatprep.subr.bf16.mxu1 %v13843_v27  ;;  %v1188_v25 = vrot.slane %v1174_v19, 7 }
 0x2de   :  { %13509 = vmatpush3.bf16.msra.mxu0 %v13842_v24 }
 0x2df   :  { %13529 = vmatpush3.bf16.msra.mxu1 %v13843_v27  ;;  %13534 = vmatprep.subr.bf16.mxu0 %v13847_v33 }
 0x2e0   :  { %13554 = vmatprep.subr.bf16.mxu1 %v13844_v36 }
 0x2e1   :  { %13511 = vmatmul.mubr.bf16.vlgmr.msra.gmra.mxu0 %v923_v39  ;;  %v13871_v39 = vld [vmem:[#allocation13 + $0x74] ss:$8 sps:$4 sm:$0xff]  }
 0x2e2   :  { %13531 = vmatmul.mubr.bf16.vlgmr.msra.gmra.mxu1 %v874_v41  ;;  %13535 = vmatpush3.bf16.msra.mxu0 %v13847_v33  ;;  %v13874_v41 = vld [vmem:[#allocation14 + $0x44] ss:$8 sps:$4 sm:$0xff]  }
 0x2e3   :  { %13555 = vmatpush3.bf16.msra.mxu1 %v13844_v36  ;;  %13536 = vmatprep.subr.bf16.mxu0 %v13849_v40  ;;  %v13868_v36 = vld [vmem:[#allocation14 + $0x54] ss:$8 sps:$4 sm:$0xff]  }
 0x2e4   :  { %13556 = vmatprep.subr.bf16.mxu1 %v13845_v42 }
 0x2e6   :  { %13537 = vmatpush3.bf16.msra.mxu0 %v13849_v40  ;;  %v13872_v40 = vld [vmem:[#allocation14 + $0x40] ss:$8 sps:$4 sm:$0xff]  }
 0x2e7   :  { %13557 = vmatpush3.bf16.msra.mxu1 %v13845_v42  ;;  %13538 = vmatprep.subr.bf16.mxu0 %v13851_v46  ;;  %v13877_v42 = vld [vmem:[#allocation13 + $0x64] ss:$8 sps:$4 sm:$0xff]  }
 0x2e8   :  { %13558 = vmatprep.subr.bf16.mxu1 %v13846_v43 }
 0x2ea   :  { %13539 = vmatpush3.bf16.msra.mxu0 %v13851_v46  ;;  %v13883_v46 = vld [vmem:[#allocation13 + $0x54] ss:$8 sps:$4 sm:$0xff]  }
 0x2eb   :  { %13559 = vmatpush3.bf16.msra.mxu1 %v13846_v43  ;;  %13540 = vmatprep.subr.bf16.mxu0 %v13853_v48  ;;  %v13875_v43 = vld [vmem:[#allocation13 + $0x60] ss:$8 sps:$4 sm:$0xff]  }
 0x2ec   :  { %13560 = vmatprep.subr.bf16.mxu1 %v13848_v44 }
 0x2ee   :  { %13541 = vmatpush3.bf16.msra.mxu0 %v13853_v48  ;;  %v13886_v48 = vld [vmem:[#allocation14 + $0x24] ss:$8 sps:$4 sm:$0xff]  }
 0x2ef   :  { %13561 = vmatpush3.bf16.msra.mxu1 %v13848_v44  ;;  %13542 = vmatprep.subr.bf16.mxu0 %v13855_v50  ;;  %v13880_v44 = vld [vmem:[#allocation14 + $0x34] ss:$8 sps:$4 sm:$0xff]  }
 0x2f0   :  { %13562 = vmatprep.subr.bf16.mxu1 %v13850_v45 }
 0x2f2   :  { %13543 = vmatpush3.bf16.msra.mxu0 %v13855_v50  ;;  %v13889_v50 = vld [vmem:[#allocation13 + $0x44] ss:$8 sps:$4 sm:$0xff]  }
 0x2f3   :  { %13563 = vmatpush3.bf16.msra.mxu1 %v13850_v45  ;;  %13544 = vmatprep.subr.bf16.mxu0 %v13857_v52  ;;  %v13878_v45 = vld [vmem:[#allocation14 + $0x30] ss:$8 sps:$4 sm:$0xff]  }
 0x2f4   :  { %13564 = vmatprep.subr.bf16.mxu1 %v13852_v47 }
 0x2f6   :  { %13545 = vmatpush3.bf16.msra.mxu0 %v13857_v52  ;;  %v13892_v52 = vld [vmem:[#allocation14 + $0x14] ss:$8 sps:$4 sm:$0xff]  }
 0x2f7   :  { %13565 = vmatpush3.bf16.msra.mxu1 %v13852_v47  ;;  %13546 = vmatprep.subr.bf16.mxu0 %v13858_v53  ;;  %v13881_v47 = vld [vmem:[#allocation13 + $0x50] ss:$8 sps:$4 sm:$0xff]  }
 0x2f8   :  { %13566 = vmatprep.subr.bf16.mxu1 %v13854_v49 }
 0x2fa   :  { %13547 = vmatpush3.bf16.msra.mxu0 %v13858_v53  ;;  %v13890_v53 = vld [vmem:[#allocation14 + $0x10] ss:$8 sps:$4 sm:$0xff]  }
 0x2fb   :  { %13567 = vmatpush3.bf16.msra.mxu1 %v13854_v49  ;;  %13548 = vmatprep.subr.bf16.mxu0 %v13859_v54  ;;  %v13884_v49 = vld [vmem:[#allocation14 + $0x20] ss:$8 sps:$4 sm:$0xff]  }
 0x2fc   :  { %13568 = vmatprep.subr.bf16.mxu1 %v13856_v51 }
 0x2fe   :  { %13549 = vmatpush3.bf16.msra.mxu0 %v13859_v54  ;;  %v13895_v54 = vld [vmem:[#allocation13 + $0x34] ss:$8 sps:$4 sm:$0xff]  }
 0x2ff   :  { %13569 = vmatpush3.bf16.msra.mxu1 %v13856_v51  ;;  %1579 = vmatprep.subr.bf16.mxu0 %v13871_v39  ;;  %v13887_v51 = vld [vmem:[#allocation13 + $0x40] ss:$8 sps:$4 sm:$0xff]  }
 0x300   :  { %1712 = vmatprep.subr.bf16.mxu1 %v13862_v55  ;;  %v13893_v55 = vld [vmem:[#allocation13 + $0x30] ss:$8 sps:$4 sm:$0xff]  }
 0x3a1   :  { %v13512_v56 = vpop.f32.mrf.mxu0 }
 0x3a2   :  { %v13532_v57 = vpop.f32.mrf.mxu1 }
 0x3a3   :  { %v1022_v58 = vpop.f32.mrf.mxu0  ;;  %v1128_v63 = vadd.f32 %v13532_v57, %v13512_v56  ;;  %v13898_v56 = vld [vmem:[#allocation14 + $0x4] ss:$8 sps:$4 sm:$0xff]   ;;  %v13896_v57 = vld [vmem:[#allocation14] ss:$8 sps:$4 sm:$0xff]  }
 0x3a4   :  { %v1119_v59 = vpop.f32.mrf.mxu1 }
 0x3a5   :  { %v1120_v61 = vadd.f32 %v1119_v59, %v1022_v58  ;;  %v13513_v62 = vpop.f32.mrf.mxu0  ;;  %v1143_v7 = vadd.f32 %v12168_v60, %v1128_v63  ;;  %v13901_v58 = vld [vmem:[#allocation13 + $0x24] ss:$8 sps:$4 sm:$0xff]   ;;  %v13899_v59 = vld [vmem:[#allocation13 + $0x20] ss:$8 sps:$4 sm:$0xff]  }
 0x3a6   :  { %v13533_v0 = vpop.f32.mrf.mxu1  ;;  %v13907_v63 = vld [vmem:[#allocation13 + $0x4] ss:$8 sps:$4 sm:$0xff]  }
 0x3a7   :  { %v1131_v1 = vadd.f32 %v13533_v0, %v13513_v62  ;;  %v1025_v2 = vpop.f32.mrf.mxu0  ;;  %v1141_v4 = vadd.f32 %v12168_v60, %v1120_v61  ;;  %v1147_v14 = vmax.f32 %v1143_v7, 0.0  ;;  %v13902_v61 = vld [vmem:[#allocation13 + $0x10] ss:$8 sps:$4 sm:$0xff]   ;;  %v13904_v62 = vld [vmem:[#allocation13 + $0x14] ss:$8 sps:$4 sm:$0xff]  }
 0x3a8   :  { %v1122_v3 = vpop.f32.mrf.mxu1  ;;  %v13905_v0 = vld [vmem:[#allocation13] ss:$8 sps:$4 sm:$0xff]  }
 0x3a9   :  { %v1144_v5 = vadd.f32 %v12168_v60, %v1131_v1  ;;  %v1123_v6 = vadd.f32 %v1122_v3, %v1025_v2  ;;  %v1145_v10 = vmax.f32 %v1141_v4, 0.0  ;;  %v1189_v26 = vrot.slane %v1147_v14, 7  ;;  %v13910_v1 = vld [vmem:[#allocation19 + $0x74] ss:$8 sps:$4 sm:$0xff]  }
 0x3aa   :  { %v13919_v2 = vld [vmem:[#allocation17 + $0x74] ss:$8 sps:$4 sm:$0xff]  }
 0x3ab   :  { %v1148_v8 = vmax.f32 %v1144_v5, 0.0  ;;  %v1142_v9 = vadd.f32 %v12168_v60, %v1123_v6  ;;  %v1184_v22 = vrot.slane %v1145_v10, 7  ;;  %v1190_v32 = vsel %vm907_vm0, %v1188_v25, %v1189_v26 }
 0x3ac   :  { %v17982_v60 = vmov 0  }
 0x3ad   :  { %1170 = vst [vmem:[#allocation2 + $0x10] sm:$0xff] %v1148_v8  ;;  %v1146_v11 = vmax.f32 %v1142_v9, 0.0  ;;  %v1150_v17 = vpack.c.bf16 %v1148_v8, %v1147_v14  ;;  %v1185_v29 = vsel %vm907_vm0, %v1183_v21, %v1184_v22  ;;  %13826 = vset.pattern.permute.xlu1 %v17982_v60  ;;  %v12185_v9 = vld [vmem:[#allocation11] ss:$0 sm:$0xff] }
 0x3af   :  { %1168 = vst [vmem:[#allocation2 + $0x50] sm:$0xff] %v1146_v11  ;;  %v1149_v15 = vpack.c.bf16 %v1146_v11, %v1145_v10 }
 0x3b1   :  { %13570 = vmatprep.mubr.bf16.mxu1 %v1149_v15 }
 0x3b2   :  { %13571 = vmatmul.mubr.bf16.vlgmr.msra.gmra.mxu1 %v1150_v17 }
 0x3b3   :  { %1713 = vmatpush1.bf16.msra.mxu1 %v13860_v12  ;;  %1744 = vmatprep.mubr.bf16.mxu1 %v17982_v60 }
 0x3b4   :  { %v1176_v20 = vld [vmem:[#allocation2 + $0x10] sm:$0x7f]  ;;  %1714 = vmatprep.subr.bf16.mxu1 %v13865_v34 }
 0x3b5   :  { %v1191_v23 = vrot.slane %v1176_v20, 7 }
 0x3b6   :  { %v1173_v24 = vld [vmem:[#allocation2 + $0x50] sm:$0x7f] }
 0x3b7   :  { %v1186_v27 = vrot.slane %v1173_v24, 7  ;;  %v1192_v28 = vsel %vm907_vm0, %v1189_v26, %v1191_v23  ;;  %1715 = vmatpush1.bf16.msra.mxu1 %v13863_v35  ;;  %v15272_v24 = vld [vmem:[%s18066_s17] sm:$0xff]  ;;  %v13913_v35 = vld [vmem:[#allocation19 + $0x64] ss:$8 sps:$4 sm:$0xff]  }
 0x3b8   :  { %v1198_v33 = vpack.c.bf16 %v1192_v28, %v1190_v32  ;;  %1716 = vmatprep.subr.bf16.mxu1 %v13868_v36  ;;  %v15273_v36 = vld [vmem:[%s18066_s17 + $0x10] sm:$0xff] }
 0x3b9   :  { %v1187_v30 = vsel %vm907_vm0, %v1184_v22, %v1186_v27  ;;  %vm11085_vm0 = vcmask 851712  }
 0x3ba   :  { %v1197_v31 = vpack.c.bf16 %v1187_v30, %v1185_v29 }
 0x3bb   :  { %1717 = vmatpush1.bf16.msra.mxu1 %v13866_v37 }
 0x3bc   :  { %13550 = vmatprep.mubr.bf16.mxu0 %v1197_v31  ;;  %1718 = vmatprep.subr.bf16.mxu1 %v13874_v41 }
 0x3bd   :  { %13551 = vmatmul.mubr.bf16.vlgmr.msra.gmra.mxu0 %v1198_v33  ;;  %v13908_v33 = vld [vmem:[#allocation19 + $0x70] ss:$8 sps:$4 sm:$0xff]  }
 0x3be   :  { %1580 = vmatpush1.bf16.msra.mxu0 %v13869_v38  ;;  %1611 = vmatprep.mubr.bf16.mxu0 %v17982_v60  ;;  %v13911_v38 = vld [vmem:[#allocation19 + $0x60] ss:$8 sps:$4 sm:$0xff]  }
 0x3bf   :  { %1719 = vmatpush1.bf16.msra.mxu1 %v13872_v40  ;;  %1581 = vmatprep.subr.bf16.mxu0 %v13877_v42 }
 0x3c0   :  { %1720 = vmatprep.subr.bf16.mxu1 %v13880_v44 }
 0x3c2   :  { %1582 = vmatpush1.bf16.msra.mxu0 %v13875_v43  ;;  %v13914_v43 = vld [vmem:[#allocation19 + $0x50] ss:$8 sps:$4 sm:$0xff]  }
 0x3c3   :  { %1721 = vmatpush1.bf16.msra.mxu1 %v13878_v45  ;;  %1583 = vmatprep.subr.bf16.mxu0 %v13883_v46  ;;  %v13922_v46 = vld [vmem:[#allocation19 + $0x44] ss:$8 sps:$4 sm:$0xff]  }
 0x3c4   :  { %1722 = vmatprep.subr.bf16.mxu1 %v13886_v48 }
 0x3c6   :  { %1584 = vmatpush1.bf16.msra.mxu0 %v13881_v47 }
 0x3c7   :  { %1723 = vmatpush1.bf16.msra.mxu1 %v13884_v49  ;;  %1585 = vmatprep.subr.bf16.mxu0 %v13889_v50  ;;  %v13917_v50 = vld [vmem:[#allocation17 + $0x70] ss:$8 sps:$4 sm:$0xff]  }
 0x3c8   :  { %1724 = vmatprep.subr.bf16.mxu1 %v13892_v52  ;;  %v1457_v52 = vld [vmem:[#allocation2 + $0x8] sm:$0xc0] }
 0x3ca   :  { %1586 = vmatpush1.bf16.msra.mxu0 %v13887_v51 }
 0x3cb   :  { %1725 = vmatpush1.bf16.msra.mxu1 %v13890_v53  ;;  %1587 = vmatprep.subr.bf16.mxu0 %v13895_v54  ;;  %v13920_v53 = vld [vmem:[#allocation19 + $0x40] ss:$8 sps:$4 sm:$0xff]   ;;  %v13925_v54 = vld [vmem:[#allocation17 + $0x64] ss:$8 sps:$4 sm:$0xff]  }
 0x3cc   :  { %1726 = vmatprep.subr.bf16.mxu1 %v13898_v56  ;;  %v13928_v56 = vld [vmem:[#allocation19 + $0x34] ss:$8 sps:$4 sm:$0xff]  }
 0x3ce   :  { %1588 = vmatpush1.bf16.msra.mxu0 %v13893_v55 }
 0x3cf   :  { %1727 = vmatpush1.bf16.msra.mxu1 %v13896_v57  ;;  %1589 = vmatprep.subr.bf16.mxu0 %v13901_v58  ;;  %v1472_v57 = vrot.slane %v1457_v52, 6  ;;  %v14001_v52 = vld [vmem:[#allocation17 + $0x80] ss:$8 sps:$4 sm:$0xff]  }
 0x3d0   :  { %2298 = vmatprep.subr.bf16.mxu1 %v13910_v1 }
 0x3d2   :  { %1590 = vmatpush1.bf16.msra.mxu0 %v13899_v59  ;;  %v13923_v59 = vld [vmem:[#allocation17 + $0x60] ss:$8 sps:$4 sm:$0xff]  }
 0x3d3   :  { %1591 = vmatprep.subr.bf16.mxu0 %v13904_v62  ;;  %v13931_v62 = vld [vmem:[#allocation17 + $0x54] ss:$8 sps:$4 sm:$0xff]  }
 0x3d6   :  { %1592 = vmatpush1.bf16.msra.mxu0 %v13902_v61  ;;  %v13926_v61 = vld [vmem:[#allocation19 + $0x30] ss:$8 sps:$4 sm:$0xff]  }
 0x3d7   :  { %1593 = vmatprep.subr.bf16.mxu0 %v13907_v63 }
 0x3da   :  { %1594 = vmatpush1.bf16.msra.mxu0 %v13905_v0  ;;  %v13934_v0 = vld [vmem:[#allocation19 + $0x24] ss:$8 sps:$4 sm:$0xff]  }
 0x3db   :  { %2085 = vmatprep.subr.bf16.mxu0 %v13919_v2  ;;  %v13929_v2 = vld [vmem:[#allocation17 + $0x50] ss:$8 sps:$4 sm:$0xff]  }
 0x472   :  { %v13572_v3 = vpop.f32.mrf.mxu1 }
 0x474   :  { %v1394_v4 = vpop.f32.mrf.mxu1 }
 0x476   :  { %v13573_v6 = vpop.f32.mrf.mxu1 }
 0x478   :  { %v1397_v14 = vpop.f32.mrf.mxu1 }
 0x47d   :  { %v13552_v5 = vpop.f32.mrf.mxu0 }
 0x47e   :  { %v1403_v17 = vadd.f32 %v13572_v3, %v13552_v5  ;;  %v13937_v5 = vld [vmem:[#allocation17 + $0x44] ss:$8 sps:$4 sm:$0xff]  }
 0x47f   :  { %v1297_v7 = vpop.f32.mrf.mxu0 }
 0x480   :  { %v1395_v8 = vadd.f32 %v1394_v4, %v1297_v7  ;;  %v1418_v23 = vadd.f32 %v12185_v9, %v1403_v17  ;;  %v13932_v4 = vld [vmem:[#allocation19 + $0x20] ss:$8 sps:$4 sm:$0xff]  }
 0x481   :  { %v13553_v10 = vpop.f32.mrf.mxu0  ;;  %v13935_v7 = vld [vmem:[#allocation17 + $0x40] ss:$8 sps:$4 sm:$0xff]  }
 0x482   :  { %v1416_v11 = vadd.f32 %v12185_v9, %v1395_v8  ;;  %v1406_v12 = vadd.f32 %v13573_v6, %v13553_v10  ;;  %v1422_v30 = vmax.f32 %v1418_v23, 0.0  ;;  %v13940_v6 = vld [vmem:[#allocation19 + $0x14] ss:$8 sps:$4 sm:$0xff]   ;;  %v13938_v8 = vld [vmem:[#allocation19 + $0x10] ss:$8 sps:$4 sm:$0xff]  }
 0x483   :  { %v1300_v15 = vpop.f32.mrf.mxu0  ;;  %v13946_v10 = vld [vmem:[#allocation19 + $0x4] ss:$8 sps:$4 sm:$0xff]   ;;  %v13947_v17 = vld [vmem:[#allocation17 + $0x20] ss:$8 sps:$4 sm:$0xff]  }
 0x484   :  { %v1420_v18 = vmax.f32 %v1416_v11, 0.0  ;;  %v1419_v19 = vadd.f32 %v12185_v9, %v1406_v12  ;;  %v1398_v20 = vadd.f32 %v1397_v14, %v1300_v15  ;;  %v1426_v37 = vadd.f32 %v15273_v36, %v1422_v30  ;;  %v13941_v11 = vld [vmem:[#allocation17 + $0x30] ss:$8 sps:$4 sm:$0xff]   ;;  %v13944_v12 = vld [vmem:[#allocation19] ss:$8 sps:$4 sm:$0xff]  }
 0x485   :  { %v13949_v14 = vld [vmem:[#allocation17 + $0x24] ss:$8 sps:$4 sm:$0xff]   ;;  %v13952_v15 = vld [vmem:[#allocation19 + $0xf4] ss:$8 sps:$4 sm:$0xff]   ;;  %v13968_v30 = vld [vmem:[#allocation19 + $0xc0] ss:$8 sps:$4 sm:$0xff]  }
 0x486   :  { %v1423_v21 = vmax.f32 %v1419_v19, 0.0  ;;  %v1417_v22 = vadd.f32 %v12185_v9, %v1398_v20  ;;  %v1424_v25 = vadd.f32 %v15272_v24, %v1420_v18  ;;  %v1430_v39 = vmax.f32 %v1426_v37, 0.0  ;;  %v13943_v9 = vld [vmem:[#allocation17 + $0x34] ss:$8 sps:$4 sm:$0xff]   ;;  %v13950_v18 = vld [vmem:[#allocation19 + $0xf0] ss:$8 sps:$4 sm:$0xff]  }
 0x487   :  { %v13955_v19 = vld [vmem:[#allocation17 + $0x14] ss:$8 sps:$4 sm:$0xff]   ;;  %v13958_v20 = vld [vmem:[#allocation19 + $0xe4] ss:$8 sps:$4 sm:$0xff]   ;;  %v13959_v24 = vld [vmem:[#allocation17] ss:$8 sps:$4 sm:$0xff]  }
 0x488   :  { %v1427_v26 = vadd.f32 %v1423_v21, %v16858_v16  ;;  %v1421_v27 = vmax.f32 %v1417_v22, 0.0  ;;  %v1428_v31 = vmax.f32 %v1424_v25, 0.0  ;;  %v1454_v16 = vld [vmem:[#allocation2 + $0x30] sm:$0xc0]  ;;  %v1473_v58 = vrot.slane %v1430_v39, 6 }
 0x489   :  { %v1467_v40 = vrot.slane %v1454_v16, 6  ;;  %v13953_v21 = vld [vmem:[#allocation17 + $0x10] ss:$8 sps:$4 sm:$0xff]   ;;  %v13956_v22 = vld [vmem:[#allocation19 + $0xe0] ss:$8 sps:$4 sm:$0xff]  }
 0x48a   :  { %v1431_v28 = vmax.f32 %v1427_v26, 0.0  ;;  %v1425_v29 = vadd.f32 %v1421_v27, %v16853_v13  ;;  %v13916_v13 = vld [vmem:[#allocation19 + $0x54] ss:$8 sps:$4 sm:$0xff]   ;;  %v1468_v41 = vrot.slane %v1428_v31, 6  ;;  %v1474_v1 = vsel %vm1466_vm1, %v1472_v57, %v1473_v58  ;;  %v13961_v23 = vld [vmem:[#allocation17 + $0x4] ss:$8 sps:$4 sm:$0xff]  }
 0x48b   :  { %v13964_v25 = vld [vmem:[#allocation19 + $0xd4] ss:$8 sps:$4 sm:$0xff]   ;;  %v13962_v26 = vld [vmem:[#allocation19 + $0xd0] ss:$8 sps:$4 sm:$0xff]   ;;  %v13982_v16 = vld [vmem:[#allocation19 + $0xa4] ss:$8 sps:$4 sm:$0xff]  }
 0x48c   :  { %1453 = vst [vmem:[#allocation2 + $0x10] sm:$0xff] %v1431_v28  ;;  %v1429_v32 = vmax.f32 %v1425_v29, 0.0  ;;  %v16882_v44 = vpack.c.bf16 %v1431_v28, %v1430_v39  ;;  %v1469_v48 = vsel %vm1466_vm1, %v1467_v40, %v1468_v41  ;;  %v13967_v27 = vld [vmem:[#allocation17 + $0xf4] ss:$8 sps:$4 sm:$0xff]   ;;  %v13965_v28 = vld [vmem:[#allocation17 + $0xf0] ss:$8 sps:$4 sm:$0xff]  }
 0x48d   :  { %v13970_v29 = vld [vmem:[#allocation19 + $0xc4] ss:$8 sps:$4 sm:$0xff]   ;;  %v13979_v36 = vld [vmem:[#allocation17 + $0xd4] ss:$8 sps:$4 sm:$0xff]   ;;  %v13977_v37 = vld [vmem:[#allocation17 + $0xd0] ss:$8 sps:$4 sm:$0xff]  }
 0x48e   :  { %1451 = vst [vmem:[#allocation2 + $0x50] sm:$0xff] %v1429_v32  ;;  %v16877_v34 = vpack.c.bf16 %v1429_v32, %v1428_v31  ;;  %v13973_v31 = vld [vmem:[#allocation17 + $0xe4] ss:$8 sps:$4 sm:$0xff]   ;;  %v13971_v32 = vld [vmem:[#allocation17 + $0xe0] ss:$8 sps:$4 sm:$0xff]  }
 0x48f   :  { %v13983_v39 = vld [vmem:[#allocation17 + $0xc0] ss:$8 sps:$4 sm:$0xff]   ;;  %v13988_v40 = vld [vmem:[#allocation19 + $0x94] ss:$8 sps:$4 sm:$0xff]  }
 0x490   :  { %1745 = vmatmul.mubr.bf16.vlgmr.msra.gmra.mxu1 %v16877_v34 }
 0x491   :  { %1754 = vmatprep.mubr.bf16.mxu1 %v17982_v60  ;;  %2299 = vmatpush1.bf16.msra.mxu1 %v13908_v33  ;;  %v13976_v33 = vld [vmem:[#allocation19 + $0xb4] ss:$8 sps:$4 sm:$0xff]  }
 0x492   :  { %2300 = vmatprep.subr.bf16.mxu1 %v13913_v35  ;;  %v13974_v35 = vld [vmem:[#allocation19 + $0xb0] ss:$8 sps:$4 sm:$0xff]  }
 0x493   :  { %v1459_v47 = vld [vmem:[#allocation2 + $0x10] sm:$0x3f] }
 0x494   :  { %v1475_v55 = vrot.slane %v1459_v47, 6  ;;  %v13997_v47 = vld [vmem:[#allocation17 + $0xa4] ss:$8 sps:$4 sm:$0xff]  }
 0x495   :  { %v1456_v42 = vld [vmem:[#allocation2 + $0x50] sm:$0x3f]  ;;  %2301 = vmatpush1.bf16.msra.mxu1 %v13911_v38 }
 0x496   :  { %v1470_v45 = vrot.slane %v1456_v42, 6  ;;  %2302 = vmatprep.subr.bf16.mxu1 %v13916_v13  ;;  %v1476_v63 = vsel %vm1466_vm1, %v1473_v58, %v1475_v55  ;;  %v13980_v38 = vld [vmem:[#allocation19 + $0xa0] ss:$8 sps:$4 sm:$0xff]   ;;  %v13985_v13 = vld [vmem:[#allocation17 + $0xc4] ss:$8 sps:$4 sm:$0xff]  }
 0x497   :  { %v1482_v3 = vpack.c.bf16 %v1476_v63, %v1474_v1  ;;  %v13991_v42 = vld [vmem:[#allocation17 + $0xb4] ss:$8 sps:$4 sm:$0xff]  }
 0x498   :  { %1755 = vmatmul.mubr.bf16.gmra.mxu1 %v16882_v44  ;;  %v1471_v49 = vsel %vm1466_vm1, %v1468_v41, %v1470_v45  ;;  %v13986_v41 = vld [vmem:[#allocation19 + $0x90] ss:$8 sps:$4 sm:$0xff]   ;;  %v13994_v45 = vld [vmem:[#allocation19 + $0x84] ss:$8 sps:$4 sm:$0xff]  }
 0x499   :  { %v1481_v51 = vpack.c.bf16 %v1471_v49, %v1469_v48  ;;  %2303 = vmatpush1.bf16.msra.mxu1 %v13914_v43  ;;  %v13989_v43 = vld [vmem:[#allocation17 + $0xb0] ss:$8 sps:$4 sm:$0xff]   ;;  %v13995_v48 = vld [vmem:[#allocation17 + $0xa0] ss:$8 sps:$4 sm:$0xff]   ;;  %v14000_v49 = vld [vmem:[#allocation17 + $0x94] ss:$8 sps:$4 sm:$0xff]  }
 0x49a   :  { %2304 = vmatprep.subr.bf16.mxu1 %v13922_v46  ;;  %v13992_v46 = vld [vmem:[#allocation19 + $0x80] ss:$8 sps:$4 sm:$0xff]  }
 0x49b   :  { %1612 = vmatmul.mubr.bf16.vlgmr.msra.gmra.mxu0 %v1481_v51  ;;  %v14003_v51 = vld [vmem:[#allocation17 + $0x84] ss:$8 sps:$4 sm:$0xff]  }
 0x49c   :  { %1621 = vmatprep.mubr.bf16.mxu0 %v17982_v60  ;;  %2086 = vmatpush1.bf16.msra.mxu0 %v13917_v50  ;;  %v13998_v50 = vld [vmem:[#allocation17 + $0x90] ss:$8 sps:$4 sm:$0xff]  }
 0x49d   :  { %2305 = vmatpush1.bf16.msra.mxu1 %v13920_v53  ;;  %2087 = vmatprep.subr.bf16.mxu0 %v13925_v54  ;;  %v14006_v53 = vld [vmem:[#allocation22 + $0x74] ss:$8 sps:$4 sm:$0xff]  }
 0x49e   :  { %2306 = vmatprep.subr.bf16.mxu1 %v13928_v56  ;;  %v17979_v56 = vlaneseq }
 0x4a0   :  { %2088 = vmatpush1.bf16.msra.mxu0 %v13923_v59  ;;  %v16891_v58 = vshrl.u32 %v17979_v56, 7 }
 0x4a1   :  { %2307 = vmatpush1.bf16.msra.mxu1 %v13926_v61  ;;  %2089 = vmatprep.subr.bf16.mxu0 %v13931_v62 }
 0x4a2   :  { %2308 = vmatprep.subr.bf16.mxu1 %v13934_v0  ;;  %v16894_v61 = vsub.s32 1, %v16891_v58  ;;  %v16897_v63 = vsub.s32 0, %v16891_v58  ;;  %v1765_v0 = vld [vmem:[#allocation16] sm:$0x3] }
 0x4a3   :  { %1622 = vmatmul.mubr.bf16.gmra.mxu0 %v1482_v3 }
 0x4a4   :  { %2090 = vmatpush1.bf16.msra.mxu0 %v13929_v2 }
 0x4a5   :  { %2309 = vmatpush1.bf16.msra.mxu1 %v13932_v4  ;;  %2091 = vmatprep.subr.bf16.mxu0 %v13937_v5  ;;  %v1774_v4 = vrot.slane %v1765_v0, %v16894_v61 }
 0x4a6   :  { %2310 = vmatprep.subr.bf16.mxu1 %v13940_v6  ;;  %v1770_v6 = vrot.slane %v1765_v0, %v16897_v63 }
 0x4a8   :  { %2092 = vmatpush1.bf16.msra.mxu0 %v13935_v7 }
 0x4a9   :  { %2311 = vmatpush1.bf16.msra.mxu1 %v13938_v8  ;;  %2093 = vmatprep.subr.bf16.mxu0 %v13943_v9 }
 0x4aa   :  { %2312 = vmatprep.subr.bf16.mxu1 %v13946_v10 }
 0x4ac   :  { %2094 = vmatpush1.bf16.msra.mxu0 %v13941_v11 }
 0x4ad   :  { %2313 = vmatpush1.bf16.msra.mxu1 %v13944_v12  ;;  %2095 = vmatprep.subr.bf16.mxu0 %v13949_v14 }
 0x4ae   :  { %2314 = vmatprep.subr.bf16.mxu1 %v13952_v15 }
 0x4b0   :  { %2096 = vmatpush1.bf16.msra.mxu0 %v13947_v17 }
 0x4b1   :  { %2315 = vmatpush2.bf16.msra.mxu1 %v13950_v18  ;;  %2097 = vmatprep.subr.bf16.mxu0 %v13955_v19 }
 0x4b2   :  { %2316 = vmatprep.subr.bf16.mxu1 %v13958_v20 }
 0x4b4   :  { %2098 = vmatpush1.bf16.msra.mxu0 %v13953_v21 }
 0x4b5   :  { %2317 = vmatpush2.bf16.msra.mxu1 %v13956_v22  ;;  %2099 = vmatprep.subr.bf16.mxu0 %v13961_v23 }
 0x4b6   :  { %2318 = vmatprep.subr.bf16.mxu1 %v13964_v25 }
 0x4b8   :  { %2100 = vmatpush1.bf16.msra.mxu0 %v13959_v24 }
 0x4b9   :  { %2319 = vmatpush2.bf16.msra.mxu1 %v13962_v26  ;;  %2101 = vmatprep.subr.bf16.mxu0 %v13967_v27 }
 0x4ba   :  { %2320 = vmatprep.subr.bf16.mxu1 %v13970_v29 }
 0x4bc   :  { %2102 = vmatpush2.bf16.msra.mxu0 %v13965_v28 }
 0x4bd   :  { %2321 = vmatpush2.bf16.msra.mxu1 %v13968_v30  ;;  %2103 = vmatprep.subr.bf16.mxu0 %v13973_v31 }
 0x4be   :  { %2322 = vmatprep.subr.bf16.mxu1 %v13976_v33 }
 0x4c0   :  { %2104 = vmatpush2.bf16.msra.mxu0 %v13971_v32 }
 0x4c1   :  { %2323 = vmatpush2.bf16.msra.mxu1 %v13974_v35  ;;  %2105 = vmatprep.subr.bf16.mxu0 %v13979_v36 }
 0x4c2   :  { %2324 = vmatprep.subr.bf16.mxu1 %v13982_v16 }
 0x4c4   :  { %2106 = vmatpush2.bf16.msra.mxu0 %v13977_v37  ;;  %v1838_v37 = vld [vmem:[#allocation2] sm:$0xc0] }
 0x4c5   :  { %2325 = vmatpush2.bf16.msra.mxu1 %v13980_v38  ;;  %2107 = vmatprep.subr.bf16.mxu0 %v13985_v13 }
 0x4c6   :  { %2326 = vmatprep.subr.bf16.mxu1 %v13988_v40  ;;  %v1864_v40 = vrot.slane %v1838_v37, 6  ;;  %v14033_v37 = vld [vmem:[#allocation26 + $0x64] ss:$8 sps:$4 sm:$0xff]  }
 0x4c8   :  { %2108 = vmatpush2.bf16.msra.mxu0 %v13983_v39  ;;  %v1837_v39 = vld [vmem:[#allocation2 + $0x30] sm:$0xc0] }
 0x4c9   :  { %2327 = vmatpush2.bf16.msra.mxu1 %v13986_v41  ;;  %2109 = vmatprep.subr.bf16.mxu0 %v13991_v42 }
 0x4ca   :  { %2328 = vmatprep.subr.bf16.mxu1 %v13994_v45 }
 0x4cc   :  { %2110 = vmatpush2.bf16.msra.mxu0 %v13989_v43 }
 0x4cd   :  { %2329 = vmatpush2.bf16.msra.mxu1 %v13992_v46  ;;  %2111 = vmatprep.subr.bf16.mxu0 %v13997_v47 }
 0x4d0   :  { %2112 = vmatpush2.bf16.msra.mxu0 %v13995_v48 }
 0x4d1   :  { %2113 = vmatprep.subr.bf16.mxu0 %v14000_v49  ;;  %v1861_v49 = vrot.slane %v1837_v39, 6  ;;  %v14037_v39 = vld [vmem:[#allocation25 + $0x70] ss:$8 sps:$4 sm:$0xff]  }
 0x4d4   :  { %2114 = vmatpush2.bf16.msra.mxu0 %v13998_v50 }
 0x4d5   :  { %2115 = vmatprep.subr.bf16.mxu0 %v14003_v51 }
 0x4d8   :  { %2116 = vmatpush2.bf16.msra.mxu0 %v14001_v52 }
 0x4d9   :  { %2487 = vmatprep.subr.bf16.mxu0 %v14006_v53 }
 0x550   :  { %v1746_v54 = vpop.f32.mrf.mxu1 }
 0x552   :  { %v1748_v55 = vpop.f32.mrf.mxu1 }
 0x554   :  { %v1750_v57 = vpop.f32.mrf.mxu1 }
 0x556   :  { %v1752_v59 = vpop.f32.mrf.mxu1 }
 0x558   :  { %v1756_v1 = vpop.f32.mrf.mxu1 }
 0x55a   :  { %v1758_v9 = vpop.f32.mrf.mxu1 }
 0x55b   :  { %v1613_v62 = vpop.f32.mrf.mxu0 }
 0x55c   :  { %v1747_v5 = vadd.f32 %v1746_v54, %v1613_v62  ;;  %v1760_v20 = vpop.f32.mrf.mxu1  ;;  %v14004_v62 = vld [vmem:[#allocation22 + $0x70] ss:$8 sps:$4 sm:$0xff]  }
 0x55d   :  { %v1615_v2 = vpop.f32.mrf.mxu0 }
 0x55e   :  { %v1749_v3 = vadd.f32 %v1748_v55, %v1615_v2  ;;  %v1777_v15 = vadd.f32 %v1770_v6, %v1747_v5  ;;  %v1762_v30 = vpop.f32.mrf.mxu1 }
 0x55f   :  { %v1617_v7 = vpop.f32.mrf.mxu0 }
 0x560   :  { %v1751_v8 = vadd.f32 %v1750_v57, %v1617_v7  ;;  %v1778_v11 = vadd.f32 %v1774_v4, %v1749_v3  ;;  %v1785_v25 = vmax.f32 %v1777_v15, 0.0  ;;  %v14009_v3 = vld [vmem:[#allocation22 + $0x64] ss:$8 sps:$4 sm:$0xff]   ;;  %v14012_v15 = vld [vmem:[#allocation22 + $0x54] ss:$8 sps:$4 sm:$0xff]  }
 0x561   :  { %v1619_v10 = vpop.f32.mrf.mxu0 }
 0x562   :  { %v1779_v12 = vadd.f32 %v1770_v6, %v1751_v8  ;;  %v1753_v14 = vadd.f32 %v1752_v59, %v1619_v10  ;;  %v1786_v22 = vmax.f32 %v1778_v11, 0.0  ;;  %v1862_v50 = vrot.slane %v1785_v25, 6 }
 0x563   :  { %v1623_v17 = vpop.f32.mrf.mxu0 }
 0x564   :  { %v1787_v18 = vmax.f32 %v1779_v12, 0.0  ;;  %v1780_v19 = vadd.f32 %v1774_v4, %v1753_v14  ;;  %v1757_v26 = vadd.f32 %v1756_v1, %v1623_v17  ;;  %v1865_v45 = vrot.slane %v1786_v22, 6  ;;  %v1844_v1 = vld [vmem:[#allocation2 + $0x38] sm:$0xc0] }
 0x565   :  { %v1625_v21 = vpop.f32.mrf.mxu0  ;;  %v1863_v0 = vsel %vm1466_vm1, %v1861_v49, %v1862_v50  ;;  %v14052_v49 = vld [vmem:[#allocation26 + $0x20] ss:$8 sps:$4 sm:$0xff]  }
 0x566   :  { %1831 = vst [vmem:[#allocation2 + $0x50] sm:$0xff] %v1787_v18  ;;  %v1788_v23 = vmax.f32 %v1780_v19, 0.0  ;;  %v1759_v24 = vadd.f32 %v1758_v9, %v1625_v21  ;;  %v1793_v31 = vpack.c.bf16 %v1787_v18, %v1785_v25  ;;  %v1781_v16 = vadd.f32 %v1770_v6, %v1757_v26  ;;  %v14007_v9 = vld [vmem:[#allocation22 + $0x60] ss:$8 sps:$4 sm:$0xff]   ;;  %v14010_v21 = vld [vmem:[#allocation22 + $0x50] ss:$8 sps:$4 sm:$0xff]  }
 0x567   :  { %v1627_v27 = vpop.f32.mrf.mxu0  ;;  %v1866_v55 = vsel %vm1466_vm1, %v1864_v40, %v1865_v45  ;;  %v14013_v25 = vld [vmem:[#allocation22 + $0x40] ss:$8 sps:$4 sm:$0xff]   ;;  %v14018_v26 = vld [vmem:[#allocation22 + $0x34] ss:$8 sps:$4 sm:$0xff]  }
 0x568   :  { %1832 = vst [vmem:[#allocation2 + $0x20] sm:$0xff] %v1788_v23  ;;  %v1761_v28 = vadd.f32 %v1760_v20, %v1627_v27  ;;  %v1794_v29 = vpack.c.bf16 %v1788_v23, %v1786_v22  ;;  %v1782_v33 = vadd.f32 %v1774_v4, %v1759_v24  ;;  %v1789_v47 = vmax.f32 %v1781_v16, 0.0  ;;  %v14015_v24 = vld [vmem:[#allocation22 + $0x44] ss:$8 sps:$4 sm:$0xff]   ;;  %v14016_v27 = vld [vmem:[#allocation22 + $0x30] ss:$8 sps:$4 sm:$0xff]  }
 0x569   :  { %v1629_v32 = vpop.f32.mrf.mxu0  ;;  %v14031_v16 = vld [vmem:[#allocation26 + $0x60] ss:$8 sps:$4 sm:$0xff]   ;;  %v14039_v40 = vld [vmem:[#allocation25 + $0x74] ss:$8 sps:$4 sm:$0xff]  }
 0x56a   :  { %v1783_v35 = vadd.f32 %v1770_v6, %v1761_v28  ;;  %v1763_v36 = vadd.f32 %v1762_v30, %v1629_v32  ;;  %2330 = vmatprep.mubr.bf16.mxu1 %v1794_v29  ;;  %v1790_v42 = vmax.f32 %v1782_v33, 0.0  ;;  %v1874_v6 = vrot.slane %v1844_v1, 6  ;;  %v14021_v28 = vld [vmem:[#allocation22 + $0x24] ss:$8 sps:$4 sm:$0xff]   ;;  %v14019_v29 = vld [vmem:[#allocation22 + $0x20] ss:$8 sps:$4 sm:$0xff]   ;;  %2849 = vmatprep.subr.bf16.mxu1 %v14039_v40 }
 0x56b   :  { %2331 = vmatmul.mubr.bf16.vlgmr.msra.gmra.mxu1 %v1793_v31  ;;  %v1872_v12 = vrot.slane %v1789_v47, 6  ;;  %v14024_v30 = vld [vmem:[#allocation22 + $0x14] ss:$8 sps:$4 sm:$0xff]   ;;  %v14022_v31 = vld [vmem:[#allocation22 + $0x10] ss:$8 sps:$4 sm:$0xff]  }
 0x56c   :  { %v1791_v38 = vmax.f32 %v1783_v35, 0.0  ;;  %v1784_v13 = vadd.f32 %v1774_v4, %v1763_v36  ;;  %v1843_v4 = vld [vmem:[#allocation2 + $0x8] sm:$0xc0]  ;;  %v1875_v7 = vrot.slane %v1790_v42, 6  ;;  %v14025_v33 = vld [vmem:[#allocation22] ss:$8 sps:$4 sm:$0xff]   ;;  %2850 = vmatpush1.bf16.msra.mxu1 %v14037_v39 }
 0x56d   :  { %v1841_v41 = vld [vmem:[#allocation2 + $0x50] sm:$0x3f]  ;;  %v1871_v11 = vrot.slane %v1843_v4, 6  ;;  %v14030_v35 = vld [vmem:[#allocation26 + $0x74] ss:$8 sps:$4 sm:$0xff]  }
 0x56e   :  { %1835 = vst [vmem:[#allocation2 + $0x10] sm:$0xff] %v1791_v38  ;;  %v1792_v43 = vmax.f32 %v1784_v13, 0.0  ;;  %v1867_v46 = vrot.slane %v1841_v41, 6  ;;  %v1795_v53 = vpack.c.bf16 %v1791_v38, %v1789_v47  ;;  %v1876_v18 = vsel %vm1466_vm1, %v1874_v6, %v1875_v7  ;;  %v14027_v32 = vld [vmem:[#allocation22 + $0x4] ss:$8 sps:$4 sm:$0xff]  }
 0x56f   :  { %v1842_v48 = vld [vmem:[#allocation2 + $0x20] sm:$0x3f]  ;;  %v1873_v22 = vsel %vm1466_vm1, %v1871_v11, %v1872_v12  ;;  %v14042_v41 = vld [vmem:[#allocation26 + $0x44] ss:$8 sps:$4 sm:$0xff]   ;;  %v14076_v6 = vld [vmem:[#allocation26 + $0xe0] ss:$8 sps:$4 sm:$0xff]  }
 0x570   :  { %1836 = vst [vmem:[#allocation2 + $0x40] sm:$0xff] %v1792_v43  ;;  %v1796_v51 = vpack.c.bf16 %v1792_v43, %v1790_v42  ;;  %v1869_v52 = vrot.slane %v1842_v48, 6  ;;  %v1868_v54 = vsel %vm1466_vm1, %v1862_v50, %v1867_v46  ;;  %v14028_v36 = vld [vmem:[#allocation26 + $0x70] ss:$8 sps:$4 sm:$0xff]   ;;  %v14036_v38 = vld [vmem:[#allocation26 + $0x54] ss:$8 sps:$4 sm:$0xff]  }
 0x571   :  { %v1889_v2 = vpack.c.bf16 %v1868_v54, %v1863_v0  ;;  %v14034_v13 = vld [vmem:[#allocation26 + $0x50] ss:$8 sps:$4 sm:$0xff]   ;;  %v14040_v42 = vld [vmem:[#allocation26 + $0x40] ss:$8 sps:$4 sm:$0xff]   ;;  %v14045_v43 = vld [vmem:[#allocation25 + $0x64] ss:$8 sps:$4 sm:$0xff]  }
 0x572   :  { %2340 = vmatprep.mubr.bf16.mxu1 %v1796_v51  ;;  %v1870_v57 = vsel %vm1466_vm1, %v1865_v45, %v1869_v52  ;;  %v14048_v45 = vld [vmem:[#allocation26 + $0x34] ss:$8 sps:$4 sm:$0xff]   ;;  %2851 = vmatprep.subr.bf16.mxu1 %v14045_v43  ;;  %v14046_v46 = vld [vmem:[#allocation26 + $0x30] ss:$8 sps:$4 sm:$0xff]   ;;  %v14054_v48 = vld [vmem:[#allocation26 + $0x24] ss:$8 sps:$4 sm:$0xff]  }
 0x573   :  { %2341 = vmatmul.mubr.bf16.gmra.mxu1 %v1795_v53  ;;  %v1890_v59 = vpack.c.bf16 %v1870_v57, %v1866_v55  ;;  %v14049_v47 = vld [vmem:[#allocation25 + $0x50] ss:$8 sps:$4 sm:$0xff]   ;;  %v14057_v50 = vld [vmem:[#allocation25 + $0x44] ss:$8 sps:$4 sm:$0xff]   ;;  %v14055_v51 = vld [vmem:[#allocation25 + $0x40] ss:$8 sps:$4 sm:$0xff]  }
 0x574   :  { %v14060_v52 = vld [vmem:[#allocation26 + $0x14] ss:$8 sps:$4 sm:$0xff]   ;;  %v14058_v53 = vld [vmem:[#allocation26 + $0x10] ss:$8 sps:$4 sm:$0xff]   ;;  %v14066_v57 = vld [vmem:[#allocation26 + $0x4] ss:$8 sps:$4 sm:$0xff]  }
 0x575   :  { %2117 = vmatprep.mubr.bf16.mxu0 %v1890_v59  ;;  %v1847_v5 = vld [vmem:[#allocation2 + $0x10] sm:$0x3f]  ;;  %v14063_v54 = vld [vmem:[#allocation25 + $0x34] ss:$8 sps:$4 sm:$0xff]   ;;  %v14061_v55 = vld [vmem:[#allocation25 + $0x30] ss:$8 sps:$4 sm:$0xff]  }
 0x576   :  { %2118 = vmatmul.mubr.bf16.vlgmr.msra.gmra.mxu0 %v1889_v2  ;;  %v1877_v8 = vrot.slane %v1847_v5, 6  ;;  %v14064_v59 = vld [vmem:[#allocation26] ss:$8 sps:$4 sm:$0xff]   ;;  %v14072_v1 = vld [vmem:[#allocation26 + $0xf4] ss:$8 sps:$4 sm:$0xff]  }
 0x577   :  { %2488 = vmatpush1.bf16.msra.mxu0 %v14004_v62  ;;  %v1848_v10 = vld [vmem:[#allocation2 + $0x40] sm:$0x3f]  ;;  %v14069_v62 = vld [vmem:[#allocation25 + $0x24] ss:$8 sps:$4 sm:$0xff]   ;;  %v14067_v0 = vld [vmem:[#allocation25 + $0x20] ss:$8 sps:$4 sm:$0xff]  }
 0x578   :  { %2489 = vmatprep.subr.bf16.mxu0 %v14009_v3  ;;  %v1879_v14 = vrot.slane %v1848_v10, 6  ;;  %v1878_v17 = vsel %vm1466_vm1, %v1872_v12, %v1877_v8  ;;  %v14070_v2 = vld [vmem:[#allocation26 + $0xf0] ss:$8 sps:$4 sm:$0xff]   ;;  %v14075_v3 = vld [vmem:[#allocation25 + $0x14] ss:$8 sps:$4 sm:$0xff]  }
 0x579   :  { %v1891_v23 = vpack.c.bf16 %v1878_v17, %v1873_v22  ;;  %v14073_v4 = vld [vmem:[#allocation25 + $0x10] ss:$8 sps:$4 sm:$0xff]   ;;  %v14078_v5 = vld [vmem:[#allocation26 + $0xe4] ss:$8 sps:$4 sm:$0xff]   ;;  %v14079_v8 = vld [vmem:[#allocation25] ss:$8 sps:$4 sm:$0xff]  }
 0x57a   :  { %v1880_v19 = vsel %vm1466_vm1, %v1875_v7, %v1879_v14  ;;  %v14081_v7 = vld [vmem:[#allocation25 + $0x4] ss:$8 sps:$4 sm:$0xff]   ;;  %v14082_v10 = vld [vmem:[#allocation26 + $0xd0] ss:$8 sps:$4 sm:$0xff]   ;;  %v14087_v11 = vld [vmem:[#allocation25 + $0xf4] ss:$8 sps:$4 sm:$0xff]  }
 0x57b   :  { %2490 = vmatpush1.bf16.msra.mxu0 %v14007_v9  ;;  %v1892_v20 = vpack.c.bf16 %v1880_v19, %v1876_v18  ;;  %v14084_v9 = vld [vmem:[#allocation26 + $0xd4] ss:$8 sps:$4 sm:$0xff]   ;;  %v14090_v12 = vld [vmem:[#allocation26 + $0xc4] ss:$8 sps:$4 sm:$0xff]   ;;  %v14085_v14 = vld [vmem:[#allocation25 + $0xf0] ss:$8 sps:$4 sm:$0xff]  }
 0x57c   :  { %2491 = vmatprep.subr.bf16.mxu0 %v14012_v15  ;;  %v14088_v15 = vld [vmem:[#allocation26 + $0xc0] ss:$8 sps:$4 sm:$0xff]   ;;  %v14093_v17 = vld [vmem:[#allocation25 + $0xe4] ss:$8 sps:$4 sm:$0xff]   ;;  %v14096_v19 = vld [vmem:[#allocation26 + $0xb4] ss:$8 sps:$4 sm:$0xff]  }
 0x57d   :  { %2127 = vmatprep.mubr.bf16.mxu0 %v1892_v20  ;;  %v14091_v18 = vld [vmem:[#allocation25 + $0xe0] ss:$8 sps:$4 sm:$0xff]   ;;  %v14094_v20 = vld [vmem:[#allocation26 + $0xb0] ss:$8 sps:$4 sm:$0xff]   ;;  %vm11092_vm1 = vcmask 917312  }
 0x57e   :  { %2128 = vmatmul.mubr.bf16.gmra.mxu0 %v1891_v23  ;;  %v14097_v22 = vld [vmem:[#allocation25 + $0xd0] ss:$8 sps:$4 sm:$0xff]   ;;  %v14102_v23 = vld [vmem:[#allocation26 + $0xa4] ss:$8 sps:$4 sm:$0xff]  }
 0x57f   :  { %2492 = vmatpush1.bf16.msra.mxu0 %v14010_v21  ;;  %2519 = vmatprep.mubr.bf16.mxu0 %v17982_v60  ;;  %v14099_v21 = vld [vmem:[#allocation25 + $0xd4] ss:$8 sps:$4 sm:$0xff]  }
 0x580   :  { %2493 = vmatprep.subr.bf16.mxu0 %v14015_v24  ;;  %v14100_v24 = vld [vmem:[#allocation26 + $0xa0] ss:$8 sps:$4 sm:$0xff]  }
 0x581   :  { %v14135_v39 = vld [vmem:[#allocation29 + $0x74] ss:$8 sps:$4 sm:$0xff]  }
 0x583   :  { %2494 = vmatpush1.bf16.msra.mxu0 %v14013_v25  ;;  %v14105_v25 = vld [vmem:[#allocation25 + $0xc4] ss:$8 sps:$4 sm:$0xff]  }
 0x584   :  { %2495 = vmatprep.subr.bf16.mxu0 %v14018_v26  ;;  %v14103_v26 = vld [vmem:[#allocation25 + $0xc0] ss:$8 sps:$4 sm:$0xff]  }
 0x587   :  { %2496 = vmatpush1.bf16.msra.mxu0 %v14016_v27  ;;  %v14108_v27 = vld [vmem:[#allocation26 + $0x94] ss:$8 sps:$4 sm:$0xff]  }
 0x588   :  { %2497 = vmatprep.subr.bf16.mxu0 %v14021_v28  ;;  %v14106_v28 = vld [vmem:[#allocation26 + $0x90] ss:$8 sps:$4 sm:$0xff]  }
 0x58b   :  { %2498 = vmatpush1.bf16.msra.mxu0 %v14019_v29  ;;  %v14111_v29 = vld [vmem:[#allocation25 + $0xb4] ss:$8 sps:$4 sm:$0xff]  }
 0x58c   :  { %2499 = vmatprep.subr.bf16.mxu0 %v14024_v30  ;;  %v14109_v30 = vld [vmem:[#allocation25 + $0xb0] ss:$8 sps:$4 sm:$0xff]  }
 0x58f   :  { %2500 = vmatpush1.bf16.msra.mxu0 %v14022_v31  ;;  %v14114_v31 = vld [vmem:[#allocation26 + $0x84] ss:$8 sps:$4 sm:$0xff]  }
 0x590   :  { %2501 = vmatprep.subr.bf16.mxu0 %v14027_v32  ;;  %v14112_v32 = vld [vmem:[#allocation26 + $0x80] ss:$8 sps:$4 sm:$0xff]  }
 0x593   :  { %2502 = vmatpush1.bf16.msra.mxu0 %v14025_v33  ;;  %v14117_v33 = vld [vmem:[#allocation25 + $0xa4] ss:$8 sps:$4 sm:$0xff]  }
 0x594   :  { %3062 = vmatprep.subr.bf16.mxu0 %v14030_v35  ;;  %v14115_v35 = vld [vmem:[#allocation25 + $0xa0] ss:$8 sps:$4 sm:$0xff]  }
 0x596   :  { %2520 = vmatmul.mubr.bf16.vlgmr.msra.gmra.mxu0 %v16877_v34  ;;  %v14043_v34 = vld [vmem:[#allocation25 + $0x60] ss:$8 sps:$4 sm:$0xff]  }
 0x597   :  { %2529 = vmatprep.mubr.bf16.mxu0 %v17982_v60  ;;  %3063 = vmatpush1.bf16.msra.mxu0 %v14028_v36  ;;  %v14120_v36 = vld [vmem:[#allocation25 + $0x94] ss:$8 sps:$4 sm:$0xff]  }
 0x598   :  { %3064 = vmatprep.subr.bf16.mxu0 %v14033_v37  ;;  %2852 = vmatpush1.bf16.msra.mxu1 %v14043_v34  ;;  %v14118_v37 = vld [vmem:[#allocation25 + $0x90] ss:$8 sps:$4 sm:$0xff]  }
 0x59b   :  { %3065 = vmatpush1.bf16.msra.mxu0 %v14031_v16  ;;  %v14121_v16 = vld [vmem:[#allocation25 + $0x80] ss:$8 sps:$4 sm:$0xff]  }
 0x59c   :  { %3066 = vmatprep.subr.bf16.mxu0 %v14036_v38  ;;  %v14123_v38 = vld [vmem:[#allocation25 + $0x84] ss:$8 sps:$4 sm:$0xff]  }
 0x59e   :  { %2530 = vmatmul.mubr.bf16.gmra.mxu0 %v16882_v44  ;;  %v14051_v44 = vld [vmem:[#allocation25 + $0x54] ss:$8 sps:$4 sm:$0xff]  }
 0x59f   :  { %3067 = vmatpush1.bf16.msra.mxu0 %v14034_v13  ;;  %2853 = vmatprep.subr.bf16.mxu1 %v14051_v44  ;;  %v14126_v13 = vld [vmem:[#allocation31 + $0x74] ss:$8 sps:$4 sm:$0xff]  }
 0x5a0   :  { %3068 = vmatprep.subr.bf16.mxu0 %v14042_v41  ;;  %2854 = vmatpush1.bf16.msra.mxu1 %v14049_v47 }
 0x5a1   :  { %2855 = vmatprep.subr.bf16.mxu1 %v14057_v50 }
 0x5a3   :  { %3069 = vmatpush1.bf16.msra.mxu0 %v14040_v42 }
 0x5a4   :  { %3070 = vmatprep.subr.bf16.mxu0 %v14048_v45  ;;  %2856 = vmatpush1.bf16.msra.mxu1 %v14055_v51  ;;  %v2351_v51 = vld [vmem:[#allocation20] sm:$0x3] }
 0x5a5   :  { %2857 = vmatprep.subr.bf16.mxu1 %v14063_v54 }
 0x5a7   :  { %3071 = vmatpush1.bf16.msra.mxu0 %v14046_v46 }
 0x5a8   :  { %3072 = vmatprep.subr.bf16.mxu0 %v14054_v48  ;;  %2858 = vmatpush1.bf16.msra.mxu1 %v14061_v55  ;;  %v2395_v55 = vld [vmem:[#allocation23] sm:$0x3] }
 0x5a9   :  { %2859 = vmatprep.subr.bf16.mxu1 %v14069_v62  ;;  %v2356_v62 = vrot.slane %v2351_v51, %v16897_v63 }
 0x5ab   :  { %3073 = vmatpush1.bf16.msra.mxu0 %v14052_v49 }
 0x5ac   :  { %3074 = vmatprep.subr.bf16.mxu0 %v14060_v52  ;;  %2860 = vmatpush1.bf16.msra.mxu1 %v14067_v0 }
 0x5ad   :  { %2861 = vmatprep.subr.bf16.mxu1 %v14075_v3 }
 0x5af   :  { %3075 = vmatpush1.bf16.msra.mxu0 %v14058_v53  ;;  %v2360_v53 = vrot.slane %v2351_v51, %v16894_v61  ;;  %v14129_v51 = vld [vmem:[#allocation31 + $0x64] ss:$8 sps:$4 sm:$0xff]  }
 0x5b0   :  { %3076 = vmatprep.subr.bf16.mxu0 %v14066_v57  ;;  %2862 = vmatpush1.bf16.msra.mxu1 %v14073_v4  ;;  %v2400_v4 = vrot.slane %v2395_v55, %v16897_v63 }
 0x5b1   :  { %2863 = vmatprep.subr.bf16.mxu1 %v14081_v7 }
 0x5b3   :  { %3077 = vmatpush1.bf16.msra.mxu0 %v14064_v59 }
 0x5b4   :  { %3078 = vmatprep.subr.bf16.mxu0 %v14072_v1  ;;  %2864 = vmatpush1.bf16.msra.mxu1 %v14079_v8 }
 0x5b5   :  { %2865 = vmatprep.subr.bf16.mxu1 %v14087_v11 }
 0x5b7   :  { %3079 = vmatpush2.bf16.msra.mxu0 %v14070_v2  ;;  %v2404_v2 = vrot.slane %v2395_v55, %v16894_v61 }
 0x5b8   :  { %3080 = vmatprep.subr.bf16.mxu0 %v14078_v5  ;;  %2866 = vmatpush2.bf16.msra.mxu1 %v14085_v14 }
 0x5b9   :  { %2867 = vmatprep.subr.bf16.mxu1 %v14093_v17 }
 0x5bb   :  { %3081 = vmatpush2.bf16.msra.mxu0 %v14076_v6 }
 0x5bc   :  { %3082 = vmatprep.subr.bf16.mxu0 %v14084_v9  ;;  %2868 = vmatpush2.bf16.msra.mxu1 %v14091_v18 }
 0x5bd   :  { %2869 = vmatprep.subr.bf16.mxu1 %v14099_v21 }
 0x5bf   :  { %3083 = vmatpush2.bf16.msra.mxu0 %v14082_v10 }
 0x5c0   :  { %3084 = vmatprep.subr.bf16.mxu0 %v14090_v12  ;;  %2870 = vmatpush2.bf16.msra.mxu1 %v14097_v22 }
 0x5c1   :  { %2871 = vmatprep.subr.bf16.mxu1 %v14105_v25 }
 0x5c3   :  { %3085 = vmatpush2.bf16.msra.mxu0 %v14088_v15 }
 0x5c4   :  { %3086 = vmatprep.subr.bf16.mxu0 %v14096_v19  ;;  %2872 = vmatpush2.bf16.msra.mxu1 %v14103_v26 }
 0x5c5   :  { %2873 = vmatprep.subr.bf16.mxu1 %v14111_v29 }
 0x5c7   :  { %3087 = vmatpush2.bf16.msra.mxu0 %v14094_v20 }
 0x5c8   :  { %3088 = vmatprep.subr.bf16.mxu0 %v14102_v23  ;;  %2874 = vmatpush2.bf16.msra.mxu1 %v14109_v30 }
 0x5c9   :  { %2875 = vmatprep.subr.bf16.mxu1 %v14117_v33 }
 0x5cb   :  { %3089 = vmatpush2.bf16.msra.mxu0 %v14100_v24 }
 0x5cc   :  { %3090 = vmatprep.subr.bf16.mxu0 %v14108_v27  ;;  %2876 = vmatpush2.bf16.msra.mxu1 %v14115_v35 }
 0x5cd   :  { %2877 = vmatprep.subr.bf16.mxu1 %v14120_v36 }
 0x5cf   :  { %3091 = vmatpush2.bf16.msra.mxu0 %v14106_v28 }
 0x5d0   :  { %3092 = vmatprep.subr.bf16.mxu0 %v14114_v31  ;;  %2878 = vmatpush2.bf16.msra.mxu1 %v14118_v37 }
 0x5d1   :  { %2879 = vmatprep.subr.bf16.mxu1 %v14123_v38 }
 0x5d3   :  { %3093 = vmatpush2.bf16.msra.mxu0 %v14112_v32 }
 0x5d4   :  { %2880 = vmatpush2.bf16.msra.mxu1 %v14121_v16  ;;  %3648 = vmatprep.subr.bf16.mxu0 %v14126_v13 }
 0x5d5   :  { %3435 = vmatprep.subr.bf16.mxu1 %v14135_v39 }
 0x62b   :  { %v2332_v42 = vpop.f32.mrf.mxu1 }
 0x62d   :  { %v2334_v43 = vpop.f32.mrf.mxu1 }
 0x62f   :  { %v2336_v46 = vpop.f32.mrf.mxu1 }
 0x631   :  { %v2338_v47 = vpop.f32.mrf.mxu1 }
 0x633   :  { %v2342_v49 = vpop.f32.mrf.mxu1 }
 0x635   :  { %v2344_v57 = vpop.f32.mrf.mxu1 }
 0x636   :  { %v2119_v40 = vpop.f32.mrf.mxu0 }
 0x637   :  { %v2333_v59 = vadd.f32 %v2332_v42, %v2119_v40  ;;  %v2346_v8 = vpop.f32.mrf.mxu1 }
 0x638   :  { %v2121_v41 = vpop.f32.mrf.mxu0 }
 0x639   :  { %v2335_v52 = vadd.f32 %v2334_v43, %v2121_v41  ;;  %v2363_v7 = vadd.f32 %v2356_v62, %v2333_v59  ;;  %v2348_v22 = vpop.f32.mrf.mxu1 }
 0x63a   :  { %v2123_v34 = vpop.f32.mrf.mxu0 }
 0x63b   :  { %v2337_v54 = vadd.f32 %v2336_v46, %v2123_v34  ;;  %v2364_v3 = vadd.f32 %v2360_v53, %v2335_v52  ;;  %v2371_v21 = vmax.f32 %v2363_v7, 0.0 }
 0x63c   :  { %v2125_v45 = vpop.f32.mrf.mxu0 }
 0x63d   :  { %v2339_v0 = vadd.f32 %v2338_v47, %v2125_v45  ;;  %v2365_v6 = vadd.f32 %v2356_v62, %v2337_v54  ;;  %v2372_v12 = vmax.f32 %v2364_v3, 0.0  ;;  %v14124_v47 = vld [vmem:[#allocation31 + $0x70] ss:$8 sps:$4 sm:$0xff]   ;;  %v14127_v3 = vld [vmem:[#allocation31 + $0x60] ss:$8 sps:$4 sm:$0xff]  }
 0x63e   :  { %v2129_v44 = vpop.f32.mrf.mxu0 }
 0x63f   :  { %v2366_v9 = vadd.f32 %v2360_v53, %v2339_v0  ;;  %v2373_v17 = vmax.f32 %v2365_v6, 0.0  ;;  %v2343_v24 = vadd.f32 %v2342_v49, %v2129_v44  ;;  %v14132_v6 = vld [vmem:[#allocation31 + $0x54] ss:$8 sps:$4 sm:$0xff]  }
 0x640   :  { %v2131_v48 = vpop.f32.mrf.mxu0 }
 0x641   :  { %v2345_v18 = vadd.f32 %v2344_v57, %v2131_v48  ;;  %v2374_v23 = vmax.f32 %v2366_v9, 0.0  ;;  %v2367_v37 = vadd.f32 %v2356_v62, %v2343_v24  ;;  %v2601_v57 = vld [vmem:[#allocation2] sm:$0xf0] }
 0x642   :  { %v2133_v50 = vpop.f32.mrf.mxu0 }
 0x643   :  { %v2347_v19 = vadd.f32 %v2346_v8, %v2133_v50  ;;  %v2368_v32 = vadd.f32 %v2360_v53, %v2345_v18  ;;  %v2375_v48 = vmax.f32 %v2367_v37, 0.0  ;;  %v14130_v18 = vld [vmem:[#allocation31 + $0x50] ss:$8 sps:$4 sm:$0xff]  }
 0x644   :  { %v2135_v1 = vpop.f32.mrf.mxu0 }
 0x645   :  { %v2349_v26 = vadd.f32 %v2348_v22, %v2135_v1  ;;  %v2369_v33 = vadd.f32 %v2356_v62, %v2347_v19  ;;  %v2376_v43 = vmax.f32 %v2368_v32, 0.0  ;;  %v2600_v1 = vld [vmem:[#allocation2 + $0x30] sm:$0xf0] }
 0x647   :  { %v2370_v38 = vadd.f32 %v2360_v53, %v2349_v26  ;;  %v2377_v45 = vmax.f32 %v2369_v33, 0.0  ;;  %v2607_v26 = vld [vmem:[#allocation2 + $0x38] sm:$0xf0]  ;;  %v14144_v33 = vld [vmem:[#allocation31 + $0x34] ss:$8 sps:$4 sm:$0xff]  }
 0x649   :  { %v2378_v52 = vmax.f32 %v2370_v38, 0.0 }
 0x656   :  { %v2521_v5 = vpop.f32.mrf.mxu0 }
 0x657   :  { %v2522_v14 = vadd.f32 %v2521_v5, %v2400_v4 }
 0x658   :  { %v2523_v10 = vpop.f32.mrf.mxu0 }
 0x659   :  { %v2524_v11 = vadd.f32 %v2523_v10, %v2404_v2  ;;  %v2540_v30 = vadd.f32 %v2522_v14, %v2371_v21  ;;  %v14138_v21 = vld [vmem:[#allocation31 + $0x44] ss:$8 sps:$4 sm:$0xff]  }
 0x65a   :  { %v2525_v15 = vpop.f32.mrf.mxu0 }
 0x65b   :  { %v2526_v20 = vadd.f32 %v2525_v15, %v2400_v4  ;;  %v2541_v27 = vadd.f32 %v2524_v11, %v2372_v12  ;;  %v16924_v41 = vmax.f32 %v2540_v30, 0.0  ;;  %v2625_v12 = vrot.slane %v2600_v1, 4  ;;  %v14136_v30 = vld [vmem:[#allocation31 + $0x40] ss:$8 sps:$4 sm:$0xff]   ;;  %v14159_v1 = vld [vmem:[#allocation29 + $0x34] ss:$8 sps:$4 sm:$0xff]  }
 0x65c   :  { %v2527_v25 = vpop.f32.mrf.mxu0 }
 0x65d   :  { %v2542_v28 = vadd.f32 %v2526_v20, %v2373_v17  ;;  %v2528_v29 = vadd.f32 %v2527_v25, %v2404_v2  ;;  %v16919_v13 = vmax.f32 %v2541_v27, 0.0  ;;  %v2626_v14 = vrot.slane %v16924_v41, 4  ;;  %v14133_v27 = vld [vmem:[#allocation29 + $0x70] ss:$8 sps:$4 sm:$0xff]  }
 0x65e   :  { %v2531_v31 = vpop.f32.mrf.mxu0 }
 0x65f   :  { %v16917_v35 = vmax.f32 %v2542_v28, 0.0  ;;  %v2543_v36 = vadd.f32 %v2528_v29, %v2374_v23  ;;  %v2532_v42 = vadd.f32 %v2531_v31, %v2400_v4  ;;  %v2627_v25 = vsel %vm2624_vm2, %v2625_v12, %v2626_v14  ;;  %v2606_v29 = vld [vmem:[#allocation2 + $0x8] sm:$0xf0]  ;;  %v14141_v31 = vld [vmem:[#allocation29 + $0x64] ss:$8 sps:$4 sm:$0xff]  }
 0x660   :  { %v2533_v16 = vpop.f32.mrf.mxu0  ;;  %v14171_v12 = vld [vmem:[#allocation29 + $0x14] ss:$8 sps:$4 sm:$0xff]  }
 0x661   :  { %2594 = vst [vmem:[#allocation2 + $0x50] sm:$0xff] %v16917_v35  ;;  %v16922_v39 = vmax.f32 %v2543_v36, 0.0  ;;  %v2534_v40 = vadd.f32 %v2533_v16, %v2404_v2  ;;  %v2556_v49 = vpack.c.bf16 %v16917_v35, %v16924_v41  ;;  %v2544_v59 = vadd.f32 %v2532_v42, %v2375_v48 }
 0x662   :  { %v2535_v34 = vpop.f32.mrf.mxu0  ;;  %v2638_v36 = vrot.slane %v2607_v26, 4  ;;  %v14189_v26 = vld [vmem:[#allocation29 + $0xe4] ss:$8 sps:$4 sm:$0xff]  }
 0x663   :  { %2595 = vst [vmem:[#allocation2 + $0x20] sm:$0xff] %v16922_v39  ;;  %v2536_v46 = vadd.f32 %v2535_v34, %v2400_v4  ;;  %v2557_v44 = vpack.c.bf16 %v16922_v39, %v16919_v13  ;;  %v2545_v53 = vadd.f32 %v2534_v40, %v2376_v43  ;;  %v2628_v4 = vrot.slane %v2601_v57, 4  ;;  %v14139_v34 = vld [vmem:[#allocation29 + $0x60] ss:$8 sps:$4 sm:$0xff]   ;;  %v14156_v57 = vld [vmem:[#allocation31 + $0x14] ss:$8 sps:$4 sm:$0xff]  }
 0x664   :  { %v2537_v50 = vpop.f32.mrf.mxu0  ;;  %v16939_v10 = vmax.f32 %v2544_v59, 0.0  ;;  %v2635_v40 = vrot.slane %v2606_v29, 4  ;;  %v14151_v59 = vld [vmem:[#allocation29 + $0x40] ss:$8 sps:$4 sm:$0xff]   ;;  %v14190_v29 = vld [vmem:[#allocation31 + $0xb0] ss:$8 sps:$4 sm:$0xff]  }
 0x665   :  { %v2546_v54 = vadd.f32 %v2536_v46, %v2377_v45  ;;  %v2538_v55 = vadd.f32 %v2537_v50, %v2404_v2  ;;  %3094 = vmatprep.mubr.bf16.mxu0 %v2557_v44  ;;  %v16933_v7 = vmax.f32 %v2545_v53, 0.0  ;;  %v2629_v2 = vrot.slane %v16919_v13, 4  ;;  %v14142_v45 = vld [vmem:[#allocation31 + $0x30] ss:$8 sps:$4 sm:$0xff]   ;;  %v14147_v46 = vld [vmem:[#allocation29 + $0x54] ss:$8 sps:$4 sm:$0xff]  }
 0x666   :  { %3095 = vmatmul.mubr.bf16.vlgmr.msra.gmra.mxu0 %v2556_v49  ;;  %v2636_v42 = vrot.slane %v16939_v10, 4 }
 0x667   :  { %v16931_v62 = vmax.f32 %v2546_v54, 0.0  ;;  %v2547_v0 = vadd.f32 %v2538_v55, %v2378_v52  ;;  %3649 = vmatpush1.bf16.msra.mxu0 %v14124_v47  ;;  %v2630_v22 = vsel %vm2624_vm2, %v2628_v4, %v2629_v2  ;;  %v2639_v37 = vrot.slane %v16933_v7, 4  ;;  %v14150_v47 = vld [vmem:[#allocation31 + $0x24] ss:$8 sps:$4 sm:$0xff]   ;;  %v14145_v52 = vld [vmem:[#allocation29 + $0x50] ss:$8 sps:$4 sm:$0xff]  }
 0x668   :  { %v2604_v5 = vld [vmem:[#allocation2 + $0x50] sm:$0xf]  ;;  %3650 = vmatprep.subr.bf16.mxu0 %v14129_v51  ;;  %v2637_v51 = vsel %vm2624_vm2, %v2635_v40, %v2636_v42  ;;  %v14148_v54 = vld [vmem:[#allocation31 + $0x20] ss:$8 sps:$4 sm:$0xff]   ;;  %v14157_v4 = vld [vmem:[#allocation29 + $0x30] ss:$8 sps:$4 sm:$0xff]  }
 0x669   :  { %2598 = vst [vmem:[#allocation2 + $0x10] sm:$0xff] %v16931_v62  ;;  %v16936_v8 = vmax.f32 %v2547_v0, 0.0  ;;  %v2631_v9 = vrot.slane %v2604_v5, 4  ;;  %v2558_v19 = vpack.c.bf16 %v16931_v62, %v16939_v10  ;;  %v2640_v48 = vsel %vm2624_vm2, %v2638_v36, %v2639_v37  ;;  %v14153_v55 = vld [vmem:[#allocation29 + $0x44] ss:$8 sps:$4 sm:$0xff]  }
 0x66a   :  { %v2605_v11 = vld [vmem:[#allocation2 + $0x20] sm:$0xf]  ;;  %v14154_v0 = vld [vmem:[#allocation31 + $0x10] ss:$8 sps:$4 sm:$0xff]   ;;  %v14160_v5 = vld [vmem:[#allocation31] ss:$8 sps:$4 sm:$0xff]  }
 0x66b   :  { %2599 = vst [vmem:[#allocation2 + $0x40] sm:$0xff] %v16936_v8  ;;  %v2559_v15 = vpack.c.bf16 %v16936_v8, %v16933_v7  ;;  %v2633_v17 = vrot.slane %v2605_v11, 4  ;;  %3651 = vmatpush1.bf16.msra.mxu0 %v14127_v3  ;;  %v2632_v20 = vsel %vm2624_vm2, %v2626_v14, %v2631_v9  ;;  %v14162_v3 = vld [vmem:[#allocation31 + $0x4] ss:$8 sps:$4 sm:$0xff]   ;;  %v14163_v9 = vld [vmem:[#allocation29 + $0x20] ss:$8 sps:$4 sm:$0xff]  }
 0x66c   :  { %3652 = vmatprep.subr.bf16.mxu0 %v14132_v6  ;;  %v2653_v28 = vpack.c.bf16 %v2632_v20, %v2627_v25  ;;  %v14165_v6 = vld [vmem:[#allocation29 + $0x24] ss:$8 sps:$4 sm:$0xff]   ;;  %v14166_v11 = vld [vmem:[#allocation31 + $0xf0] ss:$8 sps:$4 sm:$0xff]   ;;  %v14207_v40 = vld [vmem:[#allocation29 + $0xb4] ss:$8 sps:$4 sm:$0xff]  }
 0x66d   :  { %3104 = vmatprep.mubr.bf16.mxu0 %v2559_v15  ;;  %v2634_v23 = vsel %vm2624_vm2, %v2629_v2, %v2633_v17  ;;  %v14168_v2 = vld [vmem:[#allocation31 + $0xf4] ss:$8 sps:$4 sm:$0xff]   ;;  %v14174_v14 = vld [vmem:[#allocation31 + $0xe4] ss:$8 sps:$4 sm:$0xff]   ;;  %v14169_v15 = vld [vmem:[#allocation29 + $0x10] ss:$8 sps:$4 sm:$0xff]  }
 0x66e   :  { %3105 = vmatmul.mubr.bf16.gmra.mxu0 %v2558_v19  ;;  %v2654_v24 = vpack.c.bf16 %v2634_v23, %v2630_v22  ;;  %v14172_v17 = vld [vmem:[#allocation31 + $0xe0] ss:$8 sps:$4 sm:$0xff]   ;;  %v14178_v20 = vld [vmem:[#allocation31 + $0xd0] ss:$8 sps:$4 sm:$0xff]   ;;  %v14183_v22 = vld [vmem:[#allocation29 + $0xf4] ss:$8 sps:$4 sm:$0xff]  }
 0x66f   :  { %3653 = vmatpush1.bf16.msra.mxu0 %v14130_v18  ;;  %v14177_v18 = vld [vmem:[#allocation29 + $0x4] ss:$8 sps:$4 sm:$0xff]   ;;  %v14175_v19 = vld [vmem:[#allocation29] ss:$8 sps:$4 sm:$0xff]   ;;  %v14181_v23 = vld [vmem:[#allocation29 + $0xf0] ss:$8 sps:$4 sm:$0xff]  }
 0x670   :  { %2881 = vmatprep.mubr.bf16.mxu1 %v2654_v24  ;;  %v2610_v32 = vld [vmem:[#allocation2 + $0x10] sm:$0xf]  ;;  %3654 = vmatprep.subr.bf16.mxu0 %v14138_v21  ;;  %v14180_v21 = vld [vmem:[#allocation31 + $0xd4] ss:$8 sps:$4 sm:$0xff]   ;;  %v14184_v24 = vld [vmem:[#allocation31 + $0xc0] ss:$8 sps:$4 sm:$0xff]  }
 0x671   :  { %2882 = vmatmul.mubr.bf16.vlgmr.msra.gmra.mxu1 %v2653_v28  ;;  %v2641_v16 = vrot.slane %v2610_v32, 4  ;;  %v14186_v25 = vld [vmem:[#allocation31 + $0xc4] ss:$8 sps:$4 sm:$0xff]   ;;  %v14192_v28 = vld [vmem:[#allocation31 + $0xb4] ss:$8 sps:$4 sm:$0xff]  }
 0x672   :  { %v2611_v38 = vld [vmem:[#allocation2 + $0x40] sm:$0xf]  ;;  %3436 = vmatpush1.bf16.msra.mxu1 %v14133_v27  ;;  %v14187_v27 = vld [vmem:[#allocation29 + $0xe0] ss:$8 sps:$4 sm:$0xff]   ;;  %v14198_v32 = vld [vmem:[#allocation31 + $0xa4] ss:$8 sps:$4 sm:$0xff]  }
 0x673   :  { %v2643_v43 = vrot.slane %v2611_v38, 4  ;;  %3655 = vmatpush1.bf16.msra.mxu0 %v14136_v30  ;;  %3437 = vmatprep.subr.bf16.mxu1 %v14141_v31  ;;  %v2642_v44 = vsel %vm2624_vm2, %v2636_v42, %v2641_v16  ;;  %v14195_v30 = vld [vmem:[#allocation29 + $0xd4] ss:$8 sps:$4 sm:$0xff]   ;;  %v14193_v31 = vld [vmem:[#allocation29 + $0xd0] ss:$8 sps:$4 sm:$0xff]  }
 0x674   :  { %3656 = vmatprep.subr.bf16.mxu0 %v14144_v33  ;;  %v2655_v53 = vpack.c.bf16 %v2642_v44, %v2637_v51  ;;  %v14196_v33 = vld [vmem:[#allocation31 + $0xa0] ss:$8 sps:$4 sm:$0xff]   ;;  %v14201_v36 = vld [vmem:[#allocation29 + $0xc4] ss:$8 sps:$4 sm:$0xff]   ;;  %v14204_v16 = vld [vmem:[#allocation31 + $0x94] ss:$8 sps:$4 sm:$0xff]  }
 0x675   :  { %v2644_v49 = vsel %vm2624_vm2, %v2639_v37, %v2643_v43  ;;  %v14199_v37 = vld [vmem:[#allocation29 + $0xc0] ss:$8 sps:$4 sm:$0xff]   ;;  %v14202_v38 = vld [vmem:[#allocation31 + $0x90] ss:$8 sps:$4 sm:$0xff]   ;;  %v14216_v44 = vld [vmem:[#allocation29 + $0x94] ss:$8 sps:$4 sm:$0xff]  }
 0x676   :  { %v2656_v50 = vpack.c.bf16 %v2644_v49, %v2640_v48  ;;  %3438 = vmatpush1.bf16.msra.mxu1 %v14139_v34  ;;  %v14205_v42 = vld [vmem:[#allocation29 + $0xb0] ss:$8 sps:$4 sm:$0xff]   ;;  %v14210_v34 = vld [vmem:[#allocation31 + $0x84] ss:$8 sps:$4 sm:$0xff]   ;;  %v14208_v43 = vld [vmem:[#allocation31 + $0x80] ss:$8 sps:$4 sm:$0xff]  }
 0x677   :  { %3657 = vmatpush1.bf16.msra.mxu0 %v14142_v45  ;;  %3439 = vmatprep.subr.bf16.mxu1 %v14147_v46  ;;  %v14213_v45 = vld [vmem:[#allocation29 + $0xa4] ss:$8 sps:$4 sm:$0xff]   ;;  %v14211_v46 = vld [vmem:[#allocation29 + $0xa0] ss:$8 sps:$4 sm:$0xff]  }
 0x678   :  { %2891 = vmatprep.mubr.bf16.mxu1 %v2656_v50  ;;  %3658 = vmatprep.subr.bf16.mxu0 %v14150_v47  ;;  %v14214_v47 = vld [vmem:[#allocation29 + $0x90] ss:$8 sps:$4 sm:$0xff]   ;;  %v14217_v48 = vld [vmem:[#allocation29 + $0x80] ss:$8 sps:$4 sm:$0xff]   ;;  %v14219_v49 = vld [vmem:[#allocation29 + $0x84] ss:$8 sps:$4 sm:$0xff]  }
 0x679   :  { %2892 = vmatmul.mubr.bf16.gmra.mxu1 %v2655_v53  ;;  %v14222_v50 = vld [vmem:[#allocation35 + $0x74] ss:$8 sps:$4 sm:$0xff]  }
 0x67a   :  { %3440 = vmatpush1.bf16.msra.mxu1 %v14145_v52  ;;  %v14225_v51 = vld [vmem:[#allocation34 + $0x74] ss:$8 sps:$4 sm:$0xff]  }
 0x67b   :  { %3659 = vmatpush1.bf16.msra.mxu0 %v14148_v54  ;;  %3441 = vmatprep.subr.bf16.mxu1 %v14153_v55 }
 0x67c   :  { %3660 = vmatprep.subr.bf16.mxu0 %v14156_v57 }
 0x67e   :  { %3442 = vmatpush1.bf16.msra.mxu1 %v14151_v59  ;;  %v3115_v59 = vld [vmem:[#allocation28] sm:$0x3] }
 0x67f   :  { %3661 = vmatpush1.bf16.msra.mxu0 %v14154_v0  ;;  %3443 = vmatprep.subr.bf16.mxu1 %v14159_v1 }
 0x680   :  { %3662 = vmatprep.subr.bf16.mxu0 %v14162_v3 }
 0x682   :  { %3444 = vmatpush1.bf16.msra.mxu1 %v14157_v4  ;;  %v3124_v4 = vrot.slane %v3115_v59, %v16894_v61 }
 0x683   :  { %3663 = vmatpush1.bf16.msra.mxu0 %v14160_v5  ;;  %3445 = vmatprep.subr.bf16.mxu1 %v14165_v6  ;;  %v3120_v6 = vrot.slane %v3115_v59, %v16897_v63 }
 0x684   :  { %3664 = vmatprep.subr.bf16.mxu0 %v14168_v2 }
 0x686   :  { %3446 = vmatpush1.bf16.msra.mxu1 %v14163_v9 }
 0x687   :  { %3665 = vmatpush2.bf16.msra.mxu0 %v14166_v11  ;;  %3447 = vmatprep.subr.bf16.mxu1 %v14171_v12 }
 0x688   :  { %3666 = vmatprep.subr.bf16.mxu0 %v14174_v14 }
 0x68a   :  { %3448 = vmatpush1.bf16.msra.mxu1 %v14169_v15 }
 0x68b   :  { %3667 = vmatpush2.bf16.msra.mxu0 %v14172_v17  ;;  %3449 = vmatprep.subr.bf16.mxu1 %v14177_v18 }
 0x68c   :  { %3668 = vmatprep.subr.bf16.mxu0 %v14180_v21 }
 0x68e   :  { %3450 = vmatpush1.bf16.msra.mxu1 %v14175_v19 }
 0x68f   :  { %3669 = vmatpush2.bf16.msra.mxu0 %v14178_v20  ;;  %3451 = vmatprep.subr.bf16.mxu1 %v14183_v22 }
 0x690   :  { %3670 = vmatprep.subr.bf16.mxu0 %v14186_v25 }
 0x692   :  { %3452 = vmatpush2.bf16.msra.mxu1 %v14181_v23 }
 0x693   :  { %3671 = vmatpush2.bf16.msra.mxu0 %v14184_v24  ;;  %3453 = vmatprep.subr.bf16.mxu1 %v14189_v26 }
 0x694   :  { %3672 = vmatprep.subr.bf16.mxu0 %v14192_v28 }
 0x696   :  { %3454 = vmatpush2.bf16.msra.mxu1 %v14187_v27 }
 0x697   :  { %3673 = vmatpush2.bf16.msra.mxu0 %v14190_v29  ;;  %3455 = vmatprep.subr.bf16.mxu1 %v14195_v30 }
 0x698   :  { %3674 = vmatprep.subr.bf16.mxu0 %v14198_v32  ;;  %v14220_v32 = vld [vmem:[#allocation35 + $0x70] ss:$8 sps:$4 sm:$0xff]  }
 0x69a   :  { %3456 = vmatpush2.bf16.msra.mxu1 %v14193_v31 }
 0x69b   :  { %3675 = vmatpush2.bf16.msra.mxu0 %v14196_v33  ;;  %3457 = vmatprep.subr.bf16.mxu1 %v14201_v36 }
 0x69c   :  { %3676 = vmatprep.subr.bf16.mxu0 %v14204_v16  ;;  %v14228_v16 = vld [vmem:[#allocation35 + $0x64] ss:$8 sps:$4 sm:$0xff]  }
 0x69e   :  { %3458 = vmatpush2.bf16.msra.mxu1 %v14199_v37 }
 0x69f   :  { %3677 = vmatpush2.bf16.msra.mxu0 %v14202_v38  ;;  %3459 = vmatprep.subr.bf16.mxu1 %v14207_v40 }
 0x6a0   :  { %3678 = vmatprep.subr.bf16.mxu0 %v14210_v34  ;;  %v3188_v34 = vld [vmem:[#allocation2] sm:$0xf0] }
 0x6a2   :  { %3460 = vmatpush2.bf16.msra.mxu1 %v14205_v42 }
 0x6a3   :  { %3679 = vmatpush2.bf16.msra.mxu0 %v14208_v43  ;;  %3461 = vmatprep.subr.bf16.mxu1 %v14213_v45 }
 0x6a4   :  { %4206 = vmatprep.subr.bf16.mxu0 %v14222_v50  ;;  %v14234_v50 = vld [vmem:[#allocation35 + $0x54] ss:$8 sps:$4 sm:$0xff]  }
 0x6a6   :  { %3462 = vmatpush2.bf16.msra.mxu1 %v14211_v46 }
 0x6a7   :  { %3463 = vmatprep.subr.bf16.mxu1 %v14216_v44  ;;  %v3187_v44 = vld [vmem:[#allocation2 + $0x30] sm:$0xf0] }
 0x6a8   :  { %v3211_v59 = vrot.slane %v3187_v44, 4  ;;  %v14258_v44 = vld [vmem:[#allocation35 + $0x14] ss:$8 sps:$4 sm:$0xff]  }
 0x6aa   :  { %3464 = vmatpush2.bf16.msra.mxu1 %v14214_v47  ;;  %v14226_v47 = vld [vmem:[#allocation35 + $0x60] ss:$8 sps:$4 sm:$0xff]  }
 0x6ab   :  { %3465 = vmatprep.subr.bf16.mxu1 %v14219_v49 }
 0x6ae   :  { %3466 = vmatpush2.bf16.msra.mxu1 %v14217_v48  ;;  %v3214_v48 = vrot.slane %v3188_v34, 4  ;;  %v14235_v34 = vld [vmem:[#allocation34 + $0x50] ss:$8 sps:$4 sm:$0xff]  }
 0x6af   :  { %3993 = vmatprep.subr.bf16.mxu1 %v14225_v51 }
 0x726   :  { %v3096_v52 = vpop.f32.mrf.mxu0 }
 0x728   :  { %v3098_v53 = vpop.f32.mrf.mxu0 }
 0x72a   :  { %v3100_v54 = vpop.f32.mrf.mxu0 }
 0x72c   :  { %v3102_v55 = vpop.f32.mrf.mxu0 }
 0x72e   :  { %v3106_v0 = vpop.f32.mrf.mxu0 }
 0x730   :  { %v3108_v11 = vpop.f32.mrf.mxu0 }
 0x731   :  { %v2883_v57 = vpop.f32.mrf.mxu1 }
 0x732   :  { %v3097_v5 = vadd.f32 %v3096_v52, %v2883_v57  ;;  %v3110_v22 = vpop.f32.mrf.mxu0 }
 0x733   :  { %v2885_v1 = vpop.f32.mrf.mxu1 }
 0x734   :  { %v3099_v3 = vadd.f32 %v3098_v53, %v2885_v1  ;;  %v3127_v18 = vadd.f32 %v3120_v6, %v3097_v5  ;;  %v3112_v33 = vpop.f32.mrf.mxu0 }
 0x735   :  { %v2887_v2 = vpop.f32.mrf.mxu1 }
 0x736   :  { %v3101_v9 = vadd.f32 %v3100_v54, %v2887_v2  ;;  %v3128_v14 = vadd.f32 %v3124_v4, %v3099_v3  ;;  %v3135_v27 = vmax.f32 %v3127_v18, 0.0  ;;  %v14240_v2 = vld [vmem:[#allocation35 + $0x44] ss:$8 sps:$4 sm:$0xff]  }
 0x737   :  { %v2889_v12 = vpop.f32.mrf.mxu1 }
 0x738   :  { %v3129_v15 = vadd.f32 %v3120_v6, %v3101_v9  ;;  %v3103_v17 = vadd.f32 %v3102_v55, %v2889_v12  ;;  %v3136_v24 = vmax.f32 %v3128_v14, 0.0 }
 0x739   :  { %v2893_v19 = vpop.f32.mrf.mxu1 }
 0x73a   :  { %v3137_v20 = vmax.f32 %v3129_v15, 0.0  ;;  %v3130_v21 = vadd.f32 %v3124_v4, %v3103_v17  ;;  %v3107_v28 = vadd.f32 %v3106_v0, %v2893_v19  ;;  %v3215_v53 = vrot.slane %v3136_v24, 4  ;;  %v3194_v15 = vld [vmem:[#allocation2 + $0x38] sm:$0xf0]  ;;  %v3193_v19 = vld [vmem:[#allocation2 + $0x8] sm:$0xf0] }
 0x73b   :  { %v2895_v23 = vpop.f32.mrf.mxu1  ;;  %v3212_v0 = vrot.slane %v3135_v27, 4  ;;  %v14223_v17 = vld [vmem:[#allocation34 + $0x70] ss:$8 sps:$4 sm:$0xff]  }
 0x73c   :  { %3181 = vst [vmem:[#allocation2 + $0x50] sm:$0xff] %v3137_v20  ;;  %v3138_v25 = vmax.f32 %v3130_v21, 0.0  ;;  %v3109_v26 = vadd.f32 %v3108_v11, %v2895_v23  ;;  %v3143_v36 = vpack.c.bf16 %v3137_v20, %v3135_v27  ;;  %v3131_v43 = vadd.f32 %v3120_v6, %v3107_v28  ;;  %v14231_v20 = vld [vmem:[#allocation34 + $0x64] ss:$8 sps:$4 sm:$0xff]   ;;  %v14238_v21 = vld [vmem:[#allocation35 + $0x40] ss:$8 sps:$4 sm:$0xff]  }
 0x73d   :  { %v2897_v29 = vpop.f32.mrf.mxu1  ;;  %v3216_v9 = vsel %vm2624_vm2, %v3214_v48, %v3215_v53  ;;  %v3213_v14 = vsel %vm2624_vm2, %v3211_v59, %v3212_v0  ;;  %v14246_v23 = vld [vmem:[#allocation35 + $0x34] ss:$8 sps:$4 sm:$0xff]   ;;  %v3221_v28 = vrot.slane %v3193_v19, 4  ;;  %v14268_v59 = vld [vmem:[#allocation35 + $0xf0] ss:$8 sps:$4 sm:$0xff]  }
 0x73e   :  { %3182 = vst [vmem:[#allocation2 + $0x20] sm:$0xff] %v3138_v25  ;;  %v3111_v30 = vadd.f32 %v3110_v22, %v2897_v29  ;;  %v3144_v31 = vpack.c.bf16 %v3138_v25, %v3136_v24  ;;  %v3132_v38 = vadd.f32 %v3124_v4, %v3109_v26  ;;  %v3139_v55 = vmax.f32 %v3131_v43, 0.0  ;;  %v14249_v48 = vld [vmem:[#allocation34 + $0x34] ss:$8 sps:$4 sm:$0xff]   ;;  %v14289_v19 = vld [vmem:[#allocation34 + $0xc0] ss:$8 sps:$4 sm:$0xff]  }
 0x73f   :  { %v2899_v37 = vpop.f32.mrf.mxu1  ;;  %v3224_v24 = vrot.slane %v3194_v15, 4  ;;  %v14280_v15 = vld [vmem:[#allocation35 + $0xd0] ss:$8 sps:$4 sm:$0xff]  }
 0x740   :  { %v3133_v40 = vadd.f32 %v3120_v6, %v3111_v30  ;;  %v3113_v42 = vadd.f32 %v3112_v33, %v2899_v37  ;;  %3680 = vmatprep.mubr.bf16.mxu0 %v3144_v31  ;;  %v3140_v51 = vmax.f32 %v3132_v38, 0.0  ;;  %v3222_v29 = vrot.slane %v3139_v55, 4  ;;  %v14229_v30 = vld [vmem:[#allocation34 + $0x60] ss:$8 sps:$4 sm:$0xff]   ;;  %v14244_v33 = vld [vmem:[#allocation35 + $0x30] ss:$8 sps:$4 sm:$0xff]  }
 0x741   :  { %3681 = vmatmul.mubr.bf16.vlgmr.msra.gmra.mxu0 %v3143_v36  ;;  %v14252_v37 = vld [vmem:[#allocation35 + $0x24] ss:$8 sps:$4 sm:$0xff]  }
 0x742   :  { %v3141_v45 = vmax.f32 %v3133_v40, 0.0  ;;  %v3134_v46 = vadd.f32 %v3124_v4, %v3113_v42  ;;  %4207 = vmatpush1.bf16.msra.mxu0 %v14220_v32  ;;  %v14232_v4 = vld [vmem:[#allocation35 + $0x50] ss:$8 sps:$4 sm:$0xff]   ;;  %v3225_v25 = vrot.slane %v3140_v51, 4  ;;  %v14237_v32 = vld [vmem:[#allocation34 + $0x54] ss:$8 sps:$4 sm:$0xff]   ;;  %v3223_v42 = vsel %vm2624_vm2, %v3221_v28, %v3222_v29 }
 0x743   :  { %v3191_v49 = vld [vmem:[#allocation2 + $0x50] sm:$0xf]  ;;  %4208 = vmatprep.subr.bf16.mxu0 %v14228_v16 }
 0x744   :  { %3185 = vst [vmem:[#allocation2 + $0x10] sm:$0xff] %v3141_v45  ;;  %v3142_v52 = vmax.f32 %v3134_v46, 0.0  ;;  %v3217_v54 = vrot.slane %v3191_v49, 4  ;;  %v3145_v5 = vpack.c.bf16 %v3141_v45, %v3139_v55  ;;  %v3226_v16 = vsel %vm2624_vm2, %v3224_v24, %v3225_v25  ;;  %v14243_v45 = vld [vmem:[#allocation34 + $0x44] ss:$8 sps:$4 sm:$0xff]  }
 0x745   :  { %v3192_v57 = vld [vmem:[#allocation2 + $0x20] sm:$0xf]  ;;  %v14250_v46 = vld [vmem:[#allocation35 + $0x20] ss:$8 sps:$4 sm:$0xff]   ;;  %v14300_v28 = vld [vmem:[#allocation35 + $0xa4] ss:$8 sps:$4 sm:$0xff]  }
 0x746   :  { %3186 = vst [vmem:[#allocation2 + $0x40] sm:$0xff] %v3142_v52  ;;  %v3146_v1 = vpack.c.bf16 %v3142_v52, %v3140_v51  ;;  %v3219_v3 = vrot.slane %v3192_v57, 4  ;;  %4209 = vmatpush1.bf16.msra.mxu0 %v14226_v47  ;;  %v3218_v6 = vsel %vm2624_vm2, %v3212_v0, %v3217_v54  ;;  %v14241_v47 = vld [vmem:[#allocation34 + $0x40] ss:$8 sps:$4 sm:$0xff]   ;;  %v14256_v49 = vld [vmem:[#allocation35 + $0x10] ss:$8 sps:$4 sm:$0xff]  }
 0x747   :  { %4210 = vmatprep.subr.bf16.mxu0 %v14234_v50  ;;  %v3239_v18 = vpack.c.bf16 %v3218_v6, %v3213_v14  ;;  %v14264_v50 = vld [vmem:[#allocation35 + $0x4] ss:$8 sps:$4 sm:$0xff]   ;;  %v14247_v51 = vld [vmem:[#allocation34 + $0x30] ss:$8 sps:$4 sm:$0xff]   ;;  %v14270_v54 = vld [vmem:[#allocation35 + $0xf4] ss:$8 sps:$4 sm:$0xff]  }
 0x748   :  { %3690 = vmatprep.mubr.bf16.mxu0 %v3146_v1  ;;  %v3220_v11 = vsel %vm2624_vm2, %v3215_v53, %v3219_v3  ;;  %v14255_v52 = vld [vmem:[#allocation34 + $0x24] ss:$8 sps:$4 sm:$0xff]   ;;  %v14262_v53 = vld [vmem:[#allocation35] ss:$8 sps:$4 sm:$0xff]   ;;  %v14261_v57 = vld [vmem:[#allocation34 + $0x14] ss:$8 sps:$4 sm:$0xff]  }
 0x749   :  { %3691 = vmatmul.mubr.bf16.gmra.mxu0 %v3145_v5  ;;  %v3240_v12 = vpack.c.bf16 %v3220_v11, %v3216_v9  ;;  %v14253_v55 = vld [vmem:[#allocation34 + $0x20] ss:$8 sps:$4 sm:$0xff]   ;;  %v14259_v0 = vld [vmem:[#allocation34 + $0x10] ss:$8 sps:$4 sm:$0xff]   ;;  %v14267_v1 = vld [vmem:[#allocation34 + $0x4] ss:$8 sps:$4 sm:$0xff]  }
 0x74a   :  { %4211 = vmatpush1.bf16.msra.mxu0 %v14232_v4  ;;  %v14265_v3 = vld [vmem:[#allocation34] ss:$8 sps:$4 sm:$0xff]   ;;  %v14273_v4 = vld [vmem:[#allocation34 + $0xf4] ss:$8 sps:$4 sm:$0xff]   ;;  %v14271_v5 = vld [vmem:[#allocation34 + $0xf0] ss:$8 sps:$4 sm:$0xff]  }
 0x74b   :  { %3467 = vmatprep.mubr.bf16.mxu1 %v3240_v12  ;;  %v3197_v22 = vld [vmem:[#allocation2 + $0x10] sm:$0xf]  ;;  %4212 = vmatprep.subr.bf16.mxu0 %v14240_v2  ;;  %v14285_v12 = vld [vmem:[#allocation34 + $0xd4] ss:$8 sps:$4 sm:$0xff]   ;;  %v14283_v14 = vld [vmem:[#allocation34 + $0xd0] ss:$8 sps:$4 sm:$0xff]  }
 0x74c   :  { %3468 = vmatmul.mubr.bf16.vlgmr.msra.gmra.mxu1 %v3239_v18  ;;  %v3227_v26 = vrot.slane %v3197_v22, 4  ;;  %v14279_v6 = vld [vmem:[#allocation34 + $0xe4] ss:$8 sps:$4 sm:$0xff]   ;;  %v14277_v2 = vld [vmem:[#allocation34 + $0xe0] ss:$8 sps:$4 sm:$0xff]  }
 0x74d   :  { %v3198_v27 = vld [vmem:[#allocation2 + $0x40] sm:$0xf]  ;;  %3994 = vmatpush1.bf16.msra.mxu1 %v14223_v17  ;;  %v14274_v9 = vld [vmem:[#allocation35 + $0xe0] ss:$8 sps:$4 sm:$0xff]   ;;  %v14276_v11 = vld [vmem:[#allocation35 + $0xe4] ss:$8 sps:$4 sm:$0xff]  }
 0x74e   :  { %v3229_v31 = vrot.slane %v3198_v27, 4  ;;  %3995 = vmatprep.subr.bf16.mxu1 %v14231_v20  ;;  %4213 = vmatpush1.bf16.msra.mxu0 %v14238_v21  ;;  %v3228_v36 = vsel %vm2624_vm2, %v3222_v29, %v3227_v26  ;;  %v14282_v17 = vld [vmem:[#allocation35 + $0xd4] ss:$8 sps:$4 sm:$0xff]   ;;  %v14291_v18 = vld [vmem:[#allocation34 + $0xc4] ss:$8 sps:$4 sm:$0xff]  }
 0x74f   :  { %4214 = vmatprep.subr.bf16.mxu0 %v14246_v23  ;;  %v3241_v43 = vpack.c.bf16 %v3228_v36, %v3223_v42  ;;  %v14288_v20 = vld [vmem:[#allocation35 + $0xc4] ss:$8 sps:$4 sm:$0xff]   ;;  %v14297_v21 = vld [vmem:[#allocation34 + $0xb4] ss:$8 sps:$4 sm:$0xff]   ;;  %v14286_v22 = vld [vmem:[#allocation35 + $0xc0] ss:$8 sps:$4 sm:$0xff]  }
 0x750   :  { %v3230_v38 = vsel %vm2624_vm2, %v3225_v25, %v3229_v31  ;;  %v14295_v23 = vld [vmem:[#allocation34 + $0xb0] ss:$8 sps:$4 sm:$0xff]   ;;  %v14294_v24 = vld [vmem:[#allocation35 + $0xb4] ss:$8 sps:$4 sm:$0xff]   ;;  %v14303_v25 = vld [vmem:[#allocation34 + $0xa4] ss:$8 sps:$4 sm:$0xff]  }
 0x751   :  { %v3242_v40 = vpack.c.bf16 %v3230_v38, %v3226_v16  ;;  %3996 = vmatpush1.bf16.msra.mxu1 %v14229_v30  ;;  %v14292_v26 = vld [vmem:[#allocation35 + $0xb0] ss:$8 sps:$4 sm:$0xff]   ;;  %v14301_v27 = vld [vmem:[#allocation34 + $0xa0] ss:$8 sps:$4 sm:$0xff]   ;;  %v14309_v29 = vld [vmem:[#allocation34 + $0x94] ss:$8 sps:$4 sm:$0xff]  }
 0x752   :  { %3997 = vmatprep.subr.bf16.mxu1 %v14237_v32  ;;  %4215 = vmatpush1.bf16.msra.mxu0 %v14244_v33  ;;  %v14298_v30 = vld [vmem:[#allocation35 + $0xa0] ss:$8 sps:$4 sm:$0xff]   ;;  %v14307_v31 = vld [vmem:[#allocation34 + $0x90] ss:$8 sps:$4 sm:$0xff]   ;;  %v14306_v32 = vld [vmem:[#allocation35 + $0x94] ss:$8 sps:$4 sm:$0xff]  }
 0x753   :  { %3477 = vmatprep.mubr.bf16.mxu1 %v3242_v40  ;;  %4216 = vmatprep.subr.bf16.mxu0 %v14252_v37  ;;  %v14315_v33 = vld [vmem:[#allocation34 + $0x84] ss:$8 sps:$4 sm:$0xff]   ;;  %v14304_v36 = vld [vmem:[#allocation35 + $0x90] ss:$8 sps:$4 sm:$0xff]   ;;  %v14313_v37 = vld [vmem:[#allocation34 + $0x80] ss:$8 sps:$4 sm:$0xff]  }
 0x754   :  { %3478 = vmatmul.mubr.bf16.gmra.mxu1 %v3241_v43  ;;  %v14312_v16 = vld [vmem:[#allocation35 + $0x84] ss:$8 sps:$4 sm:$0xff]   ;;  %v14310_v38 = vld [vmem:[#allocation35 + $0x80] ss:$8 sps:$4 sm:$0xff]   ;;  %vm11099_vm2 = vcmask 982912  }
 0x755   :  { %3998 = vmatpush1.bf16.msra.mxu1 %v14235_v34  ;;  %v14318_v40 = vld [vmem:[#allocation40 + $0x74] ss:$8 sps:$4 sm:$0xff]  }
 0x756   :  { %3999 = vmatprep.subr.bf16.mxu1 %v14243_v45  ;;  %4217 = vmatpush1.bf16.msra.mxu0 %v14250_v46  ;;  %v14321_v42 = vld [vmem:[#allocation38 + $0x74] ss:$8 sps:$4 sm:$0xff]  }
 0x757   :  { %4218 = vmatprep.subr.bf16.mxu0 %v14258_v44  ;;  %v3701_v46 = vld [vmem:[#allocation32] sm:$0x3] }
 0x759   :  { %4000 = vmatpush1.bf16.msra.mxu1 %v14241_v47  ;;  %v3706_v47 = vrot.slane %v3701_v46, %v16897_v63 }
 0x75a   :  { %4001 = vmatprep.subr.bf16.mxu1 %v14249_v48  ;;  %4219 = vmatpush1.bf16.msra.mxu0 %v14256_v49 }
 0x75b   :  { %4220 = vmatprep.subr.bf16.mxu0 %v14264_v50  ;;  %v3710_v50 = vrot.slane %v3701_v46, %v16894_v61 }
 0x75d   :  { %4002 = vmatpush1.bf16.msra.mxu1 %v14247_v51 }
 0x75e   :  { %4003 = vmatprep.subr.bf16.mxu1 %v14255_v52  ;;  %4221 = vmatpush1.bf16.msra.mxu0 %v14262_v53 }
 0x75f   :  { %4222 = vmatprep.subr.bf16.mxu0 %v14270_v54 }
 0x761   :  { %4004 = vmatpush1.bf16.msra.mxu1 %v14253_v55 }
 0x762   :  { %4005 = vmatprep.subr.bf16.mxu1 %v14261_v57  ;;  %4223 = vmatpush2.bf16.msra.mxu0 %v14268_v59 }
 0x763   :  { %4224 = vmatprep.subr.bf16.mxu0 %v14276_v11 }
 0x765   :  { %4006 = vmatpush1.bf16.msra.mxu1 %v14259_v0 }
 0x766   :  { %4007 = vmatprep.subr.bf16.mxu1 %v14267_v1  ;;  %4225 = vmatpush2.bf16.msra.mxu0 %v14274_v9 }
 0x767   :  { %4226 = vmatprep.subr.bf16.mxu0 %v14282_v17 }
 0x769   :  { %4008 = vmatpush1.bf16.msra.mxu1 %v14265_v3 }
 0x76a   :  { %4009 = vmatprep.subr.bf16.mxu1 %v14273_v4  ;;  %4227 = vmatpush2.bf16.msra.mxu0 %v14280_v15 }
 0x76b   :  { %4228 = vmatprep.subr.bf16.mxu0 %v14288_v20 }
 0x76d   :  { %4010 = vmatpush2.bf16.msra.mxu1 %v14271_v5 }
 0x76e   :  { %4011 = vmatprep.subr.bf16.mxu1 %v14279_v6  ;;  %4229 = vmatpush2.bf16.msra.mxu0 %v14286_v22 }
 0x76f   :  { %4230 = vmatprep.subr.bf16.mxu0 %v14294_v24 }
 0x771   :  { %4012 = vmatpush2.bf16.msra.mxu1 %v14277_v2 }
 0x772   :  { %4013 = vmatprep.subr.bf16.mxu1 %v14285_v12  ;;  %4231 = vmatpush2.bf16.msra.mxu0 %v14292_v26 }
 0x773   :  { %4232 = vmatprep.subr.bf16.mxu0 %v14300_v28 }
 0x775   :  { %4014 = vmatpush2.bf16.msra.mxu1 %v14283_v14 }
 0x776   :  { %4015 = vmatprep.subr.bf16.mxu1 %v14291_v18  ;;  %4233 = vmatpush2.bf16.msra.mxu0 %v14298_v30 }
 0x777   :  { %4234 = vmatprep.subr.bf16.mxu0 %v14306_v32 }
 0x779   :  { %4016 = vmatpush2.bf16.msra.mxu1 %v14289_v19 }
 0x77a   :  { %4017 = vmatprep.subr.bf16.mxu1 %v14297_v21  ;;  %4235 = vmatpush2.bf16.msra.mxu0 %v14304_v36 }
 0x77b   :  { %4236 = vmatprep.subr.bf16.mxu0 %v14312_v16 }
 0x77d   :  { %4018 = vmatpush2.bf16.msra.mxu1 %v14295_v23 }
 0x77e   :  { %4019 = vmatprep.subr.bf16.mxu1 %v14303_v25  ;;  %4237 = vmatpush2.bf16.msra.mxu0 %v14310_v38  ;;  %v14327_v38 = vld [vmem:[#allocation38 + $0x64] ss:$8 sps:$4 sm:$0xff]  }
 0x77f   :  { %4748 = vmatprep.subr.bf16.mxu0 %v14318_v40 }
 0x781   :  { %4020 = vmatpush2.bf16.msra.mxu1 %v14301_v27 }
 0x782   :  { %4021 = vmatprep.subr.bf16.mxu1 %v14309_v29 }
 0x785   :  { %4022 = vmatpush2.bf16.msra.mxu1 %v14307_v31  ;;  %v16973_v31 = vld [vmem:[#allocation2 + $0x30] sm:$0xff] }
 0x786   :  { %4023 = vmatprep.subr.bf16.mxu1 %v14315_v33  ;;  %v14319_v33 = vld [vmem:[#allocation38 + $0x70] ss:$8 sps:$4 sm:$0xff]  }
 0x789   :  { %4024 = vmatpush2.bf16.msra.mxu1 %v14313_v37 }
 0x78a   :  { %4535 = vmatprep.subr.bf16.mxu1 %v14321_v42 }
 0x801   :  { %v3682_v34 = vpop.f32.mrf.mxu0 }
 0x803   :  { %v3684_v43 = vpop.f32.mrf.mxu0 }
 0x805   :  { %v3686_v45 = vpop.f32.mrf.mxu0 }
 0x807   :  { %v3688_v44 = vpop.f32.mrf.mxu0 }
 0x809   :  { %v3692_v51 = vpop.f32.mrf.mxu0 }
 0x80b   :  { %v3694_v1 = vpop.f32.mrf.mxu0 }
 0x80c   :  { %v3469_v48 = vpop.f32.mrf.mxu1 }
 0x80d   :  { %v3683_v49 = vadd.f32 %v3682_v34, %v3469_v48  ;;  %v3696_v17 = vpop.f32.mrf.mxu0 }
 0x80e   :  { %v3471_v52 = vpop.f32.mrf.mxu1 }
 0x80f   :  { %v3713_v53 = vadd.f32 %v3706_v47, %v3683_v49  ;;  %v3685_v54 = vadd.f32 %v3684_v43, %v3471_v52  ;;  %v3698_v28 = vpop.f32.mrf.mxu0 }
 0x810   :  { %v3473_v55 = vpop.f32.mrf.mxu1 }
 0x811   :  { %v3721_v57 = vmax.f32 %v3713_v53, 0.0  ;;  %v3714_v59 = vadd.f32 %v3710_v50, %v3685_v54  ;;  %v3687_v0 = vadd.f32 %v3686_v45, %v3473_v55  ;;  %v14322_v54 = vld [vmem:[#allocation40 + $0x60] ss:$8 sps:$4 sm:$0xff]   ;;  %v14331_v55 = vld [vmem:[#allocation38 + $0x50] ss:$8 sps:$4 sm:$0xff]  }
 0x812   :  { %v3475_v3 = vpop.f32.mrf.mxu1 }
 0x813   :  { %v3729_v4 = vadd.f32 %v3721_v57, %v16924_v41  ;;  %v3722_v5 = vmax.f32 %v3714_v59, 0.0  ;;  %v3715_v6 = vadd.f32 %v3706_v47, %v3687_v0  ;;  %v3689_v2 = vadd.f32 %v3688_v44, %v3475_v3  ;;  %v14316_v44 = vld [vmem:[#allocation40 + $0x70] ss:$8 sps:$4 sm:$0xff]   ;;  %v14330_v0 = vld [vmem:[#allocation40 + $0x54] ss:$8 sps:$4 sm:$0xff]  }
 0x814   :  { %v3479_v9 = vpop.f32.mrf.mxu1 }
 0x815   :  { %v3730_v11 = vadd.f32 %v3722_v5, %v16919_v13  ;;  %v3723_v12 = vmax.f32 %v3715_v6, 0.0  ;;  %v3716_v14 = vadd.f32 %v3710_v50, %v3689_v2  ;;  %v3737_v15 = vmax.f32 %v3729_v4, 0.0  ;;  %v14337_v4 = vld [vmem:[#allocation38 + $0x40] ss:$8 sps:$4 sm:$0xff]   ;;  %v14336_v6 = vld [vmem:[#allocation40 + $0x44] ss:$8 sps:$4 sm:$0xff]  }
 0x816   :  { %v3693_v18 = vadd.f32 %v3692_v51, %v3479_v9  ;;  %v3481_v19 = vpop.f32.mrf.mxu1  ;;  %v14345_v2 = vld [vmem:[#allocation38 + $0x34] ss:$8 sps:$4 sm:$0xff]   ;;  %v14334_v9 = vld [vmem:[#allocation40 + $0x40] ss:$8 sps:$4 sm:$0xff]  }
 0x817   :  { %v3738_v20 = vmax.f32 %v3730_v11, 0.0  ;;  %v3731_v21 = vadd.f32 %v3723_v12, %v16917_v35  ;;  %v3724_v22 = vmax.f32 %v3716_v14, 0.0  ;;  %v3695_v23 = vadd.f32 %v3694_v1, %v3481_v19  ;;  %v14339_v1 = vld [vmem:[#allocation38 + $0x44] ss:$8 sps:$4 sm:$0xff]   ;;  %v14343_v11 = vld [vmem:[#allocation38 + $0x30] ss:$8 sps:$4 sm:$0xff]  }
 0x818   :  { %v3717_v24 = vadd.f32 %v3706_v47, %v3693_v18  ;;  %v3483_v25 = vpop.f32.mrf.mxu1  ;;  %v3797_v16 = vpack.c.bf16 %v3737_v15, %v16973_v31  ;;  %v14342_v12 = vld [vmem:[#allocation40 + $0x34] ss:$8 sps:$4 sm:$0xff]   ;;  %v14351_v14 = vld [vmem:[#allocation38 + $0x24] ss:$8 sps:$4 sm:$0xff]  }
 0x819   :  { %v3732_v41 = vadd.f32 %v3724_v22, %v16922_v39  ;;  %v3718_v26 = vadd.f32 %v3710_v50, %v3695_v23  ;;  %v3697_v27 = vadd.f32 %v3696_v17, %v3483_v25  ;;  %v3739_v29 = vmax.f32 %v3731_v21, 0.0  ;;  %v14349_v17 = vld [vmem:[#allocation38 + $0x20] ss:$8 sps:$4 sm:$0xff]   ;;  %v14348_v18 = vld [vmem:[#allocation40 + $0x24] ss:$8 sps:$4 sm:$0xff]  }
 0x81a   :  { %v3725_v13 = vmax.f32 %v3717_v24, 0.0  ;;  %v3485_v30 = vpop.f32.mrf.mxu1  ;;  %v3798_v32 = vpack.c.bf16 %v3738_v20, %v16973_v31  ;;  %v14357_v19 = vld [vmem:[#allocation38 + $0x14] ss:$8 sps:$4 sm:$0xff]   ;;  %v14355_v21 = vld [vmem:[#allocation38 + $0x10] ss:$8 sps:$4 sm:$0xff]  }
 0x81b   :  { %v3726_v36 = vmax.f32 %v3718_v26, 0.0  ;;  %v3719_v37 = vadd.f32 %v3706_v47, %v3697_v27  ;;  %v3699_v35 = vadd.f32 %v3698_v28, %v3485_v30  ;;  %v3740_v39 = vmax.f32 %v3732_v41, 0.0  ;;  %v14325_v47 = vld [vmem:[#allocation38 + $0x60] ss:$8 sps:$4 sm:$0xff]   ;;  %v14354_v22 = vld [vmem:[#allocation40 + $0x14] ss:$8 sps:$4 sm:$0xff]  }
 0x81c   :  { %v3733_v40 = vadd.f32 %v3725_v13, %v16939_v10  ;;  %4025 = vmatprep.mubr.bf16.mxu1 %v3798_v32  ;;  %v16979_v45 = vpack.c.bf16 %v3739_v29, %v3737_v15  ;;  %v14324_v10 = vld [vmem:[#allocation40 + $0x64] ss:$8 sps:$4 sm:$0xff]   ;;  %v14340_v15 = vld [vmem:[#allocation40 + $0x30] ss:$8 sps:$4 sm:$0xff]   ;;  %v14361_v25 = vld [vmem:[#allocation38] ss:$8 sps:$4 sm:$0xff]  }
 0x81d   :  { %v3734_v42 = vadd.f32 %v3726_v36, %v16933_v7  ;;  %v3727_v34 = vmax.f32 %v3719_v37, 0.0  ;;  %v3720_v43 = vadd.f32 %v3710_v50, %v3699_v35  ;;  %4026 = vmatmul.mubr.bf16.vlgmr.msra.gmra.mxu1 %v3797_v16  ;;  %v16981_v46 = vpack.c.bf16 %v3740_v39, %v3738_v20  ;;  %v14333_v7 = vld [vmem:[#allocation38 + $0x54] ss:$8 sps:$4 sm:$0xff]   ;;  %v14346_v20 = vld [vmem:[#allocation40 + $0x20] ss:$8 sps:$4 sm:$0xff]  }
 0x81e   :  { %4536 = vmatpush1.bf16.msra.mxu1 %v14319_v33  ;;  %v3741_v48 = vmax.f32 %v3733_v40, 0.0  ;;  %v14363_v23 = vld [vmem:[#allocation38 + $0x4] ss:$8 sps:$4 sm:$0xff]   ;;  %v14352_v24 = vld [vmem:[#allocation40 + $0x10] ss:$8 sps:$4 sm:$0xff]  }
 0x81f   :  { %v3742_v49 = vmax.f32 %v3734_v42, 0.0  ;;  %v3735_v51 = vadd.f32 %v3727_v34, %v16931_v62  ;;  %v3728_v52 = vmax.f32 %v3720_v43, 0.0  ;;  %4537 = vmatprep.subr.bf16.mxu1 %v14327_v38  ;;  %4238 = vmatprep.mubr.bf16.mxu0 %v16981_v46  ;;  %v14360_v41 = vld [vmem:[#allocation40 + $0x4] ss:$8 sps:$4 sm:$0xff]   ;;  %v14369_v26 = vld [vmem:[#allocation38 + $0xf4] ss:$8 sps:$4 sm:$0xff]  }
 0x820   :  { %4239 = vmatmul.mubr.bf16.vlgmr.msra.gmra.mxu0 %v16979_v45  ;;  %v3799_v62 = vpack.c.bf16 %v3741_v48, %v16973_v31  ;;  %v14358_v27 = vld [vmem:[#allocation40] ss:$8 sps:$4 sm:$0xff]   ;;  %v14367_v28 = vld [vmem:[#allocation38 + $0xf0] ss:$8 sps:$4 sm:$0xff]   ;;  %v14366_v29 = vld [vmem:[#allocation40 + $0xf4] ss:$8 sps:$4 sm:$0xff]  }
 0x821   :  { %v3736_v50 = vadd.f32 %v3728_v52, %v16936_v8  ;;  %v3800_v53 = vpack.c.bf16 %v3742_v49, %v16973_v31  ;;  %4749 = vmatpush1.bf16.msra.mxu0 %v14316_v44  ;;  %v3743_v57 = vmax.f32 %v3735_v51, 0.0  ;;  %v14328_v8 = vld [vmem:[#allocation40 + $0x50] ss:$8 sps:$4 sm:$0xff]   ;;  %v14375_v13 = vld [vmem:[#allocation38 + $0xe4] ss:$8 sps:$4 sm:$0xff]  }
 0x822   :  { %4538 = vmatpush1.bf16.msra.mxu1 %v14325_v47  ;;  %4750 = vmatprep.subr.bf16.mxu0 %v14324_v10  ;;  %v14364_v30 = vld [vmem:[#allocation40 + $0xf0] ss:$8 sps:$4 sm:$0xff]   ;;  %v14373_v32 = vld [vmem:[#allocation38 + $0xe0] ss:$8 sps:$4 sm:$0xff]   ;;  %v14372_v33 = vld [vmem:[#allocation40 + $0xe4] ss:$8 sps:$4 sm:$0xff]  }
 0x823   :  { %v3744_v59 = vmax.f32 %v3736_v50, 0.0  ;;  %4035 = vmatprep.mubr.bf16.mxu1 %v3800_v53  ;;  %4539 = vmatprep.subr.bf16.mxu1 %v14333_v7  ;;  %v16992_v5 = vpack.c.bf16 %v3743_v57, %v3741_v48  ;;  %v14381_v36 = vld [vmem:[#allocation38 + $0xd4] ss:$8 sps:$4 sm:$0xff]   ;;  %v14370_v37 = vld [vmem:[#allocation40 + $0xe0] ss:$8 sps:$4 sm:$0xff]  }
 0x824   :  { %v14379_v35 = vld [vmem:[#allocation38 + $0xd0] ss:$8 sps:$4 sm:$0xff]   ;;  %v14378_v16 = vld [vmem:[#allocation40 + $0xd4] ss:$8 sps:$4 sm:$0xff]   ;;  %v14387_v40 = vld [vmem:[#allocation38 + $0xc4] ss:$8 sps:$4 sm:$0xff]  }
 0x825   :  { %v16989_v3 = vpack.c.bf16 %v3744_v59, %v3742_v49  ;;  %4036 = vmatmul.mubr.bf16.gmra.mxu1 %v3799_v62  ;;  %4751 = vmatpush1.bf16.msra.mxu0 %v14322_v54  ;;  %v14376_v38 = vld [vmem:[#allocation40 + $0xd0] ss:$8 sps:$4 sm:$0xff]   ;;  %v14385_v39 = vld [vmem:[#allocation38 + $0xc0] ss:$8 sps:$4 sm:$0xff]   ;;  %v14393_v42 = vld [vmem:[#allocation38 + $0xb4] ss:$8 sps:$4 sm:$0xff]  }
 0x826   :  { %4540 = vmatpush1.bf16.msra.mxu1 %v14331_v55  ;;  %4752 = vmatprep.subr.bf16.mxu0 %v14330_v0  ;;  %v14384_v34 = vld [vmem:[#allocation40 + $0xc4] ss:$8 sps:$4 sm:$0xff]   ;;  %v14391_v43 = vld [vmem:[#allocation38 + $0xb0] ss:$8 sps:$4 sm:$0xff]   ;;  %v14382_v44 = vld [vmem:[#allocation40 + $0xc0] ss:$8 sps:$4 sm:$0xff]  }
 0x827   :  { %4248 = vmatprep.mubr.bf16.mxu0 %v16989_v3  ;;  %4541 = vmatprep.subr.bf16.mxu1 %v14339_v1  ;;  %v14399_v47 = vld [vmem:[#allocation38 + $0xa4] ss:$8 sps:$4 sm:$0xff]   ;;  %v14390_v48 = vld [vmem:[#allocation40 + $0xb4] ss:$8 sps:$4 sm:$0xff]   ;;  %v14397_v49 = vld [vmem:[#allocation38 + $0xa0] ss:$8 sps:$4 sm:$0xff]  }
 0x828   :  { %4249 = vmatmul.mubr.bf16.gmra.mxu0 %v16992_v5  ;;  %v14388_v51 = vld [vmem:[#allocation40 + $0xb0] ss:$8 sps:$4 sm:$0xff]   ;;  %v14405_v52 = vld [vmem:[#allocation38 + $0x94] ss:$8 sps:$4 sm:$0xff]   ;;  %v14396_v10 = vld [vmem:[#allocation40 + $0xa4] ss:$8 sps:$4 sm:$0xff]  }
 0x829   :  { %4753 = vmatpush1.bf16.msra.mxu0 %v14328_v8  ;;  %v14403_v7 = vld [vmem:[#allocation38 + $0x90] ss:$8 sps:$4 sm:$0xff]   ;;  %v14394_v50 = vld [vmem:[#allocation40 + $0xa0] ss:$8 sps:$4 sm:$0xff]   ;;  %v14411_v53 = vld [vmem:[#allocation38 + $0x84] ss:$8 sps:$4 sm:$0xff]  }
 0x82a   :  { %4542 = vmatpush1.bf16.msra.mxu1 %v14337_v4  ;;  %4754 = vmatprep.subr.bf16.mxu0 %v14336_v6  ;;  %v14402_v54 = vld [vmem:[#allocation40 + $0x94] ss:$8 sps:$4 sm:$0xff]   ;;  %v14409_v55 = vld [vmem:[#allocation38 + $0x80] ss:$8 sps:$4 sm:$0xff]   ;;  %v14400_v57 = vld [vmem:[#allocation40 + $0x90] ss:$8 sps:$4 sm:$0xff]  }
 0x82b   :  { %4543 = vmatprep.subr.bf16.mxu1 %v14345_v2  ;;  %v14414_v59 = vld [vmem:[#allocation43 + $0x74] ss:$8 sps:$4 sm:$0xff]   ;;  %v14408_v62 = vld [vmem:[#allocation40 + $0x84] ss:$8 sps:$4 sm:$0xff]  }
 0x82c   :  { %v14406_v0 = vld [vmem:[#allocation40 + $0x80] ss:$8 sps:$4 sm:$0xff]   ;;  %v4259_v8 = vld [vmem:[#allocation37] sm:$0x3] }
 0x82d   :  { %4755 = vmatpush1.bf16.msra.mxu0 %v14334_v9  ;;  %v4264_v6 = vrot.slane %v4259_v8, %v16897_v63 }
 0x82e   :  { %4544 = vmatpush1.bf16.msra.mxu1 %v14343_v11  ;;  %4756 = vmatprep.subr.bf16.mxu0 %v14342_v12  ;;  %v4268_v12 = vrot.slane %v4259_v8, %v16894_v61 }
 0x82f   :  { %4545 = vmatprep.subr.bf16.mxu1 %v14351_v14 }
 0x831   :  { %4757 = vmatpush1.bf16.msra.mxu0 %v14340_v15 }
 0x832   :  { %4546 = vmatpush1.bf16.msra.mxu1 %v14349_v17  ;;  %4758 = vmatprep.subr.bf16.mxu0 %v14348_v18 }
 0x833   :  { %4547 = vmatprep.subr.bf16.mxu1 %v14357_v19 }
 0x835   :  { %4759 = vmatpush1.bf16.msra.mxu0 %v14346_v20 }
 0x836   :  { %4548 = vmatpush1.bf16.msra.mxu1 %v14355_v21  ;;  %4760 = vmatprep.subr.bf16.mxu0 %v14354_v22 }
 0x837   :  { %4549 = vmatprep.subr.bf16.mxu1 %v14363_v23 }
 0x839   :  { %4761 = vmatpush1.bf16.msra.mxu0 %v14352_v24 }
 0x83a   :  { %4550 = vmatpush1.bf16.msra.mxu1 %v14361_v25  ;;  %4762 = vmatprep.subr.bf16.mxu0 %v14360_v41 }
 0x83b   :  { %4551 = vmatprep.subr.bf16.mxu1 %v14369_v26 }
 0x83d   :  { %4763 = vmatpush1.bf16.msra.mxu0 %v14358_v27 }
 0x83e   :  { %4552 = vmatpush2.bf16.msra.mxu1 %v14367_v28  ;;  %4764 = vmatprep.subr.bf16.mxu0 %v14366_v29 }
 0x83f   :  { %4553 = vmatprep.subr.bf16.mxu1 %v14375_v13 }
 0x841   :  { %4765 = vmatpush2.bf16.msra.mxu0 %v14364_v30 }
 0x842   :  { %4554 = vmatpush2.bf16.msra.mxu1 %v14373_v32  ;;  %4766 = vmatprep.subr.bf16.mxu0 %v14372_v33  ;;  %v14412_v33 = vld [vmem:[#allocation43 + $0x70] ss:$8 sps:$4 sm:$0xff]  }
 0x843   :  { %4555 = vmatprep.subr.bf16.mxu1 %v14381_v36 }
 0x845   :  { %4767 = vmatpush2.bf16.msra.mxu0 %v14370_v37 }
 0x846   :  { %4556 = vmatpush2.bf16.msra.mxu1 %v14379_v35  ;;  %4768 = vmatprep.subr.bf16.mxu0 %v14378_v16  ;;  %v14417_v16 = vld [vmem:[#allocation43 + $0x64] ss:$8 sps:$4 sm:$0xff]  }
 0x847   :  { %4557 = vmatprep.subr.bf16.mxu1 %v14387_v40 }
 0x849   :  { %4769 = vmatpush2.bf16.msra.mxu0 %v14376_v38 }
 0x84a   :  { %4558 = vmatpush2.bf16.msra.mxu1 %v14385_v39  ;;  %4770 = vmatprep.subr.bf16.mxu0 %v14384_v34 }
 0x84b   :  { %4559 = vmatprep.subr.bf16.mxu1 %v14393_v42 }
 0x84d   :  { %4771 = vmatpush2.bf16.msra.mxu0 %v14382_v44 }
 0x84e   :  { %4560 = vmatpush2.bf16.msra.mxu1 %v14391_v43  ;;  %4772 = vmatprep.subr.bf16.mxu0 %v14390_v48  ;;  %v14415_v48 = vld [vmem:[#allocation43 + $0x60] ss:$8 sps:$4 sm:$0xff]  }
 0x84f   :  { %4561 = vmatprep.subr.bf16.mxu1 %v14399_v47 }
 0x851   :  { %4773 = vmatpush2.bf16.msra.mxu0 %v14388_v51 }
 0x852   :  { %4562 = vmatpush2.bf16.msra.mxu1 %v14397_v49  ;;  %4774 = vmatprep.subr.bf16.mxu0 %v14396_v10  ;;  %v14420_v10 = vld [vmem:[#allocation43 + $0x54] ss:$8 sps:$4 sm:$0xff]  }
 0x853   :  { %4563 = vmatprep.subr.bf16.mxu1 %v14405_v52 }
 0x855   :  { %4775 = vmatpush2.bf16.msra.mxu0 %v14394_v50 }
 0x856   :  { %4564 = vmatpush2.bf16.msra.mxu1 %v14403_v7  ;;  %4776 = vmatprep.subr.bf16.mxu0 %v14402_v54 }
 0x857   :  { %4565 = vmatprep.subr.bf16.mxu1 %v14411_v53 }
 0x859   :  { %4777 = vmatpush2.bf16.msra.mxu0 %v14400_v57 }
 0x85a   :  { %4566 = vmatpush2.bf16.msra.mxu1 %v14409_v55  ;;  %4778 = vmatprep.subr.bf16.mxu0 %v14408_v62 }
 0x85b   :  { %5033 = vmatprep.subr.bf16.mxu1 %v14414_v59  ;;  %v14418_v59 = vld [vmem:[#allocation43 + $0x50] ss:$8 sps:$4 sm:$0xff]  }
 0x85d   :  { %4779 = vmatpush2.bf16.msra.mxu0 %v14406_v0  ;;  %v14423_v0 = vld [vmem:[#allocation43 + $0x44] ss:$8 sps:$4 sm:$0xff]  }
 0x8dd   :  { %v4027_v1 = vpop.f32.mrf.mxu1 }
 0x8df   :  { %v4029_v4 = vpop.f32.mrf.mxu1 }
 0x8e0   :  { %v4240_v2 = vpop.f32.mrf.mxu0 }
 0x8e1   :  { %v4031_v9 = vpop.f32.mrf.mxu1  ;;  %v4241_v11 = vadd.f32 %v4240_v2, %v4027_v1  ;;  %v14426_v2 = vld [vmem:[#allocation43 + $0x34] ss:$8 sps:$4 sm:$0xff]  }
 0x8e2   :  { %v4242_v14 = vpop.f32.mrf.mxu0 }
 0x8e3   :  { %v4033_v15 = vpop.f32.mrf.mxu1  ;;  %v4271_v17 = vadd.f32 %v4264_v6, %v4241_v11  ;;  %v4243_v18 = vadd.f32 %v4242_v14, %v4029_v4  ;;  %v14421_v4 = vld [vmem:[#allocation43 + $0x40] ss:$8 sps:$4 sm:$0xff]   ;;  %v14430_v14 = vld [vmem:[#allocation43 + $0x10] ss:$8 sps:$4 sm:$0xff]  }
 0x8e4   :  { %v4244_v19 = vpop.f32.mrf.mxu0  ;;  %v14427_v11 = vld [vmem:[#allocation43 + $0x20] ss:$8 sps:$4 sm:$0xff]  }
 0x8e5   :  { %v4037_v20 = vpop.f32.mrf.mxu1  ;;  %v4279_v21 = vmax.f32 %v4271_v17, 0.0  ;;  %v4272_v22 = vadd.f32 %v4268_v12, %v4243_v18  ;;  %v4245_v23 = vadd.f32 %v4244_v19, %v4031_v9  ;;  %v14424_v9 = vld [vmem:[#allocation43 + $0x30] ss:$8 sps:$4 sm:$0xff]   ;;  %v14438_v17 = vld [vmem:[#allocation43 + $0xf4] ss:$8 sps:$4 sm:$0xff]  }
 0x8e6   :  { %v4246_v24 = vpop.f32.mrf.mxu0  ;;  %v14436_v18 = vld [vmem:[#allocation43 + $0xf0] ss:$8 sps:$4 sm:$0xff]   ;;  %v14441_v19 = vld [vmem:[#allocation43 + $0xe4] ss:$8 sps:$4 sm:$0xff]  }
 0x8e7   :  { %v4039_v25 = vpop.f32.mrf.mxu1  ;;  %v4280_v41 = vmax.f32 %v4272_v22, 0.0  ;;  %v4273_v26 = vadd.f32 %v4264_v6, %v4245_v23  ;;  %v4247_v27 = vadd.f32 %v4246_v24, %v4033_v15  ;;  %v4339_v35 = vpack.c.bf16 %v4279_v21, %v16973_v31  ;;  %v14435_v15 = vld [vmem:[#allocation43 + $0x4] ss:$8 sps:$4 sm:$0xff]   ;;  %v14442_v22 = vld [vmem:[#allocation43 + $0xd0] ss:$8 sps:$4 sm:$0xff]  }
 0x8e8   :  { %v4250_v28 = vpop.f32.mrf.mxu0  ;;  %v14447_v23 = vld [vmem:[#allocation43 + $0xc4] ss:$8 sps:$4 sm:$0xff]   ;;  %v14445_v24 = vld [vmem:[#allocation43 + $0xc0] ss:$8 sps:$4 sm:$0xff]  }
 0x8e9   :  { %v4281_v29 = vmax.f32 %v4273_v26, 0.0  ;;  %v4274_v13 = vadd.f32 %v4268_v12, %v4247_v27  ;;  %v4251_v30 = vadd.f32 %v4250_v28, %v4037_v20  ;;  %v4340_v32 = vpack.c.bf16 %v4280_v41, %v16973_v31  ;;  %v4041_v37 = vpop.f32.mrf.mxu1  ;;  %v14439_v20 = vld [vmem:[#allocation43 + $0xe0] ss:$8 sps:$4 sm:$0xff]   ;;  %v14453_v26 = vld [vmem:[#allocation43 + $0xa4] ss:$8 sps:$4 sm:$0xff]  }
 0x8ea   :  { %v4252_v36 = vpop.f32.mrf.mxu0  ;;  %v14451_v27 = vld [vmem:[#allocation43 + $0xa0] ss:$8 sps:$4 sm:$0xff]   ;;  %v14456_v28 = vld [vmem:[#allocation43 + $0x94] ss:$8 sps:$4 sm:$0xff]  }
 0x8eb   :  { %4325 = vst [vmem:[#allocation2 + $0x50] sm:$0xff] %v4281_v29  ;;  %v4282_v38 = vmax.f32 %v4274_v13, 0.0  ;;  %v4275_v40 = vadd.f32 %v4264_v6, %v4251_v30  ;;  %v4253_v39 = vadd.f32 %v4252_v36, %v4039_v25  ;;  %4567 = vmatprep.mubr.bf16.mxu1 %v4340_v32  ;;  %v4287_v49 = vpack.c.bf16 %v4281_v29, %v4279_v21  ;;  %v4043_v52 = vpop.f32.mrf.mxu1  ;;  %v14444_v21 = vld [vmem:[#allocation43 + $0xd4] ss:$8 sps:$4 sm:$0xff]   ;;  %v14454_v29 = vld [vmem:[#allocation43 + $0x90] ss:$8 sps:$4 sm:$0xff]  }
 0x8ec   :  { %v4254_v42 = vpop.f32.mrf.mxu0  ;;  %4568 = vmatmul.mubr.bf16.vlgmr.msra.gmra.mxu1 %v4339_v35  ;;  %v14450_v25 = vld [vmem:[#allocation43 + $0xb4] ss:$8 sps:$4 sm:$0xff]   ;;  %v14459_v13 = vld [vmem:[#allocation43 + $0x84] ss:$8 sps:$4 sm:$0xff]   ;;  %v14457_v30 = vld [vmem:[#allocation43 + $0x80] ss:$8 sps:$4 sm:$0xff]  }
 0x8ed   :  { %4326 = vst [vmem:[#allocation2 + $0x20] sm:$0xff] %v4282_v38  ;;  %v4283_v34 = vmax.f32 %v4275_v40, 0.0  ;;  %v4276_v43 = vadd.f32 %v4268_v12, %v4253_v39  ;;  %v4255_v44 = vadd.f32 %v4254_v42, %v4041_v37  ;;  %v4288_v47 = vpack.c.bf16 %v4282_v38, %v4280_v41  ;;  %5034 = vmatpush1.bf16.msra.mxu1 %v14412_v33  ;;  %v14448_v41 = vld [vmem:[#allocation43 + $0xb0] ss:$8 sps:$4 sm:$0xff]   ;;  %v14463_v37 = vld [vmem:[#allocation46 + $0x60] ss:$8 sps:$4 sm:$0xff]  }
 0x8ee   :  { %v4256_v51 = vpop.f32.mrf.mxu0  ;;  %5035 = vmatprep.subr.bf16.mxu1 %v14417_v16  ;;  %v14462_v32 = vld [vmem:[#allocation46 + $0x74] ss:$8 sps:$4 sm:$0xff]   ;;  %v14460_v33 = vld [vmem:[#allocation46 + $0x70] ss:$8 sps:$4 sm:$0xff]   ;;  %v14465_v36 = vld [vmem:[#allocation46 + $0x64] ss:$8 sps:$4 sm:$0xff]  }
 0x8ef   :  { %v4284_v7 = vmax.f32 %v4276_v43, 0.0  ;;  %v4277_v50 = vadd.f32 %v4264_v6, %v4255_v44  ;;  %v4257_v53 = vadd.f32 %v4256_v51, %v4043_v52  ;;  %4780 = vmatprep.mubr.bf16.mxu0 %v4288_v47  ;;  %v4341_v62 = vpack.c.bf16 %v4283_v34, %v16973_v31  ;;  %5310 = vmatprep.subr.bf16.mxu0 %v14462_v32  ;;  %v14468_v35 = vld [vmem:[#allocation46 + $0x54] ss:$8 sps:$4 sm:$0xff]   ;;  %v14466_v16 = vld [vmem:[#allocation46 + $0x50] ss:$8 sps:$4 sm:$0xff]  }
 0x8f0   :  { %4781 = vmatmul.mubr.bf16.vlgmr.msra.gmra.mxu0 %v4287_v49  ;;  %v14471_v38 = vld [vmem:[#allocation46 + $0x44] ss:$8 sps:$4 sm:$0xff]   ;;  %v14469_v40 = vld [vmem:[#allocation46 + $0x40] ss:$8 sps:$4 sm:$0xff]   ;;  %v14480_v42 = vld [vmem:[#allocation46 + $0x14] ss:$8 sps:$4 sm:$0xff]  }
 0x8f1   :  { %v4285_v54 = vmax.f32 %v4277_v50, 0.0  ;;  %v4278_v55 = vadd.f32 %v4268_v12, %v4257_v53  ;;  %5036 = vmatpush1.bf16.msra.mxu1 %v14415_v48  ;;  %v4342_v57 = vpack.c.bf16 %v4284_v7, %v16973_v31  ;;  %v14429_v31 = vld [vmem:[#allocation43 + $0x24] ss:$8 sps:$4 sm:$0xff]   ;;  %v14432_v12 = vld [vmem:[#allocation43 + $0x14] ss:$8 sps:$4 sm:$0xff]   ;;  %5311 = vmatpush1.bf16.msra.mxu0 %v14460_v33 }
 0x8f2   :  { %5037 = vmatprep.subr.bf16.mxu1 %v14420_v10  ;;  %5312 = vmatprep.subr.bf16.mxu0 %v14465_v36  ;;  %v14475_v39 = vld [vmem:[#allocation46 + $0x20] ss:$8 sps:$4 sm:$0xff]   ;;  %v14483_v43 = vld [vmem:[#allocation46 + $0x4] ss:$8 sps:$4 sm:$0xff]   ;;  %v14486_v47 = vld [vmem:[#allocation46 + $0xf4] ss:$8 sps:$4 sm:$0xff]  }
 0x8f3   :  { %4329 = vst [vmem:[#allocation2 + $0x10] sm:$0xff] %v4285_v54  ;;  %v4286_v1 = vmax.f32 %v4278_v55, 0.0  ;;  %4577 = vmatprep.mubr.bf16.mxu1 %v4342_v57  ;;  %v4289_v6 = vpack.c.bf16 %v4285_v54, %v4283_v34  ;;  %v14478_v34 = vld [vmem:[#allocation46 + $0x10] ss:$8 sps:$4 sm:$0xff]   ;;  %v14481_v44 = vld [vmem:[#allocation46] ss:$8 sps:$4 sm:$0xff]  }
 0x8f4   :  { %4578 = vmatmul.mubr.bf16.gmra.mxu1 %v4341_v62  ;;  %v14484_v48 = vld [vmem:[#allocation46 + $0xf0] ss:$8 sps:$4 sm:$0xff]   ;;  %v14489_v49 = vld [vmem:[#allocation46 + $0xe4] ss:$8 sps:$4 sm:$0xff]   ;;  %v14487_v51 = vld [vmem:[#allocation46 + $0xe0] ss:$8 sps:$4 sm:$0xff]  }
 0x8f5   :  { %4330 = vst [vmem:[#allocation2 + $0x40] sm:$0xff] %v4286_v1  ;;  %v4290_v8 = vpack.c.bf16 %v4286_v1, %v4284_v7  ;;  %5038 = vmatpush1.bf16.msra.mxu1 %v14418_v59  ;;  %5065 = vmatprep.mubr.bf16.mxu1 %v16981_v46  ;;  %v14433_v46 = vld [vmem:[#allocation43] ss:$8 sps:$4 sm:$0xff]   ;;  %v14490_v10 = vld [vmem:[#allocation46 + $0xd0] ss:$8 sps:$4 sm:$0xff]  }
 0x8f6   :  { %5039 = vmatprep.subr.bf16.mxu1 %v14423_v0  ;;  %5313 = vmatpush1.bf16.msra.mxu0 %v14463_v37  ;;  %v14492_v52 = vld [vmem:[#allocation46 + $0xd4] ss:$8 sps:$4 sm:$0xff]   ;;  %v14495_v7 = vld [vmem:[#allocation46 + $0xc4] ss:$8 sps:$4 sm:$0xff]   ;;  %v14493_v50 = vld [vmem:[#allocation46 + $0xc0] ss:$8 sps:$4 sm:$0xff]  }
 0x8f7   :  { %4790 = vmatprep.mubr.bf16.mxu0 %v4290_v8  ;;  %5314 = vmatprep.subr.bf16.mxu0 %v14468_v35  ;;  %v14498_v53 = vld [vmem:[#allocation46 + $0xb4] ss:$8 sps:$4 sm:$0xff]   ;;  %v14496_v54 = vld [vmem:[#allocation46 + $0xb0] ss:$8 sps:$4 sm:$0xff]   ;;  %v14501_v55 = vld [vmem:[#allocation46 + $0xa4] ss:$8 sps:$4 sm:$0xff]  }
 0x8f8   :  { %4791 = vmatmul.mubr.bf16.gmra.mxu0 %v4289_v6  ;;  %v14499_v57 = vld [vmem:[#allocation46 + $0xa0] ss:$8 sps:$4 sm:$0xff]   ;;  %v14504_v59 = vld [vmem:[#allocation46 + $0x94] ss:$8 sps:$4 sm:$0xff]   ;;  %v14502_v62 = vld [vmem:[#allocation46 + $0x90] ss:$8 sps:$4 sm:$0xff]  }
 0x8f9   :  { %5040 = vmatpush1.bf16.msra.mxu1 %v14421_v4  ;;  %v14507_v0 = vld [vmem:[#allocation46 + $0x84] ss:$8 sps:$4 sm:$0xff]   ;;  %v14505_v1 = vld [vmem:[#allocation46 + $0x80] ss:$8 sps:$4 sm:$0xff]   ;;  %v14508_v8 = vld [vmem:[#allocation49 + $0x70] ss:$8 sps:$4 sm:$0xff]  }
 0x8fa   :  { %5041 = vmatprep.subr.bf16.mxu1 %v14426_v2  ;;  %5315 = vmatpush1.bf16.msra.mxu0 %v14466_v16  ;;  %v14510_v4 = vld [vmem:[#allocation49 + $0x74] ss:$8 sps:$4 sm:$0xff]   ;;  %v14513_v6 = vld [vmem:[#allocation49 + $0x64] ss:$8 sps:$4 sm:$0xff]   ;;  %v14511_v2 = vld [vmem:[#allocation49 + $0x60] ss:$8 sps:$4 sm:$0xff]  }
 0x8fb   :  { %5316 = vmatprep.subr.bf16.mxu0 %v14471_v38 }
 0x8fd   :  { %5042 = vmatpush1.bf16.msra.mxu1 %v14424_v9  ;;  %v14516_v9 = vld [vmem:[#allocation49 + $0x54] ss:$8 sps:$4 sm:$0xff]  }
 0x8fe   :  { %5043 = vmatprep.subr.bf16.mxu1 %v14429_v31  ;;  %5317 = vmatpush1.bf16.msra.mxu0 %v14469_v40  ;;  %v14514_v31 = vld [vmem:[#allocation49 + $0x50] ss:$8 sps:$4 sm:$0xff]  }
 0x901   :  { %5044 = vmatpush1.bf16.msra.mxu1 %v14427_v11  ;;  %v14519_v11 = vld [vmem:[#allocation49 + $0x44] ss:$8 sps:$4 sm:$0xff]  }
 0x902   :  { %5045 = vmatprep.subr.bf16.mxu1 %v14432_v12  ;;  %v14517_v12 = vld [vmem:[#allocation49 + $0x40] ss:$8 sps:$4 sm:$0xff]  }
 0x905   :  { %5046 = vmatpush1.bf16.msra.mxu1 %v14430_v14  ;;  %v14522_v14 = vld [vmem:[#allocation49 + $0x34] ss:$8 sps:$4 sm:$0xff]  }
 0x906   :  { %5047 = vmatprep.subr.bf16.mxu1 %v14435_v15  ;;  %v14520_v15 = vld [vmem:[#allocation49 + $0x30] ss:$8 sps:$4 sm:$0xff]  }
 0x909   :  { %5048 = vmatpush1.bf16.msra.mxu1 %v14433_v46  ;;  %v14525_v46 = vld [vmem:[#allocation49 + $0x24] ss:$8 sps:$4 sm:$0xff]  }
 0x90a   :  { %5049 = vmatprep.subr.bf16.mxu1 %v14438_v17  ;;  %v14523_v17 = vld [vmem:[#allocation49 + $0x20] ss:$8 sps:$4 sm:$0xff]  }
 0x90d   :  { %5050 = vmatpush2.bf16.msra.mxu1 %v14436_v18  ;;  %v14528_v18 = vld [vmem:[#allocation49 + $0x14] ss:$8 sps:$4 sm:$0xff]  }
 0x90e   :  { %5051 = vmatprep.subr.bf16.mxu1 %v14441_v19  ;;  %v14526_v19 = vld [vmem:[#allocation49 + $0x10] ss:$8 sps:$4 sm:$0xff]  }
 0x911   :  { %5052 = vmatpush2.bf16.msra.mxu1 %v14439_v20  ;;  %v14531_v20 = vld [vmem:[#allocation49 + $0x4] ss:$8 sps:$4 sm:$0xff]  }
 0x912   :  { %5053 = vmatprep.subr.bf16.mxu1 %v14444_v21  ;;  %v14529_v21 = vld [vmem:[#allocation49] ss:$8 sps:$4 sm:$0xff]  }
 0x915   :  { %5054 = vmatpush2.bf16.msra.mxu1 %v14442_v22  ;;  %v14534_v22 = vld [vmem:[#allocation49 + $0xf4] ss:$8 sps:$4 sm:$0xff]  }
 0x916   :  { %5055 = vmatprep.subr.bf16.mxu1 %v14447_v23  ;;  %v14532_v23 = vld [vmem:[#allocation49 + $0xf0] ss:$8 sps:$4 sm:$0xff]  }
 0x919   :  { %5056 = vmatpush2.bf16.msra.mxu1 %v14445_v24  ;;  %v14537_v24 = vld [vmem:[#allocation49 + $0xe4] ss:$8 sps:$4 sm:$0xff]  }
 0x91a   :  { %5057 = vmatprep.subr.bf16.mxu1 %v14450_v25  ;;  %v14535_v25 = vld [vmem:[#allocation49 + $0xe0] ss:$8 sps:$4 sm:$0xff]  }
 0x91d   :  { %5058 = vmatpush2.bf16.msra.mxu1 %v14448_v41  ;;  %v14540_v41 = vld [vmem:[#allocation49 + $0xd4] ss:$8 sps:$4 sm:$0xff]  }
 0x91e   :  { %5059 = vmatprep.subr.bf16.mxu1 %v14453_v26  ;;  %v14538_v26 = vld [vmem:[#allocation49 + $0xd0] ss:$8 sps:$4 sm:$0xff]  }
 0x921   :  { %5060 = vmatpush2.bf16.msra.mxu1 %v14451_v27  ;;  %v14543_v27 = vld [vmem:[#allocation49 + $0xc4] ss:$8 sps:$4 sm:$0xff]  }
 0x922   :  { %5061 = vmatprep.subr.bf16.mxu1 %v14456_v28  ;;  %v14541_v28 = vld [vmem:[#allocation49 + $0xc0] ss:$8 sps:$4 sm:$0xff]  }
 0x925   :  { %5062 = vmatpush2.bf16.msra.mxu1 %v14454_v29  ;;  %v14546_v29 = vld [vmem:[#allocation49 + $0xb4] ss:$8 sps:$4 sm:$0xff]  }
 0x926   :  { %5063 = vmatprep.subr.bf16.mxu1 %v14459_v13  ;;  %v14544_v13 = vld [vmem:[#allocation49 + $0xb0] ss:$8 sps:$4 sm:$0xff]  }
 0x929   :  { %5064 = vmatpush2.bf16.msra.mxu1 %v14457_v30 }
 0x92a   :  { %5579 = vmatprep.subr.bf16.mxu1 %v14510_v4 }
 0x92c   :  { %5066 = vmatmul.mubr.bf16.vlgmr.msra.gmra.mxu1 %v16979_v45  ;;  %v14474_v45 = vld [vmem:[#allocation46 + $0x34] ss:$8 sps:$4 sm:$0xff]  }
 0x92d   :  { %5075 = vmatprep.mubr.bf16.mxu1 %v16989_v3  ;;  %v14472_v3 = vld [vmem:[#allocation46 + $0x30] ss:$8 sps:$4 sm:$0xff]   ;;  %5318 = vmatprep.subr.bf16.mxu0 %v14474_v45 }
 0x92e   :  { %5319 = vmatpush1.bf16.msra.mxu0 %v14472_v3  ;;  %5580 = vmatpush1.bf16.msra.mxu1 %v14508_v8 }
 0x92f   :  { %5581 = vmatprep.subr.bf16.mxu1 %v14513_v6 }
 0x932   :  { %5582 = vmatpush1.bf16.msra.mxu1 %v14511_v2 }
 0x933   :  { %5583 = vmatprep.subr.bf16.mxu1 %v14516_v9 }
 0x934   :  { %5076 = vmatmul.mubr.bf16.gmra.mxu1 %v16992_v5  ;;  %v14477_v5 = vld [vmem:[#allocation46 + $0x24] ss:$8 sps:$4 sm:$0xff]  }
 0x935   :  { %5320 = vmatprep.subr.bf16.mxu0 %v14477_v5 }
 0x936   :  { %5321 = vmatpush1.bf16.msra.mxu0 %v14475_v39  ;;  %5584 = vmatpush1.bf16.msra.mxu1 %v14514_v31  ;;  %v4801_v39 = vld [vmem:[#allocation41] sm:$0x3] }
 0x937   :  { %5322 = vmatprep.subr.bf16.mxu0 %v14480_v42  ;;  %5585 = vmatprep.subr.bf16.mxu1 %v14519_v11 }
 0x93a   :  { %5323 = vmatpush1.bf16.msra.mxu0 %v14478_v34  ;;  %5586 = vmatpush1.bf16.msra.mxu1 %v14517_v12  ;;  %v4810_v34 = vrot.slane %v4801_v39, %v16894_v61 }
 0x93b   :  { %5324 = vmatprep.subr.bf16.mxu0 %v14483_v43  ;;  %5587 = vmatprep.subr.bf16.mxu1 %v14522_v14 }
 0x93e   :  { %5325 = vmatpush1.bf16.msra.mxu0 %v14481_v44  ;;  %5588 = vmatpush1.bf16.msra.mxu1 %v14520_v15 }
 0x93f   :  { %5326 = vmatprep.subr.bf16.mxu0 %v14486_v47  ;;  %5589 = vmatprep.subr.bf16.mxu1 %v14525_v46  ;;  %v4861_v47 = vld [vmem:[#allocation44] sm:$0x3] }
 0x942   :  { %5327 = vmatpush2.bf16.msra.mxu0 %v14484_v48  ;;  %5590 = vmatpush1.bf16.msra.mxu1 %v14523_v17 }
 0x943   :  { %5328 = vmatprep.subr.bf16.mxu0 %v14489_v49  ;;  %5591 = vmatprep.subr.bf16.mxu1 %v14528_v18  ;;  %v4806_v49 = vrot.slane %v4801_v39, %v16897_v63 }
 0x946   :  { %5329 = vmatpush2.bf16.msra.mxu0 %v14487_v51  ;;  %5592 = vmatpush1.bf16.msra.mxu1 %v14526_v19 }
 0x947   :  { %5330 = vmatprep.subr.bf16.mxu0 %v14492_v52  ;;  %5593 = vmatprep.subr.bf16.mxu1 %v14531_v20 }
 0x94a   :  { %5331 = vmatpush2.bf16.msra.mxu0 %v14490_v10  ;;  %5594 = vmatpush1.bf16.msra.mxu1 %v14529_v21  ;;  %v4870_v10 = vrot.slane %v4861_v47, %v16894_v61 }
 0x94b   :  { %5332 = vmatprep.subr.bf16.mxu0 %v14495_v7  ;;  %5595 = vmatprep.subr.bf16.mxu1 %v14534_v22 }
 0x94e   :  { %5333 = vmatpush2.bf16.msra.mxu0 %v14493_v50  ;;  %5596 = vmatpush2.bf16.msra.mxu1 %v14532_v23 }
 0x94f   :  { %5334 = vmatprep.subr.bf16.mxu0 %v14498_v53  ;;  %5597 = vmatprep.subr.bf16.mxu1 %v14537_v24  ;;  %v4866_v53 = vrot.slane %v4861_v47, %v16897_v63 }
 0x952   :  { %5335 = vmatpush2.bf16.msra.mxu0 %v14496_v54  ;;  %5598 = vmatpush2.bf16.msra.mxu1 %v14535_v25 }
 0x953   :  { %5336 = vmatprep.subr.bf16.mxu0 %v14501_v55  ;;  %5599 = vmatprep.subr.bf16.mxu1 %v14540_v41 }
 0x956   :  { %5337 = vmatpush2.bf16.msra.mxu0 %v14499_v57  ;;  %5600 = vmatpush2.bf16.msra.mxu1 %v14538_v26 }
 0x957   :  { %5338 = vmatprep.subr.bf16.mxu0 %v14504_v59  ;;  %5601 = vmatprep.subr.bf16.mxu1 %v14543_v27 }
 0x95a   :  { %5339 = vmatpush2.bf16.msra.mxu0 %v14502_v62  ;;  %5602 = vmatpush2.bf16.msra.mxu1 %v14541_v28 }
 0x95b   :  { %5340 = vmatprep.subr.bf16.mxu0 %v14507_v0  ;;  %5603 = vmatprep.subr.bf16.mxu1 %v14546_v29 }
 0x95e   :  { %5341 = vmatpush2.bf16.msra.mxu0 %v14505_v1  ;;  %5604 = vmatpush2.bf16.msra.mxu1 %v14544_v13 }
 0x9ac   :  { %v4569_v30 = vpop.f32.mrf.mxu1 }
 0x9ae   :  { %v4571_v32 = vpop.f32.mrf.mxu1 }
 0x9b0   :  { %v4782_v33 = vpop.f32.mrf.mxu0  ;;  %v4573_v36 = vpop.f32.mrf.mxu1 }
 0x9b1   :  { %v4783_v48 = vadd.f32 %v4782_v33, %v4569_v30 }
 0x9b2   :  { %v4784_v37 = vpop.f32.mrf.mxu0  ;;  %v4575_v35 = vpop.f32.mrf.mxu1 }
 0x9b3   :  { %v4785_v42 = vadd.f32 %v4784_v37, %v4571_v32  ;;  %v4813_v57 = vadd.f32 %v4806_v49, %v4783_v48 }
 0x9b4   :  { %v4786_v16 = vpop.f32.mrf.mxu0  ;;  %v4579_v38 = vpop.f32.mrf.mxu1 }
 0x9b5   :  { %v4787_v44 = vadd.f32 %v4786_v16, %v4573_v36  ;;  %v4814_v7 = vadd.f32 %v4810_v34, %v4785_v42  ;;  %v4821_v12 = vmax.f32 %v4813_v57, 0.0  ;;  %v14553_v57 = vld [vmem:[#allocation49 + $0x80] ss:$8 sps:$4 sm:$0xff]  }
 0x9b6   :  { %v4788_v40 = vpop.f32.mrf.mxu0  ;;  %v4581_v45 = vpop.f32.mrf.mxu1 }
 0x9b7   :  { %v4789_v51 = vadd.f32 %v4788_v40, %v4575_v35  ;;  %v4815_v55 = vadd.f32 %v4806_v49, %v4787_v44  ;;  %v4822_v1 = vmax.f32 %v4814_v7, 0.0  ;;  %v14549_v7 = vld [vmem:[#allocation49 + $0xa4] ss:$8 sps:$4 sm:$0xff]  }
 0x9b8   :  { %v4792_v3 = vpop.f32.mrf.mxu0  ;;  %v4583_v5 = vpop.f32.mrf.mxu1  ;;  %5605 = vmatprep.subr.bf16.mxu1 %v14549_v7 }
 0x9b9   :  { %v4816_v59 = vadd.f32 %v4810_v34, %v4789_v51  ;;  %v4823_v2 = vmax.f32 %v4815_v55, 0.0  ;;  %v4793_v15 = vadd.f32 %v4792_v3, %v4579_v38  ;;  %v14555_v55 = vld [vmem:[#allocation49 + $0x84] ss:$8 sps:$4 sm:$0xff]  }
 0x9ba   :  { %v4794_v43 = vpop.f32.mrf.mxu0  ;;  %v4585_v52 = vpop.f32.mrf.mxu1 }
 0x9bb   :  { %v4795_v9 = vadd.f32 %v4794_v43, %v4581_v45  ;;  %v4824_v14 = vmax.f32 %v4816_v59, 0.0  ;;  %v4817_v41 = vadd.f32 %v4806_v49, %v4793_v15  ;;  %v14556_v59 = vld [vmem:[#allocation52 + $0x70] ss:$8 sps:$4 sm:$0xff]  }
 0x9bc   :  { %v4796_v50 = vpop.f32.mrf.mxu0  ;;  %v14574_v15 = vld [vmem:[#allocation52 + $0x10] ss:$8 sps:$4 sm:$0xff]  }
 0x9bd   :  { %v4797_v31 = vadd.f32 %v4796_v50, %v4583_v5  ;;  %v4818_v23 = vadd.f32 %v4810_v34, %v4795_v9  ;;  %v4825_v40 = vmax.f32 %v4817_v41, 0.0  ;;  %v14547_v50 = vld [vmem:[#allocation49 + $0xa0] ss:$8 sps:$4 sm:$0xff]  }
 0x9be   :  { %v4798_v8 = vpop.f32.mrf.mxu0  ;;  %5606 = vmatpush2.bf16.msra.mxu1 %v14547_v50  ;;  %v14570_v9 = vld [vmem:[#allocation52 + $0x34] ss:$8 sps:$4 sm:$0xff]  }
 0x9bf   :  { %v4799_v17 = vadd.f32 %v4798_v8, %v4585_v52  ;;  %v4819_v24 = vadd.f32 %v4806_v49, %v4797_v31  ;;  %v4826_v37 = vmax.f32 %v4818_v23, 0.0  ;;  %v14564_v8 = vld [vmem:[#allocation52 + $0x54] ss:$8 sps:$4 sm:$0xff]   ;;  %v14568_v31 = vld [vmem:[#allocation52 + $0x30] ss:$8 sps:$4 sm:$0xff]  }
 0x9c0   :  { %v14585_v23 = vld [vmem:[#allocation52 + $0xe4] ss:$8 sps:$4 sm:$0xff]   ;;  %v14588_v41 = vld [vmem:[#allocation52 + $0xd4] ss:$8 sps:$4 sm:$0xff]  }
 0x9c1   :  { %v4820_v28 = vadd.f32 %v4810_v34, %v4799_v17  ;;  %v4827_v35 = vmax.f32 %v4819_v24, 0.0  ;;  %v14577_v17 = vld [vmem:[#allocation52] ss:$8 sps:$4 sm:$0xff]  }
 0x9c2   :  { %v14583_v24 = vld [vmem:[#allocation52 + $0xe0] ss:$8 sps:$4 sm:$0xff]  }
 0x9c3   :  { %v4828_v5 = vmax.f32 %v4820_v28, 0.0  ;;  %v14591_v28 = vld [vmem:[#allocation52 + $0xc4] ss:$8 sps:$4 sm:$0xff]  }
 0x9ec   :  { %v5067_v54 = vpop.f32.mrf.mxu1 }
 0x9ed   :  { %v5068_v4 = vadd.f32 %v5067_v54, %v4866_v53  ;;  %v14550_v54 = vld [vmem:[#allocation49 + $0x90] ss:$8 sps:$4 sm:$0xff]  }
 0x9ee   :  { %v5069_v62 = vpop.f32.mrf.mxu1 }
 0x9ef   :  { %v5070_v0 = vadd.f32 %v5069_v62, %v4870_v10  ;;  %v17013_v21 = vadd.f32 %v5068_v4, %v4821_v12  ;;  %v14558_v62 = vld [vmem:[#allocation52 + $0x74] ss:$8 sps:$4 sm:$0xff]   ;;  %v14562_v4 = vld [vmem:[#allocation52 + $0x50] ss:$8 sps:$4 sm:$0xff]   ;;  %v14571_v12 = vld [vmem:[#allocation52 + $0x20] ss:$8 sps:$4 sm:$0xff]  }
 0x9f0   :  { %v5071_v6 = vpop.f32.mrf.mxu1  ;;  %5864 = vmatprep.subr.bf16.mxu0 %v14558_v62 }
 0x9f1   :  { %v5072_v11 = vadd.f32 %v5071_v6, %v4866_v53  ;;  %v17009_v18 = vadd.f32 %v5070_v0, %v4822_v1  ;;  %v5094_v32 = vmax.f32 %v17013_v21, 0.0  ;;  %v14561_v0 = vld [vmem:[#allocation52 + $0x64] ss:$8 sps:$4 sm:$0xff]   ;;  %v14559_v1 = vld [vmem:[#allocation52 + $0x60] ss:$8 sps:$4 sm:$0xff]  }
 0x9f2   :  { %v5073_v46 = vpop.f32.mrf.mxu1  ;;  %v14567_v6 = vld [vmem:[#allocation52 + $0x44] ss:$8 sps:$4 sm:$0xff]  }
 0x9f3   :  { %v17011_v19 = vadd.f32 %v5072_v11, %v4823_v2  ;;  %v5074_v20 = vadd.f32 %v5073_v46, %v4870_v10  ;;  %v5095_v29 = vmax.f32 %v17009_v18, 0.0  ;;  %v14565_v2 = vld [vmem:[#allocation52 + $0x40] ss:$8 sps:$4 sm:$0xff]   ;;  %v14573_v11 = vld [vmem:[#allocation52 + $0x24] ss:$8 sps:$4 sm:$0xff]  }
 0x9f4   :  { %v5077_v22 = vpop.f32.mrf.mxu1  ;;  %v14579_v46 = vld [vmem:[#allocation52 + $0x4] ss:$8 sps:$4 sm:$0xff]  }
 0x9f5   :  { %v17015_v25 = vadd.f32 %v5074_v20, %v4824_v14  ;;  %v5096_v26 = vmax.f32 %v17011_v19, 0.0  ;;  %v5078_v33 = vadd.f32 %v5077_v22, %v4866_v53  ;;  %v14576_v14 = vld [vmem:[#allocation52 + $0x14] ss:$8 sps:$4 sm:$0xff]   ;;  %v14580_v22 = vld [vmem:[#allocation52 + $0xf0] ss:$8 sps:$4 sm:$0xff]  }
 0x9f6   :  { %v5079_v27 = vpop.f32.mrf.mxu1  ;;  %v14582_v20 = vld [vmem:[#allocation52 + $0xf4] ss:$8 sps:$4 sm:$0xff]  }
 0x9f7   :  { %v5097_v13 = vmax.f32 %v17015_v25, 0.0  ;;  %v5080_v30 = vadd.f32 %v5079_v27, %v4870_v10  ;;  %v5102_v45 = vpack.c.bf16 %v5096_v26, %v5094_v32  ;;  %v17033_v43 = vadd.f32 %v5078_v33, %v4825_v40  ;;  %v14586_v27 = vld [vmem:[#allocation52 + $0xd0] ss:$8 sps:$4 sm:$0xff]   ;;  %v5138_v33 = vld [vmem:[#allocation47] sm:$0x3] }
 0x9f8   :  { %v5081_v36 = vpop.f32.mrf.mxu1 }
 0x9f9   :  { %v5082_v16 = vadd.f32 %v5081_v36, %v4866_v53  ;;  %v5103_v38 = vpack.c.bf16 %v5097_v13, %v5095_v29  ;;  %v17029_v39 = vadd.f32 %v5080_v30, %v4826_v37  ;;  %v5098_v51 = vmax.f32 %v17033_v43, 0.0  ;;  %v14552_v53 = vld [vmem:[#allocation49 + $0x94] ss:$8 sps:$4 sm:$0xff]   ;;  %v14589_v30 = vld [vmem:[#allocation52 + $0xc0] ss:$8 sps:$4 sm:$0xff]  }
 0x9fa   :  { %v5083_v3 = vpop.f32.mrf.mxu1  ;;  %5607 = vmatprep.subr.bf16.mxu1 %v14552_v53  ;;  %v5147_v37 = vrot.slane %v5138_v33, %v16894_v61  ;;  %v14610_v43 = vld [vmem:[#allocation58 + $0x50] ss:$8 sps:$4 sm:$0xff]  }
 0x9fb   :  { %v17031_v42 = vadd.f32 %v5082_v16, %v4827_v35  ;;  %v5084_v34 = vadd.f32 %v5083_v3, %v4870_v10  ;;  %5342 = vmatprep.mubr.bf16.mxu0 %v5103_v38  ;;  %v5099_v48 = vmax.f32 %v17029_v39, 0.0  ;;  %5608 = vmatpush2.bf16.msra.mxu1 %v14550_v54  ;;  %v5143_v35 = vrot.slane %v5138_v33, %v16897_v63  ;;  %v14655_v33 = vld [vmem:[#allocation55 + $0x60] ss:$8 sps:$4 sm:$0xff]  }
 0x9fc   :  { %5343 = vmatmul.mubr.bf16.vlgmr.msra.gmra.mxu0 %v5102_v45  ;;  %5609 = vmatprep.subr.bf16.mxu1 %v14555_v55 }
 0x9fd   :  { %v17035_v44 = vadd.f32 %v5084_v34, %v4828_v5  ;;  %v5100_v47 = vmax.f32 %v17031_v42, 0.0  ;;  %5865 = vmatpush1.bf16.msra.mxu0 %v14556_v59  ;;  %v14615_v42 = vld [vmem:[#allocation58 + $0x44] ss:$8 sps:$4 sm:$0xff]  }
 0x9fe   :  { %5866 = vmatprep.subr.bf16.mxu0 %v14561_v0 }
 0x9ff   :  { %v5101_v49 = vmax.f32 %v17035_v44, 0.0  ;;  %v5104_v10 = vpack.c.bf16 %v5100_v47, %v5098_v51  ;;  %5610 = vmatpush2.bf16.msra.mxu1 %v14553_v57  ;;  %v14613_v44 = vld [vmem:[#allocation58 + $0x40] ss:$8 sps:$4 sm:$0xff]  }
 0xa01   :  { %v5105_v52 = vpack.c.bf16 %v5101_v49, %v5099_v48  ;;  %5867 = vmatpush1.bf16.msra.mxu0 %v14559_v1 }
 0xa02   :  { %5868 = vmatprep.subr.bf16.mxu0 %v14564_v8 }
 0xa03   :  { %5352 = vmatprep.mubr.bf16.mxu0 %v5105_v52 }
 0xa04   :  { %5353 = vmatmul.mubr.bf16.gmra.mxu0 %v5104_v10 }
 0xa05   :  { %5869 = vmatpush1.bf16.msra.mxu0 %v14562_v4 }
 0xa06   :  { %5870 = vmatprep.subr.bf16.mxu0 %v14567_v6 }
 0xa09   :  { %5871 = vmatpush1.bf16.msra.mxu0 %v14565_v2 }
 0xa0a   :  { %5872 = vmatprep.subr.bf16.mxu0 %v14570_v9 }
 0xa0d   :  { %5873 = vmatpush1.bf16.msra.mxu0 %v14568_v31 }
 0xa0e   :  { %5874 = vmatprep.subr.bf16.mxu0 %v14573_v11 }
 0xa11   :  { %5875 = vmatpush1.bf16.msra.mxu0 %v14571_v12 }
 0xa12   :  { %5876 = vmatprep.subr.bf16.mxu0 %v14576_v14  ;;  %v14594_v14 = vld [vmem:[#allocation52 + $0xb4] ss:$8 sps:$4 sm:$0xff]  }
 0xa15   :  { %5877 = vmatpush1.bf16.msra.mxu0 %v14574_v15  ;;  %v14592_v15 = vld [vmem:[#allocation52 + $0xb0] ss:$8 sps:$4 sm:$0xff]  }
 0xa16   :  { %5878 = vmatprep.subr.bf16.mxu0 %v14579_v46  ;;  %v14597_v46 = vld [vmem:[#allocation52 + $0xa4] ss:$8 sps:$4 sm:$0xff]  }
 0xa19   :  { %5879 = vmatpush1.bf16.msra.mxu0 %v14577_v17  ;;  %v14595_v17 = vld [vmem:[#allocation52 + $0xa0] ss:$8 sps:$4 sm:$0xff]  }
 0xa1a   :  { %5880 = vmatprep.subr.bf16.mxu0 %v14582_v20  ;;  %v14600_v20 = vld [vmem:[#allocation52 + $0x94] ss:$8 sps:$4 sm:$0xff]  }
 0xa1d   :  { %5881 = vmatpush2.bf16.msra.mxu0 %v14580_v22  ;;  %v14598_v22 = vld [vmem:[#allocation52 + $0x90] ss:$8 sps:$4 sm:$0xff]  }
 0xa1e   :  { %5882 = vmatprep.subr.bf16.mxu0 %v14585_v23  ;;  %v14603_v23 = vld [vmem:[#allocation52 + $0x84] ss:$8 sps:$4 sm:$0xff]  }
 0xa21   :  { %5883 = vmatpush2.bf16.msra.mxu0 %v14583_v24  ;;  %v14601_v24 = vld [vmem:[#allocation52 + $0x80] ss:$8 sps:$4 sm:$0xff]  }
 0xa22   :  { %5884 = vmatprep.subr.bf16.mxu0 %v14588_v41  ;;  %v14606_v41 = vld [vmem:[#allocation58 + $0x74] ss:$8 sps:$4 sm:$0xff]  }
 0xa25   :  { %5885 = vmatpush2.bf16.msra.mxu0 %v14586_v27  ;;  %v14652_v27 = vld [vmem:[#allocation55 + $0x70] ss:$8 sps:$4 sm:$0xff]  }
 0xa26   :  { %5886 = vmatprep.subr.bf16.mxu0 %v14591_v28  ;;  %v14654_v28 = vld [vmem:[#allocation55 + $0x74] ss:$8 sps:$4 sm:$0xff]  }
 0xa27   :  { %6133 = vmatprep.subr.bf16.mxu1 %v14654_v28 }
 0xa29   :  { %5887 = vmatpush2.bf16.msra.mxu0 %v14589_v30  ;;  %v14657_v30 = vld [vmem:[#allocation55 + $0x64] ss:$8 sps:$4 sm:$0xff]  }
 0xa2a   :  { %5888 = vmatprep.subr.bf16.mxu0 %v14594_v14 }
 0xa2d   :  { %5889 = vmatpush2.bf16.msra.mxu0 %v14592_v15 }
 0xa2e   :  { %5890 = vmatprep.subr.bf16.mxu0 %v14597_v46  ;;  %v14690_v46 = vld [vmem:[#allocation55 + $0xb4] ss:$8 sps:$4 sm:$0xff]  }
 0xa31   :  { %5891 = vmatpush2.bf16.msra.mxu0 %v14595_v17 }
 0xa32   :  { %5892 = vmatprep.subr.bf16.mxu0 %v14600_v20 }
 0xa35   :  { %5893 = vmatpush2.bf16.msra.mxu0 %v14598_v22 }
 0xa36   :  { %5894 = vmatprep.subr.bf16.mxu0 %v14603_v23 }
 0xa39   :  { %5895 = vmatpush2.bf16.msra.mxu0 %v14601_v24 }
 0xa3a   :  { %6398 = vmatprep.subr.bf16.mxu0 %v14606_v41 }
 0xabc   :  { %v5344_v36 = vpop.f32.mrf.mxu0 }
 0xabd   :  { %v5345_v3 = vadd.f32 %v5344_v36, %v5143_v35  ;;  %v14660_v36 = vld [vmem:[#allocation55 + $0x54] ss:$8 sps:$4 sm:$0xff]  }
 0xabe   :  { %v5346_v16 = vpop.f32.mrf.mxu0 }
 0xabf   :  { %v5347_v40 = vadd.f32 %v5346_v16, %v5147_v37  ;;  %v5363_v53 = vmax.f32 %v5345_v3, 0.0  ;;  %v14661_v16 = vld [vmem:[#allocation55 + $0x40] ss:$8 sps:$4 sm:$0xff]  }
 0xac0   :  { %v5348_v38 = vpop.f32.mrf.mxu0  ;;  %v14667_v3 = vld [vmem:[#allocation55 + $0x20] ss:$8 sps:$4 sm:$0xff]  }
 0xac1   :  { %v5349_v45 = vadd.f32 %v5348_v38, %v5143_v35  ;;  %v5364_v7 = vmax.f32 %v5347_v40, 0.0  ;;  %v14666_v38 = vld [vmem:[#allocation55 + $0x34] ss:$8 sps:$4 sm:$0xff]   ;;  %v14664_v40 = vld [vmem:[#allocation55 + $0x30] ss:$8 sps:$4 sm:$0xff]  }
 0xac2   :  { %v5350_v5 = vpop.f32.mrf.mxu0 }
 0xac3   :  { %v5351_v34 = vadd.f32 %v5350_v5, %v5147_v37  ;;  %v5365_v52 = vmax.f32 %v5349_v45, 0.0  ;;  %v14669_v45 = vld [vmem:[#allocation55 + $0x24] ss:$8 sps:$4 sm:$0xff]   ;;  %v14672_v5 = vld [vmem:[#allocation55 + $0x14] ss:$8 sps:$4 sm:$0xff]  }
 0xac4   :  { %v5354_v10 = vpop.f32.mrf.mxu0 }
 0xac5   :  { %v5366_v50 = vmax.f32 %v5351_v34, 0.0  ;;  %v5371_v57 = vpack.c.bf16 %v5365_v52, %v5363_v53  ;;  %v5355_v1 = vadd.f32 %v5354_v10, %v5143_v35  ;;  %v14670_v34 = vld [vmem:[#allocation55 + $0x10] ss:$8 sps:$4 sm:$0xff]   ;;  %v14675_v52 = vld [vmem:[#allocation55 + $0x4] ss:$8 sps:$4 sm:$0xff]  }
 0xac6   :  { %v5356_v54 = vpop.f32.mrf.mxu0  ;;  %v14673_v10 = vld [vmem:[#allocation55] ss:$8 sps:$4 sm:$0xff]   ;;  %v14681_v53 = vld [vmem:[#allocation55 + $0xe4] ss:$8 sps:$4 sm:$0xff]  }
 0xac7   :  { %v5372_v55 = vpack.c.bf16 %v5366_v50, %v5364_v7  ;;  %v5357_v62 = vadd.f32 %v5356_v54, %v5147_v37  ;;  %v5367_v31 = vmax.f32 %v5355_v1, 0.0  ;;  %v14678_v7 = vld [vmem:[#allocation55 + $0xf4] ss:$8 sps:$4 sm:$0xff]   ;;  %v14676_v50 = vld [vmem:[#allocation55 + $0xf0] ss:$8 sps:$4 sm:$0xff]  }
 0xac8   :  { %v5358_v59 = vpop.f32.mrf.mxu0  ;;  %v5407_v54 = vld [vmem:[#allocation50] sm:$0x3]  ;;  %v14682_v1 = vld [vmem:[#allocation55 + $0xd0] ss:$8 sps:$4 sm:$0xff]  }
 0xac9   :  { %v5359_v0 = vadd.f32 %v5358_v59, %v5143_v35  ;;  %5611 = vmatprep.mubr.bf16.mxu1 %v5372_v55  ;;  %v5368_v2 = vmax.f32 %v5357_v62, 0.0  ;;  %v14663_v35 = vld [vmem:[#allocation55 + $0x44] ss:$8 sps:$4 sm:$0xff]   ;;  %v14679_v55 = vld [vmem:[#allocation55 + $0xe0] ss:$8 sps:$4 sm:$0xff]   ;;  %v5416_v62 = vrot.slane %v5407_v54, %v16894_v61 }
 0xaca   :  { %v5360_v8 = vpop.f32.mrf.mxu0  ;;  %5612 = vmatmul.mubr.bf16.vlgmr.msra.gmra.mxu1 %v5371_v57  ;;  %v5412_v57 = vrot.slane %v5407_v54, %v16897_v63  ;;  %v14684_v59 = vld [vmem:[#allocation55 + $0xd4] ss:$8 sps:$4 sm:$0xff]  }
 0xacb   :  { %v5361_v4 = vadd.f32 %v5360_v8, %v5147_v37  ;;  %v5369_v6 = vmax.f32 %v5359_v0, 0.0  ;;  %6134 = vmatpush1.bf16.msra.mxu1 %v14652_v27  ;;  %v14658_v37 = vld [vmem:[#allocation55 + $0x50] ss:$8 sps:$4 sm:$0xff]  }
 0xacc   :  { %6135 = vmatprep.subr.bf16.mxu1 %v14657_v30  ;;  %v14688_v27 = vld [vmem:[#allocation55 + $0xb0] ss:$8 sps:$4 sm:$0xff]  }
 0xacd   :  { %v5370_v9 = vmax.f32 %v5361_v4, 0.0  ;;  %v5373_v12 = vpack.c.bf16 %v5369_v6, %v5367_v31  ;;  %v14687_v6 = vld [vmem:[#allocation55 + $0xc4] ss:$8 sps:$4 sm:$0xff]  }
 0xacf   :  { %v5374_v11 = vpack.c.bf16 %v5370_v9, %v5368_v2  ;;  %6136 = vmatpush1.bf16.msra.mxu1 %v14655_v33 }
 0xad0   :  { %6137 = vmatprep.subr.bf16.mxu1 %v14660_v36 }
 0xad1   :  { %5621 = vmatprep.mubr.bf16.mxu1 %v5374_v11 }
 0xad2   :  { %5622 = vmatmul.mubr.bf16.gmra.mxu1 %v5373_v12  ;;  %v14685_v12 = vld [vmem:[#allocation55 + $0xc0] ss:$8 sps:$4 sm:$0xff]  }
 0xad3   :  { %6138 = vmatpush1.bf16.msra.mxu1 %v14658_v37 }
 0xad4   :  { %6139 = vmatprep.subr.bf16.mxu1 %v14663_v35 }
 0xad7   :  { %6140 = vmatpush1.bf16.msra.mxu1 %v14661_v16 }
 0xad8   :  { %6141 = vmatprep.subr.bf16.mxu1 %v14666_v38 }
 0xadb   :  { %6142 = vmatpush1.bf16.msra.mxu1 %v14664_v40 }
 0xadc   :  { %6143 = vmatprep.subr.bf16.mxu1 %v14669_v45 }
 0xadf   :  { %6144 = vmatpush1.bf16.msra.mxu1 %v14667_v3 }
 0xae0   :  { %6145 = vmatprep.subr.bf16.mxu1 %v14672_v5 }
 0xae3   :  { %6146 = vmatpush1.bf16.msra.mxu1 %v14670_v34 }
 0xae4   :  { %6147 = vmatprep.subr.bf16.mxu1 %v14675_v52  ;;  %v14609_v52 = vld [vmem:[#allocation58 + $0x64] ss:$8 sps:$4 sm:$0xff]  }
 0xae7   :  { %6148 = vmatpush1.bf16.msra.mxu1 %v14673_v10 }
 0xae8   :  { %6149 = vmatprep.subr.bf16.mxu1 %v14678_v7 }
 0xaeb   :  { %6150 = vmatpush2.bf16.msra.mxu1 %v14676_v50 }
 0xaec   :  { %6151 = vmatprep.subr.bf16.mxu1 %v14681_v53  ;;  %v14607_v53 = vld [vmem:[#allocation58 + $0x60] ss:$8 sps:$4 sm:$0xff]  }
 0xaef   :  { %6152 = vmatpush2.bf16.msra.mxu1 %v14679_v55  ;;  %v14612_v55 = vld [vmem:[#allocation58 + $0x54] ss:$8 sps:$4 sm:$0xff]  }
 0xaf0   :  { %6153 = vmatprep.subr.bf16.mxu1 %v14684_v59 }
 0xaf3   :  { %6154 = vmatpush2.bf16.msra.mxu1 %v14682_v1  ;;  %v14624_v1 = vld [vmem:[#allocation58 + $0x14] ss:$8 sps:$4 sm:$0xff]  }
 0xaf4   :  { %6155 = vmatprep.subr.bf16.mxu1 %v14687_v6  ;;  %v14625_v6 = vld [vmem:[#allocation58] ss:$8 sps:$4 sm:$0xff]  }
 0xaf7   :  { %6156 = vmatpush2.bf16.msra.mxu1 %v14685_v12  ;;  %v14636_v12 = vld [vmem:[#allocation58 + $0xd4] ss:$8 sps:$4 sm:$0xff]  }
 0xaf8   :  { %6157 = vmatprep.subr.bf16.mxu1 %v14690_v46  ;;  %v14637_v46 = vld [vmem:[#allocation58 + $0xc0] ss:$8 sps:$4 sm:$0xff]  }
 0xafb   :  { %6158 = vmatpush2.bf16.msra.mxu1 %v14688_v27  ;;  %v14651_v27 = vld [vmem:[#allocation58 + $0x84] ss:$8 sps:$4 sm:$0xff]  }
 0xb8a   :  { %v5613_v0 = vpop.f32.mrf.mxu1 }
 0xb8b   :  { %v5614_v8 = vadd.f32 %v5613_v0, %v5412_v57  ;;  %v14619_v0 = vld [vmem:[#allocation58 + $0x20] ss:$8 sps:$4 sm:$0xff]  }
 0xb8c   :  { %v5615_v4 = vpop.f32.mrf.mxu1 }
 0xb8d   :  { %v5616_v2 = vadd.f32 %v5615_v4, %v5416_v62  ;;  %v5632_v14 = vmax.f32 %v5614_v8, 0.0  ;;  %v14622_v8 = vld [vmem:[#allocation58 + $0x10] ss:$8 sps:$4 sm:$0xff]   ;;  %v14627_v4 = vld [vmem:[#allocation58 + $0x4] ss:$8 sps:$4 sm:$0xff]  }
 0xb8e   :  { %v5617_v9 = vpop.f32.mrf.mxu1 }
 0xb8f   :  { %v5633_v31 = vmax.f32 %v5616_v2, 0.0  ;;  %v5618_v11 = vadd.f32 %v5617_v9, %v5412_v57  ;;  %v5640_v28 = vadd.f32 %v5632_v14, %v5094_v32  ;;  %v14604_v32 = vld [vmem:[#allocation58 + $0x70] ss:$8 sps:$4 sm:$0xff]   ;;  %v14630_v2 = vld [vmem:[#allocation58 + $0xf4] ss:$8 sps:$4 sm:$0xff]  }
 0xb90   :  { %v5619_v15 = vpop.f32.mrf.mxu1  ;;  %v14628_v9 = vld [vmem:[#allocation58 + $0xf0] ss:$8 sps:$4 sm:$0xff]  }
 0xb91   :  { %v5634_v17 = vmax.f32 %v5618_v11, 0.0  ;;  %v5620_v20 = vadd.f32 %v5619_v15, %v5416_v62  ;;  %v5641_v23 = vadd.f32 %v5633_v31, %v5095_v29  ;;  %v5648_v19 = vmax.f32 %v5640_v28, 0.0  ;;  %v14633_v31 = vld [vmem:[#allocation58 + $0xe4] ss:$8 sps:$4 sm:$0xff]   ;;  %v14631_v11 = vld [vmem:[#allocation58 + $0xe0] ss:$8 sps:$4 sm:$0xff]  }
 0xb92   :  { %v5623_v22 = vpop.f32.mrf.mxu1  ;;  %v14634_v14 = vld [vmem:[#allocation58 + $0xd0] ss:$8 sps:$4 sm:$0xff]   ;;  %v14639_v15 = vld [vmem:[#allocation58 + $0xc4] ss:$8 sps:$4 sm:$0xff]   ;;  %v14649_v28 = vld [vmem:[#allocation58 + $0x80] ss:$8 sps:$4 sm:$0xff]  }
 0xb93   :  { %v5642_v24 = vadd.f32 %v5634_v17, %v5096_v26  ;;  %v5635_v41 = vmax.f32 %v5620_v20, 0.0  ;;  %v5624_v30 = vadd.f32 %v5623_v22, %v5412_v57  ;;  %v5649_v18 = vmax.f32 %v5641_v23, 0.0  ;;  %v14642_v17 = vld [vmem:[#allocation58 + $0xb4] ss:$8 sps:$4 sm:$0xff]   ;;  %v14640_v20 = vld [vmem:[#allocation58 + $0xb0] ss:$8 sps:$4 sm:$0xff]  }
 0xb94   :  { %v5625_v33 = vpop.f32.mrf.mxu1  ;;  %v14645_v22 = vld [vmem:[#allocation58 + $0xa4] ss:$8 sps:$4 sm:$0xff]   ;;  %v14643_v23 = vld [vmem:[#allocation58 + $0xa0] ss:$8 sps:$4 sm:$0xff]  }
 0xb95   :  { %v5643_v36 = vadd.f32 %v5635_v41, %v5097_v13  ;;  %v5626_v37 = vadd.f32 %v5625_v33, %v5416_v62  ;;  %v5650_v35 = vmax.f32 %v5642_v24, 0.0  ;;  %v5636_v26 = vmax.f32 %v5624_v30, 0.0  ;;  %v14648_v24 = vld [vmem:[#allocation58 + $0x94] ss:$8 sps:$4 sm:$0xff]   ;;  %v14646_v41 = vld [vmem:[#allocation58 + $0x90] ss:$8 sps:$4 sm:$0xff]  }
 0xb96   :  { %v5627_v16 = vpop.f32.mrf.mxu1  ;;  %v14693_v30 = vld [vmem:[#allocation55 + $0xa4] ss:$8 sps:$4 sm:$0xff]   ;;  %v14691_v33 = vld [vmem:[#allocation55 + $0xa0] ss:$8 sps:$4 sm:$0xff]  }
 0xb97   :  { %v5651_v29 = vmax.f32 %v5643_v36, 0.0  ;;  %v5637_v38 = vmax.f32 %v5626_v37, 0.0  ;;  %v5628_v40 = vadd.f32 %v5627_v16, %v5412_v57  ;;  %v17061_v5 = vpack.c.bf16 %v5650_v35, %v5648_v19  ;;  %6159 = vmatprep.subr.bf16.mxu1 %v14693_v30  ;;  %v14696_v36 = vld [vmem:[#allocation55 + $0x94] ss:$8 sps:$4 sm:$0xff]   ;;  %v14694_v37 = vld [vmem:[#allocation55 + $0x90] ss:$8 sps:$4 sm:$0xff]  }
 0xb98   :  { %v5629_v45 = vpop.f32.mrf.mxu1  ;;  %v5644_v10 = vadd.f32 %v5636_v26, %v5098_v51  ;;  %6160 = vmatpush2.bf16.msra.mxu1 %v14691_v33  ;;  %v14699_v35 = vld [vmem:[#allocation55 + $0x84] ss:$8 sps:$4 sm:$0xff]   ;;  %v14697_v16 = vld [vmem:[#allocation55 + $0x80] ss:$8 sps:$4 sm:$0xff]  }
 0xb99   :  { %v5630_v3 = vadd.f32 %v5629_v45, %v5416_v62  ;;  %v5657_v21 = vpack.c.bf16 %v5651_v29, %v5649_v18  ;;  %v5638_v34 = vmax.f32 %v5628_v40, 0.0  ;;  %v5645_v25 = vadd.f32 %v5637_v38, %v5099_v48  ;;  %v14621_v62 = vld [vmem:[#allocation58 + $0x24] ss:$8 sps:$4 sm:$0xff]   ;;  %6161 = vmatprep.subr.bf16.mxu1 %v14696_v36  ;;  %v14702_v18 = vld [vmem:[#allocation61 + $0x74] ss:$8 sps:$4 sm:$0xff]  }
 0xb9a   :  { %v5652_v57 = vmax.f32 %v5644_v10, 0.0  ;;  %v5692_v29 = vld [vmem:[#allocation53] sm:$0x3]  ;;  %v14735_v30 = vld [vmem:[#allocation61 + $0xc4] ss:$8 sps:$4 sm:$0xff]  }
 0xb9b   :  { %v5639_v13 = vmax.f32 %v5630_v3, 0.0  ;;  %5896 = vmatprep.mubr.bf16.mxu0 %v5657_v21  ;;  %v5646_v7 = vadd.f32 %v5638_v34, %v5100_v47  ;;  %v5653_v39 = vmax.f32 %v5645_v25, 0.0  ;;  %v14618_v47 = vld [vmem:[#allocation58 + $0x34] ss:$8 sps:$4 sm:$0xff]   ;;  %v5701_v19 = vrot.slane %v5692_v29, %v16894_v61  ;;  %v14733_v33 = vld [vmem:[#allocation61 + $0xc0] ss:$8 sps:$4 sm:$0xff]  }
 0xb9c   :  { %5897 = vmatmul.mubr.bf16.vlgmr.msra.gmra.mxu0 %v17061_v5  ;;  %6162 = vmatpush2.bf16.msra.mxu1 %v14694_v37  ;;  %v5697_v26 = vrot.slane %v5692_v29, %v16897_v63  ;;  %v14738_v36 = vld [vmem:[#allocation61 + $0xb4] ss:$8 sps:$4 sm:$0xff]   ;;  %v14736_v37 = vld [vmem:[#allocation61 + $0xb0] ss:$8 sps:$4 sm:$0xff]  }
 0xb9d   :  { %v5647_v50 = vadd.f32 %v5639_v13, %v5101_v49  ;;  %6399 = vmatpush1.bf16.msra.mxu0 %v14604_v32  ;;  %v5654_v54 = vmax.f32 %v5646_v7, 0.0  ;;  %v14616_v49 = vld [vmem:[#allocation58 + $0x30] ss:$8 sps:$4 sm:$0xff]   ;;  %6163 = vmatprep.subr.bf16.mxu1 %v14699_v35 }
 0xb9e   :  { %6400 = vmatprep.subr.bf16.mxu0 %v14609_v52  ;;  %v14741_v35 = vld [vmem:[#allocation61 + $0xa4] ss:$8 sps:$4 sm:$0xff]   ;;  %v14742_v29 = vld [vmem:[#allocation61 + $0x90] ss:$8 sps:$4 sm:$0xff]  }
 0xb9f   :  { %v5655_v48 = vmax.f32 %v5647_v50, 0.0  ;;  %v17072_v51 = vpack.c.bf16 %v5654_v54, %v5652_v57  ;;  %v14700_v54 = vld [vmem:[#allocation61 + $0x70] ss:$8 sps:$4 sm:$0xff]  }
 0xba0   :  { %6164 = vmatpush2.bf16.msra.mxu1 %v14697_v16  ;;  %v14739_v16 = vld [vmem:[#allocation61 + $0xa0] ss:$8 sps:$4 sm:$0xff]  }
 0xba1   :  { %6401 = vmatpush1.bf16.msra.mxu0 %v14607_v53  ;;  %v5659_v59 = vpack.c.bf16 %v5655_v48, %v5653_v39  ;;  %6675 = vmatprep.subr.bf16.mxu1 %v14702_v18  ;;  %v14705_v48 = vld [vmem:[#allocation61 + $0x64] ss:$8 sps:$4 sm:$0xff]   ;;  %v14744_v18 = vld [vmem:[#allocation61 + $0x94] ss:$8 sps:$4 sm:$0xff]  }
 0xba2   :  { %6402 = vmatprep.subr.bf16.mxu0 %v14612_v55 }
 0xba3   :  { %5906 = vmatprep.mubr.bf16.mxu0 %v5659_v59 }
 0xba4   :  { %5907 = vmatmul.mubr.bf16.gmra.mxu0 %v17072_v51 }
 0xba5   :  { %6403 = vmatpush1.bf16.msra.mxu0 %v14610_v43  ;;  %6430 = vmatprep.mubr.bf16.mxu0 %v5657_v21 }
 0xba6   :  { %6404 = vmatprep.subr.bf16.mxu0 %v14615_v42 }
 0xba9   :  { %6405 = vmatpush1.bf16.msra.mxu0 %v14613_v44  ;;  %v14703_v44 = vld [vmem:[#allocation61 + $0x60] ss:$8 sps:$4 sm:$0xff]  }
 0xbaa   :  { %6406 = vmatprep.subr.bf16.mxu0 %v14618_v47 }
 0xbad   :  { %6407 = vmatpush1.bf16.msra.mxu0 %v14616_v49  ;;  %v14708_v49 = vld [vmem:[#allocation61 + $0x54] ss:$8 sps:$4 sm:$0xff]  }
 0xbae   :  { %6408 = vmatprep.subr.bf16.mxu0 %v14621_v62 }
 0xbb1   :  { %6409 = vmatpush1.bf16.msra.mxu0 %v14619_v0 }
 0xbb2   :  { %6410 = vmatprep.subr.bf16.mxu0 %v14624_v1 }
 0xbb5   :  { %6411 = vmatpush1.bf16.msra.mxu0 %v14622_v8 }
 0xbb6   :  { %6412 = vmatprep.subr.bf16.mxu0 %v14627_v4  ;;  %v14706_v4 = vld [vmem:[#allocation61 + $0x50] ss:$8 sps:$4 sm:$0xff]  }
 0xbb9   :  { %6413 = vmatpush1.bf16.msra.mxu0 %v14625_v6 }
 0xbba   :  { %6414 = vmatprep.subr.bf16.mxu0 %v14630_v2  ;;  %v14711_v2 = vld [vmem:[#allocation61 + $0x44] ss:$8 sps:$4 sm:$0xff]  }
 0xbbd   :  { %6415 = vmatpush2.bf16.msra.mxu0 %v14628_v9  ;;  %v14709_v9 = vld [vmem:[#allocation61 + $0x40] ss:$8 sps:$4 sm:$0xff]  }
 0xbbe   :  { %6416 = vmatprep.subr.bf16.mxu0 %v14633_v31  ;;  %v14714_v31 = vld [vmem:[#allocation61 + $0x34] ss:$8 sps:$4 sm:$0xff]  }
 0xbc1   :  { %6417 = vmatpush2.bf16.msra.mxu0 %v14631_v11  ;;  %v14712_v11 = vld [vmem:[#allocation61 + $0x30] ss:$8 sps:$4 sm:$0xff]  }
 0xbc2   :  { %6418 = vmatprep.subr.bf16.mxu0 %v14636_v12  ;;  %v14717_v12 = vld [vmem:[#allocation61 + $0x24] ss:$8 sps:$4 sm:$0xff]  }
 0xbc5   :  { %6419 = vmatpush2.bf16.msra.mxu0 %v14634_v14  ;;  %v14715_v14 = vld [vmem:[#allocation61 + $0x20] ss:$8 sps:$4 sm:$0xff]  }
 0xbc6   :  { %6420 = vmatprep.subr.bf16.mxu0 %v14639_v15  ;;  %v14720_v15 = vld [vmem:[#allocation61 + $0x14] ss:$8 sps:$4 sm:$0xff]  }
 0xbc9   :  { %6421 = vmatpush2.bf16.msra.mxu0 %v14637_v46  ;;  %v14718_v46 = vld [vmem:[#allocation61 + $0x10] ss:$8 sps:$4 sm:$0xff]  }
 0xbca   :  { %6422 = vmatprep.subr.bf16.mxu0 %v14642_v17  ;;  %v14723_v17 = vld [vmem:[#allocation61 + $0x4] ss:$8 sps:$4 sm:$0xff]  }
 0xbcd   :  { %6423 = vmatpush2.bf16.msra.mxu0 %v14640_v20  ;;  %v14721_v20 = vld [vmem:[#allocation61] ss:$8 sps:$4 sm:$0xff]  }
 0xbce   :  { %6424 = vmatprep.subr.bf16.mxu0 %v14645_v22  ;;  %v14726_v22 = vld [vmem:[#allocation61 + $0xf4] ss:$8 sps:$4 sm:$0xff]  }
 0xbd1   :  { %6425 = vmatpush2.bf16.msra.mxu0 %v14643_v23  ;;  %v14724_v23 = vld [vmem:[#allocation61 + $0xf0] ss:$8 sps:$4 sm:$0xff]  }
 0xbd2   :  { %6426 = vmatprep.subr.bf16.mxu0 %v14648_v24  ;;  %v14729_v24 = vld [vmem:[#allocation61 + $0xe4] ss:$8 sps:$4 sm:$0xff]  }
 0xbd5   :  { %6427 = vmatpush2.bf16.msra.mxu0 %v14646_v41  ;;  %v14727_v41 = vld [vmem:[#allocation61 + $0xe0] ss:$8 sps:$4 sm:$0xff]  }
 0xbd6   :  { %6428 = vmatprep.subr.bf16.mxu0 %v14651_v27  ;;  %v14732_v27 = vld [vmem:[#allocation61 + $0xd4] ss:$8 sps:$4 sm:$0xff]  }
 0xbd9   :  { %6429 = vmatpush2.bf16.msra.mxu0 %v14649_v28  ;;  %v14730_v28 = vld [vmem:[#allocation61 + $0xd0] ss:$8 sps:$4 sm:$0xff]  }
 0xbdc   :  { %6431 = vmatmul.mubr.bf16.vlgmr.msra.gmra.mxu0 %v17061_v5 }
 0xbdd   :  { %6440 = vmatprep.mubr.bf16.mxu0 %v5659_v59 }
 0xbe4   :  { %6441 = vmatmul.mubr.bf16.gmra.mxu0 %v17072_v51 }
 0xc5c   :  { %v5898_v38 = vpop.f32.mrf.mxu0 }
 0xc5d   :  { %v5899_v32 = vadd.f32 %v5898_v38, %v5697_v26  ;;  %v14747_v38 = vld [vmem:[#allocation61 + $0x84] ss:$8 sps:$4 sm:$0xff]  }
 0xc5e   :  { %v5900_v40 = vpop.f32.mrf.mxu0 }
 0xc5f   :  { %v5901_v3 = vadd.f32 %v5900_v40, %v5701_v19  ;;  %v5917_v7 = vmax.f32 %v5899_v32, 0.0  ;;  %v14750_v40 = vld [vmem:[#allocation64 + $0x74] ss:$8 sps:$4 sm:$0xff]   ;;  %v14754_v32 = vld [vmem:[#allocation64 + $0x50] ss:$8 sps:$4 sm:$0xff]  }
 0xc60   :  { %v5902_v45 = vpop.f32.mrf.mxu0  ;;  %6944 = vmatprep.subr.bf16.mxu0 %v14750_v40 }
 0xc61   :  { %v5903_v21 = vadd.f32 %v5902_v45, %v5697_v26  ;;  %v5918_v13 = vmax.f32 %v5901_v3, 0.0  ;;  %v14753_v45 = vld [vmem:[#allocation64 + $0x64] ss:$8 sps:$4 sm:$0xff]   ;;  %v14751_v3 = vld [vmem:[#allocation64 + $0x60] ss:$8 sps:$4 sm:$0xff]  }
 0xc62   :  { %v5904_v5 = vpop.f32.mrf.mxu0 }
 0xc63   :  { %v5905_v34 = vadd.f32 %v5904_v5, %v5701_v19  ;;  %v5919_v52 = vmax.f32 %v5903_v21, 0.0  ;;  %v14756_v21 = vld [vmem:[#allocation64 + $0x54] ss:$8 sps:$4 sm:$0xff]   ;;  %v14759_v5 = vld [vmem:[#allocation64 + $0x44] ss:$8 sps:$4 sm:$0xff]  }
 0xc64   :  { %v5908_v25 = vpop.f32.mrf.mxu0 }
 0xc65   :  { %v5920_v10 = vmax.f32 %v5905_v34, 0.0  ;;  %v5925_v55 = vpack.c.bf16 %v5919_v52, %v5917_v7  ;;  %v5909_v43 = vadd.f32 %v5908_v25, %v5697_v26  ;;  %v14757_v34 = vld [vmem:[#allocation64 + $0x40] ss:$8 sps:$4 sm:$0xff]   ;;  %v14762_v52 = vld [vmem:[#allocation64 + $0x34] ss:$8 sps:$4 sm:$0xff]  }
 0xc66   :  { %v5910_v50 = vpop.f32.mrf.mxu0  ;;  %v14760_v25 = vld [vmem:[#allocation64 + $0x30] ss:$8 sps:$4 sm:$0xff]   ;;  %v14768_v7 = vld [vmem:[#allocation64 + $0x14] ss:$8 sps:$4 sm:$0xff]  }
 0xc67   :  { %v5926_v53 = vpack.c.bf16 %v5920_v10, %v5918_v13  ;;  %v5911_v57 = vadd.f32 %v5910_v50, %v5701_v19  ;;  %v5921_v1 = vmax.f32 %v5909_v43, 0.0  ;;  %v14765_v13 = vld [vmem:[#allocation64 + $0x24] ss:$8 sps:$4 sm:$0xff]   ;;  %v14763_v10 = vld [vmem:[#allocation64 + $0x20] ss:$8 sps:$4 sm:$0xff]  }
 0xc68   :  { %v5912_v39 = vpop.f32.mrf.mxu0  ;;  %v14766_v50 = vld [vmem:[#allocation64 + $0x10] ss:$8 sps:$4 sm:$0xff]  }
 0xc69   :  { %v5913_v59 = vadd.f32 %v5912_v39, %v5697_v26  ;;  %6165 = vmatprep.mubr.bf16.mxu1 %v5926_v53  ;;  %v5922_v62 = vmax.f32 %v5911_v57, 0.0  ;;  %v14748_v26 = vld [vmem:[#allocation64 + $0x70] ss:$8 sps:$4 sm:$0xff]   ;;  %v14771_v53 = vld [vmem:[#allocation64 + $0x4] ss:$8 sps:$4 sm:$0xff]  }
 0xc6a   :  { %v5914_v51 = vpop.f32.mrf.mxu0  ;;  %6166 = vmatmul.mubr.bf16.vlgmr.msra.gmra.mxu1 %v5925_v55  ;;  %6945 = vmatpush1.bf16.msra.mxu0 %v14748_v26  ;;  %v14774_v55 = vld [vmem:[#allocation64 + $0xf4] ss:$8 sps:$4 sm:$0xff]   ;;  %v14772_v39 = vld [vmem:[#allocation64 + $0xf0] ss:$8 sps:$4 sm:$0xff]   ;;  %v14775_v57 = vld [vmem:[#allocation64 + $0xe0] ss:$8 sps:$4 sm:$0xff]  }
 0xc6b   :  { %v5915_v42 = vadd.f32 %v5914_v51, %v5701_v19  ;;  %6676 = vmatpush1.bf16.msra.mxu1 %v14700_v54  ;;  %v5923_v47 = vmax.f32 %v5913_v59, 0.0  ;;  %v14745_v19 = vld [vmem:[#allocation61 + $0x80] ss:$8 sps:$4 sm:$0xff]   ;;  %6946 = vmatprep.subr.bf16.mxu0 %v14753_v45  ;;  %v14778_v43 = vld [vmem:[#allocation64 + $0xd0] ss:$8 sps:$4 sm:$0xff]  }
 0xc6c   :  { %6677 = vmatprep.subr.bf16.mxu1 %v14705_v48  ;;  %v14769_v54 = vld [vmem:[#allocation64] ss:$8 sps:$4 sm:$0xff]   ;;  %v14777_v48 = vld [vmem:[#allocation64 + $0xe4] ss:$8 sps:$4 sm:$0xff]   ;;  %v14780_v59 = vld [vmem:[#allocation64 + $0xd4] ss:$8 sps:$4 sm:$0xff]  }
 0xc6d   :  { %v5924_v0 = vmax.f32 %v5915_v42, 0.0  ;;  %v5927_v6 = vpack.c.bf16 %v5923_v47, %v5921_v1  ;;  %v14783_v51 = vld [vmem:[#allocation64 + $0xc4] ss:$8 sps:$4 sm:$0xff]   ;;  %v14781_v42 = vld [vmem:[#allocation64 + $0xc0] ss:$8 sps:$4 sm:$0xff]  }
 0xc6e   :  { %6947 = vmatpush1.bf16.msra.mxu0 %v14751_v3  ;;  %v14784_v47 = vld [vmem:[#allocation64 + $0xb0] ss:$8 sps:$4 sm:$0xff]  }
 0xc6f   :  { %v5928_v8 = vpack.c.bf16 %v5924_v0, %v5922_v62  ;;  %6678 = vmatpush1.bf16.msra.mxu1 %v14703_v44  ;;  %6948 = vmatprep.subr.bf16.mxu0 %v14756_v21  ;;  %v14786_v44 = vld [vmem:[#allocation64 + $0xb4] ss:$8 sps:$4 sm:$0xff]   ;;  %v5961_v1 = vld [vmem:[#allocation56] sm:$0x3] }
 0xc70   :  { %6679 = vmatprep.subr.bf16.mxu1 %v14708_v49 }
 0xc71   :  { %6175 = vmatprep.mubr.bf16.mxu1 %v5928_v8 }
 0xc72   :  { %6176 = vmatmul.mubr.bf16.gmra.mxu1 %v5927_v6  ;;  %6949 = vmatpush1.bf16.msra.mxu0 %v14754_v32  ;;  %v5970_v6 = vrot.slane %v5961_v1, %v16894_v61 }
 0xc73   :  { %6680 = vmatpush1.bf16.msra.mxu1 %v14706_v4  ;;  %6950 = vmatprep.subr.bf16.mxu0 %v14759_v5  ;;  %v5966_v4 = vrot.slane %v5961_v1, %v16897_v63 }
 0xc74   :  { %6681 = vmatprep.subr.bf16.mxu1 %v14711_v2 }
 0xc76   :  { %6951 = vmatpush1.bf16.msra.mxu0 %v14757_v34 }
 0xc77   :  { %6682 = vmatpush1.bf16.msra.mxu1 %v14709_v9  ;;  %6952 = vmatprep.subr.bf16.mxu0 %v14762_v52  ;;  %v6226_v9 = vld [vmem:[#allocation59] sm:$0x3] }
 0xc78   :  { %6683 = vmatprep.subr.bf16.mxu1 %v14714_v31 }
 0xc7a   :  { %6953 = vmatpush1.bf16.msra.mxu0 %v14760_v25 }
 0xc7b   :  { %6684 = vmatpush1.bf16.msra.mxu1 %v14712_v11  ;;  %6954 = vmatprep.subr.bf16.mxu0 %v14765_v13 }
 0xc7c   :  { %6685 = vmatprep.subr.bf16.mxu1 %v14717_v12 }
 0xc7e   :  { %6955 = vmatpush1.bf16.msra.mxu0 %v14763_v10 }
 0xc7f   :  { %6686 = vmatpush1.bf16.msra.mxu1 %v14715_v14  ;;  %6956 = vmatprep.subr.bf16.mxu0 %v14768_v7  ;;  %v6235_v14 = vrot.slane %v6226_v9, %v16894_v61 }
 0xc80   :  { %6687 = vmatprep.subr.bf16.mxu1 %v14720_v15 }
 0xc82   :  { %6957 = vmatpush1.bf16.msra.mxu0 %v14766_v50 }
 0xc83   :  { %6688 = vmatpush1.bf16.msra.mxu1 %v14718_v46  ;;  %6958 = vmatprep.subr.bf16.mxu0 %v14771_v53  ;;  %v6231_v46 = vrot.slane %v6226_v9, %v16897_v63  ;;  %v14787_v9 = vld [vmem:[#allocation64 + $0xa0] ss:$8 sps:$4 sm:$0xff]  }
 0xc84   :  { %6689 = vmatprep.subr.bf16.mxu1 %v14723_v17 }
 0xc86   :  { %6959 = vmatpush1.bf16.msra.mxu0 %v14769_v54 }
 0xc87   :  { %6690 = vmatpush1.bf16.msra.mxu1 %v14721_v20  ;;  %6960 = vmatprep.subr.bf16.mxu0 %v14774_v55 }
 0xc88   :  { %6691 = vmatprep.subr.bf16.mxu1 %v14726_v22 }
 0xc8a   :  { %6961 = vmatpush2.bf16.msra.mxu0 %v14772_v39 }
 0xc8b   :  { %6692 = vmatpush2.bf16.msra.mxu1 %v14724_v23  ;;  %6962 = vmatprep.subr.bf16.mxu0 %v14777_v48 }
 0xc8c   :  { %6693 = vmatprep.subr.bf16.mxu1 %v14729_v24 }
 0xc8e   :  { %6963 = vmatpush2.bf16.msra.mxu0 %v14775_v57 }
 0xc8f   :  { %6694 = vmatpush2.bf16.msra.mxu1 %v14727_v41  ;;  %6964 = vmatprep.subr.bf16.mxu0 %v14780_v59 }
 0xc90   :  { %6695 = vmatprep.subr.bf16.mxu1 %v14732_v27 }
 0xc92   :  { %6965 = vmatpush2.bf16.msra.mxu0 %v14778_v43 }
 0xc93   :  { %6696 = vmatpush2.bf16.msra.mxu1 %v14730_v28  ;;  %6966 = vmatprep.subr.bf16.mxu0 %v14783_v51 }
 0xc94   :  { %6697 = vmatprep.subr.bf16.mxu1 %v14735_v30 }
 0xc96   :  { %6967 = vmatpush2.bf16.msra.mxu0 %v14781_v42 }
 0xc97   :  { %6698 = vmatpush2.bf16.msra.mxu1 %v14733_v33  ;;  %6968 = vmatprep.subr.bf16.mxu0 %v14786_v44 }
 0xc98   :  { %6699 = vmatprep.subr.bf16.mxu1 %v14738_v36 }
 0xc9a   :  { %6969 = vmatpush2.bf16.msra.mxu0 %v14784_v47 }
 0xc9b   :  { %6700 = vmatpush2.bf16.msra.mxu1 %v14736_v37 }
 0xc9c   :  { %6701 = vmatprep.subr.bf16.mxu1 %v14741_v35  ;;  %v6432_v49 = vpop.f32.mrf.mxu0 }
 0xc9d   :  { %v6433_v36 = vadd.f32 %v6432_v49, %v6231_v46 }
 0xc9e   :  { %v6434_v62 = vpop.f32.mrf.mxu0 }
 0xc9f   :  { %6702 = vmatpush2.bf16.msra.mxu1 %v14739_v16  ;;  %v6435_v27 = vadd.f32 %v6434_v62, %v6235_v14 }
 0xca0   :  { %6703 = vmatprep.subr.bf16.mxu1 %v14744_v18  ;;  %v6436_v0 = vpop.f32.mrf.mxu0 }
 0xca1   :  { %v6437_v28 = vadd.f32 %v6436_v0, %v6231_v46 }
 0xca2   :  { %v6438_v8 = vpop.f32.mrf.mxu0 }
 0xca3   :  { %6704 = vmatpush2.bf16.msra.mxu1 %v14742_v29  ;;  %v6439_v35 = vadd.f32 %v6438_v8, %v6235_v14 }
 0xca4   :  { %6705 = vmatprep.subr.bf16.mxu1 %v14747_v38  ;;  %v6442_v31 = vpop.f32.mrf.mxu0 }
 0xca5   :  { %v6443_v39 = vadd.f32 %v6442_v31, %v6231_v46  ;;  %v14792_v31 = vld [vmem:[#allocation64 + $0x94] ss:$8 sps:$4 sm:$0xff]  }
 0xca6   :  { %v6444_v23 = vpop.f32.mrf.mxu0 }
 0xca7   :  { %6706 = vmatpush2.bf16.msra.mxu1 %v14745_v19  ;;  %v6445_v53 = vadd.f32 %v6444_v23, %v6235_v14  ;;  %v14823_v23 = vld [vmem:[#allocation67 + $0x170] ss:$12 sps:$4 sm:$0xff]  }
 0xca8   :  { %v6446_v38 = vpop.f32.mrf.mxu0 }
 0xca9   :  { %v6447_v48 = vadd.f32 %v6446_v38, %v6231_v46  ;;  %v14798_v46 = vld [vmem:[#allocation67 + $0xac] ss:$12 sps:$4 sm:$0xff]  }
 0xcaa   :  { %v6448_v25 = vpop.f32.mrf.mxu0  ;;  %7362 = vmatprep.subr.bf16.mxu1 %v14798_v46  ;;  %v14817_v38 = vld [vmem:[#allocation67] ss:$12 sps:$4 sm:$0xff]  }
 0xcab   :  { %v6449_v43 = vadd.f32 %v6448_v25, %v6235_v14  ;;  %v14793_v14 = vld [vmem:[#allocation64 + $0x80] ss:$8 sps:$4 sm:$0xff]  }
 0xcac   :  { %v14830_v25 = vld [vmem:[#allocation67 + $0x138] ss:$12 sps:$4 sm:$0xff]  }
 0xd2a   :  { %v6167_v2 = vpop.f32.mrf.mxu1 }
 0xd2b   :  { %v6168_v11 = vadd.f32 %v6167_v2, %v5966_v4  ;;  %v14789_v2 = vld [vmem:[#allocation64 + $0xa4] ss:$8 sps:$4 sm:$0xff]  }
 0xd2c   :  { %v6169_v12 = vpop.f32.mrf.mxu1  ;;  %6970 = vmatprep.subr.bf16.mxu0 %v14789_v2 }
 0xd2d   :  { %v6170_v15 = vadd.f32 %v6169_v12, %v5970_v6  ;;  %v6186_v24 = vmax.f32 %v6168_v11, 0.0  ;;  %6971 = vmatpush2.bf16.msra.mxu0 %v14787_v9  ;;  %v14790_v11 = vld [vmem:[#allocation64 + $0x90] ss:$8 sps:$4 sm:$0xff]   ;;  %v14795_v12 = vld [vmem:[#allocation64 + $0x84] ss:$8 sps:$4 sm:$0xff]  }
 0xd2e   :  { %v6171_v17 = vpop.f32.mrf.mxu1  ;;  %6972 = vmatprep.subr.bf16.mxu0 %v14792_v31 }
 0xd2f   :  { %v6187_v20 = vmax.f32 %v6170_v15, 0.0  ;;  %v6172_v22 = vadd.f32 %v6171_v17, %v5966_v4  ;;  %v17087_v19 = vadd.f32 %v6433_v36, %v6186_v24  ;;  %v14796_v15 = vld [vmem:[#allocation67 + $0xa8] ss:$12 sps:$4 sm:$0xff]   ;;  %v14802_v24 = vld [vmem:[#allocation67 + $0x78] ss:$12 sps:$4 sm:$0xff]  }
 0xd30   :  { %v6173_v41 = vpop.f32.mrf.mxu1  ;;  %v14801_v17 = vld [vmem:[#allocation67 + $0x94] ss:$12 sps:$4 sm:$0xff]   ;;  %v14811_v36 = vld [vmem:[#allocation67 + $0x30] ss:$12 sps:$4 sm:$0xff]  }
 0xd31   :  { %v6188_v30 = vmax.f32 %v6172_v22, 0.0  ;;  %v6174_v33 = vadd.f32 %v6173_v41, %v5970_v6  ;;  %v17083_v16 = vadd.f32 %v6435_v27, %v6187_v20  ;;  %v6459_v13 = vmax.f32 %v17087_v19, 0.0  ;;  %6973 = vmatpush2.bf16.msra.mxu0 %v14790_v11  ;;  %v14799_v20 = vld [vmem:[#allocation67 + $0x90] ss:$12 sps:$4 sm:$0xff]   ;;  %v14805_v27 = vld [vmem:[#allocation67 + $0x60] ss:$12 sps:$4 sm:$0xff]  }
 0xd32   :  { %v6177_v37 = vpop.f32.mrf.mxu1  ;;  %6974 = vmatprep.subr.bf16.mxu0 %v14795_v12  ;;  %v14804_v22 = vld [vmem:[#allocation67 + $0x7c] ss:$12 sps:$4 sm:$0xff]   ;;  %v14807_v41 = vld [vmem:[#allocation67 + $0x64] ss:$12 sps:$4 sm:$0xff]  }
 0xd33   :  { %v17085_v18 = vadd.f32 %v6437_v28, %v6188_v30  ;;  %v6189_v29 = vmax.f32 %v6174_v33, 0.0  ;;  %v6178_v26 = vadd.f32 %v6177_v37, %v5966_v4  ;;  %v6460_v5 = vmax.f32 %v17083_v16, 0.0  ;;  %v14810_v28 = vld [vmem:[#allocation67 + $0x4c] ss:$12 sps:$4 sm:$0xff]   ;;  %v14808_v30 = vld [vmem:[#allocation67 + $0x48] ss:$12 sps:$4 sm:$0xff]  }
 0xd34   :  { %v6179_v40 = vpop.f32.mrf.mxu1  ;;  %v14813_v33 = vld [vmem:[#allocation67 + $0x34] ss:$12 sps:$4 sm:$0xff]   ;;  %v14816_v37 = vld [vmem:[#allocation67 + $0x1c] ss:$12 sps:$4 sm:$0xff]  }
 0xd35   :  { %v17089_v45 = vadd.f32 %v6439_v35, %v6189_v29  ;;  %v6180_v3 = vadd.f32 %v6179_v40, %v5970_v6  ;;  %v6461_v21 = vmax.f32 %v17085_v18, 0.0  ;;  %v6190_v10 = vmax.f32 %v6178_v26, 0.0  ;;  %6975 = vmatpush2.bf16.msra.mxu0 %v14793_v14  ;;  %v14814_v35 = vld [vmem:[#allocation67 + $0x18] ss:$12 sps:$4 sm:$0xff]   ;;  %v14820_v40 = vld [vmem:[#allocation67 + $0x168] ss:$12 sps:$4 sm:$0xff]  }
 0xd36   :  { %v6181_v32 = vpop.f32.mrf.mxu1  ;;  %13244 = vmatprep.subr.bf16.mxu0 %v14823_v23  ;;  %v14819_v29 = vld [vmem:[#allocation67 + $0x4] ss:$12 sps:$4 sm:$0xff]   ;;  %v14822_v26 = vld [vmem:[#allocation67 + $0x16c] ss:$12 sps:$4 sm:$0xff]   ;;  %v14860_v19 = vld [vmem:[#allocation68 + $0xa8] ss:$12 sps:$4 sm:$0xff]  }
 0xd37   :  { %v6462_v34 = vmax.f32 %v17089_v45, 0.0  ;;  %v6191_v52 = vmax.f32 %v6180_v3, 0.0  ;;  %v6182_v7 = vadd.f32 %v6181_v32, %v5966_v4  ;;  %v6467_v57 = vpack.c.bf16 %v6461_v21, %v6459_v13  ;;  %v14827_v3 = vld [vmem:[#allocation67 + $0x154] ss:$12 sps:$4 sm:$0xff]   ;;  %v14825_v32 = vld [vmem:[#allocation67 + $0x150] ss:$12 sps:$4 sm:$0xff]  }
 0xd38   :  { %v6183_v50 = vpop.f32.mrf.mxu1  ;;  %v17105_v44 = vadd.f32 %v6443_v39, %v6190_v10  ;;  %v14837_v10 = vld [vmem:[#allocation67 + $0x124] ss:$12 sps:$4 sm:$0xff]   ;;  %v14865_v45 = vld [vmem:[#allocation68 + $0x94] ss:$12 sps:$4 sm:$0xff]  }
 0xd39   :  { %v6184_v54 = vadd.f32 %v6183_v50, %v5970_v6  ;;  %v6468_v55 = vpack.c.bf16 %v6462_v34, %v6460_v5  ;;  %v6192_v59 = vmax.f32 %v6182_v7, 0.0  ;;  %v17103_v51 = vadd.f32 %v6445_v53, %v6191_v52  ;;  %v14832_v52 = vld [vmem:[#allocation67 + $0x13c] ss:$12 sps:$4 sm:$0xff]   ;;  %v14835_v7 = vld [vmem:[#allocation67 + $0x120] ss:$12 sps:$4 sm:$0xff]  }
 0xd3a   :  { %v6463_v8 = vmax.f32 %v17105_v44, 0.0  ;;  %v6503_v50 = vld [vmem:[#allocation62] sm:$0x3] }
 0xd3b   :  { %v6193_v42 = vmax.f32 %v6184_v54, 0.0  ;;  %6707 = vmatprep.mubr.bf16.mxu1 %v6468_v55  ;;  %v17107_v47 = vadd.f32 %v6447_v48, %v6192_v59  ;;  %v6464_v0 = vmax.f32 %v17103_v51, 0.0  ;;  %v6512_v54 = vrot.slane %v6503_v50, %v16894_v61  ;;  %v14863_v51 = vld [vmem:[#allocation68 + $0x90] ss:$12 sps:$4 sm:$0xff]  }
 0xd3c   :  { %6708 = vmatmul.mubr.bf16.vlgmr.msra.gmra.mxu1 %v6467_v57  ;;  %v6508_v55 = vrot.slane %v6503_v50, %v16897_v63  ;;  %v14848_v50 = vld [vmem:[#allocation67 + $0xf8] ss:$12 sps:$4 sm:$0xff]   ;;  %v14901_v44 = vld [vmem:[#allocation68 + $0x1fc] ss:$12 sps:$4 sm:$0xff]  }
 0xd3d   :  { %v17109_v49 = vadd.f32 %v6449_v43, %v6193_v42  ;;  %v6465_v62 = vmax.f32 %v17107_v47, 0.0  ;;  %7363 = vmatpush1.bf16.msra.mxu1 %v14796_v15  ;;  %v14824_v15 = vld [vmem:[#allocation67 + $0xb0] ss:$12 sps:$4 sm:$0xff]  }
 0xd3e   :  { %7364 = vmatprep.subr.bf16.mxu1 %v14801_v17 }
 0xd3f   :  { %v6466_v1 = vmax.f32 %v17109_v49, 0.0  ;;  %v6469_v6 = vpack.c.bf16 %v6465_v62, %v6463_v8 }
 0xd41   :  { %v6470_v4 = vpack.c.bf16 %v6466_v1, %v6464_v0  ;;  %7365 = vmatpush1.bf16.msra.mxu1 %v14799_v20  ;;  %v14828_v20 = vld [vmem:[#allocation67 + $0x158] ss:$12 sps:$4 sm:$0xff]  }
 0xd42   :  { %7366 = vmatprep.subr.bf16.mxu1 %v14804_v22 }
 0xd43   :  { %6717 = vmatprep.mubr.bf16.mxu1 %v6470_v4 }
 0xd44   :  { %6718 = vmatmul.mubr.bf16.gmra.mxu1 %v6469_v6 }
 0xd45   :  { %7367 = vmatpush1.bf16.msra.mxu1 %v14802_v24 }
 0xd46   :  { %7368 = vmatprep.subr.bf16.mxu1 %v14807_v41 }
 0xd49   :  { %7369 = vmatpush1.bf16.msra.mxu1 %v14805_v27 }
 0xd4a   :  { %7370 = vmatprep.subr.bf16.mxu1 %v14810_v28  ;;  %v14829_v28 = vld [vmem:[#allocation67 + $0x98] ss:$12 sps:$4 sm:$0xff]  }
 0xd4d   :  { %7371 = vmatpush1.bf16.msra.mxu1 %v14808_v30 }
 0xd4e   :  { %7372 = vmatprep.subr.bf16.mxu1 %v14813_v33  ;;  %v14833_v33 = vld [vmem:[#allocation67 + $0x140] ss:$12 sps:$4 sm:$0xff]  }
 0xd51   :  { %7373 = vmatpush1.bf16.msra.mxu1 %v14811_v36 }
 0xd52   :  { %7374 = vmatprep.subr.bf16.mxu1 %v14816_v37 }
 0xd55   :  { %7375 = vmatpush1.bf16.msra.mxu1 %v14814_v35 }
 0xd56   :  { %7376 = vmatprep.subr.bf16.mxu1 %v14819_v29 }
 0xd59   :  { %7377 = vmatpush1.bf16.msra.mxu1 %v14817_v38  ;;  %v14834_v38 = vld [vmem:[#allocation67 + $0x80] ss:$12 sps:$4 sm:$0xff]  }
 0xd5a   :  { %7378 = vmatprep.subr.bf16.mxu1 %v14822_v26 }
 0xd5d   :  { %7379 = vmatpush2.bf16.msra.mxu1 %v14820_v40  ;;  %v14838_v40 = vld [vmem:[#allocation67 + $0x128] ss:$12 sps:$4 sm:$0xff]  }
 0xd5e   :  { %7380 = vmatprep.subr.bf16.mxu1 %v14827_v3  ;;  %v14839_v3 = vld [vmem:[#allocation67 + $0x68] ss:$12 sps:$4 sm:$0xff]  }
 0xd61   :  { %7381 = vmatpush2.bf16.msra.mxu1 %v14825_v32  ;;  %v14842_v32 = vld [vmem:[#allocation67 + $0x10c] ss:$12 sps:$4 sm:$0xff]  }
 0xd62   :  { %7382 = vmatprep.subr.bf16.mxu1 %v14832_v52  ;;  %v14843_v52 = vld [vmem:[#allocation67 + $0x110] ss:$12 sps:$4 sm:$0xff]  }
 0xd65   :  { %7383 = vmatpush2.bf16.msra.mxu1 %v14830_v25  ;;  %v14840_v25 = vld [vmem:[#allocation67 + $0x108] ss:$12 sps:$4 sm:$0xff]  }
 0xd66   :  { %7384 = vmatprep.subr.bf16.mxu1 %v14837_v10  ;;  %v14844_v10 = vld [vmem:[#allocation67 + $0x50] ss:$12 sps:$4 sm:$0xff]  }
 0xd69   :  { %7385 = vmatpush2.bf16.msra.mxu1 %v14835_v7  ;;  %v14847_v7 = vld [vmem:[#allocation67 + $0xf4] ss:$12 sps:$4 sm:$0xff]  }
 0xd6a   :  { %7386 = vmatprep.subr.bf16.mxu1 %v14842_v32 }
 0xd6d   :  { %7387 = vmatpush2.bf16.msra.mxu1 %v14840_v25 }
 0xd6e   :  { %7388 = vmatprep.subr.bf16.mxu1 %v14847_v7 }
 0xdfc   :  { %v6709_v53 = vpop.f32.mrf.mxu1 }
 0xdfd   :  { %v6710_v43 = vadd.f32 %v6709_v53, %v6508_v55  ;;  %v14845_v53 = vld [vmem:[#allocation67 + $0xf0] ss:$12 sps:$4 sm:$0xff]  }
 0xdfe   :  { %v6711_v39 = vpop.f32.mrf.mxu1  ;;  %7389 = vmatpush2.bf16.msra.mxu1 %v14845_v53 }
 0xdff   :  { %v6712_v57 = vadd.f32 %v6711_v39, %v6512_v54  ;;  %v6728_v11 = vmax.f32 %v6710_v43, 0.0  ;;  %v14853_v39 = vld [vmem:[#allocation67 + $0xe0] ss:$12 sps:$4 sm:$0xff]   ;;  %v14858_v43 = vld [vmem:[#allocation67 + $0xc8] ss:$12 sps:$4 sm:$0xff]  }
 0xe00   :  { %v6713_v48 = vpop.f32.mrf.mxu1 }
 0xe01   :  { %v6714_v59 = vadd.f32 %v6713_v48, %v6508_v55  ;;  %v6729_v9 = vmax.f32 %v6712_v57, 0.0  ;;  %v14850_v48 = vld [vmem:[#allocation67 + $0xd8] ss:$12 sps:$4 sm:$0xff]   ;;  %v14854_v57 = vld [vmem:[#allocation67 + $0x20] ss:$12 sps:$4 sm:$0xff]  }
 0xe02   :  { %v6715_v42 = vpop.f32.mrf.mxu1 }
 0xe03   :  { %v6716_v4 = vadd.f32 %v6715_v42, %v6512_v54  ;;  %v6730_v6 = vmax.f32 %v6714_v59, 0.0  ;;  %v14857_v59 = vld [vmem:[#allocation67 + $0xc4] ss:$12 sps:$4 sm:$0xff]   ;;  %v14855_v42 = vld [vmem:[#allocation67 + $0xc0] ss:$12 sps:$4 sm:$0xff]  }
 0xe04   :  { %v6719_v2 = vpop.f32.mrf.mxu1 }
 0xe05   :  { %v6731_v31 = vmax.f32 %v6716_v4, 0.0  ;;  %v6736_v46 = vpack.c.bf16 %v6730_v6, %v6728_v11  ;;  %v6720_v24 = vadd.f32 %v6719_v2, %v6508_v55  ;;  %v14859_v4 = vld [vmem:[#allocation67 + $0x8] ss:$12 sps:$4 sm:$0xff]   ;;  %v14862_v6 = vld [vmem:[#allocation68 + $0xac] ss:$12 sps:$4 sm:$0xff]  }
 0xe06   :  { %v6721_v12 = vpop.f32.mrf.mxu1  ;;  %v14889_v2 = vld [vmem:[#allocation68 + $0x22c] ss:$12 sps:$4 sm:$0xff]  }
 0xe07   :  { %v6737_v14 = vpack.c.bf16 %v6731_v31, %v6729_v9  ;;  %v6722_v22 = vadd.f32 %v6721_v12, %v6512_v54  ;;  %v6732_v35 = vmax.f32 %v6720_v24, 0.0  ;;  %v6772_v9 = vld [vmem:[#allocation65] sm:$0x3] }
 0xe08   :  { %v6723_v17 = vpop.f32.mrf.mxu1  ;;  %v6777_v31 = vrot.slane %v6772_v9, %v16897_v63  ;;  %v6781_v11 = vrot.slane %v6772_v9, %v16894_v61  ;;  %v14869_v9 = vld [vmem:[#allocation68 + $0x60] ss:$12 sps:$4 sm:$0xff]  }
 0xe09   :  { %v6724_v23 = vadd.f32 %v6723_v17, %v6508_v55  ;;  %6976 = vmatprep.mubr.bf16.mxu0 %v6737_v14  ;;  %v6733_v36 = vmax.f32 %v6722_v22, 0.0  ;;  %v14852_v55 = vld [vmem:[#allocation67 + $0xdc] ss:$12 sps:$4 sm:$0xff]  }
 0xe0a   :  { %v6725_v41 = vpop.f32.mrf.mxu1  ;;  %6977 = vmatmul.mubr.bf16.vlgmr.msra.gmra.mxu0 %v6736_v46  ;;  %7390 = vmatprep.subr.bf16.mxu1 %v14852_v55 }
 0xe0b   :  { %v6726_v27 = vadd.f32 %v6725_v41, %v6512_v54  ;;  %13245 = vmatpush3.bf16.msra.mxu0 %v14824_v15  ;;  %v6734_v30 = vmax.f32 %v6724_v23, 0.0  ;;  %v14849_v54 = vld [vmem:[#allocation67 + $0x38] ss:$12 sps:$4 sm:$0xff]   ;;  %7391 = vmatpush2.bf16.msra.mxu1 %v14850_v48 }
 0xe0c   :  { %13246 = vmatprep.subr.bf16.mxu0 %v14828_v20  ;;  %7392 = vmatprep.subr.bf16.mxu1 %v14857_v59 }
 0xe0d   :  { %v6735_v37 = vmax.f32 %v6726_v27, 0.0  ;;  %v6738_v26 = vpack.c.bf16 %v6734_v30, %v6732_v35 }
 0xe0f   :  { %v6739_v29 = vpack.c.bf16 %v6735_v37, %v6733_v36  ;;  %13247 = vmatpush3.bf16.msra.mxu0 %v14829_v28  ;;  %7393 = vmatpush2.bf16.msra.mxu1 %v14855_v42 }
 0xe10   :  { %13248 = vmatprep.subr.bf16.mxu0 %v14833_v33  ;;  %8032 = vmatprep.subr.bf16.mxu1 %v14889_v2  ;;  %v14907_v2 = vld [vmem:[#allocation68 + $0x1e4] ss:$12 sps:$4 sm:$0xff]  }
 0xe11   :  { %6986 = vmatprep.mubr.bf16.mxu0 %v6739_v29 }
 0xe12   :  { %6987 = vmatmul.mubr.bf16.gmra.mxu0 %v6738_v26 }
 0xe13   :  { %13249 = vmatpush3.bf16.msra.mxu0 %v14834_v38 }
 0xe14   :  { %13250 = vmatprep.subr.bf16.mxu0 %v14838_v40 }
 0xe17   :  { %13251 = vmatpush3.bf16.msra.mxu0 %v14839_v3 }
 0xe18   :  { %13252 = vmatprep.subr.bf16.mxu0 %v14843_v52 }
 0xe1b   :  { %13253 = vmatpush3.bf16.msra.mxu0 %v14844_v10 }
 0xe1c   :  { %13254 = vmatprep.subr.bf16.mxu0 %v14848_v50 }
 0xe1f   :  { %13255 = vmatpush3.bf16.msra.mxu0 %v14849_v54 }
 0xe20   :  { %13256 = vmatprep.subr.bf16.mxu0 %v14853_v39 }
 0xe23   :  { %13257 = vmatpush3.bf16.msra.mxu0 %v14854_v57 }
 0xe24   :  { %13258 = vmatprep.subr.bf16.mxu0 %v14858_v43  ;;  %v14868_v43 = vld [vmem:[#allocation68 + $0x7c] ss:$12 sps:$4 sm:$0xff]  }
 0xe27   :  { %13259 = vmatpush3.bf16.msra.mxu0 %v14859_v4  ;;  %v14866_v4 = vld [vmem:[#allocation68 + $0x78] ss:$12 sps:$4 sm:$0xff]  }
 0xe28   :  { %7979 = vmatprep.subr.bf16.mxu0 %v14862_v6  ;;  %v14899_v6 = vld [vmem:[#allocation68 + $0x1f8] ss:$12 sps:$4 sm:$0xff]  }
 0xeca   :  { %v6978_v12 = vpop.f32.mrf.mxu0 }
 0xecb   :  { %v6979_v14 = vadd.f32 %v6978_v12, %v6777_v31  ;;  %v14913_v12 = vld [vmem:[#allocation68 + $0x1cc] ss:$12 sps:$4 sm:$0xff]  }
 0xecc   :  { %v6980_v15 = vpop.f32.mrf.mxu0 }
 0xecd   :  { %v6981_v46 = vadd.f32 %v6980_v15, %v6781_v11  ;;  %v6997_v23 = vmax.f32 %v6979_v14, 0.0  ;;  %v14872_v14 = vld [vmem:[#allocation68 + $0x48] ss:$12 sps:$4 sm:$0xff]  }
 0xece   :  { %v6982_v17 = vpop.f32.mrf.mxu0  ;;  %v14911_v15 = vld [vmem:[#allocation68 + $0x1c8] ss:$12 sps:$4 sm:$0xff]  }
 0xecf   :  { %v6998_v20 = vmax.f32 %v6981_v46, 0.0  ;;  %v6983_v22 = vadd.f32 %v6982_v17, %v6777_v31  ;;  %v7005_v37 = vadd.f32 %v6997_v23, %v6459_v13  ;;  %v14887_v13 = vld [vmem:[#allocation68 + $0x228] ss:$12 sps:$4 sm:$0xff]   ;;  %v14875_v17 = vld [vmem:[#allocation68 + $0x30] ss:$12 sps:$4 sm:$0xff]  }
 0xed0   :  { %v6984_v24 = vpop.f32.mrf.mxu0  ;;  %v14877_v46 = vld [vmem:[#allocation68 + $0x34] ss:$12 sps:$4 sm:$0xff]   ;;  %v14883_v23 = vld [vmem:[#allocation68 + $0x4] ss:$12 sps:$4 sm:$0xff]  }
 0xed1   :  { %v6999_v41 = vmax.f32 %v6983_v22, 0.0  ;;  %v6985_v27 = vadd.f32 %v6984_v24, %v6781_v11  ;;  %v7006_v30 = vadd.f32 %v6998_v20, %v6460_v5  ;;  %v7013_v16 = vmax.f32 %v7005_v37, 0.0  ;;  %v14880_v20 = vld [vmem:[#allocation68 + $0x1c] ss:$12 sps:$4 sm:$0xff]   ;;  %v14878_v22 = vld [vmem:[#allocation68 + $0x18] ss:$12 sps:$4 sm:$0xff]  }
 0xed2   :  { %v6988_v28 = vpop.f32.mrf.mxu0  ;;  %v14881_v24 = vld [vmem:[#allocation68] ss:$12 sps:$4 sm:$0xff]   ;;  %v14904_v37 = vld [vmem:[#allocation68 + $0x124] ss:$12 sps:$4 sm:$0xff]  }
 0xed3   :  { %v7007_v33 = vadd.f32 %v6999_v41, %v6461_v21  ;;  %v7000_v36 = vmax.f32 %v6985_v27, 0.0  ;;  %v6989_v35 = vadd.f32 %v6988_v28, %v6777_v31  ;;  %v7014_v32 = vmax.f32 %v7006_v30, 0.0  ;;  %v14886_v41 = vld [vmem:[#allocation68 + $0x16c] ss:$12 sps:$4 sm:$0xff]   ;;  %v14884_v27 = vld [vmem:[#allocation68 + $0x168] ss:$12 sps:$4 sm:$0xff]  }
 0xed4   :  { %v6990_v29 = vpop.f32.mrf.mxu0  ;;  %v14892_v28 = vld [vmem:[#allocation68 + $0x154] ss:$12 sps:$4 sm:$0xff]   ;;  %v14890_v30 = vld [vmem:[#allocation68 + $0x150] ss:$12 sps:$4 sm:$0xff]  }
 0xed5   :  { %v7008_v38 = vadd.f32 %v7000_v36, %v6462_v34  ;;  %v6991_v26 = vadd.f32 %v6990_v29, %v6781_v11  ;;  %v7015_v40 = vmax.f32 %v7007_v33, 0.0  ;;  %v7001_v5 = vmax.f32 %v6989_v35, 0.0  ;;  %v14895_v34 = vld [vmem:[#allocation68 + $0x214] ss:$12 sps:$4 sm:$0xff]   ;;  %v14898_v33 = vld [vmem:[#allocation68 + $0x13c] ss:$12 sps:$4 sm:$0xff]  }
 0xed6   :  { %v6992_v3 = vpop.f32.mrf.mxu0  ;;  %v14896_v36 = vld [vmem:[#allocation68 + $0x138] ss:$12 sps:$4 sm:$0xff]   ;;  %v14902_v35 = vld [vmem:[#allocation68 + $0x120] ss:$12 sps:$4 sm:$0xff]  }
 0xed7   :  { %v7016_v52 = vmax.f32 %v7008_v38, 0.0  ;;  %v7002_v25 = vmax.f32 %v6991_v26, 0.0  ;;  %v6993_v10 = vadd.f32 %v6992_v3, %v6777_v31  ;;  %v17137_v50 = vpack.c.bf16 %v7015_v40, %v7013_v16  ;;  %v14905_v31 = vld [vmem:[#allocation68 + $0x1e0] ss:$12 sps:$4 sm:$0xff]   ;;  %v14908_v38 = vld [vmem:[#allocation68 + $0x108] ss:$12 sps:$4 sm:$0xff]  }
 0xed8   :  { %v6994_v18 = vpop.f32.mrf.mxu0  ;;  %v7009_v39 = vadd.f32 %v7001_v5, %v6463_v8  ;;  %v14910_v29 = vld [vmem:[#allocation68 + $0x10c] ss:$12 sps:$4 sm:$0xff]   ;;  %v14916_v26 = vld [vmem:[#allocation68 + $0xf4] ss:$12 sps:$4 sm:$0xff]   ;;  %v14914_v40 = vld [vmem:[#allocation68 + $0xf0] ss:$12 sps:$4 sm:$0xff]  }
 0xed9   :  { %v17135_v21 = vpack.c.bf16 %v7016_v52, %v7014_v32  ;;  %v6995_v7 = vadd.f32 %v6994_v18, %v6781_v11  ;;  %v7003_v53 = vmax.f32 %v6993_v10, 0.0  ;;  %v7010_v54 = vadd.f32 %v7002_v25, %v6464_v0  ;;  %v14893_v0 = vld [vmem:[#allocation68 + $0x210] ss:$12 sps:$4 sm:$0xff]   ;;  %v14874_v11 = vld [vmem:[#allocation68 + $0x4c] ss:$12 sps:$4 sm:$0xff]  }
 0xeda   :  { %v7017_v47 = vmax.f32 %v7009_v39, 0.0  ;;  %v14919_v3 = vld [vmem:[#allocation68 + $0x1b4] ss:$12 sps:$4 sm:$0xff]   ;;  %v14917_v32 = vld [vmem:[#allocation68 + $0x1b0] ss:$12 sps:$4 sm:$0xff]  }
 0xedb   :  { %v7004_v55 = vmax.f32 %v6995_v7, 0.0  ;;  %7394 = vmatprep.mubr.bf16.mxu1 %v17135_v21  ;;  %7447 = vmatprep.mubr.bf16.mxu0 %v17135_v21  ;;  %v7011_v48 = vadd.f32 %v7003_v53, %v6465_v62  ;;  %v7018_v8 = vmax.f32 %v7010_v54, 0.0  ;;  %v14922_v52 = vld [vmem:[#allocation68 + $0xdc] ss:$12 sps:$4 sm:$0xff]   ;;  %v14920_v25 = vld [vmem:[#allocation68 + $0xd8] ss:$12 sps:$4 sm:$0xff]  }
 0xedc   :  { %7395 = vmatmul.mubr.bf16.vlgmr.msra.gmra.mxu1 %v17137_v50  ;;  %7448 = vmatmul.mubr.bf16.vlgmr.msra.gmra.mxu0 %v17137_v50  ;;  %v14925_v16 = vld [vmem:[#allocation68 + $0x19c] ss:$12 sps:$4 sm:$0xff]   ;;  %v14923_v5 = vld [vmem:[#allocation68 + $0x198] ss:$12 sps:$4 sm:$0xff]   ;;  %v14926_v18 = vld [vmem:[#allocation68 + $0xc0] ss:$12 sps:$4 sm:$0xff]  }
 0xedd   :  { %v7012_v57 = vadd.f32 %v7004_v55, %v6466_v1  ;;  %7980 = vmatpush1.bf16.msra.mxu0 %v14860_v19  ;;  %8033 = vmatpush1.bf16.msra.mxu1 %v14887_v13  ;;  %v7019_v59 = vmax.f32 %v7011_v48, 0.0  ;;  %v14871_v1 = vld [vmem:[#allocation68 + $0x64] ss:$12 sps:$4 sm:$0xff]   ;;  %v14929_v19 = vld [vmem:[#allocation68 + $0x180] ss:$12 sps:$4 sm:$0xff]  }
 0xede   :  { %7981 = vmatprep.subr.bf16.mxu0 %v14865_v45  ;;  %8034 = vmatprep.subr.bf16.mxu1 %v14895_v34  ;;  %v14928_v10 = vld [vmem:[#allocation68 + $0xc4] ss:$12 sps:$4 sm:$0xff]   ;;  %v17161_v45 = vsub.s32 2, %v16891_v58  ;;  %v7089_v34 = vld [vmem:[%s18067_s1] sm:$0x7] }
 0xedf   :  { %v7020_v42 = vmax.f32 %v7012_v57, 0.0  ;;  %v17153_v49 = vpack.c.bf16 %v7019_v59, %v7017_v47  ;;  %v14931_v7 = vld [vmem:[#allocation68 + $0x184] ss:$12 sps:$4 sm:$0xff]   ;;  %v7098_v39 = vrot.slane %v7089_v34, %v16894_v61 }
 0xee0   :  { %v14932_v13 = vld [vmem:[#allocation68 + $0x230] ss:$12 sps:$4 sm:$0xff]  }
 0xee1   :  { %v17151_v62 = vpack.c.bf16 %v7020_v42, %v7018_v8  ;;  %7982 = vmatpush1.bf16.msra.mxu0 %v14863_v51  ;;  %8035 = vmatpush1.bf16.msra.mxu1 %v14893_v0  ;;  %v14933_v53 = vld [vmem:[#allocation68 + $0x170] ss:$12 sps:$4 sm:$0xff]   ;;  %v7094_v51 = vrot.slane %v7089_v34, %v16897_v63  ;;  %v7102_v0 = vrot.slane %v7089_v34, %v17161_v45  ;;  %v14939_v34 = vld [vmem:[#allocation68 + $0x140] ss:$12 sps:$4 sm:$0xff]  }
 0xee2   :  { %7983 = vmatprep.subr.bf16.mxu0 %v14868_v43  ;;  %8036 = vmatprep.subr.bf16.mxu1 %v14901_v44 }
 0xee3   :  { %7404 = vmatprep.mubr.bf16.mxu1 %v17151_v62  ;;  %7455 = vmatprep.mubr.bf16.mxu0 %v17151_v62 }
 0xee4   :  { %7405 = vmatmul.mubr.bf16.gmra.mxu1 %v17153_v49  ;;  %7456 = vmatmul.mubr.bf16.gmra.mxu0 %v17153_v49 }
 0xee5   :  { %7984 = vmatpush1.bf16.msra.mxu0 %v14866_v4  ;;  %8037 = vmatpush1.bf16.msra.mxu1 %v14899_v6 }
 0xee6   :  { %7985 = vmatprep.subr.bf16.mxu0 %v14871_v1  ;;  %8038 = vmatprep.subr.bf16.mxu1 %v14907_v2 }
 0xee7   :  { %8064 = vmatprep.mubr.bf16.mxu1 %v17982_v60 }
 0xee9   :  { %7986 = vmatpush1.bf16.msra.mxu0 %v14869_v9  ;;  %8039 = vmatpush1.bf16.msra.mxu1 %v14905_v31 }
 0xeea   :  { %7987 = vmatprep.subr.bf16.mxu0 %v14874_v11  ;;  %8040 = vmatprep.subr.bf16.mxu1 %v14913_v12 }
 0xeed   :  { %7988 = vmatpush1.bf16.msra.mxu0 %v14872_v14  ;;  %8041 = vmatpush1.bf16.msra.mxu1 %v14911_v15 }
 0xeee   :  { %7989 = vmatprep.subr.bf16.mxu0 %v14877_v46  ;;  %8042 = vmatprep.subr.bf16.mxu1 %v14919_v3 }
 0xef1   :  { %7990 = vmatpush1.bf16.msra.mxu0 %v14875_v17  ;;  %8043 = vmatpush1.bf16.msra.mxu1 %v14917_v32 }
 0xef2   :  { %7991 = vmatprep.subr.bf16.mxu0 %v14880_v20  ;;  %8044 = vmatprep.subr.bf16.mxu1 %v14925_v16 }
 0xef5   :  { %7992 = vmatpush1.bf16.msra.mxu0 %v14878_v22  ;;  %8045 = vmatpush1.bf16.msra.mxu1 %v14923_v5  ;;  %v14937_v5 = vld [vmem:[#allocation68 + $0x98] ss:$12 sps:$4 sm:$0xff]  }
 0xef6   :  { %7993 = vmatprep.subr.bf16.mxu0 %v14883_v23  ;;  %8046 = vmatprep.subr.bf16.mxu1 %v14931_v7 }
 0xef9   :  { %7994 = vmatpush1.bf16.msra.mxu0 %v14881_v24  ;;  %8047 = vmatpush1.bf16.msra.mxu1 %v14929_v19 }
 0xefa   :  { %7995 = vmatprep.subr.bf16.mxu0 %v14886_v41  ;;  %13272 = vmatprep.subr.bf16.mxu1 %v14933_v53  ;;  %v14938_v53 = vld [vmem:[#allocation68 + $0x200] ss:$12 sps:$4 sm:$0xff]  }
 0xefd   :  { %7996 = vmatpush2.bf16.msra.mxu0 %v14884_v27 }
 0xefe   :  { %7997 = vmatprep.subr.bf16.mxu0 %v14892_v28 }
 0xf01   :  { %7998 = vmatpush2.bf16.msra.mxu0 %v14890_v30 }
 0xf02   :  { %7999 = vmatprep.subr.bf16.mxu0 %v14898_v33  ;;  %v14934_v33 = vld [vmem:[#allocation68 + $0xb0] ss:$12 sps:$4 sm:$0xff]  }
 0xf05   :  { %8000 = vmatpush2.bf16.msra.mxu0 %v14896_v36 }
 0xf06   :  { %8001 = vmatprep.subr.bf16.mxu0 %v14904_v37 }
 0xf09   :  { %8002 = vmatpush2.bf16.msra.mxu0 %v14902_v35 }
 0xf0a   :  { %8003 = vmatprep.subr.bf16.mxu0 %v14910_v29 }
 0xf0d   :  { %8004 = vmatpush2.bf16.msra.mxu0 %v14908_v38  ;;  %v14935_v38 = vld [vmem:[#allocation68 + $0x218] ss:$12 sps:$4 sm:$0xff]  }
 0xf0e   :  { %8005 = vmatprep.subr.bf16.mxu0 %v14916_v26  ;;  %v14936_v26 = vld [vmem:[#allocation68 + $0x158] ss:$12 sps:$4 sm:$0xff]  }
 0xf11   :  { %8006 = vmatpush2.bf16.msra.mxu0 %v14914_v40 }
 0xf12   :  { %8007 = vmatprep.subr.bf16.mxu0 %v14922_v52 }
 0xf15   :  { %8008 = vmatpush2.bf16.msra.mxu0 %v14920_v25 }
 0xf16   :  { %8009 = vmatprep.subr.bf16.mxu0 %v14928_v10 }
 0xf19   :  { %8010 = vmatpush2.bf16.msra.mxu0 %v14926_v18 }
 0xf1a   :  { %13574 = vmatprep.subr.bf16.mxu0 %v14932_v13 }
 0xf9c   :  { %v7396_v54 = vpop.f32.mrf.mxu1  ;;  %v13260_v55 = vpop.f32.mrf.mxu0 }
 0xf9d   :  { %v7397_v6 = vadd.f32 %v7396_v54, %v7094_v51 }
 0xf9e   :  { %v7398_v48 = vpop.f32.mrf.mxu1  ;;  %v13261_v57 = vpop.f32.mrf.mxu0 }
 0xf9f   :  { %v13262_v59 = vadd.f32 %v13261_v57, %v13260_v55  ;;  %v7399_v42 = vadd.f32 %v7398_v48, %v7098_v39  ;;  %v7464_v22 = vmax.f32 %v7397_v6, 0.0  ;;  %v14949_v6 = vld [vmem:[#allocation68 + $0x38] ss:$12 sps:$4 sm:$0xff]  }
 0xfa0   :  { %v7400_v43 = vpop.f32.mrf.mxu1  ;;  %v13263_v44 = vpop.f32.mrf.mxu0 }
 0xfa1   :  { %v7401_v8 = vadd.f32 %v7400_v43, %v7094_v51  ;;  %v7450_v1 = vadd.f32 %v13262_v59, %v7102_v0  ;;  %v7465_v46 = vmax.f32 %v7399_v42, 0.0  ;;  %v14942_v59 = vld [vmem:[#allocation68 + $0x128] ss:$12 sps:$4 sm:$0xff]   ;;  %v14946_v42 = vld [vmem:[#allocation68 + $0x50] ss:$12 sps:$4 sm:$0xff]  }
 0xfa2   :  { %v7402_v47 = vpop.f32.mrf.mxu1  ;;  %v13264_v4 = vpop.f32.mrf.mxu0  ;;  %v14943_v43 = vld [vmem:[#allocation68 + $0x68] ss:$12 sps:$4 sm:$0xff]  }
 0xfa3   :  { %v7403_v2 = vadd.f32 %v7402_v47, %v7098_v39  ;;  %v13265_v9 = vadd.f32 %v13264_v4, %v13263_v44  ;;  %v7467_v12 = vmax.f32 %v7401_v8, 0.0  ;;  %v7466_v23 = vmax.f32 %v7450_v1, 0.0  ;;  %v14944_v44 = vld [vmem:[#allocation68 + $0x1d0] ss:$12 sps:$4 sm:$0xff]   ;;  %v14947_v47 = vld [vmem:[#allocation68 + $0x1b8] ss:$12 sps:$4 sm:$0xff]  }
 0xfa4   :  { %v7406_v31 = vpop.f32.mrf.mxu1  ;;  %v13266_v11 = vpop.f32.mrf.mxu0  ;;  %v14945_v8 = vld [vmem:[#allocation68 + $0x110] ss:$12 sps:$4 sm:$0xff]   ;;  %v14948_v4 = vld [vmem:[#allocation68 + $0xf8] ss:$12 sps:$4 sm:$0xff]   ;;  %v14950_v1 = vld [vmem:[#allocation68 + $0x1a0] ss:$12 sps:$4 sm:$0xff]  }
 0xfa5   :  { %v7468_v14 = vmax.f32 %v7403_v2, 0.0  ;;  %v7453_v15 = vadd.f32 %v13265_v9, %v7102_v0  ;;  %v17167_v36 = vpack.c.bf16 %v7467_v12, %v7464_v22  ;;  %v7407_v40 = vadd.f32 %v7406_v31, %v7094_v51  ;;  %v14951_v2 = vld [vmem:[#allocation68 + $0xe0] ss:$12 sps:$4 sm:$0xff]   ;;  %v14953_v31 = vld [vmem:[#allocation68 + $0x188] ss:$12 sps:$4 sm:$0xff]  }
 0xfa6   :  { %v7408_v17 = vpop.f32.mrf.mxu1  ;;  %v13267_v20 = vpop.f32.mrf.mxu0  ;;  %v14952_v9 = vld [vmem:[#allocation68 + $0x20] ss:$12 sps:$4 sm:$0xff]   ;;  %v14955_v12 = vld [vmem:[#allocation68 + $0x8] ss:$12 sps:$4 sm:$0xff]  }
 0xfa7   :  { %v7469_v24 = vmax.f32 %v7453_v15, 0.0  ;;  %v13268_v41 = vadd.f32 %v13267_v20, %v13266_v11  ;;  %v7477_v30 = vpack.c.bf16 %v7468_v14, %v7465_v46  ;;  %v7409_v35 = vadd.f32 %v7408_v17, %v7098_v39  ;;  %v14954_v11 = vld [vmem:[#allocation68 + $0xc8] ss:$12 sps:$4 sm:$0xff]   ;;  %v14956_v14 = vld [vmem:[%s18068_s7 + $0x170] ss:$12 sps:$4 sm:$0xff]  }
 0xfa8   :  { %v7410_v27 = vpop.f32.mrf.mxu1  ;;  %v13269_v28 = vpop.f32.mrf.mxu0  ;;  %v7470_v54 = vmax.f32 %v7407_v40, 0.0  ;;  %v14959_v15 = vld [vmem:[%s18068_s7 + $0xac] ss:$12 sps:$4 sm:$0xff]   ;;  %v14960_v46 = vld [vmem:[%s18068_s7 + $0xb0] ss:$12 sps:$4 sm:$0xff]  }
 0xfa9   :  { %v7478_v37 = vpack.c.bf16 %v7469_v24, %v7466_v23  ;;  %v7411_v29 = vadd.f32 %v7410_v27, %v7094_v51  ;;  %8011 = vmatprep.mubr.bf16.mxu0 %v7477_v30  ;;  %v7458_v52 = vadd.f32 %v13268_v41, %v7102_v0  ;;  %v7471_v10 = vmax.f32 %v7409_v35, 0.0  ;;  %v14957_v17 = vld [vmem:[%s18068_s7 + $0xa8] ss:$12 sps:$4 sm:$0xff]   ;;  %v14961_v20 = vld [vmem:[%s18068_s7 + $0x158] ss:$12 sps:$4 sm:$0xff]  }
 0xfaa   :  { %v7412_v3 = vpop.f32.mrf.mxu1  ;;  %v13270_v32 = vpop.f32.mrf.mxu0  ;;  %8012 = vmatmul.mubr.bf16.vlgmr.msra.gmra.mxu0 %v17167_v36  ;;  %v14964_v22 = vld [vmem:[%s18068_s7 + $0x94] ss:$12 sps:$4 sm:$0xff]   ;;  %v14965_v23 = vld [vmem:[%s18068_s7 + $0x98] ss:$12 sps:$4 sm:$0xff]   ;;  %v14962_v24 = vld [vmem:[%s18068_s7 + $0x90] ss:$12 sps:$4 sm:$0xff]  }
 0xfab   :  { %v7413_v25 = vadd.f32 %v7412_v3, %v7098_v39  ;;  %v13271_v16 = vadd.f32 %v13270_v32, %v13269_v28  ;;  %8065 = vmatmul.mubr.bf16.vlgmr.msra.gmra.mxu1 %v7478_v37  ;;  %13575 = vmatpush3.bf16.msra.mxu0 %v14932_v13  ;;  %v7473_v18 = vmax.f32 %v7411_v29, 0.0  ;;  %v7472_v55 = vmax.f32 %v7458_v52, 0.0  ;;  %v14940_v13 = vld [vmem:[#allocation68 + $0x80] ss:$12 sps:$4 sm:$0xff]   ;;  %v14969_v27 = vld [vmem:[%s18068_s7 + $0x7c] ss:$12 sps:$4 sm:$0xff]  }
 0xfac   :  { %13273 = vmatpush3.bf16.msra.mxu1 %v14934_v33  ;;  %13576 = vmatprep.subr.bf16.mxu0 %v14935_v38  ;;  %v14966_v41 = vld [vmem:[%s18068_s7 + $0x140] ss:$12 sps:$4 sm:$0xff]   ;;  %v14971_v33 = vld [vmem:[%s18068_s7 + $0x128] ss:$12 sps:$4 sm:$0xff]   ;;  %v14976_v29 = vld [vmem:[%s18068_s7 + $0x110] ss:$12 sps:$4 sm:$0xff]  }
 0xfad   :  { %v7474_v7 = vmax.f32 %v7413_v25, 0.0  ;;  %v7461_v19 = vadd.f32 %v13271_v16, %v7102_v0  ;;  %13274 = vmatprep.subr.bf16.mxu1 %v14936_v26  ;;  %8074 = vmatprep.mubr.bf16.mxu1 %v17982_v60  ;;  %v17173_v57 = vpack.c.bf16 %v7473_v18, %v7470_v54  ;;  %v14941_v0 = vld [vmem:[#allocation68 + $0x1e8] ss:$12 sps:$4 sm:$0xff]   ;;  %v14980_v26 = vld [vmem:[%s18068_s7 + $0x50] ss:$12 sps:$4 sm:$0xff]  }
 0xfae   :  { %v14970_v28 = vld [vmem:[%s18068_s7 + $0x80] ss:$12 sps:$4 sm:$0xff]   ;;  %v14977_v40 = vld [vmem:[%s18068_s7 + $0x48] ss:$12 sps:$4 sm:$0xff]   ;;  %v14981_v3 = vld [vmem:[%s18068_s7 + $0xf8] ss:$12 sps:$4 sm:$0xff]  }
 0xfaf   :  { %v17171_v39 = vpack.c.bf16 %v7474_v7, %v7471_v10  ;;  %v7475_v48 = vmax.f32 %v7461_v19, 0.0  ;;  %13577 = vmatpush3.bf16.msra.mxu0 %v14935_v38  ;;  %v14972_v35 = vld [vmem:[%s18068_s7 + $0x60] ss:$12 sps:$4 sm:$0xff]   ;;  %v14985_v32 = vld [vmem:[%s18068_s7 + $0x38] ss:$12 sps:$4 sm:$0xff]  }
 0xfb0   :  { %13275 = vmatpush3.bf16.msra.mxu1 %v14937_v5  ;;  %13578 = vmatprep.subr.bf16.mxu0 %v14938_v53  ;;  %v14979_v38 = vld [vmem:[%s18068_s7 + $0x4c] ss:$12 sps:$4 sm:$0xff]   ;;  %v14982_v52 = vld [vmem:[%s18068_s7 + $0x30] ss:$12 sps:$4 sm:$0xff]   ;;  %v14991_v18 = vld [vmem:[%s18068_s7 + $0xc8] ss:$12 sps:$4 sm:$0xff]  }
 0xfb1   :  { %8021 = vmatprep.mubr.bf16.mxu0 %v17171_v39  ;;  %v7481_v51 = vpack.c.bf16 %v7475_v48, %v7472_v55  ;;  %13276 = vmatprep.subr.bf16.mxu1 %v14939_v34  ;;  %v14986_v25 = vld [vmem:[%s18068_s7 + $0xe0] ss:$12 sps:$4 sm:$0xff]   ;;  %v14989_v16 = vld [vmem:[%s18068_s7 + $0x1c] ss:$12 sps:$4 sm:$0xff]   ;;  %v14987_v10 = vld [vmem:[%s18068_s7 + $0x18] ss:$12 sps:$4 sm:$0xff]  }
 0xfb2   :  { %8022 = vmatmul.mubr.bf16.gmra.mxu0 %v17173_v57  ;;  %v14990_v5 = vld [vmem:[%s18068_s7 + $0x20] ss:$12 sps:$4 sm:$0xff]   ;;  %v14994_v7 = vld [vmem:[%s18068_s7 + $0x4] ss:$12 sps:$4 sm:$0xff]   ;;  %v14995_v19 = vld [vmem:[%s18068_s7 + $0x8] ss:$12 sps:$4 sm:$0xff]  }
 0xfb3   :  { %8075 = vmatmul.mubr.bf16.gmra.mxu1 %v7481_v51  ;;  %13579 = vmatpush3.bf16.msra.mxu0 %v14938_v53  ;;  %v14992_v53 = vld [vmem:[%s18068_s7] ss:$12 sps:$4 sm:$0xff]   ;;  %v14996_v54 = vld [vmem:[%s18068_s7 + $0x168] ss:$12 sps:$4 sm:$0xff]  }
 0xfb4   :  { %13277 = vmatpush3.bf16.msra.mxu1 %v14940_v13  ;;  %13590 = vmatprep.mubr.bf16.mxu0 %v7478_v37  ;;  %v14975_v37 = vld [vmem:[%s18068_s7 + $0x68] ss:$12 sps:$4 sm:$0xff]   ;;  %v14998_v34 = vld [vmem:[%s18068_s7 + $0x16c] ss:$12 sps:$4 sm:$0xff]  }
 0xfb5   :  { %8117 = vmatprep.mubr.bf16.mxu1 %v7477_v30  ;;  %13580 = vmatprep.subr.bf16.mxu0 %v14941_v0  ;;  %v14967_v30 = vld [vmem:[%s18068_s7 + $0x78] ss:$12 sps:$4 sm:$0xff]   ;;  %v15001_v55 = vld [vmem:[%s18068_s7 + $0x154] ss:$12 sps:$4 sm:$0xff]   ;;  %v15004_v48 = vld [vmem:[%s18068_s7 + $0x13c] ss:$12 sps:$4 sm:$0xff]  }
 0xfb6   :  { %13278 = vmatprep.subr.bf16.mxu1 %v14942_v59  ;;  %v15002_v13 = vld [vmem:[%s18068_s7 + $0x138] ss:$12 sps:$4 sm:$0xff]   ;;  %v15008_v59 = vld [vmem:[%s18068_s7 + $0x108] ss:$12 sps:$4 sm:$0xff]  }
 0xfb7   :  { %13581 = vmatpush3.bf16.msra.mxu0 %v14941_v0  ;;  %v15010_v0 = vld [vmem:[%s18068_s7 + $0x10c] ss:$12 sps:$4 sm:$0xff]  }
 0xfb8   :  { %13279 = vmatpush3.bf16.msra.mxu1 %v14943_v43  ;;  %13582 = vmatprep.subr.bf16.mxu0 %v14944_v44  ;;  %v15013_v43 = vld [vmem:[%s18068_s7 + $0xf4] ss:$12 sps:$4 sm:$0xff]  }
 0xfb9   :  { %13280 = vmatprep.subr.bf16.mxu1 %v14945_v8  ;;  %v15016_v8 = vld [vmem:[%s18068_s7 + $0xdc] ss:$12 sps:$4 sm:$0xff]  }
 0xfbb   :  { %13583 = vmatpush3.bf16.msra.mxu0 %v14944_v44  ;;  %v15011_v44 = vld [vmem:[%s18068_s7 + $0xf0] ss:$12 sps:$4 sm:$0xff]  }
 0xfbc   :  { %13281 = vmatpush3.bf16.msra.mxu1 %v14946_v42  ;;  %13584 = vmatprep.subr.bf16.mxu0 %v14947_v47  ;;  %v15014_v42 = vld [vmem:[%s18068_s7 + $0xd8] ss:$12 sps:$4 sm:$0xff]  }
 0xfbd   :  { %13282 = vmatprep.subr.bf16.mxu1 %v14948_v4  ;;  %v15017_v4 = vld [vmem:[%s18068_s7 + $0xc0] ss:$12 sps:$4 sm:$0xff]  }
 0xfbf   :  { %13585 = vmatpush3.bf16.msra.mxu0 %v14947_v47  ;;  %v15019_v47 = vld [vmem:[%s18068_s7 + $0xc4] ss:$12 sps:$4 sm:$0xff]  }
 0xfc0   :  { %13283 = vmatpush3.bf16.msra.mxu1 %v14949_v6  ;;  %13586 = vmatprep.subr.bf16.mxu0 %v14950_v1  ;;  %v15022_v6 = vld [vmem:[#allocation71 + $0xac] ss:$12 sps:$4 sm:$0xff]  }
 0xfc1   :  { %13284 = vmatprep.subr.bf16.mxu1 %v14951_v2  ;;  %v15025_v2 = vld [vmem:[#allocation71 + $0x22c] ss:$12 sps:$4 sm:$0xff]  }
 0xfc3   :  { %13587 = vmatpush3.bf16.msra.mxu0 %v14950_v1  ;;  %v15020_v1 = vld [vmem:[#allocation71 + $0xa8] ss:$12 sps:$4 sm:$0xff]  }
 0xfc4   :  { %13285 = vmatpush3.bf16.msra.mxu1 %v14952_v9  ;;  %13588 = vmatprep.subr.bf16.mxu0 %v14953_v31  ;;  %v15023_v9 = vld [vmem:[#allocation71 + $0x228] ss:$12 sps:$4 sm:$0xff]  }
 0xfc5   :  { %13286 = vmatprep.subr.bf16.mxu1 %v14954_v11  ;;  %v15026_v11 = vld [vmem:[#allocation71 + $0x90] ss:$12 sps:$4 sm:$0xff]  }
 0xfc7   :  { %13589 = vmatpush3.bf16.msra.mxu0 %v14953_v31  ;;  %v15028_v31 = vld [vmem:[#allocation71 + $0x94] ss:$12 sps:$4 sm:$0xff]  }
 0xfc8   :  { %13287 = vmatpush3.bf16.msra.mxu1 %v14955_v12  ;;  %13310 = vmatprep.subr.bf16.mxu0 %v14956_v14  ;;  %v15031_v12 = vld [vmem:[#allocation71 + $0x214] ss:$12 sps:$4 sm:$0xff]   ;;  %v15029_v14 = vld [vmem:[#allocation71 + $0x210] ss:$12 sps:$4 sm:$0xff]  }
 0xfc9   :  { %8532 = vmatprep.subr.bf16.mxu1 %v14959_v15  ;;  %v15037_v15 = vld [vmem:[#allocation71 + $0x1fc] ss:$12 sps:$4 sm:$0xff]  }
 0xfca   :  { %13591 = vmatmul.mubr.bf16.vlgmr.msra.gmra.mxu0 %v7481_v51  ;;  %v15005_v51 = vld [vmem:[%s18068_s7 + $0x120] ss:$12 sps:$4 sm:$0xff]  }
 0xfcb   :  { %8118 = vmatmul.mubr.bf16.vlgmr.msra.gmra.mxu1 %v17167_v36  ;;  %13311 = vmatpush3.bf16.msra.mxu0 %v14960_v46  ;;  %v14974_v36 = vld [vmem:[%s18068_s7 + $0x64] ss:$12 sps:$4 sm:$0xff]   ;;  %v15040_v46 = vld [vmem:[#allocation71 + $0x64] ss:$12 sps:$4 sm:$0xff]  }
 0xfcc   :  { %8617 = vmatprep.mubr.bf16.mxu0 %v17135_v21  ;;  %8125 = vmatprep.mubr.bf16.mxu1 %v17171_v39  ;;  %v14999_v39 = vld [vmem:[%s18068_s7 + $0x150] ss:$12 sps:$4 sm:$0xff]  }
 0xfcd   :  { %8533 = vmatpush1.bf16.msra.mxu1 %v14957_v17  ;;  %13312 = vmatprep.subr.bf16.mxu0 %v14961_v20  ;;  %v15043_v17 = vld [vmem:[#allocation71 + $0x1e4] ss:$12 sps:$4 sm:$0xff]   ;;  %v15038_v20 = vld [vmem:[#allocation71 + $0x60] ss:$12 sps:$4 sm:$0xff]  }
 0xfce   :  { %8534 = vmatprep.subr.bf16.mxu1 %v14964_v22  ;;  %v15041_v22 = vld [vmem:[#allocation71 + $0x1e0] ss:$12 sps:$4 sm:$0xff]  }
 0xfcf   :  { %13313 = vmatpush3.bf16.msra.mxu0 %v14965_v23  ;;  %v15046_v23 = vld [vmem:[#allocation71 + $0x4c] ss:$12 sps:$4 sm:$0xff]  }
 0xfd0   :  { %13314 = vmatprep.subr.bf16.mxu0 %v14966_v41  ;;  %v15049_v41 = vld [vmem:[#allocation71 + $0x1cc] ss:$12 sps:$4 sm:$0xff]  }
 0xfd1   :  { %8535 = vmatpush1.bf16.msra.mxu1 %v14962_v24  ;;  %v15044_v24 = vld [vmem:[#allocation71 + $0x48] ss:$12 sps:$4 sm:$0xff]  }
 0xfd2   :  { %8536 = vmatprep.subr.bf16.mxu1 %v14969_v27  ;;  %v15047_v27 = vld [vmem:[#allocation71 + $0x1c8] ss:$12 sps:$4 sm:$0xff]  }
 0xfd3   :  { %8126 = vmatmul.mubr.bf16.gmra.mxu1 %v17173_v57  ;;  %13315 = vmatpush3.bf16.msra.mxu0 %v14970_v28  ;;  %v15007_v57 = vld [vmem:[%s18068_s7 + $0x124] ss:$12 sps:$4 sm:$0xff]  }
 0xfd4   :  { %8564 = vmatprep.mubr.bf16.mxu1 %v17135_v21  ;;  %13316 = vmatprep.subr.bf16.mxu0 %v14971_v33  ;;  %v14984_v21 = vld [vmem:[%s18068_s7 + $0x34] ss:$12 sps:$4 sm:$0xff]   ;;  %v15052_v28 = vld [vmem:[#allocation71 + $0x34] ss:$12 sps:$4 sm:$0xff]  }
 0xfd5   :  { %8537 = vmatpush1.bf16.msra.mxu1 %v14967_v30  ;;  %v15050_v30 = vld [vmem:[#allocation71 + $0x30] ss:$12 sps:$4 sm:$0xff]   ;;  %v15055_v33 = vld [vmem:[#allocation71 + $0x1b4] ss:$12 sps:$4 sm:$0xff]  }
 0xfd6   :  { %8538 = vmatprep.subr.bf16.mxu1 %v14974_v36  ;;  %v15053_v36 = vld [vmem:[#allocation71 + $0x1b0] ss:$12 sps:$4 sm:$0xff]  }
 0xfd7   :  { %13317 = vmatpush3.bf16.msra.mxu0 %v14975_v37  ;;  %v15058_v37 = vld [vmem:[#allocation71 + $0x1c] ss:$12 sps:$4 sm:$0xff]  }
 0xfd8   :  { %13318 = vmatprep.subr.bf16.mxu0 %v14976_v29  ;;  %v15061_v29 = vld [vmem:[#allocation71 + $0x19c] ss:$12 sps:$4 sm:$0xff]  }
 0xfd9   :  { %8539 = vmatpush1.bf16.msra.mxu1 %v14972_v35  ;;  %v15056_v35 = vld [vmem:[#allocation71 + $0x18] ss:$12 sps:$4 sm:$0xff]  }
 0xfda   :  { %8540 = vmatprep.subr.bf16.mxu1 %v14979_v38  ;;  %v15059_v38 = vld [vmem:[#allocation71 + $0x198] ss:$12 sps:$4 sm:$0xff]  }
 0xfdb   :  { %13319 = vmatpush3.bf16.msra.mxu0 %v14980_v26  ;;  %v15064_v26 = vld [vmem:[#allocation71 + $0x4] ss:$12 sps:$4 sm:$0xff]  }
 0xfdc   :  { %13320 = vmatprep.subr.bf16.mxu0 %v14981_v3  ;;  %v15067_v3 = vld [vmem:[#allocation71 + $0x184] ss:$12 sps:$4 sm:$0xff]  }
 0xfdd   :  { %8541 = vmatpush1.bf16.msra.mxu1 %v14977_v40  ;;  %v15062_v40 = vld [vmem:[#allocation71] ss:$12 sps:$4 sm:$0xff]  }
 0xfde   :  { %8542 = vmatprep.subr.bf16.mxu1 %v14984_v21  ;;  %v15065_v21 = vld [vmem:[#allocation71 + $0x180] ss:$12 sps:$4 sm:$0xff]  }
 0xfdf   :  { %13321 = vmatpush3.bf16.msra.mxu0 %v14985_v32  ;;  %v15070_v32 = vld [vmem:[#allocation71 + $0x16c] ss:$12 sps:$4 sm:$0xff]  }
 0xfe0   :  { %13322 = vmatprep.subr.bf16.mxu0 %v14986_v25  ;;  %v15071_v25 = vld [vmem:[#allocation71 + $0x170] ss:$12 sps:$4 sm:$0xff]  }
 0xfe1   :  { %8543 = vmatpush1.bf16.msra.mxu1 %v14982_v52  ;;  %v15068_v52 = vld [vmem:[#allocation71 + $0x168] ss:$12 sps:$4 sm:$0xff]  }
 0xfe2   :  { %8544 = vmatprep.subr.bf16.mxu1 %v14989_v16  ;;  %v15075_v16 = vld [vmem:[#allocation71 + $0x154] ss:$12 sps:$4 sm:$0xff]  }
 0xfe3   :  { %13323 = vmatpush3.bf16.msra.mxu0 %v14990_v5  ;;  %v15073_v5 = vld [vmem:[#allocation71 + $0x150] ss:$12 sps:$4 sm:$0xff]  }
 0xfe4   :  { %13324 = vmatprep.subr.bf16.mxu0 %v14991_v18  ;;  %v15078_v18 = vld [vmem:[#allocation71 + $0x138] ss:$12 sps:$4 sm:$0xff]  }
 0xfe5   :  { %8545 = vmatpush1.bf16.msra.mxu1 %v14987_v10  ;;  %v15080_v10 = vld [vmem:[#allocation71 + $0x13c] ss:$12 sps:$4 sm:$0xff]  }
 0xfe6   :  { %8546 = vmatprep.subr.bf16.mxu1 %v14994_v7  ;;  %v15083_v7 = vld [vmem:[#allocation71 + $0x120] ss:$12 sps:$4 sm:$0xff]  }
 0xfe7   :  { %13325 = vmatpush3.bf16.msra.mxu0 %v14995_v19  ;;  %v15085_v19 = vld [vmem:[#allocation71 + $0x124] ss:$12 sps:$4 sm:$0xff]  }
 0xfe8   :  { %9161 = vmatprep.subr.bf16.mxu0 %v15022_v6 }
 0xfe9   :  { %8547 = vmatpush1.bf16.msra.mxu1 %v14992_v53  ;;  %v15088_v53 = vld [vmem:[#allocation71 + $0x108] ss:$12 sps:$4 sm:$0xff]  }
 0xfea   :  { %8548 = vmatprep.subr.bf16.mxu1 %v14998_v34  ;;  %8618 = vmatmul.mubr.bf16.vlgmr.msra.gmra.mxu0 %v17137_v50  ;;  %v15090_v34 = vld [vmem:[#allocation71 + $0x10c] ss:$12 sps:$4 sm:$0xff]  }
 0xfeb   :  { %8625 = vmatprep.mubr.bf16.mxu0 %v17151_v62  ;;  %9162 = vmatpush1.bf16.msra.mxu0 %v15020_v1 }
 0xfec   :  { %9163 = vmatprep.subr.bf16.mxu0 %v15028_v31 }
 0xfed   :  { %8549 = vmatpush2.bf16.msra.mxu1 %v14996_v54  ;;  %v15095_v54 = vld [vmem:[#allocation71 + $0xf4] ss:$12 sps:$4 sm:$0xff]  }
 0xfee   :  { %8550 = vmatprep.subr.bf16.mxu1 %v15001_v55  ;;  %v15093_v55 = vld [vmem:[#allocation71 + $0xf0] ss:$12 sps:$4 sm:$0xff]  }
 0xfef   :  { %9164 = vmatpush1.bf16.msra.mxu0 %v15026_v11 }
 0xff1   :  { %8551 = vmatpush2.bf16.msra.mxu1 %v14999_v39  ;;  %v15100_v39 = vld [vmem:[#allocation71 + $0xdc] ss:$12 sps:$4 sm:$0xff]  }
 0xff2   :  { %8552 = vmatprep.subr.bf16.mxu1 %v15004_v48  ;;  %8626 = vmatmul.mubr.bf16.gmra.mxu0 %v17153_v49  ;;  %v15098_v48 = vld [vmem:[#allocation71 + $0xd8] ss:$12 sps:$4 sm:$0xff]  }
 0xff5   :  { %8553 = vmatpush2.bf16.msra.mxu1 %v15002_v13  ;;  %v15105_v13 = vld [vmem:[#allocation71 + $0xc4] ss:$12 sps:$4 sm:$0xff]  }
 0xff6   :  { %8554 = vmatprep.subr.bf16.mxu1 %v15007_v57  ;;  %v15103_v57 = vld [vmem:[#allocation71 + $0xc0] ss:$12 sps:$4 sm:$0xff]  }
 0xff9   :  { %8555 = vmatpush2.bf16.msra.mxu1 %v15005_v51  ;;  %v17237_v51 = vld [vmem:[#allocation71 + $0x230] ss:$12 sps:$4 sm:$0xff]  }
 0xffa   :  { %8556 = vmatprep.subr.bf16.mxu1 %v15010_v0 }
 0xffd   :  { %8557 = vmatpush2.bf16.msra.mxu1 %v15008_v59 }
 0xffe   :  { %8558 = vmatprep.subr.bf16.mxu1 %v15013_v43 }
0x1001   :  { %8559 = vmatpush2.bf16.msra.mxu1 %v15011_v44 }
0x1002   :  { %8560 = vmatprep.subr.bf16.mxu1 %v15016_v8 }
0x1005   :  { %8561 = vmatpush2.bf16.msra.mxu1 %v15014_v42 }
0x1006   :  { %8562 = vmatprep.subr.bf16.mxu1 %v15019_v47 }
0x1009   :  { %8563 = vmatpush2.bf16.msra.mxu1 %v15017_v4 }
0x100a   :  { %9214 = vmatprep.subr.bf16.mxu1 %v15025_v2 }
0x100c   :  { %8565 = vmatmul.mubr.bf16.vlgmr.msra.gmra.mxu1 %v17137_v50  ;;  %v15032_v50 = vld [vmem:[#allocation71 + $0x78] ss:$12 sps:$4 sm:$0xff]  }
0x100d   :  { %8574 = vmatprep.mubr.bf16.mxu1 %v17151_v62  ;;  %9215 = vmatpush1.bf16.msra.mxu1 %v15023_v9  ;;  %v15034_v62 = vld [vmem:[#allocation71 + $0x7c] ss:$12 sps:$4 sm:$0xff]  }
0x100e   :  { %9216 = vmatprep.subr.bf16.mxu1 %v15031_v12  ;;  %9165 = vmatprep.subr.bf16.mxu0 %v15034_v62 }
0x100f   :  { %9166 = vmatpush1.bf16.msra.mxu0 %v15032_v50 }
0x1010   :  { %9167 = vmatprep.subr.bf16.mxu0 %v15040_v46 }
0x1011   :  { %9217 = vmatpush1.bf16.msra.mxu1 %v15029_v14 }
0x1012   :  { %9218 = vmatprep.subr.bf16.mxu1 %v15037_v15 }
0x1013   :  { %9168 = vmatpush1.bf16.msra.mxu0 %v15038_v20 }
0x1014   :  { %8575 = vmatmul.mubr.bf16.gmra.mxu1 %v17153_v49  ;;  %v15035_v49 = vld [vmem:[#allocation71 + $0x1f8] ss:$12 sps:$4 sm:$0xff]   ;;  %9169 = vmatprep.subr.bf16.mxu0 %v15046_v23 }
0x1015   :  { %9246 = vmatprep.mubr.bf16.mxu1 %v17982_v60  ;;  %9219 = vmatpush1.bf16.msra.mxu1 %v15035_v49 }
0x1016   :  { %9220 = vmatprep.subr.bf16.mxu1 %v15043_v17 }
0x1017   :  { %9170 = vmatpush1.bf16.msra.mxu0 %v15044_v24 }
0x1018   :  { %9171 = vmatprep.subr.bf16.mxu0 %v15052_v28 }
0x1019   :  { %9221 = vmatpush1.bf16.msra.mxu1 %v15041_v22  ;;  %v17273_v22 = vld [vmem:[%s18069_s23] sm:$0x7] }
0x101a   :  { %9222 = vmatprep.subr.bf16.mxu1 %v15049_v41  ;;  %v7591_v41 = vrot.slane %v17273_v22, %v17161_v45 }
0x101b   :  { %9172 = vmatpush1.bf16.msra.mxu0 %v15050_v30 }
0x101c   :  { %9173 = vmatprep.subr.bf16.mxu0 %v15058_v37 }
0x101d   :  { %9223 = vmatpush1.bf16.msra.mxu1 %v15047_v27 }
0x101e   :  { %9224 = vmatprep.subr.bf16.mxu1 %v15055_v33 }
0x101f   :  { %9174 = vmatpush1.bf16.msra.mxu0 %v15056_v35 }
0x1020   :  { %9175 = vmatprep.subr.bf16.mxu0 %v15064_v26 }
0x1021   :  { %9225 = vmatpush1.bf16.msra.mxu1 %v15053_v36  ;;  %v17277_v36 = vld [vmem:[#allocation70] sm:$0x7] }
0x1022   :  { %9226 = vmatprep.subr.bf16.mxu1 %v15061_v29 }
0x1023   :  { %9176 = vmatpush1.bf16.msra.mxu0 %v15062_v40 }
0x1024   :  { %9177 = vmatprep.subr.bf16.mxu0 %v15070_v32 }
0x1025   :  { %9227 = vmatpush1.bf16.msra.mxu1 %v15059_v38  ;;  %v8272_v38 = vrot.slane %v17277_v36, %v17161_v45 }
0x1026   :  { %9228 = vmatprep.subr.bf16.mxu1 %v15067_v3 }
0x1027   :  { %9178 = vmatpush2.bf16.msra.mxu0 %v15068_v52 }
0x1028   :  { %9179 = vmatprep.subr.bf16.mxu0 %v15075_v16 }
0x1029   :  { %9229 = vmatpush1.bf16.msra.mxu1 %v15065_v21 }
0x102a   :  { %13338 = vmatprep.subr.bf16.mxu1 %v15071_v25 }
0x102b   :  { %9180 = vmatpush2.bf16.msra.mxu0 %v15073_v5 }
0x102c   :  { %9181 = vmatprep.subr.bf16.mxu0 %v15080_v10 }
0x102f   :  { %9182 = vmatpush2.bf16.msra.mxu0 %v15078_v18 }
0x1030   :  { %9183 = vmatprep.subr.bf16.mxu0 %v15085_v19 }
0x1033   :  { %9184 = vmatpush2.bf16.msra.mxu0 %v15083_v7 }
0x1034   :  { %9185 = vmatprep.subr.bf16.mxu0 %v15090_v34 }
0x1037   :  { %9186 = vmatpush2.bf16.msra.mxu0 %v15088_v53 }
0x1038   :  { %9187 = vmatprep.subr.bf16.mxu0 %v15095_v54 }
0x103b   :  { %9188 = vmatpush2.bf16.msra.mxu0 %v15093_v55 }
0x103c   :  { %9189 = vmatprep.subr.bf16.mxu0 %v15100_v39 }
0x103f   :  { %9190 = vmatpush2.bf16.msra.mxu0 %v15098_v48 }
0x1040   :  { %9191 = vmatprep.subr.bf16.mxu0 %v15105_v13 }
0x1043   :  { %9192 = vmatpush2.bf16.msra.mxu0 %v15103_v57 }
0x1044   :  { %13594 = vmatprep.subr.bf16.mxu0 %v17237_v51 }
0x106a   :  { %v17246_v44 = vpop.f32.mrf.mxu0 }
0x106b   :  { %v17240_v0 = vpop.f32.mrf.mxu1 }
0x106c   :  { %v17250_v42 = vpop.f32.mrf.mxu0 }
0x106d   :  { %v17242_v59 = vpop.f32.mrf.mxu1 }
0x106e   :  { %v17254_v4 = vpop.f32.mrf.mxu0 }
0x106f   :  { %v17244_v43 = vpop.f32.mrf.mxu1 }
0x1070   :  { %v17258_v1 = vpop.f32.mrf.mxu0 }
0x1071   :  { %v17248_v8 = vpop.f32.mrf.mxu1 }
0x1072   :  { %v17262_v9 = vpop.f32.mrf.mxu0 }
0x1073   :  { %v17252_v47 = vpop.f32.mrf.mxu1 }
0x1074   :  { %v17266_v12 = vpop.f32.mrf.mxu0 }
0x1075   :  { %v17256_v6 = vpop.f32.mrf.mxu1 }
0x1076   :  { %v17268_v50 = vpop.f32.mrf.mxu0 }
0x1077   :  { %v17260_v2 = vpop.f32.mrf.mxu1 }
0x1078   :  { %v17270_v49 = vpop.f32.mrf.mxu0 }
0x1079   :  { %v17264_v31 = vpop.f32.mrf.mxu1 }
0x108a   :  { %v13592_v15 = vpop.f32.mrf.mxu0 }
0x108b   :  { %v13288_v11 = vpop.f32.mrf.mxu1 }
0x108c   :  { %v8168_v17 = vpop.f32.mrf.mxu0 }
0x108d   :  { %v13289_v14 = vpop.f32.mrf.mxu1 }
0x108e   :  { %v13593_v23 = vpop.f32.mrf.mxu0  ;;  %v13290_v27 = vadd.f32 %v13289_v14, %v13288_v11 }
0x108f   :  { %v13291_v62 = vpop.f32.mrf.mxu1 }
0x1090   :  { %v8171_v30 = vpop.f32.mrf.mxu0  ;;  %v8120_v37 = vadd.f32 %v13290_v27, %v7591_v41  ;;  %v15072_v27 = vld [vmem:[#allocation71 + $0xb0] ss:$12 sps:$4 sm:$0xff]  }
0x1091   :  { %v13292_v46 = vpop.f32.mrf.mxu1 }
0x1092   :  { %v13293_v28 = vadd.f32 %v13292_v46, %v13291_v62  ;;  %v8169_v3 = vadd.f32 %v8168_v17, %v8120_v37 }
0x1093   :  { %v13294_v20 = vpop.f32.mrf.mxu1 }
0x1094   :  { %v8123_v29 = vadd.f32 %v13293_v28, %v7591_v41  ;;  %v8185_v18 = vmax.f32 %v8169_v3, 0.0 }
0x1095   :  { %v13295_v24 = vpop.f32.mrf.mxu1 }
0x1096   :  { %v13296_v21 = vadd.f32 %v13295_v24, %v13294_v20  ;;  %v8172_v25 = vadd.f32 %v8171_v30, %v8123_v29  ;;  %v15076_v30 = vld [vmem:[#allocation71 + $0x158] ss:$12 sps:$4 sm:$0xff]  }
0x1097   :  { %v13297_v33 = vpop.f32.mrf.mxu1 }
0x1098   :  { %v8128_v7 = vadd.f32 %v13296_v21, %v7591_v41  ;;  %v8188_v34 = vmax.f32 %v8172_v25, 0.0  ;;  %v15082_v21 = vld [vmem:[#allocation71 + $0x80] ss:$12 sps:$4 sm:$0xff]   ;;  %v15087_v25 = vld [vmem:[#allocation71 + $0x68] ss:$12 sps:$4 sm:$0xff]  }
0x1099   :  { %v13298_v26 = vpop.f32.mrf.mxu1 }
0x109a   :  { %v13299_v16 = vadd.f32 %v13298_v26, %v13297_v33  ;;  %v8177_v13 = vadd.f32 %v13592_v15, %v8128_v7  ;;  %v15081_v26 = vld [vmem:[#allocation71 + $0x140] ss:$12 sps:$4 sm:$0xff]   ;;  %v15092_v7 = vld [vmem:[#allocation71 + $0x50] ss:$12 sps:$4 sm:$0xff]  }
0x109c   :  { %v8131_v54 = vadd.f32 %v13299_v16, %v7591_v41  ;;  %v8191_v28 = vmax.f32 %v8177_v13, 0.0  ;;  %v7583_v16 = vrot.slane %v17273_v22, %v16897_v63 }
0x109e   :  { %v8180_v62 = vadd.f32 %v13593_v23, %v8131_v54  ;;  %v17318_v54 = vrot.slane %v17277_v36, %v16894_v61 }
0x10a0   :  { %v8194_v33 = vmax.f32 %v8180_v62, 0.0 }
0x10aa   :  { %v13326_v35 = vpop.f32.mrf.mxu0 }
0x10ac   :  { %v13327_v40 = vpop.f32.mrf.mxu0 }
0x10ad   :  { %v13328_v32 = vadd.f32 %v13327_v40, %v13326_v35  ;;  %v15077_v35 = vld [vmem:[#allocation71 + $0x98] ss:$12 sps:$4 sm:$0xff]  }
0x10ae   :  { %v13329_v52 = vpop.f32.mrf.mxu0 }
0x10af   :  { %v8620_v5 = vadd.f32 %v13328_v32, %v8272_v38  ;;  %v15086_v32 = vld [vmem:[#allocation71 + $0x128] ss:$12 sps:$4 sm:$0xff]  }
0x10b0   :  { %v13330_v10 = vpop.f32.mrf.mxu0 }
0x10b1   :  { %v13331_v19 = vadd.f32 %v13330_v10, %v13329_v52  ;;  %v17281_v55 = vadd.f32 %v8620_v5, %v8185_v18  ;;  %v7587_v52 = vrot.slane %v17273_v22, %v16894_v61  ;;  %v15091_v5 = vld [vmem:[#allocation71 + $0x110] ss:$12 sps:$4 sm:$0xff]   ;;  %v8018_v18 = vadd.f32 %v17254_v4, %v7583_v16 }
0x10b2   :  { %v13332_v53 = vpop.f32.mrf.mxu0 }
0x10b3   :  { %v8623_v39 = vadd.f32 %v13331_v19, %v8272_v38  ;;  %v8648_v46 = vmax.f32 %v17281_v55, 0.0  ;;  %v8016_v10 = vadd.f32 %v17250_v42, %v7587_v52  ;;  %v8014_v19 = vadd.f32 %v17246_v44, %v7583_v16 }
0x10b4   :  { %v13333_v48 = vpop.f32.mrf.mxu0  ;;  %v8071_v4 = vadd.f32 %v17244_v43, %v8018_v18 }
0x10b5   :  { %v17283_v57 = vadd.f32 %v8623_v39, %v8188_v34  ;;  %v13334_v11 = vadd.f32 %v13333_v48, %v13332_v53  ;;  %v8020_v53 = vadd.f32 %v17258_v1, %v7587_v52  ;;  %v15096_v34 = vld [vmem:[#allocation71 + $0xf8] ss:$12 sps:$4 sm:$0xff]   ;;  %v8069_v22 = vadd.f32 %v17242_v59, %v8016_v10 }
0x10b6   :  { %v13335_v14 = vpop.f32.mrf.mxu0  ;;  %v8264_v39 = vrot.slane %v17277_v36, %v16897_v63  ;;  %v15097_v48 = vld [vmem:[#allocation71 + $0x38] ss:$12 sps:$4 sm:$0xff]   ;;  %v8067_v44 = vadd.f32 %v17240_v0, %v8014_v19  ;;  %v8026_v36 = vadd.f32 %v17266_v12, %v7587_v52 }
0x10b7   :  { %v8651_v17 = vmax.f32 %v17283_v57, 0.0  ;;  %v8628_v20 = vadd.f32 %v13334_v11, %v8272_v38  ;;  %v8073_v1 = vadd.f32 %v17248_v8, %v8020_v53  ;;  %v15101_v11 = vld [vmem:[#allocation71 + $0xe0] ss:$12 sps:$4 sm:$0xff]   ;;  %v8184_v62 = vmax.f32 %v8069_v22, 0.0 }
0x10b8   :  { %v13336_v24 = vpop.f32.mrf.mxu0  ;;  %v8024_v8 = vadd.f32 %v17262_v9, %v7583_v16  ;;  %v15107_v9 = vld [vmem:[#allocation71 + $0x8] ss:$12 sps:$4 sm:$0xff]   ;;  %v15118_v10 = vld [vmem:[#allocation73 + $0xac] ss:$12 sps:$4 sm:$0xff]  }
0x10b9   :  { %v17291_v41 = vpack.c.bf16 %v8651_v17, %v8648_v46  ;;  %v13337_v15 = vadd.f32 %v13336_v24, %v13335_v14  ;;  %v17293_v37 = vadd.f32 %v8628_v20, %v8191_v28  ;;  %v8186_v24 = vmax.f32 %v8071_v4, 0.0  ;;  %v15102_v28 = vld [vmem:[#allocation71 + $0x20] ss:$12 sps:$4 sm:$0xff]  }
0x10ba   :  { %v8187_v0 = vmax.f32 %v8073_v1, 0.0 }
0x10bb   :  { %v8631_v23 = vadd.f32 %v13337_v15, %v8272_v38  ;;  %9247 = vmatmul.mubr.bf16.vlgmr.msra.gmra.mxu1 %v17291_v41  ;;  %v17981_v40 = vmax.f32 %v17293_v37, 0.0  ;;  %v8183_v15 = vmax.f32 %v8067_v44, 0.0  ;;  %v18072_v55 = vmax.f32 %v17293_v37, 0.0 }
0x10bc   :  { %13339 = vmatpush3.bf16.msra.mxu1 %v15072_v27  ;;  %9256 = vmatprep.mubr.bf16.mxu1 %v17982_v60  ;;  %v8028_v27 = vadd.f32 %v17268_v50, %v7583_v16  ;;  %v8077_v16 = vadd.f32 %v17252_v47, %v8024_v8 }
0x10bd   :  { %v17297_v29 = vadd.f32 %v8631_v23, %v8194_v33  ;;  %13340 = vmatprep.subr.bf16.mxu1 %v15076_v30  ;;  %v15106_v33 = vld [vmem:[#allocation71 + $0xc8] ss:$12 sps:$4 sm:$0xff]   ;;  %v8030_v23 = vadd.f32 %v17270_v49, %v7587_v52 }
0x10bf   :  { %v17980_v3 = vmax.f32 %v17297_v29, 0.0  ;;  %v8083_v18 = vadd.f32 %v17264_v31, %v8030_v23  ;;  %v15116_v31 = vld [vmem:[#allocation73 + $0xa8] ss:$12 sps:$4 sm:$0xff]   ;;  %v15127_v23 = vld [vmem:[#allocation73 + $0x64] ss:$12 sps:$4 sm:$0xff]  }
0x10c0   :  { %13341 = vmatpush3.bf16.msra.mxu1 %v15077_v35 }
0x10c1   :  { %v17305_v38 = vpack.c.bf16 %v17980_v3, %v17981_v40  ;;  %13342 = vmatprep.subr.bf16.mxu1 %v15081_v26 }
0x10c3   :  { %9257 = vmatmul.mubr.bf16.gmra.mxu1 %v17305_v38 }
0x10c4   :  { %13343 = vmatpush3.bf16.msra.mxu1 %v15082_v21 }
0x10c5   :  { %13344 = vmatprep.subr.bf16.mxu1 %v15086_v32  ;;  %v8079_v32 = vadd.f32 %v17256_v6, %v8026_v36  ;;  %v15119_v36 = vld [vmem:[#allocation73 + $0x90] ss:$12 sps:$4 sm:$0xff]  }
0x10c7   :  { %v8190_v22 = vmax.f32 %v8079_v32, 0.0  ;;  %v15130_v32 = vld [vmem:[#allocation73 + $0x4c] ss:$12 sps:$4 sm:$0xff]  }
0x10c8   :  { %13345 = vmatpush3.bf16.msra.mxu1 %v15087_v25  ;;  %v8081_v25 = vadd.f32 %v17260_v2, %v8028_v27 }
0x10c9   :  { %13346 = vmatprep.subr.bf16.mxu1 %v15091_v5 }
0x10cc   :  { %v8566_v42 = vpop.f32.mrf.mxu1  ;;  %13347 = vmatpush3.bf16.msra.mxu1 %v15092_v7 }
0x10cd   :  { %13348 = vmatprep.subr.bf16.mxu1 %v15096_v34  ;;  %v8567_v20 = vadd.f32 %v8566_v42, %v8264_v39  ;;  %v8192_v42 = vmax.f32 %v8081_v25, 0.0  ;;  %v15113_v25 = vld [vmem:[#allocation71 + $0x1b8] ss:$12 sps:$4 sm:$0xff]  }
0x10ce   :  { %v8568_v13 = vpop.f32.mrf.mxu1 }
0x10cf   :  { %v8569_v14 = vadd.f32 %v8568_v13, %v17318_v54  ;;  %v17336_v21 = vadd.f32 %v8567_v20, %v8183_v15  ;;  %v15109_v13 = vld [vmem:[#allocation71 + $0x218] ss:$12 sps:$4 sm:$0xff]  }
0x10d0   :  { %v8570_v59 = vpop.f32.mrf.mxu1  ;;  %13349 = vmatpush3.bf16.msra.mxu1 %v15097_v48  ;;  %v8189_v48 = vmax.f32 %v8077_v16, 0.0  ;;  %v15114_v16 = vld [vmem:[#allocation71 + $0x1a0] ss:$12 sps:$4 sm:$0xff]  }
0x10d1   :  { %v8571_v43 = vadd.f32 %v8570_v59, %v8264_v39  ;;  %13350 = vmatprep.subr.bf16.mxu1 %v15101_v11  ;;  %v17331_v35 = vadd.f32 %v8569_v14, %v8184_v62  ;;  %v8646_v2 = vmax.f32 %v17336_v21, 0.0  ;;  %v15121_v11 = vld [vmem:[#allocation73 + $0x94] ss:$12 sps:$4 sm:$0xff]   ;;  %v8193_v14 = vmax.f32 %v8083_v18, 0.0  ;;  %v15134_v18 = vld [vmem:[#allocation73 + $0x18] ss:$12 sps:$4 sm:$0xff]  }
0x10d2   :  { %v8572_v30 = vpop.f32.mrf.mxu1 }
0x10d3   :  { %v17333_v26 = vadd.f32 %v8571_v43, %v8186_v24  ;;  %v8573_v12 = vadd.f32 %v8572_v30, %v17318_v54  ;;  %v8647_v7 = vmax.f32 %v17331_v35, 0.0  ;;  %v15110_v43 = vld [vmem:[#allocation71 + $0x200] ss:$12 sps:$4 sm:$0xff]   ;;  %v15111_v30 = vld [vmem:[#allocation71 + $0x1e8] ss:$12 sps:$4 sm:$0xff]  }
0x10d4   :  { %v8576_v50 = vpop.f32.mrf.mxu1  ;;  %13351 = vmatpush3.bf16.msra.mxu1 %v15102_v28  ;;  %v15124_v28 = vld [vmem:[#allocation73 + $0x7c] ss:$12 sps:$4 sm:$0xff]  }
0x10d5   :  { %v17340_v5 = vadd.f32 %v8573_v12, %v8187_v0  ;;  %v8649_v49 = vmax.f32 %v17333_v26, 0.0  ;;  %13352 = vmatprep.subr.bf16.mxu1 %v15106_v33  ;;  %v8577_v53 = vadd.f32 %v8576_v50, %v8264_v39  ;;  %v15122_v33 = vld [vmem:[#allocation73 + $0x78] ss:$12 sps:$4 sm:$0xff]   ;;  %v15112_v12 = vld [vmem:[#allocation71 + $0x1d0] ss:$12 sps:$4 sm:$0xff]  }
0x10d6   :  { %v8578_v52 = vpop.f32.mrf.mxu1  ;;  %v15125_v50 = vld [vmem:[#allocation73 + $0x60] ss:$12 sps:$4 sm:$0xff]  }
0x10d7   :  { %v8650_v19 = vmax.f32 %v17340_v5, 0.0  ;;  %v8579_v6 = vadd.f32 %v8578_v52, %v17318_v54  ;;  %v8658_v44 = vpack.c.bf16 %v8649_v49, %v8646_v2  ;;  %v17362_v59 = vadd.f32 %v8577_v53, %v8189_v48  ;;  %v15115_v52 = vld [vmem:[#allocation71 + $0x188] ss:$12 sps:$4 sm:$0xff]   ;;  %v15137_v53 = vld [vmem:[#allocation73] ss:$12 sps:$4 sm:$0xff]  }
0x10d8   :  { %v8580_v34 = vpop.f32.mrf.mxu1  ;;  %13353 = vmatpush3.bf16.msra.mxu1 %v15107_v9  ;;  %v15128_v9 = vld [vmem:[#allocation73 + $0x48] ss:$12 sps:$4 sm:$0xff]   ;;  %v15151_v48 = vld [vmem:[#allocation73 + $0x124] ss:$12 sps:$4 sm:$0xff]  }
0x10d9   :  { %v8581_v47 = vadd.f32 %v8580_v34, %v8264_v39  ;;  %v8659_v4 = vpack.c.bf16 %v8650_v19, %v8647_v7  ;;  %9880 = vmatprep.subr.bf16.mxu1 %v15118_v10  ;;  %v17357_v62 = vadd.f32 %v8579_v6, %v8190_v22  ;;  %v8652_v0 = vmax.f32 %v17362_v59, 0.0  ;;  %v15133_v10 = vld [vmem:[#allocation73 + $0x34] ss:$12 sps:$4 sm:$0xff]   ;;  %v15136_v6 = vld [vmem:[#allocation73 + $0x1c] ss:$12 sps:$4 sm:$0xff]  }
0x10da   :  { %v8582_v1 = vpop.f32.mrf.mxu1  ;;  %v15139_v34 = vld [vmem:[#allocation73 + $0x4] ss:$12 sps:$4 sm:$0xff]   ;;  %v15140_v22 = vld [vmem:[#allocation73 + $0x168] ss:$12 sps:$4 sm:$0xff]  }
0x10db   :  { %v17359_v39 = vadd.f32 %v8581_v47, %v8192_v42  ;;  %v8583_v20 = vadd.f32 %v8582_v1, %v17318_v54  ;;  %9193 = vmatprep.mubr.bf16.mxu0 %v8659_v4  ;;  %9299 = vmatprep.mubr.bf16.mxu1 %v8659_v4  ;;  %v8653_v54 = vmax.f32 %v17357_v62, 0.0  ;;  %v15142_v42 = vld [vmem:[#allocation73 + $0x16c] ss:$12 sps:$4 sm:$0xff]   ;;  %v15145_v47 = vld [vmem:[#allocation73 + $0x154] ss:$12 sps:$4 sm:$0xff]  }
0x10dc   :  { %9194 = vmatmul.mubr.bf16.vlgmr.msra.gmra.mxu0 %v8658_v44  ;;  %9300 = vmatmul.mubr.bf16.vlgmr.msra.gmra.mxu1 %v8658_v44  ;;  %v15148_v4 = vld [vmem:[#allocation73 + $0x13c] ss:$12 sps:$4 sm:$0xff]   ;;  %v15149_v44 = vld [vmem:[#allocation73 + $0x120] ss:$12 sps:$4 sm:$0xff]  }
0x10dd   :  { %v17364_v24 = vadd.f32 %v8583_v20, %v8193_v14  ;;  %13595 = vmatpush3.bf16.msra.mxu0 %v17237_v51  ;;  %9881 = vmatpush1.bf16.msra.mxu1 %v15116_v31  ;;  %v8655_v27 = vmax.f32 %v17359_v39, 0.0  ;;  %v15146_v31 = vld [vmem:[#allocation73 + $0x138] ss:$12 sps:$4 sm:$0xff]   ;;  %v15155_v14 = vld [vmem:[#allocation73 + $0xf0] ss:$12 sps:$4 sm:$0xff]  }
0x10de   :  { %13596 = vmatprep.subr.bf16.mxu0 %v15109_v13  ;;  %9882 = vmatprep.subr.bf16.mxu1 %v15121_v11  ;;  %v15154_v1 = vld [vmem:[#allocation73 + $0x10c] ss:$12 sps:$4 sm:$0xff]   ;;  %v15157_v11 = vld [vmem:[#allocation73 + $0xf4] ss:$12 sps:$4 sm:$0xff]   ;;  %v15160_v20 = vld [vmem:[#allocation73 + $0xdc] ss:$12 sps:$4 sm:$0xff]  }
0x10df   :  { %v8656_v15 = vmax.f32 %v17364_v24, 0.0  ;;  %v8661_v8 = vpack.c.bf16 %v8655_v27, %v8652_v0 }
0x10e1   :  { %13597 = vmatpush3.bf16.msra.mxu0 %v15109_v13  ;;  %v8662_v51 = vpack.c.bf16 %v8656_v15, %v8653_v54  ;;  %9883 = vmatpush1.bf16.msra.mxu1 %v15119_v36  ;;  %v15152_v13 = vld [vmem:[#allocation73 + $0x108] ss:$12 sps:$4 sm:$0xff]   ;;  %v15158_v36 = vld [vmem:[#allocation73 + $0xd8] ss:$12 sps:$4 sm:$0xff]  }
0x10e2   :  { %13598 = vmatprep.subr.bf16.mxu0 %v15110_v43  ;;  %9884 = vmatprep.subr.bf16.mxu1 %v15124_v28  ;;  %v15166_v28 = vld [vmem:[#allocation73 + $0x22c] ss:$12 sps:$4 sm:$0xff]  }
0x10e3   :  { %9203 = vmatprep.mubr.bf16.mxu0 %v8662_v51  ;;  %9307 = vmatprep.mubr.bf16.mxu1 %v8662_v51  ;;  %v15161_v51 = vld [vmem:[#allocation73 + $0xc0] ss:$12 sps:$4 sm:$0xff]  }
0x10e4   :  { %9204 = vmatmul.mubr.bf16.gmra.mxu0 %v8661_v8  ;;  %9308 = vmatmul.mubr.bf16.gmra.mxu1 %v8661_v8  ;;  %v15164_v8 = vld [vmem:[#allocation73 + $0x228] ss:$12 sps:$4 sm:$0xff]  }
0x10e5   :  { %13599 = vmatpush3.bf16.msra.mxu0 %v15110_v43  ;;  %13610 = vmatprep.mubr.bf16.mxu0 %v17291_v41  ;;  %v15131_v41 = vld [vmem:[#allocation73 + $0x30] ss:$12 sps:$4 sm:$0xff]  }
0x10e6   :  { %13600 = vmatprep.subr.bf16.mxu0 %v15111_v30  ;;  %9885 = vmatpush1.bf16.msra.mxu1 %v15122_v33  ;;  %v15163_v43 = vld [vmem:[#allocation73 + $0xc4] ss:$12 sps:$4 sm:$0xff]  }
0x10e7   :  { %9886 = vmatprep.subr.bf16.mxu1 %v15127_v23  ;;  %v17382_v33 = vld [vmem:[#allocation73 + $0x230] ss:$12 sps:$4 sm:$0xff]  }
0x10e8   :  { %v15167_v23 = vld [vmem:[#allocation73 + $0x210] ss:$12 sps:$4 sm:$0xff]  }
0x10e9   :  { %13601 = vmatpush3.bf16.msra.mxu0 %v15111_v30  ;;  %v15169_v30 = vld [vmem:[#allocation73 + $0x214] ss:$12 sps:$4 sm:$0xff]  }
0x10ea   :  { %13602 = vmatprep.subr.bf16.mxu0 %v15112_v12  ;;  %9887 = vmatpush1.bf16.msra.mxu1 %v15125_v50  ;;  %v15171_v50 = vld [vmem:[#allocation73 + $0x1f8] ss:$12 sps:$4 sm:$0xff]  }
0x10eb   :  { %9888 = vmatprep.subr.bf16.mxu1 %v15130_v32  ;;  %v15177_v32 = vld [vmem:[#allocation73 + $0x1e4] ss:$12 sps:$4 sm:$0xff]  }
0x10ed   :  { %13603 = vmatpush3.bf16.msra.mxu0 %v15112_v12  ;;  %v15173_v12 = vld [vmem:[#allocation73 + $0x1fc] ss:$12 sps:$4 sm:$0xff]  }
0x10ee   :  { %13604 = vmatprep.subr.bf16.mxu0 %v15113_v25  ;;  %9889 = vmatpush1.bf16.msra.mxu1 %v15128_v9  ;;  %v15179_v9 = vld [vmem:[#allocation73 + $0x1c8] ss:$12 sps:$4 sm:$0xff]  }
0x10ef   :  { %9890 = vmatprep.subr.bf16.mxu1 %v15133_v10  ;;  %v15189_v10 = vld [vmem:[#allocation73 + $0x19c] ss:$12 sps:$4 sm:$0xff]  }
0x10f1   :  { %13605 = vmatpush3.bf16.msra.mxu0 %v15113_v25  ;;  %v15175_v25 = vld [vmem:[#allocation73 + $0x1e0] ss:$12 sps:$4 sm:$0xff]  }
0x10f2   :  { %13606 = vmatprep.subr.bf16.mxu0 %v15114_v16  ;;  %9891 = vmatpush1.bf16.msra.mxu1 %v15131_v41  ;;  %v15183_v41 = vld [vmem:[#allocation73 + $0x1b0] ss:$12 sps:$4 sm:$0xff]  }
0x10f3   :  { %9892 = vmatprep.subr.bf16.mxu1 %v15136_v6  ;;  %v15193_v6 = vld [vmem:[#allocation73 + $0x184] ss:$12 sps:$4 sm:$0xff]  }
0x10f5   :  { %13607 = vmatpush3.bf16.msra.mxu0 %v15114_v16  ;;  %v15181_v16 = vld [vmem:[#allocation73 + $0x1cc] ss:$12 sps:$4 sm:$0xff]  }
0x10f6   :  { %13608 = vmatprep.subr.bf16.mxu0 %v15115_v52  ;;  %9893 = vmatpush1.bf16.msra.mxu1 %v15134_v18  ;;  %v15187_v18 = vld [vmem:[#allocation73 + $0x198] ss:$12 sps:$4 sm:$0xff]  }
0x10f7   :  { %9894 = vmatprep.subr.bf16.mxu1 %v15139_v34  ;;  %v15195_v34 = vld [vmem:[#allocation73 + $0x170] ss:$12 sps:$4 sm:$0xff]  }
0x10f9   :  { %13609 = vmatpush3.bf16.msra.mxu0 %v15115_v52  ;;  %v15185_v52 = vld [vmem:[#allocation73 + $0x1b4] ss:$12 sps:$4 sm:$0xff]  }
0x10fa   :  { %9895 = vmatpush1.bf16.msra.mxu1 %v15137_v53  ;;  %9933 = vmatprep.subr.bf16.mxu0 %v15166_v28  ;;  %v15191_v53 = vld [vmem:[#allocation73 + $0x180] ss:$12 sps:$4 sm:$0xff]  }
0x10fb   :  { %9896 = vmatprep.subr.bf16.mxu1 %v15142_v42 }
0x10fc   :  { %13611 = vmatmul.mubr.bf16.vlgmr.msra.gmra.mxu0 %v17305_v38  ;;  %v15143_v38 = vld [vmem:[#allocation73 + $0x150] ss:$12 sps:$4 sm:$0xff]  }
0x10fd   :  { %9965 = vmatprep.mubr.bf16.mxu0 %v17982_v60  ;;  %9934 = vmatpush1.bf16.msra.mxu0 %v15164_v8 }
0x10fe   :  { %9897 = vmatpush2.bf16.msra.mxu1 %v15140_v22  ;;  %9935 = vmatprep.subr.bf16.mxu0 %v15169_v30 }
0x10ff   :  { %9898 = vmatprep.subr.bf16.mxu1 %v15145_v47 }
0x1101   :  { %9936 = vmatpush1.bf16.msra.mxu0 %v15167_v23 }
0x1102   :  { %9899 = vmatpush2.bf16.msra.mxu1 %v15143_v38  ;;  %9937 = vmatprep.subr.bf16.mxu0 %v15173_v12 }
0x1103   :  { %9900 = vmatprep.subr.bf16.mxu1 %v15148_v4 }
0x1105   :  { %9938 = vmatpush1.bf16.msra.mxu0 %v15171_v50 }
0x1106   :  { %9901 = vmatpush2.bf16.msra.mxu1 %v15146_v31  ;;  %9939 = vmatprep.subr.bf16.mxu0 %v15177_v32 }
0x1107   :  { %9902 = vmatprep.subr.bf16.mxu1 %v15151_v48 }
0x1109   :  { %9940 = vmatpush1.bf16.msra.mxu0 %v15175_v25 }
0x110a   :  { %9903 = vmatpush2.bf16.msra.mxu1 %v15149_v44  ;;  %9941 = vmatprep.subr.bf16.mxu0 %v15181_v16  ;;  %v17386_v44 = vld [vmem:[%s18070_s13] sm:$0x7] }
0x110b   :  { %9904 = vmatprep.subr.bf16.mxu1 %v15154_v1 }
0x110d   :  { %9942 = vmatpush1.bf16.msra.mxu0 %v15179_v9 }
0x110e   :  { %9905 = vmatpush2.bf16.msra.mxu1 %v15152_v13  ;;  %9943 = vmatprep.subr.bf16.mxu0 %v15185_v52  ;;  %v8769_v13 = vrot.slane %v17386_v44, %v16894_v61 }
0x110f   :  { %9906 = vmatprep.subr.bf16.mxu1 %v15157_v11  ;;  %v8765_v11 = vrot.slane %v17386_v44, %v16897_v63 }
0x1111   :  { %9944 = vmatpush1.bf16.msra.mxu0 %v15183_v41 }
0x1112   :  { %9907 = vmatpush2.bf16.msra.mxu1 %v15155_v14  ;;  %9945 = vmatprep.subr.bf16.mxu0 %v15189_v10 }
0x1113   :  { %9908 = vmatprep.subr.bf16.mxu1 %v15160_v20 }
0x1115   :  { %9946 = vmatpush1.bf16.msra.mxu0 %v15187_v18 }
0x1116   :  { %9909 = vmatpush2.bf16.msra.mxu1 %v15158_v36  ;;  %9947 = vmatprep.subr.bf16.mxu0 %v15193_v6 }
0x1117   :  { %9910 = vmatprep.subr.bf16.mxu1 %v15163_v43 }
0x1119   :  { %9948 = vmatpush1.bf16.msra.mxu0 %v15191_v53 }
0x111a   :  { %9911 = vmatpush2.bf16.msra.mxu1 %v15161_v51  ;;  %13376 = vmatprep.subr.bf16.mxu0 %v15195_v34 }
0x111b   :  { %13614 = vmatprep.subr.bf16.mxu1 %v17382_v33 }
0x117b   :  { %v9248_v22 = vpop.f32.mrf.mxu1 }
0x117d   :  { %v9250_v42 = vpop.f32.mrf.mxu1 }
0x117f   :  { %v9252_v47 = vpop.f32.mrf.mxu1 }
0x1181   :  { %v9254_v38 = vpop.f32.mrf.mxu1 }
0x1183   :  { %v9258_v4 = vpop.f32.mrf.mxu1 }
0x1185   :  { %v9260_v31 = vpop.f32.mrf.mxu1 }
0x1187   :  { %v9262_v48 = vpop.f32.mrf.mxu1 }
0x1189   :  { %v9264_v1 = vpop.f32.mrf.mxu1 }
0x119c   :  { %v9195_v14 = vpop.f32.mrf.mxu0  ;;  %v13354_v20 = vpop.f32.mrf.mxu1 }
0x119d   :  { %v9196_v28 = vadd.f32 %v9195_v14, %v8765_v11 }
0x119e   :  { %v9197_v36 = vpop.f32.mrf.mxu0  ;;  %v13355_v8 = vpop.f32.mrf.mxu1 }
0x119f   :  { %v9198_v43 = vadd.f32 %v9197_v36, %v8769_v13  ;;  %v9249_v25 = vadd.f32 %v9248_v22, %v9196_v28 }
0x11a0   :  { %v9199_v51 = vpop.f32.mrf.mxu0  ;;  %v13357_v16 = vpop.f32.mrf.mxu1 }
0x11a1   :  { %v9200_v30 = vadd.f32 %v9199_v51, %v8765_v11  ;;  %v9251_v12 = vadd.f32 %v9250_v42, %v9198_v43  ;;  %v9365_v34 = vmax.f32 %v9249_v25, 0.0 }
0x11a2   :  { %v9201_v23 = vpop.f32.mrf.mxu0  ;;  %v13358_v14 = vpop.f32.mrf.mxu1 }
0x11a3   :  { %v9253_v50 = vadd.f32 %v9252_v47, %v9200_v30  ;;  %v9202_v32 = vadd.f32 %v9201_v23, %v8769_v13  ;;  %v9366_v18 = vmax.f32 %v9251_v12, 0.0  ;;  %v15174_v47 = vld [vmem:[#allocation73 + $0x218] ss:$12 sps:$4 sm:$0xff]  }
0x11a4   :  { %v9205_v9 = vpop.f32.mrf.mxu0  ;;  %v13360_v30 = vpop.f32.mrf.mxu1 }
0x11a5   :  { %v9255_v52 = vadd.f32 %v9254_v38, %v9202_v32  ;;  %v9368_v41 = vmax.f32 %v9253_v50, 0.0  ;;  %v9206_v56 = vadd.f32 %v9205_v9, %v8765_v11 }
0x11a6   :  { %v9207_v10 = vpop.f32.mrf.mxu0  ;;  %v13361_v9 = vpop.f32.mrf.mxu1 }
0x11a7   :  { %v9369_v6 = vmax.f32 %v9255_v52, 0.0  ;;  %v9208_v53 = vadd.f32 %v9207_v10, %v8769_v13  ;;  %v17394_v51 = vpack.c.bf16 %v9368_v41, %v9365_v34  ;;  %v9259_v38 = vadd.f32 %v9258_v4, %v9206_v56  ;;  %v15182_v56 = vld [vmem:[#allocation73 + $0x1e8] ss:$12 sps:$4 sm:$0xff]   ;;  %v15194_v34 = vld [vmem:[#allocation73 + $0x1a0] ss:$12 sps:$4 sm:$0xff]  }
0x11a8   :  { %v9209_v36 = vpop.f32.mrf.mxu0  ;;  %v13363_v4 = vpop.f32.mrf.mxu1  ;;  %v8773_v52 = vrot.slane %v17386_v44, %v17161_v45 }
0x11a9   :  { %v9210_v3 = vadd.f32 %v9209_v36, %v8765_v11  ;;  %v17392_v40 = vpack.c.bf16 %v9369_v6, %v9366_v18  ;;  %v9261_v22 = vadd.f32 %v9260_v31, %v9208_v53  ;;  %v15178_v11 = vld [vmem:[#allocation73 + $0x200] ss:$12 sps:$4 sm:$0xff]   ;;  %v9371_v25 = vmax.f32 %v9259_v38, 0.0 }
0x11aa   :  { %v9211_v42 = vpop.f32.mrf.mxu0  ;;  %v13359_v18 = vadd.f32 %v13358_v14, %v13357_v16  ;;  %v13362_v6 = vadd.f32 %v13361_v9, %v13360_v30  ;;  %v15197_v30 = vld [vmem:[#allocation73 + $0xb0] ss:$12 sps:$4 sm:$0xff]   ;;  %v15199_v9 = vld [vmem:[#allocation73 + $0x98] ss:$12 sps:$4 sm:$0xff]  }
0x11ab   :  { %v9263_v43 = vadd.f32 %v9262_v48, %v9210_v3  ;;  %v9212_v28 = vadd.f32 %v9211_v42, %v8769_v13  ;;  %9912 = vmatprep.mubr.bf16.mxu1 %v17392_v40  ;;  %v9372_v50 = vmax.f32 %v9261_v22, 0.0  ;;  %v13364_v48 = vpop.f32.mrf.mxu1  ;;  %v13356_v13 = vadd.f32 %v13355_v8, %v13354_v20  ;;  %v15196_v8 = vld [vmem:[#allocation73 + $0x188] ss:$12 sps:$4 sm:$0xff]  }
0x11ac   :  { %9913 = vmatmul.mubr.bf16.vlgmr.msra.gmra.mxu1 %v17394_v51  ;;  %v13365_v41 = vadd.f32 %v13364_v48, %v13363_v4  ;;  %v17408_v4 = vld [vmem:[#allocation2 + $0x30] sm:$0xff] }
0x11ad   :  { %v9265_v23 = vadd.f32 %v9264_v1, %v9212_v28  ;;  %13615 = vmatpush3.bf16.msra.mxu1 %v17382_v33  ;;  %v9374_v12 = vmax.f32 %v9263_v43, 0.0  ;;  %v15186_v33 = vld [vmem:[#allocation73 + $0x1d0] ss:$12 sps:$4 sm:$0xff]   ;;  %v15190_v1 = vld [vmem:[#allocation73 + $0x1b8] ss:$12 sps:$4 sm:$0xff]   ;;  %v9302_v36 = vadd.f32 %v13356_v13, %v8773_v52  ;;  %v9305_v43 = vadd.f32 %v13359_v18, %v8773_v52 }
0x11ae   :  { %13616 = vmatprep.subr.bf16.mxu1 %v15174_v47  ;;  %v9313_v42 = vadd.f32 %v13365_v41, %v8773_v52  ;;  %v9310_v28 = vadd.f32 %v13362_v6, %v8773_v52  ;;  %v15202_v48 = vld [vmem:[#allocation73 + $0x128] ss:$12 sps:$4 sm:$0xff]   ;;  %v15204_v13 = vld [vmem:[#allocation73 + $0x110] ss:$12 sps:$4 sm:$0xff]   ;;  %v15206_v41 = vld [vmem:[#allocation73 + $0xf8] ss:$12 sps:$4 sm:$0xff]  }
0x11af   :  { %v9375_v32 = vmax.f32 %v9265_v23, 0.0  ;;  %v17401_v3 = vpack.c.bf16 %v9374_v12, %v9371_v25  ;;  %v15205_v52 = vld [vmem:[#allocation73 + $0x50] ss:$12 sps:$4 sm:$0xff]   ;;  %v15208_v18 = vld [vmem:[#allocation73 + $0xe0] ss:$12 sps:$4 sm:$0xff]  }
0x11b0   :  { %v15209_v6 = vld [vmem:[#allocation73 + $0x20] ss:$12 sps:$4 sm:$0xff]  }
0x11b1   :  { %13617 = vmatpush3.bf16.msra.mxu1 %v15174_v47  ;;  %v17399_v31 = vpack.c.bf16 %v9375_v32, %v9372_v50  ;;  %v15198_v50 = vld [vmem:[#allocation73 + $0x158] ss:$12 sps:$4 sm:$0xff]  }
0x11b2   :  { %13618 = vmatprep.subr.bf16.mxu1 %v15178_v11 }
0x11b3   :  { %9922 = vmatprep.mubr.bf16.mxu1 %v17399_v31 }
0x11b4   :  { %9923 = vmatmul.mubr.bf16.gmra.mxu1 %v17401_v3 }
0x11b5   :  { %13619 = vmatpush3.bf16.msra.mxu1 %v15178_v11 }
0x11b6   :  { %13620 = vmatprep.subr.bf16.mxu1 %v15182_v56 }
0x11b9   :  { %13621 = vmatpush3.bf16.msra.mxu1 %v15182_v56  ;;  %v15200_v56 = vld [vmem:[#allocation73 + $0x140] ss:$12 sps:$4 sm:$0xff]  }
0x11ba   :  { %13622 = vmatprep.subr.bf16.mxu1 %v15186_v33 }
0x11bc   :  { %v13612_v10 = vpop.f32.mrf.mxu0 }
0x11bd   :  { %13623 = vmatpush3.bf16.msra.mxu1 %v15186_v33  ;;  %v9359_v23 = vadd.f32 %v13612_v10, %v9310_v28  ;;  %v15201_v33 = vld [vmem:[#allocation73 + $0x80] ss:$12 sps:$4 sm:$0xff]   ;;  %v15207_v10 = vld [vmem:[#allocation73 + $0x38] ss:$12 sps:$4 sm:$0xff]  }
0x11be   :  { %v9350_v53 = vpop.f32.mrf.mxu0  ;;  %13624 = vmatprep.subr.bf16.mxu1 %v15190_v1  ;;  %v15218_v28 = vld [vmem:[#allocation74 + $0x60] sm:$0xff]  }
0x11bf   :  { %v9351_v22 = vadd.f32 %v9350_v53, %v9302_v36  ;;  %v9373_v32 = vmax.f32 %v9359_v23, 0.0  ;;  %v15210_v53 = vld [vmem:[#allocation73 + $0xc8] ss:$12 sps:$4 sm:$0xff]   ;;  %v15213_v36 = vld [vmem:[#allocation74 + $0x38] sm:$0xff]   ;;  %v15226_v23 = vld [vmem:[#allocation74 + $0x40] sm:$0xff]  }
0x11c0   :  { %v13613_v47 = vpop.f32.mrf.mxu0 }
0x11c1   :  { %13625 = vmatpush3.bf16.msra.mxu1 %v15190_v1  ;;  %v9362_v38 = vadd.f32 %v13613_v47, %v9313_v42  ;;  %v9367_v12 = vmax.f32 %v9351_v22, 0.0  ;;  %v15203_v1 = vld [vmem:[#allocation73 + $0x68] ss:$12 sps:$4 sm:$0xff]  }
0x11c2   :  { %v9353_v20 = vpop.f32.mrf.mxu0  ;;  %13626 = vmatprep.subr.bf16.mxu1 %v15194_v34  ;;  %v15214_v42 = vld [vmem:[#allocation74 + $0x70] sm:$0xff]   ;;  %v15216_v22 = vld [vmem:[#allocation74 + $0x68] sm:$0xff]  }
0x11c3   :  { %v9354_v44 = vadd.f32 %v9353_v20, %v9305_v43  ;;  %v9376_v14 = vmax.f32 %v9362_v38, 0.0  ;;  %v15215_v47 = vld [vmem:[#allocation74 + $0x30] sm:$0xff]   ;;  %v15217_v43 = vld [vmem:[#allocation74 + $0x28] sm:$0xff]   ;;  %v15219_v38 = vld [vmem:[#allocation74 + $0x20] sm:$0xff]  }
0x11c4   :  { %v15223_v20 = vld [vmem:[#allocation74 + $0x10] sm:$0xff]  }
0x11c5   :  { %v9370_v16 = vmax.f32 %v9354_v44, 0.0  ;;  %13627 = vmatpush3.bf16.msra.mxu1 %v15194_v34  ;;  %v9382_v25 = vpack.c.bf16 %v9376_v14, %v9373_v32  ;;  %v15211_v34 = vld [vmem:[#allocation73 + $0x8] ss:$12 sps:$4 sm:$0xff]  }
0x11c6   :  { %13628 = vmatprep.subr.bf16.mxu1 %v15196_v8  ;;  %v15225_v44 = vld [vmem:[#allocation74 + $0x8] sm:$0xff]   ;;  %v15229_v14 = vld [vmem:[#allocation74 + $0xb0] sm:$0xff]  }
0x11c7   :  { %v9379_v11 = vpack.c.bf16 %v9370_v16, %v9367_v12  ;;  %v15227_v12 = vld [vmem:[#allocation74] sm:$0xff]   ;;  %v15228_v16 = vld [vmem:[#allocation74 + $0xb8] sm:$0xff]   ;;  %v15233_v32 = vld [vmem:[#allocation74 + $0x90] sm:$0xff]  }
0x11c9   :  { %9966 = vmatmul.mubr.bf16.vlgmr.msra.gmra.mxu0 %v9379_v11  ;;  %13629 = vmatpush3.bf16.msra.mxu1 %v15196_v8  ;;  %v15224_v8 = vld [vmem:[#allocation74 + $0x48] sm:$0xff]  }
0x11ca   :  { %13377 = vmatpush3.bf16.msra.mxu0 %v15197_v30  ;;  %13630 = vmatprep.mubr.bf16.mxu1 %v9379_v11  ;;  %v15230_v30 = vld [vmem:[#allocation74 + $0xa8] sm:$0xff]   ;;  %v15231_v11 = vld [vmem:[#allocation74 + $0xa0] sm:$0xff]  }
0x11cb   :  { %13378 = vmatprep.subr.bf16.mxu0 %v15198_v50  ;;  %9975 = vmatprep.mubr.bf16.mxu0 %v17982_v60  ;;  %v15232_v50 = vld [vmem:[#allocation74 + $0x98] sm:$0xff]  }
0x11cc   :  { %13631 = vmatmul.mubr.bf16.vlgmr.msra.gmra.mxu1 %v9382_v25  ;;  %13634 = vmatprep.subr.bf16.mxu1 %v17408_v4 }
0x11cd   :  { %13635 = vmatpush3.bf16.msra.mxu1 %v15228_v16  ;;  %13650 = vmatprep.mubr.msk.bf16.mxu1 %vm16421_vm3, %v17408_v4 }
0x11ce   :  { %13379 = vmatpush3.bf16.msra.mxu0 %v15199_v9  ;;  %13636 = vmatprep.subr.bf16.mxu1 %v17408_v4  ;;  %v15235_v9 = vld [vmem:[#allocation74 + $0x80] sm:$0xff]  }
0x11cf   :  { %13380 = vmatprep.subr.bf16.mxu0 %v15200_v56 }
0x11d1   :  { %9976 = vmatmul.mubr.bf16.gmra.mxu0 %v9382_v25  ;;  %13637 = vmatpush3.bf16.msra.mxu1 %v15229_v14  ;;  %v15234_v25 = vld [vmem:[#allocation74 + $0x88] sm:$0xff]  }
0x11d2   :  { %13381 = vmatpush3.bf16.msra.mxu0 %v15201_v33  ;;  %10018 = vmatprep.mubr.bf16.mxu0 %v17392_v40  ;;  %v15212_v40 = vld [vmem:[#allocation74 + $0x78] sm:$0xff]  }
0x11d3   :  { %13382 = vmatprep.subr.bf16.mxu0 %v15202_v48  ;;  %13638 = vmatprep.subr.bf16.mxu1 %v17408_v4  ;;  %v17425_v48 = vld [vmem:[%s18071_s14] sm:$0x7] }
0x11d5   :  { %13639 = vmatpush3.bf16.msra.mxu1 %v15230_v30 }
0x11d6   :  { %13383 = vmatpush3.bf16.msra.mxu0 %v15203_v1  ;;  %13640 = vmatprep.subr.bf16.mxu1 %v17408_v4 }
0x11d7   :  { %13384 = vmatprep.subr.bf16.mxu0 %v15204_v13 }
0x11d9   :  { %13641 = vmatpush3.bf16.msra.mxu1 %v15231_v11 }
0x11da   :  { %13385 = vmatpush3.bf16.msra.mxu0 %v15205_v52  ;;  %13642 = vmatprep.subr.bf16.mxu1 %v17408_v4  ;;  %v9484_v52 = vrot.slane %v17425_v48, %v16897_v63 }
0x11db   :  { %13386 = vmatprep.subr.bf16.mxu0 %v15206_v41 }
0x11dd   :  { %13643 = vmatpush3.bf16.msra.mxu1 %v15232_v50 }
0x11de   :  { %13387 = vmatpush3.bf16.msra.mxu0 %v15207_v10  ;;  %13644 = vmatprep.subr.bf16.mxu1 %v17408_v4  ;;  %v9488_v10 = vrot.slane %v17425_v48, %v16894_v61 }
0x11df   :  { %13388 = vmatprep.subr.bf16.mxu0 %v15208_v18 }
0x11e1   :  { %13645 = vmatpush3.bf16.msra.mxu1 %v15233_v32 }
0x11e2   :  { %13389 = vmatpush3.bf16.msra.mxu0 %v15209_v6  ;;  %13646 = vmatprep.subr.bf16.mxu1 %v17408_v4 }
0x11e3   :  { %13390 = vmatprep.subr.bf16.mxu0 %v15210_v53 }
0x11e5   :  { %13647 = vmatpush3.bf16.msra.mxu1 %v15234_v25 }
0x11e6   :  { %13391 = vmatpush3.bf16.msra.mxu0 %v15211_v34  ;;  %13648 = vmatprep.subr.bf16.mxu1 %v17408_v4 }
0x11e7   :  { %13414 = vmatprep.subr.bf16.mxu0 %v15212_v40 }
0x11e9   :  { %10019 = vmatmul.mubr.bf16.vlgmr.msra.gmra.mxu0 %v17394_v51  ;;  %v15220_v51 = vld [vmem:[#allocation74 + $0x58] sm:$0xff]   ;;  %13649 = vmatpush3.bf16.msra.mxu1 %v15235_v9 }
0x11ea   :  { %10026 = vmatprep.mubr.bf16.mxu0 %v17399_v31  ;;  %13415 = vmatpush3.bf16.msra.mxu0 %v15213_v36  ;;  %v15221_v31 = vld [vmem:[#allocation74 + $0x18] sm:$0xff]  }
0x11eb   :  { %13416 = vmatprep.subr.bf16.mxu0 %v15214_v42 }
0x11ee   :  { %13417 = vmatpush3.bf16.msra.mxu0 %v15215_v47 }
0x11ef   :  { %13418 = vmatprep.subr.bf16.mxu0 %v15216_v22 }
0x11f1   :  { %10027 = vmatmul.mubr.bf16.gmra.mxu0 %v17401_v3  ;;  %v15222_v3 = vld [vmem:[#allocation74 + $0x50] sm:$0xff]  }
0x11f2   :  { %13419 = vmatpush3.bf16.msra.mxu0 %v15217_v43 }
0x11f3   :  { %13420 = vmatprep.subr.bf16.mxu0 %v15218_v28 }
0x11f6   :  { %13421 = vmatpush3.bf16.msra.mxu0 %v15219_v38 }
0x11f7   :  { %13422 = vmatprep.subr.bf16.mxu0 %v15220_v51 }
0x11fa   :  { %13423 = vmatpush3.bf16.msra.mxu0 %v15221_v31 }
0x11fb   :  { %13424 = vmatprep.subr.bf16.mxu0 %v15222_v3 }
0x11fe   :  { %13425 = vmatpush3.bf16.msra.mxu0 %v15223_v20 }
0x11ff   :  { %13426 = vmatprep.subr.bf16.mxu0 %v15224_v8 }
0x1202   :  { %13427 = vmatpush3.bf16.msra.mxu0 %v15225_v44 }
0x1203   :  { %13428 = vmatprep.subr.bf16.mxu0 %v15226_v23 }
0x1206   :  { %13429 = vmatpush3.bf16.msra.mxu0 %v15227_v12 }
0x126c   :  { %v9914_v56 = vpop.f32.mrf.mxu1 }
0x126d   :  { %v9915_v47 = vadd.f32 %v9914_v56, %v9484_v52 }
0x126e   :  { %v9916_v33 = vpop.f32.mrf.mxu1 }
0x126f   :  { %v9917_v43 = vadd.f32 %v9916_v33, %v9488_v10 }
0x1270   :  { %v9918_v1 = vpop.f32.mrf.mxu1 }
0x1271   :  { %v9919_v51 = vadd.f32 %v9918_v1, %v9484_v52 }
0x1272   :  { %v9920_v13 = vpop.f32.mrf.mxu1 }
0x1273   :  { %v9921_v63 = vadd.f32 %v9920_v13, %v9488_v10 }
0x1274   :  { %v9924_v41 = vpop.f32.mrf.mxu1 }
0x1275   :  { %v9925_v18 = vadd.f32 %v9924_v41, %v9484_v52 }
0x1276   :  { %v9926_v6 = vpop.f32.mrf.mxu1 }
0x1277   :  { %v9927_v53 = vadd.f32 %v9926_v6, %v9488_v10 }
0x1278   :  { %v9928_v34 = vpop.f32.mrf.mxu1 }
0x1279   :  { %v9929_v40 = vadd.f32 %v9928_v34, %v9484_v52 }
0x127a   :  { %v9930_v36 = vpop.f32.mrf.mxu1 }
0x127b   :  { %v9931_v42 = vadd.f32 %v9930_v36, %v9488_v10 }
0x1289   :  { %v9967_v22 = vpop.f32.mrf.mxu0 }
0x128a   :  { %v9968_v28 = vadd.f32 %v9967_v22, %v9915_v47 }
0x128b   :  { %v9969_v38 = vpop.f32.mrf.mxu0 }
0x128c   :  { %v9970_v31 = vadd.f32 %v9969_v38, %v9917_v43  ;;  %v10084_v44 = vmax.f32 %v9968_v28, 0.0 }
0x128d   :  { %v9971_v3 = vpop.f32.mrf.mxu0 }
0x128e   :  { %v10085_v20 = vmax.f32 %v9970_v31, 0.0  ;;  %v9972_v8 = vadd.f32 %v9971_v3, %v9919_v51  ;;  %v10096_v32 = vadd.f32 %v10084_v44, %v8646_v2 }
0x128f   :  { %v9973_v61 = vpop.f32.mrf.mxu0 }
0x1290   :  { %v10087_v23 = vmax.f32 %v9972_v8, 0.0  ;;  %v9974_v12 = vadd.f32 %v9973_v61, %v9921_v63  ;;  %v10097_v14 = vadd.f32 %v10085_v20, %v8647_v7  ;;  %v10108_v7 = vmax.f32 %v10096_v32, 0.0 }
0x1291   :  { %v9977_v16 = vpop.f32.mrf.mxu0 }
0x1292   :  { %v10099_v30 = vadd.f32 %v10087_v23, %v8649_v49  ;;  %v10088_v11 = vmax.f32 %v9974_v12, 0.0  ;;  %v9978_v50 = vadd.f32 %v9977_v16, %v9925_v18  ;;  %v10109_v52 = vmax.f32 %v10097_v14, 0.0 }
0x1293   :  { %v9979_v25 = vpop.f32.mrf.mxu0 }
0x1294   :  { %v10100_v9 = vadd.f32 %v10088_v11, %v8650_v19  ;;  %v9980_v56 = vadd.f32 %v9979_v25, %v9927_v53  ;;  %v10111_v33 = vmax.f32 %v10099_v30, 0.0  ;;  %v10090_v1 = vmax.f32 %v9978_v50, 0.0 }
0x1295   :  { %v9981_v13 = vpop.f32.mrf.mxu0 }
0x1296   :  { %v10112_v41 = vmax.f32 %v10100_v9, 0.0  ;;  %v10091_v35 = vmax.f32 %v9980_v56, 0.0  ;;  %v9982_v10 = vadd.f32 %v9981_v13, %v9929_v40  ;;  %v10120_v18 = vpack.c.bf16 %v10111_v33, %v10108_v7 }
0x1297   :  { %v9983_v26 = vpop.f32.mrf.mxu0  ;;  %v10102_v21 = vadd.f32 %v10090_v1, %v8652_v0 }
0x1298   :  { %v9984_v49 = vadd.f32 %v9983_v26, %v9931_v42  ;;  %v10121_v6 = vpack.c.bf16 %v10112_v41, %v10109_v52  ;;  %v10093_v2 = vmax.f32 %v9982_v10, 0.0  ;;  %v10103_v5 = vadd.f32 %v10091_v35, %v8653_v54  ;;  %v13632_v42 = vpop.f32.mrf.mxu1 }
0x1299   :  { %v10114_v40 = vmax.f32 %v10102_v21, 0.0  ;;  %v18073_v52 = vmax.f32 %v17297_v29, 0.0 }
0x129a   :  { %v10094_v19 = vmax.f32 %v9984_v49, 0.0  ;;  %10347 = vmatprep.mubr.bf16.mxu0 %v10121_v6  ;;  %10476 = vmatprep.subr.bf16.mxu0 %v10121_v6  ;;  %v10105_v53 = vadd.f32 %v10093_v2, %v8655_v27  ;;  %v10115_v0 = vmax.f32 %v10103_v5, 0.0  ;;  %v9492_v27 = vrot.slane %v17425_v48, %v17161_v45  ;;  %v10069_v24 = vpop.f32.mrf.mxu1 }
0x129b   :  { %10348 = vmatmul.mubr.bf16.vlgmr.msra.gmra.mxu0 %v10120_v18 }
0x129c   :  { %v10106_v34 = vadd.f32 %v10094_v19, %v8656_v15  ;;  %10477 = vmatpush1.bf16.msra.mxu0 %v10120_v18  ;;  %10494 = vmatprep.mubr.bf16.mxu0 %v17982_v60  ;;  %v10117_v59 = vmax.f32 %v10105_v53, 0.0  ;;  %v13633_v28 = vpop.f32.mrf.mxu1 }
0x129d   :  { %13672 = vmatprep.subr.bf16.mxu0 %v17408_v4 }
0x129e   :  { %v10118_v62 = vmax.f32 %v10106_v34, 0.0  ;;  %v17449_v54 = vpack.c.bf16 %v10117_v59, %v10114_v40  ;;  %v10072_v8 = vpop.f32.mrf.mxu1 }
0x12a0   :  { %v17451_v36 = vpack.c.bf16 %v10118_v62, %v10115_v0 }
0x12a9   :  { %v13392_v39 = vpop.f32.mrf.mxu0 }
0x12ab   :  { %v13393_v15 = vpop.f32.mrf.mxu0 }
0x12ac   :  { %v13394_v47 = vadd.f32 %v13393_v15, %v13392_v39 }
0x12ad   :  { %v13395_v22 = vpop.f32.mrf.mxu0 }
0x12ae   :  { %v10021_v43 = vadd.f32 %v13394_v47, %v9492_v27 }
0x12af   :  { %v13396_v38 = vpop.f32.mrf.mxu0 }
0x12b0   :  { %v10070_v51 = vadd.f32 %v10069_v24, %v10021_v43  ;;  %v13397_v31 = vadd.f32 %v13396_v38, %v13395_v22 }
0x12b1   :  { %v13398_v3 = vpop.f32.mrf.mxu0 }
0x12b2   :  { %v10086_v63 = vmax.f32 %v10070_v51, 0.0  ;;  %v10024_v20 = vadd.f32 %v13397_v31, %v9492_v27  ;;  %v15237_v51 = vld [vmem:[#allocation74 + $0x78] sm:$0xff]  }
0x12b3   :  { %v13399_v44 = vpop.f32.mrf.mxu0 }
0x12b4   :  { %v10073_v61 = vadd.f32 %v10072_v8, %v10024_v20  ;;  %v13400_v23 = vadd.f32 %v13399_v44, %v13398_v3  ;;  %v10098_v45 = vadd.f32 %v10086_v63, %v8648_v46 }
0x12b5   :  { %v13401_v12 = vpop.f32.mrf.mxu0 }
0x12b6   :  { %v10089_v48 = vmax.f32 %v10073_v61, 0.0  ;;  %v10029_v16 = vadd.f32 %v13400_v23, %v9492_v27  ;;  %v10110_v32 = vmax.f32 %v10098_v45, 0.0 }
0x12b7   :  { %v13402_v14 = vpop.f32.mrf.mxu0 }
0x12b8   :  { %v10101_v30 = vadd.f32 %v10089_v48, %v8651_v17  ;;  %v10078_v11 = vadd.f32 %v13632_v42, %v10029_v16  ;;  %v13403_v50 = vadd.f32 %v13402_v14, %v13401_v12  ;;  %v15236_v12 = vld [vmem:[#allocation74 + $0xb8] sm:$0xff]   ;;  %v15239_v16 = vld [vmem:[#allocation74 + $0xb0] sm:$0xff]  }
0x12b9   :  { %v15238_v48 = vld [vmem:[#allocation74 + $0x38] sm:$0xff]   ;;  %v15240_v14 = vld [vmem:[#allocation74 + $0x70] sm:$0xff]  }
0x12ba   :  { %v10113_v25 = vmax.f32 %v10101_v30, 0.0  ;;  %v10092_v9 = vmax.f32 %v10078_v11, 0.0  ;;  %v10032_v56 = vadd.f32 %v13403_v50, %v9492_v27  ;;  %v15241_v11 = vld [vmem:[#allocation74 + $0x30] sm:$0xff]   ;;  %v15242_v50 = vld [vmem:[#allocation74 + $0xa8] sm:$0xff]  }
0x12bc   :  { %v10122_v33 = vpack.c.bf16 %v10113_v25, %v10110_v32  ;;  %v10081_v1 = vadd.f32 %v13633_v28, %v10032_v56  ;;  %v10104_v46 = vadd.f32 %v10092_v9, %v18072_v55  ;;  %v15243_v32 = vld [vmem:[#allocation74 + $0x68] sm:$0xff]   ;;  %v15245_v56 = vld [vmem:[#allocation74 + $0xa0] sm:$0xff]   ;;  %v15248_v55 = vld [vmem:[#allocation74 + $0x98] sm:$0xff]  }
0x12bd   :  { %v15244_v9 = vld [vmem:[#allocation74 + $0x28] sm:$0xff]  }
0x12be   :  { %v10095_v13 = vmax.f32 %v10081_v1, 0.0  ;;  %13651 = vmatmul.mubr.bf16.vlgmr.msra.gmra.mxu1 %v10122_v33  ;;  %13654 = vmatprep.subr.bf16.mxu1 %v10122_v33  ;;  %v10116_v57 = vmax.f32 %v10104_v46, 0.0  ;;  %v15249_v46 = vld [vmem:[#allocation74 + $0x58] sm:$0xff]  }
0x12bf   :  { %13655 = vmatpush3.bf16.msra.mxu1 %v10122_v33  ;;  %v15246_v33 = vld [vmem:[#allocation74 + $0x60] sm:$0xff]  }
0x12c0   :  { %v10107_v41 = vadd.f32 %v10095_v13, %v18073_v52  ;;  %13454 = vmatprep.subr.bf16.mxu1 %v15237_v51  ;;  %v15247_v13 = vld [vmem:[#allocation74 + $0x20] sm:$0xff]  }
0x12c2   :  { %v10119_v17 = vmax.f32 %v10107_v41, 0.0  ;;  %v15250_v41 = vld [vmem:[#allocation74 + $0x18] sm:$0xff]  }
0x12c4   :  { %v17463_v35 = vpack.c.bf16 %v10119_v17, %v10116_v57  ;;  %v15251_v57 = vld [vmem:[#allocation74 + $0x90] sm:$0xff]  }
0x12c5   :  { %v15252_v17 = vld [vmem:[#allocation74 + $0x50] sm:$0xff]  }
0x135b   :  { %v13430_v7 = vpop.f32.mrf.mxu0 }
0x135d   :  { %v13431_v10 = vpop.f32.mrf.mxu0 }
0x135e   :  { %v13432_v21 = vadd.f32 %v13431_v10, %v13430_v7  ;;  %v15253_v10 = vld [vmem:[#allocation74 + $0x10] sm:$0xff]  }
0x135f   :  { %v13433_v26 = vpop.f32.mrf.mxu0 }
0x1361   :  { %v13434_v49 = vpop.f32.mrf.mxu0 }
0x1362   :  { %v13435_v2 = vadd.f32 %v13434_v49, %v13433_v26  ;;  %v15254_v26 = vld [vmem:[#allocation74 + $0x88] sm:$0xff]  }
0x1363   :  { %v15255_v49 = vld [vmem:[#allocation74 + $0x48] sm:$0xff]  }
0x137e   :  { %v10390_v6 = vpop.f32.mrf.mxu1 }
0x137f   :  { %v10391_v19 = vadd.f32 %v13432_v21, %v10390_v6  ;;  %v15257_v21 = vld [vmem:[#allocation74 + $0x80] sm:$0xff]  }
0x1380   :  { %v13652_v18 = vpop.f32.mrf.mxu1 }
0x1381   :  { %v15256_v18 = vld [vmem:[#allocation74 + $0x8] sm:$0xff]  }
0x1382   :  { %v10393_v5 = vpop.f32.mrf.mxu1 }
0x1383   :  { %v10394_v37 = vadd.f32 %v13435_v2, %v10393_v5  ;;  %v15258_v5 = vld [vmem:[#allocation74 + $0x40] sm:$0xff]  }
0x1384   :  { %v13653_v53 = vpop.f32.mrf.mxu1 }
0x1385   :  { %v10397_v34 = vmax.f32 %v10391_v19, %v10394_v37 }
0x1387   :  { %v10398_v40 = vrot.slane %v10397_v34, 4 }
0x1389   :  { %v10399_v29 = vmax.f32 %v10397_v34, %v10398_v40 }
0x138b   :  { %v10400_v59 = vrot.slane %v10399_v29, 2 }
0x138d   :  { %v10401_v0 = vmax.f32 %v10399_v29, %v10400_v59  ;;  %v17510_v59 = vld [vmem:[#allocation76 + $0x20] sm:$0xff] }
0x138f   :  { %v10402_v62 = vrot.slane %v10401_v0, 1 }
0x1391   :  { %v10403_v42 = vmax.f32 %v10401_v0, %v10402_v62  ;;  %v17512_v0 = vld [vmem:[#allocation76 + $0x10] sm:$0xff]  ;;  %v17515_v62 = vld [vmem:[#allocation76 + $0x18] sm:$0xff] }
0x1393   :  { %v10404_v39 = vsub.f32 %v10391_v19, %v10403_v42  ;;  %v10405_v27 = vsub.f32 %v10394_v37, %v10403_v42  ;;  %v15259_v19 = vld [vmem:[#allocation74] sm:$0xff]  }
0x1394   :  { %v17507_v37 = vld [vmem:[#allocation76] sm:$0xff] }
0x1395   :  { %v10406_v24 = vmul.f32 1.442695, %v10404_v39  ;;  %v10408_v15 = vmul.f32 1.442695, %v10405_v27 }
0x1397   :  { %15260 = vpow2.f32 %v10406_v24 }
0x1398   :  { %15262 = vpow2.f32 %v10408_v15 }
0x13a4   :  { %v15261_v47 = vpop.eup %15260 }
0x13a5   :  { %v15263_v22 = vpop.eup %15262 }
0x13a6   :  { %v10410_v43 = vadd.f32 %v15263_v22, %v15261_v47 }
0x13a8   :  { %v10411_v28 = vrot.slane %v10410_v43, 4 }
0x13aa   :  { %v10412_v38 = vadd.f32 %v10411_v28, %v10410_v43  ;;  %v17521_v43 = vld [vmem:[#allocation76 + $0x38] sm:$0xff]  ;;  %v17523_v28 = vld [vmem:[#allocation76 + $0x28] sm:$0xff] }
0x13ac   :  { %v10413_v31 = vrot.slane %v10412_v38, 2 }
0x13ae   :  { %v10414_v3 = vadd.f32 %v10413_v31, %v10412_v38 }
0x13b0   :  { %v10415_v63 = vrot.slane %v10414_v3, 1 }
0x13b2   :  { %v10416_v20 = vadd.f32 %v10415_v63, %v10414_v3 }
0x13b4   :  { %15264 = vrcp.f32 %v10416_v20 }
0x13c1   :  { %v15265_v8 = vpop.eup %15264 }
0x13c2   :  { %v10418_v44 = vmul.f32 %v15265_v8, %v15261_v47  ;;  %v10419_v61 = vmul.f32 %v15265_v8, %v15263_v22  ;;  %v17519_v47 = vld [vmem:[#allocation76 + $0x30] sm:$0xff] }
0x13c4   :  { %v10420_v23 = vpack.c.bf16 %v10419_v61, %v10418_v44  ;;  %v17529_v61 = vld [vmem:[#allocation76 + $0x40] sm:$0xff] }
0x13c6   :  { %10421 = vxpose.xlu0.c.b16.start.end [1/1] (short) %v10420_v23, 128 }
0x1428   :  { %v10429_v45 = vpop.trf.xlu0 }
0x1429   :  { %13146 = vmatmul.mubr.msk.bf16.vlgmr.msra.gmra.mxu0 %vm10437_vm4, %v10429_v45  ;;  %13656 = vmatprep.mubr.msk.bf16.mxu1 %vm10437_vm4, %v10429_v45 }
0x142a   :  { %13673 = vmatpush3.bf16.msra.mxu0 %v15236_v12  ;;  %10504 = vmatprep.mubr.bf16.mxu0 %v17982_v60  ;;  %v17531_v12 = vld [vmem:[#allocation76 + $0x48] sm:$0xff] }
0x142b   :  { %13674 = vmatprep.subr.bf16.mxu0 %v17408_v4 }
0x142c   :  { %v10430_v30 = vpop.trf.xlu0 }
0x142d   :  { %13657 = vmatmul.mubr.msk.bf16.vlgmr.msra.gmra.mxu1 %vm10437_vm4, %v10430_v30 }
0x142e   :  { %13455 = vmatpush3.bf16.msra.mxu1 %v15238_v48  ;;  %13675 = vmatpush3.bf16.msra.mxu0 %v15239_v16  ;;  %v17533_v48 = vld [vmem:[#allocation76 + $0x50] sm:$0xff] }
0x142f   :  { %13456 = vmatprep.subr.bf16.mxu1 %v15240_v14  ;;  %13676 = vmatprep.subr.bf16.mxu0 %v17408_v4 }
0x1430   :  { %v10431_v25 = vpop.trf.xlu0 }
0x1431   :  { %13147 = vmatmul.mubr.msk.bf16.gmra.mxu0 %vm10437_vm4, %v10430_v30  ;;  %13660 = vmatprep.mubr.msk.bf16.mxu1 %vm10437_vm4, %v10431_v25 }
0x1432   :  { %13457 = vmatpush3.bf16.msra.mxu1 %v15241_v11  ;;  %13677 = vmatpush3.bf16.msra.mxu0 %v15242_v50 }
0x1433   :  { %13458 = vmatprep.subr.bf16.mxu1 %v15243_v32  ;;  %13678 = vmatprep.subr.bf16.mxu0 %v17408_v4 }
0x1434   :  { %v10432_v1 = vpop.trf.xlu0  ;;  %10514 = vmatprep.mubr.bf16.mxu0 %v17982_v60 }
0x1435   :  { %13661 = vmatmul.mubr.msk.bf16.gmra.mxu1 %vm10437_vm4, %v10432_v1 }
0x1436   :  { %13459 = vmatpush3.bf16.msra.mxu1 %v15244_v9  ;;  %13679 = vmatpush3.bf16.msra.mxu0 %v15245_v56  ;;  %v17538_v9 = vld [vmem:[#allocation76 + $0x58] sm:$0xff] }
0x1437   :  { %13460 = vmatprep.subr.bf16.mxu1 %v15246_v33  ;;  %13680 = vmatprep.subr.bf16.mxu0 %v17408_v4  ;;  %v17540_v33 = vld [vmem:[#allocation76 + $0x60] sm:$0xff] }
0x1438   :  { %v10433_v52 = vpop.trf.xlu0 }
0x1439   :  { %13148 = vmatmul.mubr.msk.bf16.gmra.mxu0 %vm10437_vm4, %v10431_v25  ;;  %13664 = vmatprep.mubr.msk.bf16.mxu1 %vm10437_vm4, %v10433_v52 }
0x143a   :  { %13461 = vmatpush3.bf16.msra.mxu1 %v15247_v13  ;;  %13681 = vmatpush3.bf16.msra.mxu0 %v15248_v55  ;;  %v17542_v13 = vld [vmem:[#allocation76 + $0x68] sm:$0xff] }
0x143b   :  { %13462 = vmatprep.subr.bf16.mxu1 %v15249_v46  ;;  %13682 = vmatprep.subr.bf16.mxu0 %v17408_v4 }
0x143c   :  { %v10434_v7 = vpop.trf.xlu0  ;;  %10524 = vmatprep.mubr.bf16.mxu0 %v17982_v60 }
0x143d   :  { %13665 = vmatmul.mubr.msk.bf16.gmra.mxu1 %vm10437_vm4, %v10434_v7 }
0x143e   :  { %13463 = vmatpush3.bf16.msra.mxu1 %v15250_v41  ;;  %13683 = vmatpush3.bf16.msra.mxu0 %v15251_v57 }
0x143f   :  { %13464 = vmatprep.subr.bf16.mxu1 %v15252_v17  ;;  %13684 = vmatprep.subr.bf16.mxu0 %v17408_v4 }
0x1440   :  { %v10435_v6 = vpop.trf.xlu0 }
0x1441   :  { %13149 = vmatmul.mubr.msk.bf16.gmra.mxu0 %vm10437_vm4, %v10432_v1  ;;  %13668 = vmatprep.mubr.msk.bf16.mxu1 %vm10437_vm4, %v10435_v6 }
0x1442   :  { %13465 = vmatpush3.bf16.msra.mxu1 %v15253_v10  ;;  %13685 = vmatpush3.bf16.msra.mxu0 %v15254_v26 }
0x1443   :  { %13466 = vmatprep.subr.bf16.mxu1 %v15255_v49  ;;  %13686 = vmatprep.subr.bf16.mxu0 %v17408_v4  ;;  %v17549_v49 = vld [vmem:[#allocation76 + $0x78] sm:$0xff] }
0x1444   :  { %v10436_v2 = vpop.trf.xlu0  ;;  %10534 = vmatprep.mubr.bf16.mxu0 %v17982_v60 }
0x1445   :  { %13669 = vmatmul.mubr.msk.bf16.gmra.mxu1 %vm10437_vm4, %v10436_v2 }
0x1446   :  { %13467 = vmatpush3.bf16.msra.mxu1 %v15256_v18  ;;  %13687 = vmatpush3.bf16.msra.mxu0 %v15257_v21  ;;  %v17553_v18 = vld [vmem:[#allocation76 + $0x80] sm:$0xff] }
0x1447   :  { %11337 = vmatprep.mubr.bf16.mxu1 %v17451_v36  ;;  %13692 = vmatprep.subr.bf16.mxu0 %v17463_v35 }
0x1448   :  { %13468 = vmatprep.subr.bf16.mxu1 %v15258_v5 }
0x1449   :  { %13150 = vmatmul.mubr.msk.bf16.gmra.mxu0 %vm10437_vm4, %v10433_v52  ;;  %v17544_v52 = vld [vmem:[#allocation76 + $0x70] sm:$0xff] }
0x144a   :  { %13469 = vmatpush3.bf16.msra.mxu1 %v15259_v19  ;;  %10544 = vmatprep.mubr.bf16.mxu0 %v17982_v60  ;;  %v17556_v19 = vld [vmem:[#allocation76 + $0x88] sm:$0xff] }
0x144b   :  { %11465 = vmatprep.subr.bf16.mxu1 %v17451_v36  ;;  %v17505_v36 = vld [vmem:[#allocation76 + $0x8] sm:$0xff] }
0x144d   :  { %11338 = vmatmul.mubr.bf16.vlgmr.msra.gmra.mxu1 %v17449_v54 }
0x144e   :  { %11466 = vmatpush1.bf16.msra.mxu1 %v17449_v54  ;;  %11483 = vmatprep.mubr.bf16.mxu1 %v17982_v60 }
0x1451   :  { %13151 = vmatmul.mubr.msk.bf16.gmra.mxu0 %vm10437_vm4, %v10434_v7 }
0x1452   :  { %10554 = vmatprep.mubr.bf16.mxu0 %v17982_v60 }
0x1459   :  { %13152 = vmatmul.mubr.msk.bf16.gmra.mxu0 %vm10437_vm4, %v10435_v6 }
0x145a   :  { %10564 = vmatprep.mubr.bf16.mxu0 %v17982_v60 }
0x1461   :  { %13153 = vmatmul.mubr.msk.bf16.gmra.mxu0 %vm10437_vm4, %v10436_v2 }
0x1462   :  { %13688 = vmatprep.mubr.msk.bf16.mxu0 %vm16421_vm3, %v17408_v4  ;;  %vm11106_vm3 = vcmask 1048512  }
0x1469   :  { %13689 = vmatmul.mubr.bf16.vlgmr.msra.gmra.mxu0 %v17463_v35 }
0x146a   :  { %13693 = vmatpush3.bf16.msra.mxu0 %v17463_v35 }
0x14e9   :  { %v10496_v54 = vpop.f32.mrf.mxu0 }
0x14ea   :  { %v10720_v4 = vmul.f32 %v17507_v37, %v10496_v54 }
0x14eb   :  { %v10498_v53 = vpop.f32.mrf.mxu0 }
0x14ec   :  { %v10721_v34 = vmul.f32 %v17505_v36, %v10498_v53 }
0x14ed   :  { %v10500_v40 = vpop.f32.mrf.mxu0  ;;  %v13658_v29 = vpop.f32.mrf.mxu1 }
0x14ee   :  { %v10768_v24 = vadd.f32 %v10721_v34, %v10720_v4  ;;  %v10723_v38 = vmul.f32 %v17515_v62, %v10500_v40  ;;  %v10728_v50 = vmul.f32 %v13658_v29, %v17529_v61  ;;  %v17560_v4 = vld [vmem:[#allocation76 + $0x90] sm:$0xff] }
0x14ef   :  { %v10502_v42 = vpop.f32.mrf.mxu0  ;;  %v10609_v35 = vpop.f32.mrf.mxu1 }
0x14f0   :  { %v10724_v39 = vmul.f32 %v17510_v59, %v10502_v42  ;;  %v10722_v27 = vmul.f32 %v17512_v0, %v10609_v35  ;;  %v17562_v42 = vld [vmem:[#allocation76 + $0x98] sm:$0xff] }
0x14f1   :  { %v10506_v15 = vpop.f32.mrf.mxu0  ;;  %v13659_v22 = vpop.f32.mrf.mxu1 }
0x14f2   :  { %v10769_v51 = vadd.f32 %v10768_v24, %v10722_v27  ;;  %v10772_v63 = vadd.f32 %v10724_v39, %v10723_v38  ;;  %v10726_v20 = vmul.f32 %v17519_v47, %v10506_v15  ;;  %v10731_v17 = vmul.f32 %v13659_v22, %v17538_v9  ;;  %v17567_v38 = vld [vmem:[#allocation76 + $0xa0] sm:$0xff] }
0x14f3   :  { %v10508_v31 = vpop.f32.mrf.mxu0  ;;  %v10612_v3 = vpop.f32.mrf.mxu1 }
0x14f4   :  { %v10727_v8 = vmul.f32 %v17521_v43, %v10508_v31  ;;  %v10725_v44 = vmul.f32 %v17523_v28, %v10612_v3  ;;  %10770 = vadd.xlane.f32.xlu1 %v10769_v51  ;;  %v17571_v3 = vld [vmem:[#allocation76 + $0xa8] sm:$0xff] }
0x14f5   :  { %v10510_v23 = vpop.f32.mrf.mxu0  ;;  %v13662_v45 = vpop.f32.mrf.mxu1 }
0x14f6   :  { %v10776_v16 = vadd.f32 %v10727_v8, %v10726_v20  ;;  %v10773_v14 = vadd.f32 %v10772_v63, %v10725_v44  ;;  %v10729_v32 = vmul.f32 %v17531_v12, %v10510_v23  ;;  %v17573_v63 = vld [vmem:[#allocation76 + $0xb0] sm:$0xff]  ;;  %v10740_v23 = vmul.f32 %v13662_v45, %v17567_v38 }
0x14f7   :  { %v10512_v30 = vpop.f32.mrf.mxu0  ;;  %v10625_v11 = vpop.f32.mrf.mxu1 }
0x14f8   :  { %v10730_v25 = vmul.f32 %v17533_v48, %v10512_v30  ;;  %10774 = vadd.xlane.f32.xlu1 %v10773_v14  ;;  %v10777_v46 = vadd.f32 %v10776_v16, %v10728_v50  ;;  %v10734_v21 = vmul.f32 %v17544_v52, %v10625_v11  ;;  %v17578_v30 = vld [vmem:[#allocation76 + $0xb8] sm:$0xff] }
0x14f9   :  { %v10516_v56 = vpop.f32.mrf.mxu0  ;;  %v13663_v1 = vpop.f32.mrf.mxu1 }
0x14fa   :  { %v10780_v55 = vadd.f32 %v10730_v25, %v10729_v32  ;;  %v10732_v7 = vmul.f32 %v17540_v33, %v10516_v56  ;;  %v17580_v32 = vld [vmem:[#allocation76 + $0xc0] sm:$0xff]  ;;  %v17582_v25 = vld [vmem:[#allocation76 + $0xc8] sm:$0xff]  ;;  %v10743_v45 = vmul.f32 %v13663_v1, %v17578_v30 }
0x14fb   :  { %v10518_v41 = vpop.f32.mrf.mxu0  ;;  %v10628_v57 = vpop.f32.mrf.mxu1 }
0x14fc   :  { %v10733_v10 = vmul.f32 %v17542_v13, %v10518_v41  ;;  %10778 = vadd.xlane.f32.xlu1 %v10777_v46  ;;  %v10781_v5 = vadd.f32 %v10780_v55, %v10731_v17  ;;  %v10737_v35 = vmul.f32 %v17556_v19, %v10628_v57  ;;  %v17584_v46 = vld [vmem:[#allocation76 + $0xd0] sm:$0xff] }
0x14fd   :  { %v10520_v26 = vpop.f32.mrf.mxu0  ;;  %v17551_v6 = vpop.f32.mrf.mxu1 }
0x14fe   :  { %v10784_v2 = vadd.f32 %v10733_v10, %v10732_v7  ;;  %v10735_v53 = vmul.f32 %v17549_v49, %v10520_v26  ;;  %v17589_v7 = vld [vmem:[#allocation76 + $0xe8] sm:$0xff] }
0x14ff   :  { %v10522_v54 = vpop.f32.mrf.mxu0  ;;  %v10641_v40 = vpop.f32.mrf.mxu1 }
0x1500   :  { %v10736_v34 = vmul.f32 %v17553_v18, %v10522_v54  ;;  %10782 = vadd.xlane.f32.xlu1 %v10781_v5  ;;  %v10785_v27 = vadd.f32 %v10784_v2, %v10734_v21  ;;  %v17593_v21 = vld [vmem:[#allocation76 + $0xd8] sm:$0xff]  ;;  %v17595_v2 = vld [vmem:[#allocation76 + $0xe0] sm:$0xff]  ;;  %v10746_v5 = vmul.f32 %v17584_v46, %v10641_v40 }
0x1501   :  { %v10526_v29 = vpop.f32.mrf.mxu0  ;;  %v17569_v51 = vpop.f32.mrf.mxu1 }
0x1502   :  { %v10788_v39 = vadd.f32 %v10736_v34, %v10735_v53  ;;  %v10738_v15 = vmul.f32 %v17560_v4, %v10526_v29 }
0x1503   :  { %v10528_v24 = vpop.f32.mrf.mxu0  ;;  %v10644_v11 = vpop.f32.mrf.mxu1 }
0x1504   :  { %v10739_v22 = vmul.f32 %v17562_v42, %v10528_v24  ;;  %10786 = vadd.xlane.f32.xlu1 %v10785_v27  ;;  %v10789_v8 = vadd.f32 %v10788_v39, %v10737_v35  ;;  %v10749_v1 = vmul.f32 %v17589_v7, %v10644_v11  ;;  %v17601_v24 = vld [vmem:[#allocation76 + $0xf0] sm:$0xff]  ;;  %v17611_v11 = vld [vmem:[#allocation76 + $0x108] sm:$0xff] }
0x1505   :  { %v10530_v31 = vpop.f32.mrf.mxu0  ;;  %v17591_v10 = vpop.f32.mrf.mxu1 }
0x1506   :  { %v10792_v20 = vadd.f32 %v10739_v22, %v10738_v15  ;;  %v10741_v16 = vmul.f32 %v17571_v3, %v10530_v31  ;;  %v17603_v15 = vld [vmem:[#allocation76 + $0xf8] sm:$0xff] }
0x1507   :  { %v10532_v44 = vpop.f32.mrf.mxu0  ;;  %v10657_v39 = vpop.f32.mrf.mxu1 }
0x1508   :  { %v10742_v14 = vmul.f32 %v17573_v63, %v10532_v44  ;;  %10790 = vadd.xlane.f32.xlu1 %v10789_v8  ;;  %v10793_v55 = vadd.f32 %v10792_v20, %v10740_v23  ;;  %v17605_v20 = vld [vmem:[#allocation76 + $0x100] sm:$0xff] }
0x1509   :  { %v10536_v50 = vpop.f32.mrf.mxu0 }
0x150a   :  { %v10796_v56 = vadd.f32 %v10742_v14, %v10741_v16  ;;  %v10744_v57 = vmul.f32 %v17580_v32, %v10536_v50  ;;  %v13671_v16 = vpop.f32.mrf.mxu1  ;;  %v17613_v50 = vld [vmem:[#allocation76 + $0x110] sm:$0xff] }
0x150b   :  { %v10538_v41 = vpop.f32.mrf.mxu0 }
0x150c   :  { %v10745_v17 = vmul.f32 %v17582_v25, %v10538_v41  ;;  %10794 = vadd.xlane.f32.xlu1 %v10793_v55  ;;  %v10797_v53 = vadd.f32 %v10796_v56, %v10743_v45  ;;  %v10752_v56 = vmul.f32 %v17551_v6, %v17605_v20  ;;  %v17617_v41 = vld [vmem:[#allocation76 + $0x118] sm:$0xff] }
0x150d   :  { %v10540_v26 = vpop.f32.mrf.mxu0  ;;  %18074 = vst [vmem:[#allocation141_spill] sm:$0xff] %v17617_v41 }
0x150e   :  { %v10800_v54 = vadd.f32 %v10745_v17, %v10744_v57  ;;  %v10747_v29 = vmul.f32 %v17593_v21, %v10540_v26 }
0x150f   :  { %v10542_v34 = vpop.f32.mrf.mxu0 }
0x1510   :  { %v10748_v35 = vmul.f32 %v17595_v2, %v10542_v34  ;;  %10798 = vadd.xlane.f32.xlu1 %v10797_v53  ;;  %v10801_v31 = vadd.f32 %v10800_v54, %v10746_v5  ;;  %v10710_v5 = vld [vmem:[#allocation76 + $0x130] sm:$0xff]  ;;  %v10660_v54 = vpop.f32.mrf.mxu1  ;;  %v17621_v34 = vld [vmem:[#allocation76 + $0x120] sm:$0xff] }
0x1511   :  { %v10546_v27 = vpop.f32.mrf.mxu0  ;;  %18075 = vst [vmem:[#allocation142_spill] sm:$0xff] %v17621_v34 }
0x1512   :  { %v10804_v22 = vadd.f32 %v10748_v35, %v10747_v29  ;;  %v10750_v8 = vmul.f32 %v17601_v24, %v10546_v27  ;;  %v10755_v29 = vmul.f32 %v17569_v51, %v17617_v41  ;;  %v10758_v27 = vmul.f32 %v10710_v5, %v10657_v39  ;;  %v17635_v5 = vld [vmem:[#allocation76 + $0x150] sm:$0xff] }
0x1513   :  { %v10548_v40 = vpop.f32.mrf.mxu0  ;;  %18079 = vst [vmem:[#allocation146_spill] sm:$0xff] %v17635_v5 }
0x1514   :  { %v10751_v44 = vmul.f32 %v17603_v15, %v10548_v40  ;;  %10802 = vadd.xlane.f32.xlu1 %v10801_v31  ;;  %v17609_v23 = vadd.f32 %v10804_v22, %v10749_v1  ;;  %v17623_v1 = vld [vmem:[#allocation76 + $0x128] sm:$0xff] }
0x1515   :  { %v10550_v14 = vpop.f32.mrf.mxu0  ;;  %18076 = vst [vmem:[#allocation143_spill] sm:$0xff] %v17623_v1 }
0x1516   :  { %v10808_v55 = vadd.f32 %v10751_v44, %v10750_v8  ;;  %v10753_v57 = vmul.f32 %v17611_v11, %v10550_v14  ;;  %v13470_v8 = vpop.f32.mrf.mxu1  ;;  %v17629_v14 = vld [vmem:[#allocation76 + $0x138] sm:$0xff] }
0x1517   :  { %v10552_v45 = vpop.f32.mrf.mxu0  ;;  %18077 = vst [vmem:[#allocation144_spill] sm:$0xff] %v17629_v14 }
0x1518   :  { %v10754_v17 = vmul.f32 %v17613_v50, %v10552_v45  ;;  %v10809_v26 = vadd.f32 %v10808_v55, %v10752_v56  ;;  %v17631_v56 = vld [vmem:[#allocation76 + $0x140] sm:$0xff]  ;;  %v10713_v45 = vld [vmem:[#allocation76 + $0x148] sm:$0xff] }
0x1519   :  { %v10556_v53 = vpop.f32.mrf.mxu0  ;;  %18078 = vst [vmem:[#allocation145_spill] sm:$0xff] %v17631_v56 }
0x151a   :  { %v10812_v6 = vadd.f32 %v10754_v17, %v10753_v57  ;;  %10810 = vadd.xlane.f32.xlu1 %v10809_v26  ;;  %v10756_v22 = vmul.f32 %v17621_v34, %v10556_v53  ;;  %v13471_v17 = vpop.f32.mrf.mxu1  ;;  %v17637_v53 = vld [vmem:[#allocation76 + $0x158] sm:$0xff] }
0x151b   :  { %v10558_v35 = vpop.f32.mrf.mxu0  ;;  %18080 = vst [vmem:[#allocation147_spill] sm:$0xff] %v17637_v53 }
0x151c   :  { %v10757_v31 = vmul.f32 %v17623_v1, %v10558_v35  ;;  %v10813_v40 = vadd.f32 %v10812_v6, %v10755_v29  ;;  %v10761_v29 = vmul.f32 %v10713_v45, %v10660_v54  ;;  %v10716_v35 = vld [vmem:[#allocation76 + $0x160] sm:$0xff]  ;;  %v10719_v54 = vld [vmem:[#allocation76 + $0x178] sm:$0xff] }
0x151d   :  { %v10560_v44 = vpop.f32.mrf.mxu0 }
0x151e   :  { %v10816_v55 = vadd.f32 %v10757_v31, %v10756_v22  ;;  %10814 = vadd.xlane.f32.xlu1 %v10813_v40  ;;  %v10759_v51 = vmul.f32 %v17629_v14, %v10560_v44  ;;  %v13473_v44 = vpop.f32.mrf.mxu1 }
0x151f   :  { %v10562_v60 = vpop.f32.mrf.mxu0 }
0x1520   :  { %v10760_v57 = vmul.f32 %v17631_v56, %v10562_v60  ;;  %v10817_v39 = vadd.f32 %v10816_v55, %v10758_v27  ;;  %v17641_v60 = vld [vmem:[#allocation76 + $0x168] sm:$0xff]  ;;  %v17643_v27 = vld [vmem:[#allocation76 + $0x170] sm:$0xff]  ;;  %v10764_v55 = vmul.f32 %v17591_v10, %v10716_v35 }
0x1521   :  { %v10566_v26 = vpop.f32.mrf.mxu0  ;;  %18081 = vst [vmem:[#allocation148_spill] sm:$0xff] %v17641_v60  ;;  %18082 = vst [vmem:[#allocation149_spill] sm:$0xff] %v17643_v27 }
0x1522   :  { %v10820_v6 = vadd.f32 %v10760_v57, %v10759_v51  ;;  %10818 = vadd.xlane.f32.xlu1 %v10817_v39  ;;  %v10762_v22 = vmul.f32 %v17635_v5, %v10566_v26  ;;  %v13474_v26 = vpop.f32.mrf.mxu1  ;;  %v13472_v5 = vadd.f32 %v13471_v17, %v13470_v8 }
0x1523   :  { %v10568_v1 = vpop.f32.mrf.mxu0  ;;  %v13475_v34 = vadd.f32 %v13474_v26, %v13473_v44 }
0x1524   :  { %v10763_v31 = vmul.f32 %v17637_v53, %v10568_v1  ;;  %v10821_v40 = vadd.f32 %v10820_v6, %v10761_v29  ;;  %v10767_v29 = vmul.f32 %v13671_v16, %v10719_v54  ;;  %v17649_v16 = vld [vmem:[%s16705_s20] ss:$0 sm:$0xff] }
0x1525   :  { %v10570_v14 = vpop.f32.mrf.mxu0 }
0x1526   :  { %v10824_v56 = vadd.f32 %v10763_v31, %v10762_v22  ;;  %10822 = vadd.xlane.f32.xlu1 %v10821_v40  ;;  %v10765_v51 = vmul.f32 %v17641_v60, %v10570_v14 }
0x1527   :  { %v10572_v45 = vpop.f32.mrf.mxu0 }
0x1528   :  { %v10766_v57 = vmul.f32 %v17643_v27, %v10572_v45  ;;  %v10825_v39 = vadd.f32 %v10824_v56, %v10764_v55 }
0x1529   :  { %v11380_v1 = vpop.f32.mrf.mxu0 }
0x152a   :  { %v10828_v6 = vadd.f32 %v10766_v57, %v10765_v51  ;;  %10826 = vadd.xlane.f32.xlu1 %v10825_v39  ;;  %v11381_v35 = vadd.f32 %v13472_v5, %v11380_v1 }
0x152b   :  { %v13690_v53 = vpop.f32.mrf.mxu0 }
0x152c   :  { %v10829_v41 = vadd.f32 %v10828_v6, %v10767_v29 }
0x152d   :  { %v11383_v10 = vpop.f32.mrf.mxu0 }
0x152e   :  { %v11384_v22 = vadd.f32 %v13475_v34, %v11383_v10  ;;  %10830 = vadd.xlane.f32.xlu1 %v10829_v41  ;;  %v18083_v10 = vmov 0  }
0x152f   :  { %v13691_v31 = vpop.f32.mrf.mxu0 }
0x1530   :  { %v11387_v40 = vmax.f32 %v11381_v35, %v11384_v22 }
0x1532   :  { %v11388_v14 = vrot.slane %v11387_v40, 4 }
0x1534   :  { %v11389_v60 = vmax.f32 %v11387_v40, %v11388_v14 }
0x1536   :  { %v11390_v45 = vrot.slane %v11389_v60, 2 }
0x1538   :  { %v11391_v56 = vmax.f32 %v11389_v60, %v11390_v45 }
0x153a   :  { %v11392_v55 = vrot.slane %v11391_v56, 1 }
0x153c   :  { %v11393_v27 = vmax.f32 %v11391_v56, %v11392_v55 }
0x153e   :  { %v11394_v54 = vsub.f32 %v11381_v35, %v11393_v27  ;;  %v11395_v53 = vsub.f32 %v11384_v22, %v11393_v27 }
0x153f   :  { %10839 = vbcast.lane.b32.xlu1 %v17649_v16, 256 }
0x1540   :  { %v11396_v8 = vmul.f32 1.442695, %v11394_v54  ;;  %v11398_v17 = vmul.f32 1.442695, %v11395_v53 }
0x1542   :  { %15266 = vpow2.f32 %v11396_v8 }
0x1543   :  { %15268 = vpow2.f32 %v11398_v17  ;;  %10847 = vbcast.lane.b32.xlu1 %v17649_v16, 272 }
0x1547   :  { %10851 = vbcast.lane.b32.xlu1 %v17649_v16, 280 }
0x154b   :  { %10855 = vbcast.lane.b32.xlu1 %v17649_v16, 288 }
0x154f   :  { %v15267_v41 = vpop.eup %15266  ;;  %10859 = vbcast.lane.b32.xlu1 %v17649_v16, 296 }
0x1550   :  { %v15269_v34 = vpop.eup %15268 }
0x1551   :  { %v11400_v5 = vadd.f32 %v15269_v34, %v15267_v41 }
0x1553   :  { %v11401_v44 = vrot.slane %v11400_v5, 4  ;;  %10863 = vbcast.lane.b32.xlu1 %v17649_v16, 304 }
0x1555   :  { %v11402_v60 = vadd.f32 %v11401_v44, %v11400_v5 }
0x1557   :  { %v11403_v27 = vrot.slane %v11402_v60, 2  ;;  %10871 = vbcast.lane.b32.xlu1 %v17649_v16, 320 }
0x1559   :  { %v11404_v51 = vadd.f32 %v11403_v27, %v11402_v60 }
0x155b   :  { %10879 = vbcast.lane.b32.xlu1 %v17649_v16, 336  ;;  %v11405_v57 = vrot.slane %v11404_v51, 1 }
0x155d   :  { %v11406_v39 = vadd.f32 %v11405_v57, %v11404_v51 }
0x155f   :  { %10887 = vbcast.lane.b32.xlu1 %v17649_v16, 352  ;;  %15270 = vrcp.f32 %v11406_v39 }
0x1563   :  { %10895 = vbcast.lane.b32.xlu1 %v17649_v16, 368 }
0x1567   :  { %11828 = vbcast.lane.b32.xlu1 %v17649_v16, 256 }
0x156b   :  { %11840 = vbcast.lane.b32.xlu1 %v17649_v16, 280 }
0x156c   :  { %v15271_v26 = vpop.eup %15270 }
0x156d   :  { %v11408_v1 = vmul.f32 %v15271_v26, %v15267_v41  ;;  %v11409_v29 = vmul.f32 %v15271_v26, %v15269_v34 }
0x156f   :  { %v11410_v6 = vpack.c.bf16 %v11409_v29, %v11408_v1  ;;  %11848 = vbcast.lane.b32.xlu1 %v17649_v16, 296 }
0x1571   :  { %11411 = vxpose.xlu0.c.b16.start.end [1/1] (short) %v11410_v6, 128 }
0x1573   :  { %11852 = vbcast.lane.b32.xlu1 %v17649_v16, 304 }
0x1577   :  { %11856 = vbcast.lane.b32.xlu1 %v17649_v16, 312 }
0x157a   :  { %13827 = vset.pattern.permute.xlu0 %v18083_v10 }
0x157b   :  { %11864 = vbcast.lane.b32.xlu1 %v17649_v16, 328 }
0x157d   :  { %v10771_v35 = vpop.xlane.xlu1 %10770 }
0x157f   :  { %11872 = vbcast.lane.b32.xlu1 %v17649_v16, 344 }
0x1581   :  { %v17669_v22 = vpop.xlane.xlu1 %10774 }
0x1583   :  { %11880 = vbcast.lane.b32.xlu1 %v17649_v16, 360 }
0x1585   :  { %v10779_v31 = vpop.xlane.xlu1 %10778 }
0x1589   :  { %v10783_v40 = vpop.xlane.xlu1 %10782 }
0x158d   :  { %v17672_v14 = vpop.xlane.xlu1 %10786 }
0x1591   :  { %v10791_v45 = vpop.xlane.xlu1 %10790 }
0x1595   :  { %v17674_v56 = vpop.xlane.xlu1 %10794 }
0x1599   :  { %v17676_v55 = vpop.xlane.xlu1 %10798 }
0x159a   :  { %10806 = vadd.xlane.f32.xlu0 %v17609_v23 }
0x159d   :  { %v17679_v54 = vpop.xlane.xlu1 %10802 }
0x15a3   :  { %v17681_v53 = vpop.xlane.xlu1 %10810 }
0x15a7   :  { %v17683_v8 = vpop.xlane.xlu1 %10814 }
0x15ab   :  { %v17685_v17 = vpop.xlane.xlu1 %10818 }
0x15af   :  { %v17687_v41 = vpop.xlane.xlu1 %10822 }
0x15b0   :  { %10843 = vbcast.lane.b32.xlu0 %v17649_v16, 264 }
0x15b3   :  { %v17690_v34 = vpop.xlane.xlu1 %10826 }
0x15b4   :  { %10867 = vbcast.lane.b32.xlu0 %v17649_v16, 312 }
0x15b7   :  { %v17693_v5 = vpop.xlane.xlu1 %10830 }
0x15b8   :  { %10875 = vbcast.lane.b32.xlu0 %v17649_v16, 328 }
0x15bb   :  { %v10840_v23 = vpop.permute.xlu1 %10839 }
0x15bc   :  { %v10917_v44 = vadd.f32 %v10840_v23, %v10771_v35  ;;  %10883 = vbcast.lane.b32.xlu0 %v17649_v16, 344 }
0x15be   :  { %10950 = vperm.xlu1 %13826, %v10917_v44  }
0x15bf   :  { %v10848_v60 = vpop.permute.xlu1 %10847 }
0x15c0   :  { %v10919_v27 = vadd.f32 %v10848_v60, %v10779_v31  ;;  %10891 = vbcast.lane.b32.xlu0 %v17649_v16, 360 }
0x15c2   :  { %10956 = vperm.xlu1 %13826, %v10919_v27  }
0x15c3   :  { %v10852_v51 = vpop.permute.xlu1 %10851 }
0x15c4   :  { %v10920_v57 = vadd.f32 %v10852_v51, %v10783_v40  ;;  %10899 = vbcast.lane.b32.xlu0 %v17649_v16, 376 }
0x15c6   :  { %10959 = vperm.xlu1 %13826, %v10920_v57  }
0x15c7   :  { %v10856_v39 = vpop.permute.xlu1 %10855 }
0x15c8   :  { %11832 = vbcast.lane.b32.xlu0 %v17649_v16, 264 }
0x15cb   :  { %v10860_v26 = vpop.permute.xlu1 %10859 }
0x15cc   :  { %v10922_v1 = vadd.f32 %v10860_v26, %v10791_v45  ;;  %11836 = vbcast.lane.b32.xlu0 %v17649_v16, 272 }
0x15ce   :  { %10965 = vperm.xlu1 %13826, %v10922_v1  }
0x15cf   :  { %v10864_v27 = vpop.permute.xlu1 %10863 }
0x15d0   :  { %11844 = vbcast.lane.b32.xlu0 %v17649_v16, 288 }
0x15d3   :  { %v11419_v29 = vpop.trf.xlu0  ;;  %v10872_v26 = vpop.permute.xlu1 %10871 }
0x15d4   :  { %13187 = vmatmul.mubr.msk.bf16.vlgmr.msra.gmra.mxu1 %vm10437_vm4, %v11419_v29  ;;  %13694 = vmatprep.mubr.msk.bf16.mxu0 %vm10437_vm4, %v11419_v29  ;;  %v10921_v29 = vadd.f32 %v10856_v39, %v17672_v14 }
0x15d5   :  { %11493 = vmatprep.mubr.bf16.mxu1 %v18083_v10  ;;  %11860 = vbcast.lane.b32.xlu0 %v17649_v16, 320 }
0x15d7   :  { %v11420_v6 = vpop.trf.xlu0 }
0x15d8   :  { %13695 = vmatmul.mubr.msk.bf16.vlgmr.msra.gmra.mxu0 %vm10437_vm4, %v11420_v6 }
0x15d9   :  { %11868 = vbcast.lane.b32.xlu0 %v17649_v16, 336 }
0x15db   :  { %v11421_v35 = vpop.trf.xlu0 }
0x15dc   :  { %13188 = vmatmul.mubr.msk.bf16.gmra.mxu1 %vm10437_vm4, %v11420_v6  ;;  %13698 = vmatprep.mubr.msk.bf16.mxu0 %vm10437_vm4, %v11421_v35 }
0x15dd   :  { %11503 = vmatprep.mubr.bf16.mxu1 %v18083_v10  ;;  %11876 = vbcast.lane.b32.xlu0 %v17649_v16, 352 }
0x15df   :  { %v11422_v31 = vpop.trf.xlu0 }
0x15e0   :  { %13699 = vmatmul.mubr.msk.bf16.gmra.mxu0 %vm10437_vm4, %v11422_v31 }
0x15e3   :  { %v11423_v40 = vpop.trf.xlu0 }
0x15e4   :  { %13189 = vmatmul.mubr.msk.bf16.gmra.mxu1 %vm10437_vm4, %v11421_v35  ;;  %13702 = vmatprep.mubr.msk.bf16.mxu0 %vm10437_vm4, %v11423_v40 }
0x15e5   :  { %11513 = vmatprep.mubr.bf16.mxu1 %v18083_v10 }
0x15e7   :  { %v11424_v45 = vpop.trf.xlu0 }
0x15e8   :  { %13703 = vmatmul.mubr.msk.bf16.gmra.mxu0 %vm10437_vm4, %v11424_v45 }
0x15eb   :  { %v11425_v23 = vpop.trf.xlu0 }
0x15ec   :  { %13190 = vmatmul.mubr.msk.bf16.gmra.mxu1 %vm10437_vm4, %v11422_v31  ;;  %13706 = vmatprep.mubr.msk.bf16.mxu0 %vm10437_vm4, %v11425_v23  ;;  %v10923_v31 = vadd.f32 %v10864_v27, %v17674_v56 }
0x15ed   :  { %11523 = vmatprep.mubr.bf16.mxu1 %v18083_v10 }
0x15ef   :  { %v11426_v44 = vpop.trf.xlu0 }
0x15f0   :  { %13707 = vmatmul.mubr.msk.bf16.gmra.mxu0 %vm10437_vm4, %v11426_v44 }
0x15f4   :  { %13191 = vmatmul.mubr.msk.bf16.gmra.mxu1 %vm10437_vm4, %v11423_v40  ;;  %v10880_v40 = vpop.permute.xlu1 %10879 }
0x15f5   :  { %11533 = vmatprep.mubr.bf16.mxu1 %v18083_v10 }
0x15fc   :  { %13192 = vmatmul.mubr.msk.bf16.gmra.mxu1 %vm10437_vm4, %v11424_v45 }
0x15fd   :  { %11543 = vmatprep.mubr.bf16.mxu1 %v18083_v10 }
0x1604   :  { %13193 = vmatmul.mubr.msk.bf16.gmra.mxu1 %vm10437_vm4, %v11425_v23  ;;  %v10925_v23 = vadd.f32 %v10872_v26, %v17679_v54 }
0x1605   :  { %11553 = vmatprep.mubr.bf16.mxu1 %v18083_v10 }
0x160c   :  { %13194 = vmatmul.mubr.msk.bf16.gmra.mxu1 %vm10437_vm4, %v11426_v44  ;;  %v10888_v44 = vpop.permute.xlu1 %10887 }
0x1623   :  { %v10807_v60 = vpop.xlane.xlu0 %10806 }
0x1627   :  { %v10844_v51 = vpop.permute.xlu0 %10843 }
0x1628   :  { %v10918_v57 = vadd.f32 %v10844_v51, %v17669_v22  ;;  %v10896_v51 = vpop.permute.xlu1 %10895 }
0x1629   :  { %v10931_v54 = vadd.f32 %v10896_v51, %v17690_v34 }
0x162a   :  { %10953 = vperm.xlu0 %13827, %v10918_v57  }
0x162b   :  { %v10868_v1 = vpop.permute.xlu0 %10867 }
0x162c   :  { %v10924_v6 = vadd.f32 %v10868_v1, %v17676_v55  ;;  %v10927_v55 = vadd.f32 %v10880_v40, %v17681_v53 }
0x162e   :  { %10962 = vperm.xlu0 %13827, %v10921_v29   ;;  %10971 = vperm.xlu1 %13826, %v10924_v6  }
0x162f   :  { %v10876_v35 = vpop.permute.xlu0 %10875 }
0x1630   :  { %v10926_v10 = vadd.f32 %v10876_v35, %v10807_v60  ;;  %v10929_v60 = vadd.f32 %v10888_v44, %v17685_v17 }
0x1632   :  { %10977 = vperm.xlu1 %13826, %v10926_v10   ;;  %10968 = vperm.xlu0 %13827, %v10923_v31  }
0x1633   :  { %v10884_v45 = vpop.permute.xlu0 %10883 }
0x1634   :  { %v10928_v22 = vadd.f32 %v10884_v45, %v17683_v8  ;;  %v17739_v8 = vpop.permute.xlu1 %11828 }
0x1636   :  { %10983 = vperm.xlu1 %13826, %v10928_v22   ;;  %10974 = vperm.xlu0 %13827, %v10925_v23  }
0x1637   :  { %v10892_v14 = vpop.permute.xlu0 %10891 }
0x1638   :  { %v10930_v39 = vadd.f32 %v10892_v14, %v17687_v41  ;;  %v17741_v57 = vpop.permute.xlu1 %11840 }
0x163a   :  { %10989 = vperm.xlu1 %13826, %v10930_v39   ;;  %10980 = vperm.xlu0 %13827, %v10927_v55  }
0x163b   :  { %v10900_v56 = vpop.permute.xlu0 %10899 }
0x163c   :  { %v10932_v27 = vadd.f32 %v10900_v56, %v17693_v5  ;;  %v17743_v53 = vpop.permute.xlu1 %11848 }
0x163e   :  { %10995 = vperm.xlu1 %13826, %v10932_v27   ;;  %10986 = vperm.xlu0 %13827, %v10929_v60  }
0x163f   :  { %v17749_v1 = vpop.permute.xlu0 %11832 }
0x1640   :  { %v17745_v41 = vpop.permute.xlu1 %11852 }
0x1642   :  { %10992 = vperm.xlu0 %13827, %v10931_v54   ;;  %v18090_v54 = vlaneseq }
0x1643   :  { %v17753_v5 = vpop.permute.xlu0 %11836 }
0x1644   :  { %v17747_v26 = vpop.permute.xlu1 %11856 }
0x1645   :  { %18084 = vst [vmem:[#allocation150_spill] sm:$0xff] %v17747_v26 }
0x1647   :  { %v17757_v34 = vpop.permute.xlu0 %11844 }
0x1648   :  { %v17751_v17 = vpop.permute.xlu1 %11864 }
0x1649   :  { %18085 = vst [vmem:[#allocation151_spill] sm:$0xff] %v17751_v17 }
0x164b   :  { %v17761_v35 = vpop.permute.xlu0 %11860 }
0x164c   :  { %v17755_v29 = vpop.permute.xlu1 %11872  ;;  %18088 = vst [vmem:[#allocation154_spill] sm:$0xff] %v17761_v35 }
0x164d   :  { %18086 = vst [vmem:[#allocation152_spill] sm:$0xff] %v17755_v29 }
0x164f   :  { %v17767_v14 = vpop.permute.xlu0 %11868 }
0x1650   :  { %v17759_v6 = vpop.permute.xlu1 %11880  ;;  %18089 = vst [vmem:[#allocation155_spill] sm:$0xff] %v17767_v14 }
0x1651   :  { %18087 = vst [vmem:[#allocation153_spill] sm:$0xff] %v17759_v6  ;;  %v17774_v6 = vand.u32 127, %v18090_v54 }
0x1653   :  { %v11003_v35 = vadd.s32 4294967288, %v17774_v6 }
0x1654   :  { %v17763_v10 = vpop.permute.xlu1 %10950 }
0x1658   :  { %v17769_v56 = vpop.permute.xlu1 %10956 }
0x1694   :  { %v11485_v31 = vpop.f32.mrf.mxu1 }
0x1695   :  { %v11709_v44 = vmul.f32 %v11485_v31, %v17507_v37  ;;  %v11010_v37 = vadd.s32 4294967280, %v17774_v6 }
0x1696   :  { %v11487_v40 = vpop.f32.mrf.mxu1 }
0x1697   :  { %v11710_v45 = vmul.f32 %v11487_v40, %v17505_v36 }
0x1698   :  { %v11489_v23 = vpop.f32.mrf.mxu1  ;;  %v13696_v22 = vpop.f32.mrf.mxu0 }
0x1699   :  { %v11757_v60 = vadd.f32 %v11710_v45, %v11709_v44  ;;  %v11712_v40 = vmul.f32 %v11489_v23, %v17515_v62  ;;  %v17782_v44 = vpop.permute.xlu0 %11876 }
0x169a   :  { %v11491_v55 = vpop.f32.mrf.mxu1  ;;  %v11598_v39 = vpop.f32.mrf.mxu0 }
0x169b   :  { %v11713_v27 = vmul.f32 %v11491_v55, %v17510_v59  ;;  %v11711_v51 = vmul.f32 %v11598_v39, %v17512_v0  ;;  %v11017_v55 = vadd.s32 4294967272, %v17774_v6  ;;  %v10960_v39 = vpop.permute.xlu1 %10959 }
0x169c   :  { %v11495_v29 = vpop.f32.mrf.mxu1  ;;  %v13697_v36 = vpop.f32.mrf.mxu0 }
0x169d   :  { %v11758_v17 = vadd.f32 %v11757_v60, %v11711_v51  ;;  %v11761_v26 = vadd.f32 %v11713_v27, %v11712_v40  ;;  %v11715_v45 = vmul.f32 %v11495_v29, %v17519_v47  ;;  %v11717_v60 = vmul.f32 %v13696_v22, %v17529_v61 }
0x169e   :  { %v11497_v31 = vpop.f32.mrf.mxu1  ;;  %v11601_v14 = vpop.f32.mrf.mxu0  ;;  %v11024_v27 = vadd.s32 4294967264, %v17774_v6  ;;  %v17791_v47 = vsub.s32 %v17774_v6, %v16891_v58  ;;  %v17802_v22 = vsub.s32 %v11017_v55, %v16891_v58  ;;  %v11031_v40 = vadd.s32 4294967256, %v17774_v6 }
0x169f   :  { %v11716_v59 = vmul.f32 %v11497_v31, %v17521_v43  ;;  %v11714_v0 = vmul.f32 %v11601_v14, %v17523_v28  ;;  %11759 = vadd.xlane.f32.xlu0 %v11758_v17  ;;  %v17794_v43 = vsub.s32 %v11010_v37, %v16891_v58  ;;  %v17797_v17 = vsub.s32 %v11003_v35, %v16891_v58 }
0x16a0   :  { %v11499_v62 = vpop.f32.mrf.mxu1  ;;  %v17785_v23 = vpop.f32.mrf.mxu0  ;;  %v11720_v35 = vmul.f32 %v13697_v36, %v17538_v9 }
0x16a1   :  { %v11765_v51 = vadd.f32 %v11716_v59, %v11715_v45  ;;  %v11762_v54 = vadd.f32 %v11761_v26, %v11714_v0  ;;  %18091 = vst [vmem:[#allocation156_spill] sm:$0xff] %v17794_v43  ;;  %v11718_v14 = vmul.f32 %v11499_v62, %v17531_v12  ;;  %v10966_v45 = vpop.permute.xlu1 %10965  ;;  %v17809_v12 = vsub.s32 %v11024_v27, %v16891_v58 }
0x16a2   :  { %v11501_v28 = vpop.f32.mrf.mxu1  ;;  %v11614_v29 = vpop.f32.mrf.mxu0  ;;  %v11014_v55 = vrot.slane %v17769_v56, %v17794_v43  ;;  %v11021_v27 = vrot.slane %v10960_v39, %v17802_v22 }
0x16a3   :  { %v11719_v61 = vmul.f32 %v11501_v28, %v17533_v48  ;;  %11763 = vadd.xlane.f32.xlu1 %v11762_v54  ;;  %v11766_v26 = vadd.f32 %v11765_v51, %v11717_v60  ;;  %v11002_v48 = vrot.slane %v17763_v10, %v17791_v47  ;;  %v11038_v51 = vadd.s32 4294967248, %v17774_v6 }
0x16a4   :  { %v11505_v31 = vpop.f32.mrf.mxu1  ;;  %v17805_v37 = vpop.f32.mrf.mxu0  ;;  %v11723_v54 = vmul.f32 %v11614_v29, %v17544_v52 }
0x16a5   :  { %v11769_v59 = vadd.f32 %v11719_v61, %v11718_v14  ;;  %v10954_v0 = vpop.permute.xlu0 %10953  ;;  %11767 = vadd.xlane.f32.xlu0 %v11766_v26  ;;  %v11721_v9 = vmul.f32 %v11505_v31, %v17540_v33  ;;  %v17822_v14 = vsub.s32 %v11031_v40, %v16891_v58  ;;  %v11045_v33 = vadd.s32 4294967240, %v17774_v6 }
0x16a6   :  { %v11007_v62 = vrot.slane %v10954_v0, %v17797_v17  ;;  %v11507_v60 = vpop.f32.mrf.mxu1  ;;  %v11617_v61 = vpop.f32.mrf.mxu0  ;;  %v17830_v40 = vsub.s32 %v11038_v51, %v16891_v58  ;;  %v11052_v31 = vadd.s32 4294967232, %v17774_v6 }
0x16a7   :  { %v11722_v36 = vmul.f32 %v11507_v60, %v17542_v13  ;;  %v11770_v28 = vadd.f32 %v11769_v59, %v11720_v35  ;;  %v11035_v51 = vrot.slane %v10966_v45, %v17822_v14 }
0x16a8   :  { %v11009_v10 = vsel %vm11008_vm5, %v11007_v62, %v11002_v48  ;;  %v11509_v56 = vpop.f32.mrf.mxu1  ;;  %v11726_v48 = vmul.f32 %v11617_v61, %v17556_v19  ;;  %v17836_v62 = vpop.f32.mrf.mxu0 }
0x16a9   :  { %v11016_v26 = vsel %vm11015_vm6, %v11014_v55, %v11009_v10  ;;  %v11773_v0 = vadd.f32 %v11722_v36, %v11721_v9  ;;  %v10963_v43 = vpop.permute.xlu0 %10962  ;;  %11771 = vadd.xlane.f32.xlu0 %v11770_v28  ;;  %v10972_v13 = vpop.permute.xlu1 %10971  ;;  %v11724_v35 = vmul.f32 %v11509_v56, %v17549_v49  ;;  %v17842_v36 = vsub.s32 %v11045_v33, %v16891_v58 }
0x16aa   :  { %v11023_v52 = vsel %vm11022_vm7, %v11021_v27, %v11016_v26  ;;  %v11028_v39 = vrot.slane %v10963_v43, %v17809_v12  ;;  %v11511_v29 = vpop.f32.mrf.mxu1  ;;  %v11059_v43 = vadd.s32 4294967224, %v17774_v6  ;;  %v17846_v27 = vsub.s32 %v11052_v31, %v16891_v58  ;;  %v11630_v33 = vpop.f32.mrf.mxu0 }
0x16ab   :  { %v11725_v59 = vmul.f32 %v11511_v29, %v17553_v18  ;;  %v11774_v55 = vadd.f32 %v11773_v0, %v11723_v54  ;;  %v11073_v10 = vadd.s32 4294967208, %v17774_v6  ;;  %v11066_v56 = vadd.s32 4294967216, %v17774_v6 }
0x16ac   :  { %v11030_v60 = vsel %vm11029_vm8, %v11028_v39, %v11023_v52  ;;  %v11515_v9 = vpop.f32.mrf.mxu1  ;;  %v17855_v39 = vsub.s32 %v11059_v43, %v16891_v58  ;;  %v11729_v31 = vmul.f32 %v17785_v23, %v17567_v38  ;;  %v11080_v43 = vadd.s32 4294967200, %v17774_v6 }
0x16ad   :  { %v11777_v28 = vadd.f32 %v11725_v59, %v11724_v35  ;;  %11775 = vadd.xlane.f32.xlu1 %v11774_v55  ;;  %v10969_v49 = vpop.permute.xlu0 %10968  ;;  %v10978_v18 = vpop.permute.xlu1 %10977  ;;  %v11727_v45 = vmul.f32 %v11515_v9, %v17560_v4  ;;  %v11037_v61 = vsel %vm11036_vm9, %v11035_v51, %v11030_v60  ;;  %v11049_v35 = vrot.slane %v10972_v13, %v17842_v36 }
0x16ae   :  { %v11042_v19 = vrot.slane %v10969_v49, %v17830_v40  ;;  %v11517_v54 = vpop.f32.mrf.mxu1  ;;  %v17865_v9 = vsub.s32 %v11066_v56, %v16891_v58  ;;  %v11063_v56 = vrot.slane %v10978_v18, %v17855_v39 }
0x16af   :  { %v11728_v26 = vmul.f32 %v11517_v54, %v17562_v42  ;;  %v11778_v0 = vadd.f32 %v11777_v28, %v11726_v48  ;;  %v17862_v48 = vsub.s32 %v11073_v10, %v16891_v58  ;;  %v17871_v28 = vpop.f32.mrf.mxu0  ;;  %v11087_v54 = vadd.s32 4294967192, %v17774_v6 }
0x16b0   :  { %v11044_v52 = vsel %vm11043_vm10, %v11042_v19, %v11037_v61  ;;  %v11519_v29 = vpop.f32.mrf.mxu1  ;;  %v11732_v10 = vmul.f32 %v17805_v37, %v17578_v30 }
0x16b1   :  { %v11781_v59 = vadd.f32 %v11728_v26, %v11727_v45  ;;  %v10975_v4 = vpop.permute.xlu0 %10974  ;;  %11779 = vadd.xlane.f32.xlu0 %v11778_v0  ;;  %v10984_v55 = vpop.permute.xlu1 %10983  ;;  %v11730_v38 = vmul.f32 %v11519_v29, %v17571_v3  ;;  %v11051_v23 = vsel %vm11050_vm11, %v11049_v35, %v11044_v52  ;;  %v11735_v52 = vmul.f32 %v11630_v33, %v17584_v46 }
0x16b2   :  { %v11056_v42 = vrot.slane %v10975_v4, %v17846_v27  ;;  %v11521_v60 = vpop.f32.mrf.mxu1  ;;  %v17882_v29 = vsub.s32 %v11080_v43, %v16891_v58  ;;  %v17891_v46 = vsub.s32 %v11087_v54, %v16891_v58 }
0x16b3   :  { %v11731_v13 = vmul.f32 %v11521_v60, %v17573_v63  ;;  %v11782_v51 = vadd.f32 %v11781_v59, %v11729_v31  ;;  %v11101_v63 = vadd.s32 4294967176, %v17774_v6  ;;  %v11094_v31 = vadd.s32 4294967184, %v17774_v6  ;;  %v11633_v59 = vpop.f32.mrf.mxu0 }
0x16b4   :  { %v11058_v49 = vsel %vm11057_vm12, %v11056_v42, %v11051_v23  ;;  %v11525_v19 = vpop.f32.mrf.mxu1  ;;  %v11077_v60 = vrot.slane %v10984_v55, %v17862_v48 }
0x16b5   :  { %v11785_v3 = vadd.f32 %v11731_v13, %v11730_v38  ;;  %11783 = vadd.xlane.f32.xlu1 %v11782_v51  ;;  %v10981_v45 = vpop.permute.xlu0 %10980  ;;  %v10990_v61 = vpop.permute.xlu1 %10989  ;;  %v11733_v30 = vmul.f32 %v11525_v19, %v17580_v32  ;;  %v11065_v37 = vsel %vm11064_vm13, %v11063_v56, %v11058_v49  ;;  %v17895_v43 = vsub.s32 %v11101_v63, %v16891_v58 }
0x16b6   :  { %v11070_v26 = vrot.slane %v10981_v45, %v17865_v9  ;;  %v11527_v0 = vpop.f32.mrf.mxu1  ;;  %v11738_v38 = vmul.f32 %v11633_v59, %v17589_v7  ;;  %v17899_v23 = vsub.s32 %v11094_v31, %v16891_v58  ;;  %v11091_v56 = vrot.slane %v10990_v61, %v17891_v46  ;;  %v13708_v63 = vpop.f32.mrf.mxu0 }
0x16b7   :  { %v11734_v18 = vmul.f32 %v11527_v0, %v17582_v25  ;;  %v11786_v35 = vadd.f32 %v11785_v3, %v11732_v10 }
0x16b8   :  { %v11072_v4 = vsel %vm11071_vm14, %v11070_v26, %v11065_v37  ;;  %v11529_v42 = vpop.f32.mrf.mxu1  ;;  %v11646_v59 = vpop.f32.mrf.mxu0 }
0x16b9   :  { %v11789_v33 = vadd.f32 %v11734_v18, %v11733_v30  ;;  %v10987_v6 = vpop.permute.xlu0 %10986  ;;  %11787 = vadd.xlane.f32.xlu0 %v11786_v35  ;;  %v11736_v55 = vmul.f32 %v11529_v42, %v17593_v21  ;;  %v11079_v13 = vsel %vm11078_vm15, %v11077_v60, %v11072_v4  ;;  %v10996_v51 = vpop.permute.xlu1 %10995  ;;  %v11741_v30 = vmul.f32 %v17836_v62, %v17605_v20  ;;  %v11699_v60 = vld [vmem:[#allocation76 + $0x130] sm:$0xff] }
0x16ba   :  { %v11084_v32 = vrot.slane %v10987_v6, %v17882_v29  ;;  %v11531_v25 = vpop.f32.mrf.mxu1  ;;  %v11105_v58 = vrot.slane %v10996_v51, %v17895_v43  ;;  %v13709_v62 = vpop.f32.mrf.mxu0  ;;  %v11747_v51 = vmul.f32 %v11699_v60, %v11646_v59  ;;  %v18100_v60 = vld [vmem:[#allocation149_spill] sm:$0xff] }
0x16bb   :  { %v11737_v49 = vmul.f32 %v11531_v25, %v17595_v2  ;;  %v11790_v19 = vadd.f32 %v11789_v33, %v11735_v52  ;;  %v18092_v33 = vld [vmem:[#allocation141_spill] sm:$0xff]  ;;  %v18093_v25 = vld [vmem:[#allocation142_spill] sm:$0xff] }
0x16bc   :  { %v11086_v54 = vsel %vm11085_vm0, %v11084_v32, %v11079_v13  ;;  %v11535_v10 = vpop.f32.mrf.mxu1  ;;  %v11744_v6 = vmul.f32 %v17871_v28, %v18092_v33 }
0x16bd   :  { %v11793_v3 = vadd.f32 %v11737_v49, %v11736_v55  ;;  %11791 = vadd.xlane.f32.xlu1 %v11790_v19  ;;  %v10993_v7 = vpop.permute.xlu0 %10992  ;;  %v11739_v2 = vmul.f32 %v11535_v10, %v17601_v24  ;;  %v11093_v26 = vsel %vm11092_vm1, %v11091_v56, %v11086_v54  ;;  %v18094_v55 = vld [vmem:[#allocation143_spill] sm:$0xff]  ;;  %v11649_v54 = vpop.f32.mrf.mxu0  ;;  %v11702_v10 = vld [vmem:[#allocation76 + $0x148] sm:$0xff]  ;;  %v18095_v56 = vld [vmem:[#allocation144_spill] sm:$0xff] }
0x16be   :  { %v11098_v21 = vrot.slane %v10993_v7, %v17899_v23  ;;  %v11537_v45 = vpop.f32.mrf.mxu1  ;;  %v18096_v7 = vld [vmem:[#allocation145_spill] sm:$0xff] }
0x16bf   :  { %v11740_v0 = vmul.f32 %v11537_v45, %v17603_v15  ;;  %v11794_v52 = vadd.f32 %v11793_v3, %v11738_v38 }
0x16c0   :  { %v11100_v61 = vsel %vm11099_vm2, %v11098_v21, %v11093_v26  ;;  %v11539_v31 = vpop.f32.mrf.mxu1  ;;  %v11705_v26 = vld [vmem:[#allocation76 + $0x160] sm:$0xff] }
0x16c1   :  { %v11107_v37 = vsel %vm11106_vm3, %v11105_v58, %v11100_v61  ;;  %v11797_v18 = vadd.f32 %v11740_v0, %v11739_v2  ;;  %11795 = vadd.xlane.f32.xlu0 %v11794_v52  ;;  %v11742_v24 = vmul.f32 %v11539_v31, %v17611_v11  ;;  %v11750_v2 = vmul.f32 %v11702_v10, %v11649_v54  ;;  %v18097_v52 = vld [vmem:[#allocation146_spill] sm:$0xff]  ;;  %v18098_v31 = vld [vmem:[#allocation147_spill] sm:$0xff] }
0x16c2   :  { %11109 = vst [vmem:[%s16710_s9] sm:$0x1] %v11107_v37  ;;  %v11541_v35 = vpop.f32.mrf.mxu1 }
0x16c3   :  { %v11743_v4 = vmul.f32 %v11541_v35, %v17613_v50  ;;  %v11798_v42 = vadd.f32 %v11797_v18, %v11741_v30  ;;  %v11753_v35 = vmul.f32 %v13708_v63, %v11705_v26  ;;  %v18105_v26 = vld [vmem:[#allocation152_spill] sm:$0xff] }
0x16c4   :  { %v11545_v15 = vpop.f32.mrf.mxu1 }
0x16c5   :  { %v11801_v32 = vadd.f32 %v11743_v4, %v11742_v24  ;;  %11799 = vadd.xlane.f32.xlu1 %v11798_v42  ;;  %v11745_v38 = vmul.f32 %v11545_v15, %v18093_v25  ;;  %v11708_v24 = vld [vmem:[#allocation76 + $0x178] sm:$0xff] }
0x16c6   :  { %v11547_v20 = vpop.f32.mrf.mxu1  ;;  %v18099_v42 = vld [vmem:[#allocation148_spill] sm:$0xff] }
0x16c7   :  { %v11746_v13 = vmul.f32 %v11547_v20, %v18094_v55  ;;  %v11802_v49 = vadd.f32 %v11801_v32, %v11744_v6  ;;  %v11756_v32 = vmul.f32 %v13709_v62, %v11708_v24 }
0x16c8   :  { %v11549_v19 = vpop.f32.mrf.mxu1 }
0x16c9   :  { %v11805_v11 = vadd.f32 %v11746_v13, %v11745_v38  ;;  %11803 = vadd.xlane.f32.xlu0 %v11802_v49  ;;  %v11748_v3 = vmul.f32 %v11549_v19, %v18095_v56 }
0x16ca   :  { %v11551_v50 = vpop.f32.mrf.mxu1 }
0x16cb   :  { %v11749_v28 = vmul.f32 %v11551_v50, %v18096_v7  ;;  %v11806_v58 = vadd.f32 %v11805_v11, %v11747_v51  ;;  %v18102_v7 = vld [vmem:[#allocation154_spill] sm:$0xff] }
0x16cc   :  { %v11555_v21 = vpop.f32.mrf.mxu1 }
0x16cd   :  { %v11809_v45 = vadd.f32 %v11749_v28, %v11748_v3  ;;  %11807 = vadd.xlane.f32.xlu1 %v11806_v58  ;;  %v11751_v61 = vmul.f32 %v11555_v21, %v18097_v52  ;;  %v18103_v58 = vld [vmem:[#allocation151_spill] sm:$0xff] }
0x16ce   :  { %v11557_v0 = vpop.f32.mrf.mxu1 }
0x16cf   :  { %v11752_v30 = vmul.f32 %v11557_v0, %v18098_v31  ;;  %v11810_v37 = vadd.f32 %v11809_v45, %v11750_v2  ;;  %v18104_v45 = vld [vmem:[#allocation155_spill] sm:$0xff]  ;;  %v18106_v31 = vld [vmem:[#allocation153_spill] sm:$0xff] }
0x16d0   :  { %v11559_v18 = vpop.f32.mrf.mxu1 }
0x16d1   :  { %v11813_v59 = vadd.f32 %v11752_v30, %v11751_v61  ;;  %11811 = vadd.xlane.f32.xlu0 %v11810_v37  ;;  %v11754_v15 = vmul.f32 %v11559_v18, %v18099_v42 }
0x16d2   :  { %v11561_v4 = vpop.f32.mrf.mxu1 }
0x16d3   :  { %v11755_v33 = vmul.f32 %v11561_v4, %v18100_v60  ;;  %v11814_v6 = vadd.f32 %v11813_v59, %v11753_v35 }
0x16d5   :  { %v11817_v20 = vadd.f32 %v11755_v33, %v11754_v15  ;;  %11815 = vadd.xlane.f32.xlu1 %v11814_v6 }
0x16d7   :  { %v11818_v25 = vadd.f32 %v11817_v20, %v11756_v32 }
0x16d9   :  { %11819 = vadd.xlane.f32.xlu0 %v11818_v25 }
0x16e6   :  { %11888 = vbcast.lane.b32.xlu1 %v17649_v16, 376 }
0x16ef   :  { %11884 = vbcast.lane.b32.xlu0 %v17649_v16, 368 }
0x1728   :  { %v11760_v38 = vpop.xlane.xlu0 %11759 }
0x1729   :  { %v11906_v63 = vadd.f32 %v17739_v8, %v11760_v38 }
0x172b   :  { %11939 = vperm.xlu0 %13827, %v11906_v63  }
0x172c   :  { %v11764_v55 = vpop.xlane.xlu1 %11763 }
0x172d   :  { %v11907_v13 = vadd.f32 %v17749_v1, %v11764_v55  ;;  %v18107_v55 = vld [vmem:[#allocation156_spill] sm:$0xff] }
0x172e   :  { %v11768_v51 = vpop.xlane.xlu0 %11767 }
0x172f   :  { %v11908_v49 = vadd.f32 %v17753_v5, %v11768_v51  ;;  %11942 = vperm.xlu1 %13826, %v11907_v13   ;;  %v18101_v5 = vld [vmem:[#allocation150_spill] sm:$0xff] }
0x1731   :  { %11945 = vperm.xlu0 %13827, %v11908_v49  }
0x1732   :  { %v11772_v62 = vpop.xlane.xlu0 %11771 }
0x1733   :  { %v11909_v19 = vadd.f32 %v17741_v57, %v11772_v62 }
0x1735   :  { %11948 = vperm.xlu1 %13826, %v11909_v19  }
0x1736   :  { %v11776_v11 = vpop.xlane.xlu1 %11775 }
0x1737   :  { %v11910_v50 = vadd.f32 %v17757_v34, %v11776_v11 }
0x1739   :  { %11951 = vperm.xlu0 %13827, %v11910_v50  }
0x173a   :  { %v11780_v16 = vpop.xlane.xlu0 %11779 }
0x173b   :  { %v11911_v8 = vadd.f32 %v17743_v53, %v11780_v16 }
0x173d   :  { %11954 = vperm.xlu1 %13826, %v11911_v8  }
0x173e   :  { %v11784_v54 = vpop.xlane.xlu1 %11783 }
0x173f   :  { %v11912_v1 = vadd.f32 %v17745_v41, %v11784_v54 }
0x1741   :  { %11957 = vperm.xlu0 %13827, %v11912_v1  }
0x1742   :  { %v11788_v10 = vpop.xlane.xlu0 %11787 }
0x1743   :  { %v11913_v56 = vadd.f32 %v18101_v5, %v11788_v10 }
0x1745   :  { %11960 = vperm.xlu1 %13826, %v11913_v56  }
0x1746   :  { %v11792_v3 = vpop.xlane.xlu1 %11791 }
0x1747   :  { %v11914_v57 = vadd.f32 %v18102_v7, %v11792_v3 }
0x1749   :  { %11963 = vperm.xlu0 %13827, %v11914_v57  }
0x174a   :  { %v11796_v28 = vpop.xlane.xlu0 %11795 }
0x174b   :  { %v11915_v34 = vadd.f32 %v18103_v58, %v11796_v28 }
0x174d   :  { %11966 = vperm.xlu1 %13826, %v11915_v34  }
0x174e   :  { %v11800_v21 = vpop.xlane.xlu1 %11799 }
0x174f   :  { %v11916_v53 = vadd.f32 %v18104_v45, %v11800_v21 }
0x1751   :  { %11969 = vperm.xlu0 %13827, %v11916_v53  }
0x1752   :  { %v11804_v2 = vpop.xlane.xlu0 %11803 }
0x1753   :  { %v11917_v41 = vadd.f32 %v18105_v26, %v11804_v2 }
0x1755   :  { %11972 = vperm.xlu1 %13826, %v11917_v41  }
0x1756   :  { %v11808_v0 = vpop.xlane.xlu1 %11807 }
0x1757   :  { %v11918_v52 = vadd.f32 %v17782_v44, %v11808_v0 }
0x1759   :  { %11975 = vperm.xlu0 %13827, %v11918_v52  }
0x175a   :  { %v11812_v61 = vpop.xlane.xlu0 %11811 }
0x175b   :  { %v11919_v30 = vadd.f32 %v18106_v31, %v11812_v61 }
0x175d   :  { %11978 = vperm.xlu1 %13826, %v11919_v30  }
0x175e   :  { %v11816_v37 = vpop.xlane.xlu1 %11815 }
0x1762   :  { %v11820_v18 = vpop.xlane.xlu0 %11819  ;;  %v11889_v35 = vpop.permute.xlu1 %11888 }
0x1763   :  { %v11921_v59 = vadd.f32 %v11889_v35, %v11820_v18 }
0x1765   :  { %11984 = vperm.xlu1 %13826, %v11921_v59  }
0x1766   :  { %v11885_v24 = vpop.permute.xlu0 %11884 }
0x1767   :  { %v11920_v4 = vadd.f32 %v11885_v24, %v11816_v37 }
0x1769   :  { %11981 = vperm.xlu0 %13827, %v11920_v4  }
0x17a6   :  { %v11940_v42 = vpop.permute.xlu0 %11939 }
0x17a7   :  { %v11989_v38 = vrot.slane %v11940_v42, %v17791_v47 }
0x17aa   :  { %v11943_v15 = vpop.permute.xlu1 %11942 }
0x17ab   :  { %v11993_v25 = vrot.slane %v11943_v15, %v17797_v17 }
0x17ac   :  { %v11946_v60 = vpop.permute.xlu0 %11945 }
0x17ad   :  { %v11998_v13 = vrot.slane %v11946_v60, %v18107_v55  ;;  %v11994_v49 = vsel %vm11008_vm5, %v11993_v25, %v11989_v38 }
0x17af   :  { %v11999_v16 = vsel %vm11015_vm6, %v11998_v13, %v11994_v49 }
0x17b0   :  { %v11949_v33 = vpop.permute.xlu1 %11948 }
0x17b1   :  { %v12003_v62 = vrot.slane %v11949_v33, %v17802_v22 }
0x17b3   :  { %v12004_v47 = vsel %vm11022_vm7, %v12003_v62, %v11999_v16 }
0x17b4   :  { %v11952_v6 = vpop.permute.xlu0 %11951 }
0x17b5   :  { %v12008_v19 = vrot.slane %v11952_v6, %v17809_v12 }
0x17b7   :  { %v12009_v1 = vsel %vm11029_vm8, %v12008_v19, %v12004_v47 }
0x17b8   :  { %v11955_v32 = vpop.permute.xlu1 %11954 }
0x17b9   :  { %v12013_v11 = vrot.slane %v11955_v32, %v17822_v14 }
0x17bb   :  { %v12014_v22 = vsel %vm11036_vm9, %v12013_v11, %v12009_v1 }
0x17bc   :  { %v11958_v44 = vpop.permute.xlu0 %11957 }
0x17bd   :  { %v12018_v8 = vrot.slane %v11958_v44, %v17830_v40 }
0x17bf   :  { %v12019_v14 = vsel %vm11043_vm10, %v12018_v8, %v12014_v22 }
0x17c0   :  { %v11961_v20 = vpop.permute.xlu1 %11960 }
0x17c1   :  { %v12023_v54 = vrot.slane %v11961_v20, %v17842_v36 }
0x17c3   :  { %v12024_v40 = vsel %vm11050_vm11, %v12023_v54, %v12019_v14 }
0x17c4   :  { %v11964_v63 = vpop.permute.xlu0 %11963 }
0x17c5   :  { %v12028_v10 = vrot.slane %v11964_v63, %v17846_v27 }
0x17c7   :  { %v12029_v36 = vsel %vm11057_vm12, %v12028_v10, %v12024_v40 }
0x17c8   :  { %v11967_v51 = vpop.permute.xlu1 %11966 }
0x17c9   :  { %v12033_v12 = vrot.slane %v11967_v51, %v17855_v39 }
0x17cb   :  { %v12034_v27 = vsel %vm11064_vm13, %v12033_v12, %v12029_v36 }
0x17cc   :  { %v11970_v50 = vpop.permute.xlu0 %11969 }
0x17cd   :  { %v12038_v56 = vrot.slane %v11970_v50, %v17865_v9 }
0x17cf   :  { %v12039_v39 = vsel %vm11071_vm14, %v12038_v56, %v12034_v27 }
0x17d0   :  { %v11973_v17 = vpop.permute.xlu1 %11972 }
0x17d1   :  { %v12043_v7 = vrot.slane %v11973_v17, %v17862_v48 }
0x17d3   :  { %v12044_v34 = vsel %vm11078_vm15, %v12043_v7, %v12039_v39 }
0x17d4   :  { %v11976_v5 = vpop.permute.xlu0 %11975 }
0x17d5   :  { %v12048_v57 = vrot.slane %v11976_v5, %v17882_v29 }
0x17d7   :  { %v12049_v21 = vsel %vm11085_vm0, %v12048_v57, %v12044_v34 }
0x17d8   :  { %v11979_v3 = vpop.permute.xlu1 %11978 }
0x17d9   :  { %v12053_v28 = vrot.slane %v11979_v3, %v17891_v46 }
0x17db   :  { %v12054_v48 = vsel %vm11092_vm1, %v12053_v28, %v12049_v21 }
0x17e0   :  { %v11985_v58 = vpop.permute.xlu1 %11984 }
0x17e1   :  { %v12063_v53 = vrot.slane %v11985_v58, %v17895_v43 }
0x17e4   :  { %v11982_v9 = vpop.permute.xlu0 %11981 }
0x17e5   :  { %v12058_v45 = vrot.slane %v11982_v9, %v17899_v23 }
0x17e7   :  { %v12059_v29 = vsel %vm11099_vm2, %v12058_v45, %v12054_v48 }
0x17e8   :  { %v12064_v2 = vsel %vm11106_vm3, %v12063_v53, %v12059_v29 }
0x17e9   :  { %12066 = vst [vmem:[%s16710_s9 + $0x1] sm:$0x1] %v12064_v2 }
0x17ea   :  { %12071 = vsyncpa [#allocation4], 1 }
0x17eb   :  { %12072 = vsyncpa [#allocation6], 1 }
0x17ec   :  { %12073 = vsyncpa [#allocation9], 1 }
0x17ed   :  { %12074 = vsyncpa [#allocation12], 1 }
0x17ee   :  { %12075 = vsyncpa [#allocation15], 1 }
0x17ef   :  { %12076 = vsyncpa [#allocation18], 1 }
0x17f0   :  { %12077 = vsyncpa [#allocation21], 1 }
0x17f1   :  { %12078 = vsyncpa [#allocation24], 1 }
0x17f2   :  { %12079 = vsyncpa [#allocation27], 1 }
0x17f3   :  { %12080 = vsyncpa [#allocation30], 1 }
0x17f4   :  { %12081 = vsyncpa [#allocation33], 1 }
0x17f5   :  { %12082 = vsyncpa [#allocation36], 1 }
0x17f6   :  { %12083 = vsyncpa [#allocation39], 1 }
0x17f7   :  { %12084 = vsyncpa [#allocation42], 1 }
0x17f8   :  { %12085 = vsyncpa [#allocation45], 1 }
0x17f9   :  { %12086 = vsyncpa [#allocation48], 1 }
0x17fa   :  { %12087 = vsyncpa [#allocation51], 1 }
0x17fb   :  { %12088 = vsyncpa [#allocation54], 1 }
0x17fc   :  { %12089 = vsyncpa [#allocation57], 1 }
0x17fd   :  { %12090 = vsyncpa [#allocation60], 1 }
0x17fe   :  { %12091 = vsyncpa [#allocation63], 1 }
0x17ff   :  { %12092 = vsyncpa [#allocation66], 1 }
0x1800   :  { %12093 = vsyncpa [#allocation69], 1 }
0x1801   :  { %12094 = vsyncpa [#allocation72], 1 }
0x1802   :  { %12095 = vsyncpa [#allocation75], 1 }

</bundles_post_ra>
